<compile_context>
chip_gen: v5e
topology: v5e:2x2
jax: 0.10.0
libtpu: 0.0.40
codegen_flags: <defaults>
</compile_context>

<pallas_src>
import functools

import jax
import jax.numpy as jnp
from jax.experimental import pallas as pl
from jax.experimental.pallas import tpu as pltpu


BN_EPS = 1e-5
HIDDEN_DIMS = (128, 256, 512, 1024)
F_PAD = 128   # padded input-feature width (lane aligned)
C_PAD = 128   # padded class width (lane-dense final store)


# ----------------------------------------------------------------------------
# Fused Pallas kernel: all 5 SAGEConv(mean) layers + ReLU/BN + log_softmax
# ----------------------------------------------------------------------------
def net_fused_kernel(a_ref, x_ref,
                     w1_ref, b1_ref, t1_ref,
                     w2_ref, b2_ref, t2_ref,
                     w3_ref, b3_ref, t3_ref,
                     w4_ref, b4_ref, t4_ref,
                     w5_ref, b5_ref,
                     o_ref, *, c_pad: int):
    a = a_ref[...]                                   # [N, N]    bf16, reused by all layers
    h = x_ref[...]                                   # [N, F_PAD] bf16

    def sage_relu_bn(h, w_ref, b_ref, t_ref):
        # mean aggregation over incoming neighbors (dense row-normalized adjacency)
        agg = jnp.dot(a, h, preferred_element_type=jnp.float32)          # [N, Fin] f32
        # merged SAGEConv projection: [agg | x] @ [W_l ; W_r] + b (BN scale pre-folded)
        cat = jnp.concatenate([agg.astype(jnp.bfloat16), h], axis=1)     # [N, 2*Fin] bf16
        z = jnp.dot(cat, w_ref[...], preferred_element_type=jnp.float32) + b_ref[...]
        # ReLU -> Dropout(eval: identity) -> BatchNorm1d(eval): only the shift remains
        z = jnp.maximum(z, 0.0) + t_ref[...]
        return z.astype(jnp.bfloat16)

    h = sage_relu_bn(h, w1_ref, b1_ref, t1_ref)
    h = sage_relu_bn(h, w2_ref, b2_ref, t2_ref)
    h = sage_relu_bn(h, w3_ref, b3_ref, t3_ref)
    h = sage_relu_bn(h, w4_ref, b4_ref, t4_ref)

    # Layer 5 (1024 -> c_pad): Fout << Fin, so compute A @ (h @ W_l) instead of
    # (A @ h) @ W_l.  w5 = [W_l | W_r] merged along columns (single projection matmul).
    z = jnp.dot(h, w5_ref[...], preferred_element_type=jnp.float32)      # [N, 2*c_pad]
    zl = z[:, :c_pad]
    zr = z[:, c_pad:]
    out = (jnp.dot(a, zl.astype(jnp.bfloat16), preferred_element_type=jnp.float32)
           + zr + b5_ref[...])                                           # [N, c_pad] f32

    # log_softmax(dim=1); padded class columns carry a -1e9 bias -> exp underflows to 0
    m = jnp.max(out, axis=1, keepdims=True)
    lse = jnp.log(jnp.sum(jnp.exp(out - m), axis=1, keepdims=True)) + m
    o_ref[...] = out - lse


def net_forward(a_norm, x_pad, kparams, num_classes):
    n = x_pad.shape[0]
    c_pad = kparams["b5"].shape[1]
    (w1, b1, t1), (w2, b2, t2), (w3, b3, t3), (w4, b4, t4) = kparams["layers"]
    w5, b5 = kparams["w5"], kparams["b5"]

    full = lambda shape: pl.BlockSpec(shape, lambda: (0,) * len(shape))
    kernel = functools.partial(net_fused_kernel, c_pad=c_pad)

    out_pad = pl.pallas_call(
        kernel,
        out_shape=jax.ShapeDtypeStruct((n, c_pad), jnp.float32),
        in_specs=[full(a_norm.shape), full(x_pad.shape),
                  full(w1.shape), full(b1.shape), full(t1.shape),
                  full(w2.shape), full(b2.shape), full(t2.shape),
                  full(w3.shape), full(b3.shape), full(t3.shape),
                  full(w4.shape), full(b4.shape), full(t4.shape),
                  full(w5.shape), full(b5.shape)],
        out_specs=full((n, c_pad)),
        # 48 MiB: within v7x's 64 MiB physical VMEM as well as v5e/v6e's 128 MiB.
        compiler_params=pltpu.CompilerParams(vmem_limit_bytes=48 << 20),
    )(a_norm, x_pad,
      w1, b1, t1, w2, b2, t2, w3, b3, t3, w4, b4, t4, w5, b5)
    return out_pad[:, :num_classes]


# ----------------------------------------------------------------------------
# Parameters (PyTorch layout) + prep into the packed kernel layout
# ----------------------------------------------------------------------------
def init_params(key, num_features, num_classes):
    """Per layer: W_l (neighbor), W_r (root), b  +  BN(gamma, beta, mean, var)."""
    dims = [num_features, *HIDDEN_DIMS, num_classes]
    params = []
    for i in range(5):
        f_in, f_out = dims[i], dims[i + 1]
        key, k1, k2, k3 = jax.random.split(key, 4)
        scale = 1.0 / jnp.sqrt(jnp.float32(f_in))
        w_l = jax.random.normal(k1, (f_in, f_out), jnp.float32) * scale
        w_r = jax.random.normal(k2, (f_in, f_out), jnp.float32) * scale
        b = jax.random.normal(k3, (f_out,), jnp.float32) * 0.01
        bn = None
        if i < 4:
            # BatchNorm1d eval with default running stats
            bn = dict(gamma=jnp.ones((f_out,), jnp.float32),
                      beta=jnp.zeros((f_out,), jnp.float32),
                      mean=jnp.zeros((f_out,), jnp.float32),
                      var=jnp.ones((f_out,), jnp.float32))
        params.append(dict(w_l=w_l, w_r=w_r, b=b, bn=bn))
    return params


def prepare_kernel_params(params, num_features, num_classes):
    """Fold BN-eval scale into weights/bias, pad feature/class dims, stack the two
    projection matrices per layer, cast MXU operands to bf16."""
    layers = []
    for i in range(4):
        p = params[i]
        w_l, w_r, b = p["w_l"], p["w_r"], p["b"]
        if i == 0:  # pad input-feature rows to F_PAD (zeros contribute nothing)
            pad = F_PAD - num_features
            w_l = jnp.pad(w_l, ((0, pad), (0, 0)))
            w_r = jnp.pad(w_r, ((0, pad), (0, 0)))
        bn = p["bn"]
        s = bn["gamma"] / jnp.sqrt(bn["var"] + BN_EPS)        # > 0
        t = bn["beta"] - bn["mean"] * s
        w = jnp.concatenate([w_l, w_r], axis=0) * s[None, :]  # [2*Fin, Fout]
        layers.append((w.astype(jnp.bfloat16),
                       (b * s)[None, :].astype(jnp.float32),
                       t[None, :].astype(jnp.float32)))
    # layer 5: pad class columns to C_PAD, merge [W_l | W_r] along columns
    p = params[4]
    pad_c = C_PAD - num_classes
    w_l = jnp.pad(p["w_l"], ((0, 0), (0, pad_c)))
    w_r = jnp.pad(p["w_r"], ((0, 0), (0, pad_c)))
    w5 = jnp.concatenate([w_l, w_r], axis=1).astype(jnp.bfloat16)   # [1024, 2*C_PAD]
    b5 = jnp.pad(p["b"], (0, pad_c), constant_values=-1e9)[None, :].astype(jnp.float32)
    return dict(layers=layers, w5=w5, b5=b5)


def precompute_adjacency(edge_index, num_nodes):
    # edge_index: [2, E]; row 0 = source, row 1 = target (messages flow src -> dst,
    # mean over incoming edges at the target).  Normalization kept in f32.
    src, dst = edge_index[0], edge_index[1]
    a = jnp.zeros((num_nodes, num_nodes), jnp.float32)
    a = a.at[dst, src].add(1.0)
    deg = jnp.sum(a, axis=1, keepdims=True)
    a = a / jnp.maximum(deg, 1.0)
    return a.astype(jnp.bfloat16)       # bf16 MXU operand; halves A_norm bytes


def pad_features(x):
    n, f = x.shape
    return jnp.pad(x, ((0, 0), (0, F_PAD - f))).astype(jnp.bfloat16)


if __name__ == "__main__":
    NUM_NODES = 64
    NUM_FEATURES = 32
    NUM_CLASSES = 8
    NUM_EDGES = 256

    key = jax.random.PRNGKey(0)
    kx, ke, kp = jax.random.split(key, 3)

    x = jax.random.normal(kx, (NUM_NODES, NUM_FEATURES), jnp.float32)
    edge_index = jax.random.randint(ke, (2, NUM_EDGES), 0, NUM_NODES, jnp.int32)

    params = init_params(kp, NUM_FEATURES, NUM_CLASSES)
    kparams = prepare_kernel_params(params, NUM_FEATURES, NUM_CLASSES)
    a_norm = precompute_adjacency(edge_index, NUM_NODES)   # built once per graph
    x_pad = pad_features(x)

    out = net_forward(a_norm, x_pad, kparams, NUM_CLASSES)
    out = jax.block_until_ready(out)

    assert out.shape == (NUM_NODES, NUM_CLASSES)
    # log_softmax rows must (exp-)sum to ~1
    row_sums = jnp.sum(jnp.exp(out), axis=1)
    assert jnp.allclose(row_sums, 1.0, atol=1e-4)
    print("KERNEL_OK")
</pallas_src>

<mosaic_0001>
module attributes {stable_mosaic.version = 11 : i64} {
  func.func @net_fused_kernel(%arg0: memref<64x64xbf16, #tpu.memory_space<vmem>>, %arg1: memref<64x128xbf16, #tpu.memory_space<vmem>>, %arg2: memref<256x128xbf16, #tpu.memory_space<vmem>>, %arg3: memref<1x128xf32, #tpu.memory_space<vmem>>, %arg4: memref<1x128xf32, #tpu.memory_space<vmem>>, %arg5: memref<256x256xbf16, #tpu.memory_space<vmem>>, %arg6: memref<1x256xf32, #tpu.memory_space<vmem>>, %arg7: memref<1x256xf32, #tpu.memory_space<vmem>>, %arg8: memref<512x512xbf16, #tpu.memory_space<vmem>>, %arg9: memref<1x512xf32, #tpu.memory_space<vmem>>, %arg10: memref<1x512xf32, #tpu.memory_space<vmem>>, %arg11: memref<1024x1024xbf16, #tpu.memory_space<vmem>>, %arg12: memref<1x1024xf32, #tpu.memory_space<vmem>>, %arg13: memref<1x1024xf32, #tpu.memory_space<vmem>>, %arg14: memref<1024x256xbf16, #tpu.memory_space<vmem>>, %arg15: memref<1x128xf32, #tpu.memory_space<vmem>>, %arg16: memref<64x128xf32, #tpu.memory_space<vmem>>) attributes {dimension_semantics = [], scalar_prefetch = 0 : i64, scratch_operands = 0 : i64, tpu.core_type = #tpu.core_type<tc>} {
    %c0 = arith.constant 0 : index
    %c0_0 = arith.constant 0 : index
    %0 = vector.load %arg0[%c0, %c0_0] : memref<64x64xbf16, #tpu.memory_space<vmem>>, vector<64x64xbf16>
    %c0_1 = arith.constant 0 : index
    %c0_2 = arith.constant 0 : index
    %1 = vector.load %arg1[%c0_1, %c0_2] : memref<64x128xbf16, #tpu.memory_space<vmem>>, vector<64x128xbf16>
    %cst = arith.constant dense<0.000000e+00> : vector<64x128xf32>
    %2 = tpu.matmul %0, %1, %cst {dimension_numbers = #tpu.dot_dimension_numbers<[1], [0], [0], [1], [0, 0, 1, 1], [], []>} : vector<64x64xbf16>, vector<64x128xbf16>, vector<64x128xf32> -> vector<64x128xf32>
    %3 = arith.truncf %2 : vector<64x128xf32> to vector<64x128xbf16>
    %4 = tpu.concatenate %3, %1 in 1 : vector<64x128xbf16>, vector<64x128xbf16> -> vector<64x256xbf16>
    %c0_3 = arith.constant 0 : index
    %c0_4 = arith.constant 0 : index
    %5 = vector.load %arg2[%c0_3, %c0_4] : memref<256x128xbf16, #tpu.memory_space<vmem>>, vector<256x128xbf16>
    %cst_5 = arith.constant dense<0.000000e+00> : vector<64x128xf32>
    %6 = tpu.matmul %4, %5, %cst_5 {dimension_numbers = #tpu.dot_dimension_numbers<[1], [0], [0], [1], [0, 0, 1, 1], [], []>} : vector<64x256xbf16>, vector<256x128xbf16>, vector<64x128xf32> -> vector<64x128xf32>
    %c0_6 = arith.constant 0 : index
    %c0_7 = arith.constant 0 : index
    %7 = vector.load %arg3[%c0_6, %c0_7] : memref<1x128xf32, #tpu.memory_space<vmem>>, vector<1x128xf32>
    %8 = vector.broadcast %7 : vector<1x128xf32> to vector<64x128xf32>
    %9 = arith.addf %6, %8 : vector<64x128xf32>
    %cst_8 = arith.constant 0.000000e+00 : f32
    %10 = vector.broadcast %cst_8 : f32 to vector<64x128xf32>
    %11 = arith.maximumf %9, %10 : vector<64x128xf32>
    %c0_9 = arith.constant 0 : index
    %c0_10 = arith.constant 0 : index
    %12 = vector.load %arg4[%c0_9, %c0_10] : memref<1x128xf32, #tpu.memory_space<vmem>>, vector<1x128xf32>
    %13 = vector.broadcast %12 : vector<1x128xf32> to vector<64x128xf32>
    %14 = arith.addf %11, %13 : vector<64x128xf32>
    %15 = arith.truncf %14 : vector<64x128xf32> to vector<64x128xbf16>
    %cst_11 = arith.constant dense<0.000000e+00> : vector<64x128xf32>
    %16 = tpu.matmul %0, %15, %cst_11 {dimension_numbers = #tpu.dot_dimension_numbers<[1], [0], [0], [1], [0, 0, 1, 1], [], []>} : vector<64x64xbf16>, vector<64x128xbf16>, vector<64x128xf32> -> vector<64x128xf32>
    %17 = arith.truncf %16 : vector<64x128xf32> to vector<64x128xbf16>
    %18 = tpu.concatenate %17, %15 in 1 : vector<64x128xbf16>, vector<64x128xbf16> -> vector<64x256xbf16>
    %c0_12 = arith.constant 0 : index
    %c0_13 = arith.constant 0 : index
    %19 = vector.load %arg5[%c0_12, %c0_13] : memref<256x256xbf16, #tpu.memory_space<vmem>>, vector<256x256xbf16>
    %cst_14 = arith.constant dense<0.000000e+00> : vector<64x256xf32>
    %20 = tpu.matmul %18, %19, %cst_14 {dimension_numbers = #tpu.dot_dimension_numbers<[1], [0], [0], [1], [0, 0, 1, 1], [], []>} : vector<64x256xbf16>, vector<256x256xbf16>, vector<64x256xf32> -> vector<64x256xf32>
    %c0_15 = arith.constant 0 : index
    %c0_16 = arith.constant 0 : index
    %21 = vector.load %arg6[%c0_15, %c0_16] : memref<1x256xf32, #tpu.memory_space<vmem>>, vector<1x256xf32>
    %22 = vector.broadcast %21 : vector<1x256xf32> to vector<64x256xf32>
    %23 = arith.addf %20, %22 : vector<64x256xf32>
    %cst_17 = arith.constant 0.000000e+00 : f32
    %24 = vector.broadcast %cst_17 : f32 to vector<64x256xf32>
    %25 = arith.maximumf %23, %24 : vector<64x256xf32>
    %c0_18 = arith.constant 0 : index
    %c0_19 = arith.constant 0 : index
    %26 = vector.load %arg7[%c0_18, %c0_19] : memref<1x256xf32, #tpu.memory_space<vmem>>, vector<1x256xf32>
    %27 = vector.broadcast %26 : vector<1x256xf32> to vector<64x256xf32>
    %28 = arith.addf %25, %27 : vector<64x256xf32>
    %29 = arith.truncf %28 : vector<64x256xf32> to vector<64x256xbf16>
    %cst_20 = arith.constant dense<0.000000e+00> : vector<64x256xf32>
    %30 = tpu.matmul %0, %29, %cst_20 {dimension_numbers = #tpu.dot_dimension_numbers<[1], [0], [0], [1], [0, 0, 1, 1], [], []>} : vector<64x64xbf16>, vector<64x256xbf16>, vector<64x256xf32> -> vector<64x256xf32>
    %31 = arith.truncf %30 : vector<64x256xf32> to vector<64x256xbf16>
    %32 = tpu.concatenate %31, %29 in 1 : vector<64x256xbf16>, vector<64x256xbf16> -> vector<64x512xbf16>
    %c0_21 = arith.constant 0 : index
    %c0_22 = arith.constant 0 : index
    %33 = vector.load %arg8[%c0_21, %c0_22] : memref<512x512xbf16, #tpu.memory_space<vmem>>, vector<512x512xbf16>
    %cst_23 = arith.constant dense<0.000000e+00> : vector<64x512xf32>
    %34 = tpu.matmul %32, %33, %cst_23 {dimension_numbers = #tpu.dot_dimension_numbers<[1], [0], [0], [1], [0, 0, 1, 1], [], []>} : vector<64x512xbf16>, vector<512x512xbf16>, vector<64x512xf32> -> vector<64x512xf32>
    %c0_24 = arith.constant 0 : index
    %c0_25 = arith.constant 0 : index
    %35 = vector.load %arg9[%c0_24, %c0_25] : memref<1x512xf32, #tpu.memory_space<vmem>>, vector<1x512xf32>
    %36 = vector.broadcast %35 : vector<1x512xf32> to vector<64x512xf32>
    %37 = arith.addf %34, %36 : vector<64x512xf32>
    %cst_26 = arith.constant 0.000000e+00 : f32
    %38 = vector.broadcast %cst_26 : f32 to vector<64x512xf32>
    %39 = arith.maximumf %37, %38 : vector<64x512xf32>
    %c0_27 = arith.constant 0 : index
    %c0_28 = arith.constant 0 : index
    %40 = vector.load %arg10[%c0_27, %c0_28] : memref<1x512xf32, #tpu.memory_space<vmem>>, vector<1x512xf32>
    %41 = vector.broadcast %40 : vector<1x512xf32> to vector<64x512xf32>
    %42 = arith.addf %39, %41 : vector<64x512xf32>
    %43 = arith.truncf %42 : vector<64x512xf32> to vector<64x512xbf16>
    %cst_29 = arith.constant dense<0.000000e+00> : vector<64x512xf32>
    %44 = tpu.matmul %0, %43, %cst_29 {dimension_numbers = #tpu.dot_dimension_numbers<[1], [0], [0], [1], [0, 0, 1, 1], [], []>} : vector<64x64xbf16>, vector<64x512xbf16>, vector<64x512xf32> -> vector<64x512xf32>
    %45 = arith.truncf %44 : vector<64x512xf32> to vector<64x512xbf16>
    %46 = tpu.concatenate %45, %43 in 1 : vector<64x512xbf16>, vector<64x512xbf16> -> vector<64x1024xbf16>
    %c0_30 = arith.constant 0 : index
    %c0_31 = arith.constant 0 : index
    %47 = vector.load %arg11[%c0_30, %c0_31] : memref<1024x1024xbf16, #tpu.memory_space<vmem>>, vector<1024x1024xbf16>
    %cst_32 = arith.constant dense<0.000000e+00> : vector<64x1024xf32>
    %48 = tpu.matmul %46, %47, %cst_32 {dimension_numbers = #tpu.dot_dimension_numbers<[1], [0], [0], [1], [0, 0, 1, 1], [], []>} : vector<64x1024xbf16>, vector<1024x1024xbf16>, vector<64x1024xf32> -> vector<64x1024xf32>
    %c0_33 = arith.constant 0 : index
    %c0_34 = arith.constant 0 : index
    %49 = vector.load %arg12[%c0_33, %c0_34] : memref<1x1024xf32, #tpu.memory_space<vmem>>, vector<1x1024xf32>
    %50 = vector.broadcast %49 : vector<1x1024xf32> to vector<64x1024xf32>
    %51 = arith.addf %48, %50 : vector<64x1024xf32>
    %cst_35 = arith.constant 0.000000e+00 : f32
    %52 = vector.broadcast %cst_35 : f32 to vector<64x1024xf32>
    %53 = arith.maximumf %51, %52 : vector<64x1024xf32>
    %c0_36 = arith.constant 0 : index
    %c0_37 = arith.constant 0 : index
    %54 = vector.load %arg13[%c0_36, %c0_37] : memref<1x1024xf32, #tpu.memory_space<vmem>>, vector<1x1024xf32>
    %55 = vector.broadcast %54 : vector<1x1024xf32> to vector<64x1024xf32>
    %56 = arith.addf %53, %55 : vector<64x1024xf32>
    %57 = arith.truncf %56 : vector<64x1024xf32> to vector<64x1024xbf16>
    %c0_38 = arith.constant 0 : index
    %c0_39 = arith.constant 0 : index
    %58 = vector.load %arg14[%c0_38, %c0_39] : memref<1024x256xbf16, #tpu.memory_space<vmem>>, vector<1024x256xbf16>
    %cst_40 = arith.constant dense<0.000000e+00> : vector<64x256xf32>
    %59 = tpu.matmul %57, %58, %cst_40 {dimension_numbers = #tpu.dot_dimension_numbers<[1], [0], [0], [1], [0, 0, 1, 1], [], []>} : vector<64x1024xbf16>, vector<1024x256xbf16>, vector<64x256xf32> -> vector<64x256xf32>
    %60 = vector.extract_strided_slice %59 {offsets = [0, 0], sizes = [64, 128], strides = [1, 1]} : vector<64x256xf32> to vector<64x128xf32>
    %61 = vector.extract_strided_slice %59 {offsets = [0, 128], sizes = [64, 128], strides = [1, 1]} : vector<64x256xf32> to vector<64x128xf32>
    %62 = arith.truncf %60 : vector<64x128xf32> to vector<64x128xbf16>
    %cst_41 = arith.constant dense<0.000000e+00> : vector<64x128xf32>
    %63 = tpu.matmul %0, %62, %cst_41 {dimension_numbers = #tpu.dot_dimension_numbers<[1], [0], [0], [1], [0, 0, 1, 1], [], []>} : vector<64x64xbf16>, vector<64x128xbf16>, vector<64x128xf32> -> vector<64x128xf32>
    %64 = arith.addf %63, %61 : vector<64x128xf32>
    %c0_42 = arith.constant 0 : index
    %c0_43 = arith.constant 0 : index
    %65 = vector.load %arg15[%c0_42, %c0_43] : memref<1x128xf32, #tpu.memory_space<vmem>>, vector<1x128xf32>
    %66 = vector.broadcast %65 : vector<1x128xf32> to vector<64x128xf32>
    %67 = arith.addf %64, %66 : vector<64x128xf32>
    %cst_44 = arith.constant dense<0xFF800000> : vector<64xf32>
    %68 = vector.multi_reduction <maximumf>, %67, %cst_44 [1] : vector<64x128xf32> to vector<64xf32>
    %69 = vector.shape_cast %68 : vector<64xf32> to vector<64x1xf32>
    %70 = vector.broadcast %69 : vector<64x1xf32> to vector<64x128xf32>
    %71 = arith.subf %67, %70 : vector<64x128xf32>
    %72 = math.exp %71 : vector<64x128xf32>
    %cst_45 = arith.constant dense<0.000000e+00> : vector<64xf32>
    %73 = vector.multi_reduction <add>, %72, %cst_45 [1] : vector<64x128xf32> to vector<64xf32>
    %74 = vector.shape_cast %73 : vector<64xf32> to vector<64x1xf32>
    %75 = math.log %74 : vector<64x1xf32>
    %76 = arith.addf %75, %69 : vector<64x1xf32>
    %77 = vector.broadcast %76 : vector<64x1xf32> to vector<64x128xf32>
    %78 = arith.subf %67, %77 : vector<64x128xf32>
    %c0_46 = arith.constant 0 : index
    %c0_47 = arith.constant 0 : index
    %79 = vector.load %arg16[%c0_46, %c0_47] : memref<64x128xf32, #tpu.memory_space<vmem>>, vector<64x128xf32>
    tpu.vector_store %arg16[%c0_46, %c0_47], %78 {strides = array<i32>} : memref<64x128xf32, #tpu.memory_space<vmem>>, vector<64x128xf32>,
    return
  }
}

</mosaic_0001>

<bundles_post_ra>
// kernel: tpu_custom_call.1
= control target key start
LH: loop header
LB: loop body
LE: loop exit
PB: predicated region body
PF: predicated region fallthrough
CT: control target
= control target key end

     0   :  { %s16449_s0 = inlined_call_operand.hbm [shape: bf16[64,64], index: 0, kind: input, shape index: {}]   ;;  %s16450_s1 = inlined_call_operand.hbm [shape: bf16[64,128], index: 1, kind: input, shape index: {}]   ;;  %s16451_s2 = inlined_call_operand.hbm [shape: bf16[256,128], index: 2, kind: input, shape index: {}]   ;;  %s16452_s3 = inlined_call_operand.hbm [shape: f32[1,128], index: 3, kind: input, shape index: {}]   ;;  %s16453_s4 = inlined_call_operand.hbm [shape: f32[1,128], index: 4, kind: input, shape index: {}]   ;;  %s16454_s5 = inlined_call_operand.hbm [shape: bf16[256,256], index: 5, kind: input, shape index: {}]   ;;  %s16455_s6 = inlined_call_operand.hbm [shape: f32[1,256], index: 6, kind: input, shape index: {}]   ;;  %s16456_s7 = inlined_call_operand.hbm [shape: f32[1,256], index: 7, kind: input, shape index: {}]   ;;  %s16457_s8 = inlined_call_operand.hbm [shape: bf16[512,512], index: 8, kind: input, shape index: {}]   ;;  %s16458_s9 = inlined_call_operand.hbm [shape: f32[1,512], index: 9, kind: input, shape index: {}]   ;;  %s16459_s10 = inlined_call_operand.hbm [shape: f32[1,512], index: 10, kind: input, shape index: {}]   ;;  %s16460_s11 = inlined_call_operand.hbm [shape: bf16[1024,1024], index: 11, kind: input, shape index: {}]   ;;  %s16461_s12 = inlined_call_operand.hbm [shape: f32[1,1024], index: 12, kind: input, shape index: {}]   ;;  %s16462_s13 = inlined_call_operand.hbm [shape: f32[1,1024], index: 13, kind: input, shape index: {}]   ;;  %s16463_s14 = inlined_call_operand.hbm [shape: bf16[1024,256], index: 14, kind: input, shape index: {}]   ;;  %s16464_s15 = inlined_call_operand.hbm [shape: f32[1,128], index: 15, kind: input, shape index: {}]   ;;  %s16465_s16 = inlined_call_operand.hbm [shape: f32[64,128], index: 16, kind: output, shape index: {}]  }
   0x1   :  { %16544 = sst [smem:[#allocation75_spill]] %s16449_s0 }
   0x2   :  { %21 = vsyncpa [#allocation3], 0 }
   0x3   :  { %22 = vsyncpa [#allocation6], 0 }
   0x4   :  { %23 = vsyncpa [#allocation9], 0 }
   0x5   :  { %24 = vsyncpa [#allocation12], 0 }
   0x6   :  { %25 = vsyncpa [#allocation15], 0 }
   0x7   :  { %26 = vsyncpa [#allocation18], 0 }
   0x8   :  { %27 = vsyncpa [#allocation21], 0 }
   0x9   :  { %28 = vsyncpa [#allocation24], 0 }
   0xa   :  { %29 = vsyncpa [#allocation27], 0 }
   0xb   :  { %30 = vsyncpa [#allocation4], 0  ;;  %s48_s23 = sshll.u32 %s16450_s1, 4  ;;  %s14046_s24 = smov [#allocation5]   ;;  %s49_s23 = int_to_ptr.hbm [resolvable:$true] %s48_s23 }
   0xc   :  { %s50_s25 = sshll.u32 %s14046_s24, 4  ;;  %s75_s28 = sshll.u32 %s16452_s3, 4  ;;  %s51_s25 = int_to_ptr.vmem [resolvable:$true] %s50_s25  ;;  %s76_s28 = int_to_ptr.hbm [resolvable:$true] %s75_s28 }
   0xd   :  { %s14047_s29 = smov 64   ;;  %s14048_s30 = smov 4  }
   0xe   :  { %56 = dma.hbm_to_vmem [thread:$0]  %s49_s23, 512, %s51_s25, [#allocation6], %s14047_s29, %s14047_s29, %s14048_s30  }
   0xf   :  { %s14049_s0 = smov [#allocation8]   ;;  %s96_s1 = sshll.u32 %s16454_s5, 4  ;;  %s97_s1 = int_to_ptr.hbm [resolvable:$true] %s96_s1 }
  0x10   :  { %s77_s17 = sshll.u32 %s14049_s0, 4  ;;  %s14050_s20 = smov [#allocation11]   ;;  %s78_s17 = int_to_ptr.vmem [resolvable:$true] %s77_s17 }
  0x11   :  { %80 = dma.hbm_to_vmem [thread:$0]  %s76_s28, 16, %s78_s17, [#allocation9]  }
  0x12   :  { %s98_s21 = sshll.u32 %s14050_s20, 4  ;;  %s121_s24 = sshll.u32 %s16456_s7, 4  ;;  %s99_s21 = int_to_ptr.vmem [resolvable:$true] %s98_s21  ;;  %s122_s24 = int_to_ptr.hbm [resolvable:$true] %s121_s24 }
  0x13   :  { %s14051_s26 = smov 128   ;;  %s14052_s27 = smov 8  }
  0x14   :  { %104 = dma.hbm_to_vmem [thread:$0]  %s97_s1, 4096, %s99_s21, [#allocation12], %s14051_s26, %s14051_s26, %s14052_s27  }
  0x15   :  { %s14053_s23 = smov [#allocation14]   ;;  %s145_s28 = sshll.u32 %s16458_s9, 4  ;;  %s146_s28 = int_to_ptr.hbm [resolvable:$true] %s145_s28 }
  0x16   :  { %s123_s25 = sshll.u32 %s14053_s23, 4  ;;  %s166_s7 = sshll.u32 %s16460_s11, 4  ;;  %s124_s25 = int_to_ptr.vmem [resolvable:$true] %s123_s25  ;;  %s167_s7 = int_to_ptr.hbm [resolvable:$true] %s166_s7 }
  0x17   :  { %126 = dma.hbm_to_vmem [thread:$0]  %s122_s24, 32, %s124_s25, [#allocation15]  }
  0x18   :  { %s14054_s19 = smov [#allocation17]   ;;  %s14055_s1 = smov [#allocation20]  }
  0x19   :  { %s147_s20 = sshll.u32 %s14054_s19, 4  ;;  %s168_s21 = sshll.u32 %s14055_s1, 4  ;;  %s148_s20 = int_to_ptr.vmem [resolvable:$true] %s147_s20  ;;  %s169_s21 = int_to_ptr.vmem [resolvable:$true] %s168_s21 }
  0x1a   :  { %150 = dma.hbm_to_vmem [thread:$0]  %s146_s28, 64, %s148_s20, [#allocation18]  }
  0x1b   :  { %s14056_s3 = smov 512   ;;  %s14057_s22 = smov 32  }
  0x1c   :  { %174 = dma.hbm_to_vmem [thread:$0]  %s167_s7, 65536, %s169_s21, [#allocation21], %s14056_s3, %s14056_s3, %s14057_s22  }
  0x1d   :  { %s191_s5 = sshll.u32 %s16462_s13, 4  ;;  %s14058_s24 = smov [#allocation23]   ;;  %s192_s5 = int_to_ptr.hbm [resolvable:$true] %s191_s5 }
  0x1e   :  { %s193_s25 = sshll.u32 %s14058_s24, 4  ;;  %s16545_s17 = sld [smem:[#allocation75_spill]]  ;;  %s194_s25 = int_to_ptr.vmem [resolvable:$true] %s193_s25 }
  0x1f   :  { %196 = dma.hbm_to_vmem [thread:$0]  %s192_s5, 128, %s194_s25, [#allocation24]  }
  0x20   :  { %s14059_s28 = smov [#allocation2]   ;;  %s61_s7 = sshll.u32 %s16451_s2, 4  ;;  %s62_s7 = int_to_ptr.hbm [resolvable:$true] %s61_s7 }
  0x21   :  { %s37_s19 = sshll.u32 %s14059_s28, 4  ;;  %s86_s3 = sshll.u32 %s16453_s4, 4  ;;  %s38_s19 = int_to_ptr.vmem [resolvable:$true] %s37_s19  ;;  %s87_s3 = int_to_ptr.hbm [resolvable:$true] %s86_s3 }
  0x22   :  { %s14060_s22 = smov [#allocation7]   ;;  %s14061_s9 = smov [#allocation10]  }
  0x23   :  { %s63_s23 = sshll.u32 %s14060_s22, 4  ;;  %s88_s2 = sshll.u32 %s14061_s9, 4  ;;  %s64_s23 = int_to_ptr.vmem [resolvable:$true] %s63_s23  ;;  %s89_s2 = int_to_ptr.vmem [resolvable:$true] %s88_s2 }
  0x24   :  { %s35_s18 = sshll.u32 %s16545_s17, 4  ;;  %s110_s25 = sshll.u32 %s16455_s6, 4  ;;  %s36_s18 = int_to_ptr.hbm [resolvable:$true] %s35_s18  ;;  %s111_s25 = int_to_ptr.hbm [resolvable:$true] %s110_s25 }
  0x25   :  { %43 = dma.hbm_to_vmem [thread:$0]  %s36_s18, 512, %s38_s19, [#allocation3], %s14047_s29, %s14047_s29, %s14048_s30  }
  0x26   :  { %69 = dma.hbm_to_vmem [thread:$0]  %s62_s7, 2048, %s64_s23, [#allocation6], %s14047_s29, %s14047_s29, %s14048_s30  }
  0x27   :  { %91 = dma.hbm_to_vmem [thread:$0]  %s87_s3, 16, %s89_s2, [#allocation9]  }
  0x28   :  { %s131_s4 = sshll.u32 %s16457_s8, 4  ;;  %s14062_s17 = smov [#allocation13]   ;;  %s132_s4 = int_to_ptr.hbm [resolvable:$true] %s131_s4 }
  0x29   :  { %s112_s18 = sshll.u32 %s14062_s17, 4  ;;  %s14063_s28 = smov [#allocation16]   ;;  %s113_s18 = int_to_ptr.vmem [resolvable:$true] %s112_s18 }
  0x2a   :  { %115 = dma.hbm_to_vmem [thread:$0]  %s111_s25, 32, %s113_s18, [#allocation12]  }
  0x2b   :  { %s133_s29 = sshll.u32 %s14063_s28, 4  ;;  %s14064_s30 = smov 256   ;;  %s134_s29 = int_to_ptr.vmem [resolvable:$true] %s133_s29 }
  0x2c   :  { %s14065_s19 = smov 16   ;;  %s156_s1 = sshll.u32 %s16459_s10, 4  ;;  %s157_s1 = int_to_ptr.hbm [resolvable:$true] %s156_s1 }
  0x2d   :  { %139 = dma.hbm_to_vmem [thread:$0]  %s132_s4, 16384, %s134_s29, [#allocation15], %s14064_s30, %s14064_s30, %s14065_s19  }
  0x2e   :  { %s14066_s7 = smov [#allocation19]   ;;  %s180_s3 = sshll.u32 %s16461_s12, 4  ;;  %s181_s3 = int_to_ptr.hbm [resolvable:$true] %s180_s3 }
  0x2f   :  { %s158_s13 = sshll.u32 %s14066_s7, 4  ;;  %s14067_s22 = smov [#allocation22]   ;;  %s159_s13 = int_to_ptr.vmem [resolvable:$true] %s158_s13 }
  0x30   :  { %161 = dma.hbm_to_vmem [thread:$0]  %s157_s1, 64, %s159_s13, [#allocation18]  }
  0x31   :  { %s182_s23 = sshll.u32 %s14067_s22, 4  ;;  %s201_s5 = sshll.u32 %s16463_s14, 4  ;;  %s183_s23 = int_to_ptr.vmem [resolvable:$true] %s182_s23  ;;  %s202_s5 = int_to_ptr.hbm [resolvable:$true] %s201_s5 }
  0x32   :  { %185 = dma.hbm_to_vmem [thread:$0]  %s181_s3, 128, %s183_s23, [#allocation21]  }
  0x33   :  { %s215_s25 = sshll.u32 %s16464_s15, 4  ;;  %s14068_s11 = smov [#allocation25]   ;;  %s216_s25 = int_to_ptr.hbm [resolvable:$true] %s215_s25 }
  0x34   :  { %s203_s0 = sshll.u32 %s14068_s11, 4  ;;  %s14069_s12 = smov [#allocation26]   ;;  %s204_s0 = int_to_ptr.vmem [resolvable:$true] %s203_s0 }
  0x35   :  { %209 = dma.hbm_to_vmem [thread:$0]  %s202_s5, 16384, %s204_s0, [#allocation24], %s14051_s26, %s14051_s26, %s14052_s27  }
  0x36   :  { %s217_s4 = sshll.u32 %s14069_s12, 4  ;;  %s218_s4 = int_to_ptr.vmem [resolvable:$true] %s217_s4 }
  0x37   :  { %220 = dma.hbm_to_vmem [thread:$0]  %s216_s25, 16, %s218_s4, [#allocation27]  }
  0x38   :  { %14026 = dma.done.wait [#allocation3], 512  }
  0x39   :  { %14027 = vsyncadd [#allocation3], 4294966784 }
  0x3a   :  { %14028 = dma.done.wait [#allocation6], 2560  }
  0x3b   :  { %14029 = vsyncadd [#allocation6], 4294964736 }
  0x3c   :  { %14030 = dma.done.wait [#allocation9], 32  }
  0x3d   :  { %14031 = vsyncadd [#allocation9], 4294967264 }
  0x3e   :  { %14032 = dma.done.wait [#allocation12], 4128  }
  0x3f   :  { %14033 = vsyncadd [#allocation12], 4294963168 }
  0x40   :  { %14034 = dma.done.wait [#allocation15], 16416  }
  0x41   :  { %14035 = vsyncadd [#allocation15], 4294950880 }
  0x42   :  { %14036 = dma.done.wait [#allocation18], 128  }
  0x43   :  { %14037 = vsyncadd [#allocation18], 4294967168 }
  0x44   :  { %14038 = dma.done.wait [#allocation21], 65664  }
  0x45   :  { %14039 = vsyncadd [#allocation21], 4294901632 }
  0x46   :  { %14040 = dma.done.wait [#allocation24], 16512  }
  0x47   :  { %14041 = vsyncadd [#allocation24], 4294950784 }
  0x48   :  { %14042 = dma.done.wait [#allocation27], 16  }
  0x49   :  { %14043 = vsyncadd [#allocation27], 4294967280  ;;  %v14219_v0 = vld [vmem:[#allocation5 + $0x18] sm:$0xff]  ;;  %v14222_v1 = vld [vmem:[#allocation5 + $0x10] sm:$0xff]  ;;  %vm346_vm0 = vcmask 523264   ;;  %s14070_s14 = smov [#allocation28]  }
  0x4a   :  { %363 = vmatpush.bf16.msra.mxu0 %v14219_v0  ;;  %v14225_v2 = vld [vmem:[#allocation5 + $0x8] sm:$0xff]  ;;  %v14228_v3 = vld [vmem:[#allocation5] sm:$0xff]  ;;  %v12724_v6 = vld [vmem:[#allocation7 + $0x38] sm:$0xff]  ;;  %s9354_s15 = sshll.u32 %s14070_s14, 4  ;;  %s9356_s28 = sshll.u32 %s16465_s16, 4  ;;  %s9355_s15 = int_to_ptr.vmem [resolvable:$true] %s9354_s15  ;;  %s9357_s28 = int_to_ptr.hbm [resolvable:$true] %s9356_s28 }
  0x4b   :  { %v14230_v4 = vld [vmem:[#allocation2] sm:$0xff]  ;;  %v14235_v5 = vld [vmem:[#allocation2 + $0x8] sm:$0xff]  ;;  %552 = vmatpush.bf16.msra.mxu1 %v12724_v6  ;;  %v12723_v7 = vld [vmem:[#allocation7 + $0x30] sm:$0xff]  ;;  %13533 = vmatpush.bf16.msra.mxu2 %v12724_v6 }
  0x4c   :  { %v12722_v8 = vld [vmem:[#allocation7 + $0x28] sm:$0xff]  ;;  %v12721_v9 = vld [vmem:[#allocation7 + $0x20] sm:$0xff]  ;;  %v14239_v10 = vld [vmem:[#allocation2 + $0x10] sm:$0xff] }
  0x4d   :  { %v14243_v11 = vld [vmem:[#allocation2 + $0x18] sm:$0xff]  ;;  %v12719_v13 = vld [vmem:[#allocation7 + $0x10] sm:$0xff]  ;;  %v12718_v14 = vld [vmem:[#allocation7 + $0x8] sm:$0xff] }
  0x4e   :  { %364 = vmatpush.bf16.msra.mxu0 %v14222_v1  ;;  %v12720_v12 = vld [vmem:[#allocation7 + $0x18] sm:$0xff]  ;;  %v12717_v15 = vld [vmem:[#allocation7] sm:$0xff]  ;;  %v12731_v25 = vld [vmem:[#allocation7 + $0x70] sm:$0xff] }
  0x4f   :  { %553 = vmatpush.bf16.msra.mxu1 %v12723_v7  ;;  %13534 = vmatpush.bf16.msra.mxu2 %v12723_v7  ;;  %v12732_v23 = vld [vmem:[#allocation7 + $0x78] sm:$0xff]  ;;  %v12730_v26 = vld [vmem:[#allocation7 + $0x68] sm:$0xff]  ;;  %v12729_v30 = vld [vmem:[#allocation7 + $0x60] sm:$0xff] }
  0x50   :  { %v12728_v34 = vld [vmem:[#allocation7 + $0x58] sm:$0xff]  ;;  %v12727_v36 = vld [vmem:[#allocation7 + $0x50] sm:$0xff]  ;;  %v12726_v37 = vld [vmem:[#allocation7 + $0x48] sm:$0xff] }
  0x51   :  { %v12725_v40 = vld [vmem:[#allocation7 + $0x40] sm:$0xff]  ;;  %v12763_v52 = vld [vmem:[#allocation11 + $0xf4] sm:$0xf]  ;;  %v12761_v55 = vld [vmem:[#allocation11 + $0xe4] sm:$0xf] }
  0x52   :  { %365 = vmatpush.bf16.msra.mxu0 %v14225_v2  ;;  %v9605_v53 = vld [vmem:[#allocation11 + $0xf8] sm:$0xf0]  ;;  %v9597_v56 = vld [vmem:[#allocation11 + $0xe8] sm:$0xf0]  ;;  %v12759_v58 = vld [vmem:[#allocation11 + $0xd4] sm:$0xf] }
  0x53   :  { %554 = vmatpush.bf16.msra.mxu1 %v12722_v8  ;;  %13535 = vmatpush.bf16.msra.mxu2 %v12722_v8  ;;  %v9608_v54 = vor.u32 %v12763_v52, %v9605_v53  ;;  %v9600_v57 = vor.u32 %v12761_v55, %v9597_v56  ;;  %v9589_v59 = vld [vmem:[#allocation11 + $0xd8] sm:$0xf0]  ;;  %v12757_v61 = vld [vmem:[#allocation11 + $0xc4] sm:$0xf]  ;;  %v9581_v62 = vld [vmem:[#allocation11 + $0xc8] sm:$0xf0] }
  0x54   :  { %v9592_v60 = vor.u32 %v12759_v58, %v9589_v59  ;;  %v12753_v6 = vld [vmem:[#allocation11 + $0xa4] sm:$0xf]  ;;  %v9565_v7 = vld [vmem:[#allocation11 + $0xa8] sm:$0xf0] }
  0x56   :  { %366 = vmatpush.bf16.msra.mxu0 %v14228_v3 }
  0x57   :  { %555 = vmatpush.bf16.msra.mxu1 %v12721_v9  ;;  %13536 = vmatpush.bf16.msra.mxu2 %v12721_v9  ;;  %v9568_v9 = vor.u32 %v12753_v6, %v9565_v7 }
  0x59   :  { %9409 = vmatmul.msk.bf16.vlgmr.msra.gmra.mxu0 %vm346_vm0, %v14230_v4 }
  0x5b   :  { %556 = vmatpush.bf16.msra.mxu1 %v12720_v12  ;;  %13537 = vmatpush.bf16.msra.mxu2 %v12720_v12  ;;  %v12751_v12 = vld [vmem:[#allocation11 + $0x94] sm:$0xf] }
  0x5f   :  { %557 = vmatpush.bf16.msra.mxu1 %v12719_v13  ;;  %13538 = vmatpush.bf16.msra.mxu2 %v12719_v13  ;;  %v9557_v13 = vld [vmem:[#allocation11 + $0x98] sm:$0xf0] }
  0x63   :  { %558 = vmatpush.bf16.msra.mxu1 %v12718_v14  ;;  %13539 = vmatpush.bf16.msra.mxu2 %v12718_v14  ;;  %v9560_v14 = vor.u32 %v12751_v12, %v9557_v13 }
  0x67   :  { %559 = vmatpush.bf16.msra.mxu1 %v12717_v15  ;;  %13540 = vmatpush.bf16.msra.mxu2 %v12717_v15  ;;  %v12749_v15 = vld [vmem:[#allocation11 + $0x84] sm:$0xf] }
  0x69   :  { %9410 = vmatmul.msk.bf16.gmra.mxu0 %vm346_vm0, %v14235_v5 }
  0x6b   :  { %581 = vmatpush.bf16.msrb.mxu2 %v12732_v23 }
  0x6f   :  { %582 = vmatpush.bf16.msrb.mxu2 %v12731_v25 }
  0x73   :  { %583 = vmatpush.bf16.msrb.mxu2 %v12730_v26 }
  0x77   :  { %584 = vmatpush.bf16.msrb.mxu2 %v12729_v30 }
  0x79   :  { %9411 = vmatmul.msk.bf16.gmra.mxu0 %vm346_vm0, %v14239_v10 }
  0x7b   :  { %585 = vmatpush.bf16.msrb.mxu2 %v12728_v34 }
  0x7f   :  { %586 = vmatpush.bf16.msrb.mxu2 %v12727_v36 }
  0x83   :  { %587 = vmatpush.bf16.msrb.mxu2 %v12726_v37 }
  0x87   :  { %588 = vmatpush.bf16.msrb.mxu2 %v12725_v40 }
  0x89   :  { %9412 = vmatmul.msk.bf16.gmra.mxu0 %vm346_vm0, %v14243_v11 }
  0xd6   :  { %v368_v16 = vpop.f32.mrf.mxu0 }
  0xd7   :  { %v388_v17 = vpack.c.bf16 %v368_v16, %v368_v16  ;;  %v9549_v16 = vld [vmem:[#allocation11 + $0x88] sm:$0xf0] }
  0xd9   :  { %v404_v20 = vunpack.c.l.b16 %v388_v17 }
  0xde   :  { %v370_v18 = vpop.f32.mrf.mxu0 }
  0xdf   :  { %v389_v19 = vpack.c.bf16 %v370_v18, %v370_v18  ;;  %v9552_v18 = vor.u32 %v12749_v15, %v9549_v16 }
  0xe1   :  { %v405_v21 = vunpack.c.l.b16 %v389_v19 }
  0xe3   :  { %v412_v22 = vpack.c.b16 %v405_v21, %v404_v20  ;;  %v13566_v21 = vld [vmem:[#allocation8] ss:$0 sm:$0xff] }
  0xe5   :  { %560 = vmatmul.bf16.vlgmr.msra.gmra.mxu1 %v412_v22 }
  0xe6   :  { %v373_v24 = vpop.f32.mrf.mxu0 }
  0xe7   :  { %v390_v27 = vpack.c.bf16 %v373_v24, %v373_v24 }
  0xe9   :  { %v406_v31 = vunpack.c.l.b16 %v390_v27  ;;  %v13567_v27 = vld [vmem:[#allocation10] ss:$0 sm:$0xff] }
  0xee   :  { %v375_v28 = vpop.f32.mrf.mxu0 }
  0xef   :  { %v391_v29 = vpack.c.bf16 %v375_v28, %v375_v28 }
  0xf1   :  { %v407_v32 = vunpack.c.l.b16 %v391_v29 }
  0xf3   :  { %v413_v33 = vpack.c.b16 %v407_v32, %v406_v31 }
  0xf5   :  { %565 = vmatmul.bf16.gmra.mxu1 %v413_v33 }
  0xf6   :  { %v378_v35 = vpop.f32.mrf.mxu0 }
  0xf7   :  { %v392_v38 = vpack.c.bf16 %v378_v35, %v378_v35 }
  0xf9   :  { %v408_v42 = vunpack.c.l.b16 %v392_v38 }
  0xfe   :  { %v380_v39 = vpop.f32.mrf.mxu0 }
  0xff   :  { %v393_v41 = vpack.c.bf16 %v380_v39, %v380_v39 }
 0x101   :  { %v409_v43 = vunpack.c.l.b16 %v393_v41 }
 0x103   :  { %v414_v44 = vpack.c.b16 %v409_v43, %v408_v42 }
 0x105   :  { %570 = vmatmul.bf16.vlgmr.msra.gmra.mxu2 %v414_v44 }
 0x106   :  { %v383_v45 = vpop.f32.mrf.mxu0  ;;  %1008 = vmatpush.bf16.msra.mxu2 %v9608_v54 }
 0x107   :  { %v394_v46 = vpack.c.bf16 %v383_v45, %v383_v45 }
 0x109   :  { %v410_v49 = vunpack.c.l.b16 %v394_v46 }
 0x10a   :  { %1009 = vmatpush.bf16.msra.mxu2 %v9600_v57 }
 0x10e   :  { %v385_v47 = vpop.f32.mrf.mxu0  ;;  %1010 = vmatpush.bf16.msra.mxu2 %v9592_v60 }
 0x10f   :  { %v395_v48 = vpack.c.bf16 %v385_v47, %v385_v47 }
 0x111   :  { %v411_v50 = vunpack.c.l.b16 %v395_v48 }
 0x113   :  { %v415_v51 = vpack.c.b16 %v411_v50, %v410_v49 }
 0x115   :  { %575 = vmatmul.bf16.gmra.mxu2 %v415_v51 }
 0x125   :  { %589 = vmatmul.bf16.vlgmr.msrb.gmra.mxu2 %v14228_v3  ;;  %v9573_v3 = vld [vmem:[#allocation11 + $0xb8] sm:$0xf0] }
 0x135   :  { %594 = vmatmul.bf16.gmra.mxu2 %v14225_v2  ;;  %v9584_v2 = vor.u32 %v12757_v61, %v9581_v62 }
 0x137   :  { %1011 = vmatpush.bf16.msra.mxu2 %v9584_v2 }
 0x145   :  { %599 = vmatmul.bf16.gmra.mxu2 %v14222_v1  ;;  %v12755_v1 = vld [vmem:[#allocation11 + $0xb4] sm:$0xf] }
 0x155   :  { %604 = vmatmul.bf16.gmra.mxu2 %v14219_v0  ;;  %v9576_v0 = vor.u32 %v12755_v1, %v9573_v3 }
 0x157   :  { %1012 = vmatpush.bf16.msra.mxu2 %v9576_v0 }
 0x15b   :  { %1013 = vmatpush.bf16.msra.mxu2 %v9568_v9 }
 0x15f   :  { %1014 = vmatpush.bf16.msra.mxu2 %v9560_v14 }
 0x162   :  { %v561_v19 = vpop.f32.mrf.mxu1 }
 0x163   :  { %1015 = vmatpush.bf16.msra.mxu2 %v9552_v18  ;;  %v562_v22 = vadd.f32 %v13566_v21, %v561_v19 }
 0x16a   :  { %v563_v23 = vpop.f32.mrf.mxu1 }
 0x16b   :  { %v564_v28 = vadd.f32 %v13566_v21, %v563_v23 }
 0x172   :  { %v566_v32 = vpop.f32.mrf.mxu1 }
 0x173   :  { %v567_v36 = vadd.f32 %v13566_v21, %v566_v32  ;;  %v9587_v32 = vld [vmem:[#allocation11 + $0xd0] sm:$0xf] }
 0x17a   :  { %v568_v43 = vpop.f32.mrf.mxu1 }
 0x17b   :  { %v569_v45 = vadd.f32 %v13566_v21, %v568_v43  ;;  %v12754_v43 = vld [vmem:[#allocation11 + $0xa4] sm:$0xf0] }
 0x188   :  { %v571_v63 = vpop.f32.mrf.mxu2 }
 0x189   :  { %v572_v52 = vadd.f32 %v13566_v21, %v571_v63 }
 0x190   :  { %v573_v8 = vpop.f32.mrf.mxu2 }
 0x191   :  { %v574_v60 = vadd.f32 %v13566_v21, %v573_v8 }
 0x198   :  { %v576_v17 = vpop.f32.mrf.mxu2 }
 0x199   :  { %v577_v6 = vadd.f32 %v13566_v21, %v576_v17 }
 0x1a0   :  { %v578_v20 = vpop.f32.mrf.mxu2 }
 0x1a1   :  { %v579_v16 = vadd.f32 %v13566_v21, %v578_v20  ;;  %v9603_v20 = vld [vmem:[#allocation11 + $0xf0] sm:$0xf]  ;;  %v12764_v21 = vld [vmem:[#allocation11 + $0xf4] sm:$0xf0] }
 0x1a8   :  { %v590_v24 = vpop.f32.mrf.mxu2 }
 0x1a9   :  { %v591_v25 = vadd.f32 %v590_v24, %v562_v22 }
 0x1ab   :  { %v610_v26 = vmax.f32 %v591_v25, 0.0 }
 0x1ad   :  { %v622_v30 = vadd.f32 %v13567_v27, %v610_v26 }
 0x1af   :  { %v630_v34 = vpack.c.bf16 %v622_v30, %v622_v30  ;;  %v12762_v30 = vld [vmem:[#allocation11 + $0xe4] sm:$0xf0] }
 0x1b0   :  { %v592_v29 = vpop.f32.mrf.mxu2 }
 0x1b1   :  { %v593_v31 = vadd.f32 %v592_v29, %v564_v28  ;;  %v646_v39 = vunpack.c.l.b16 %v630_v34  ;;  %v9604_v29 = vor.u32 %v12764_v21, %v9603_v20  ;;  %v12736_v20 = vld [vmem:[#allocation11 + $0x14] sm:$0xf0] }
 0x1b3   :  { %v611_v33 = vmax.f32 %v593_v31, 0.0 }
 0x1b5   :  { %v623_v35 = vadd.f32 %v13567_v27, %v611_v33  ;;  %v12760_v33 = vld [vmem:[#allocation11 + $0xd4] sm:$0xf0] }
 0x1b6   :  { %v9588_v34 = vor.u32 %v12760_v33, %v9587_v32  ;;  %v12733_v32 = vld [vmem:[#allocation11 + $0x4] sm:$0xf] }
 0x1b7   :  { %v631_v37 = vpack.c.bf16 %v623_v35, %v623_v35  ;;  %v9579_v35 = vld [vmem:[#allocation11 + $0xc0] sm:$0xf] }
 0x1b8   :  { %v595_v38 = vpop.f32.mrf.mxu2 }
 0x1b9   :  { %v647_v40 = vunpack.c.l.b16 %v631_v37  ;;  %v596_v41 = vadd.f32 %v595_v38, %v567_v36  ;;  %v12758_v36 = vld [vmem:[#allocation11 + $0xc4] sm:$0xf0]  ;;  %v9571_v38 = vld [vmem:[#allocation11 + $0xb0] sm:$0xf] }
 0x1ba   :  { %v9580_v37 = vor.u32 %v12758_v36, %v9579_v35 }
 0x1bb   :  { %v14251_v42 = vpack.c.b16 %v647_v40, %v646_v39  ;;  %v612_v44 = vmax.f32 %v596_v41, 0.0  ;;  %v12756_v39 = vld [vmem:[#allocation11 + $0xb4] sm:$0xf0]  ;;  %v9563_v41 = vld [vmem:[#allocation11 + $0xa0] sm:$0xf] }
 0x1bc   :  { %v9572_v40 = vor.u32 %v12756_v39, %v9571_v38 }
 0x1bd   :  { %1016 = vmatmul.bf16.vlgmr.msra.gmra.mxu2 %v14251_v42  ;;  %v624_v47 = vadd.f32 %v13567_v27, %v612_v44  ;;  %v9564_v44 = vor.u32 %v12754_v43, %v9563_v41 }
 0x1bf   :  { %v632_v50 = vpack.c.bf16 %v624_v47, %v624_v47 }
 0x1c0   :  { %v597_v46 = vpop.f32.mrf.mxu2 }
 0x1c1   :  { %v598_v48 = vadd.f32 %v597_v46, %v569_v45  ;;  %v648_v55 = vunpack.c.l.b16 %v632_v50  ;;  %v9555_v45 = vld [vmem:[#allocation11 + $0x90] sm:$0xf]  ;;  %v12752_v46 = vld [vmem:[#allocation11 + $0x94] sm:$0xf0] }
 0x1c2   :  { %v9556_v47 = vor.u32 %v12752_v46, %v9555_v45 }
 0x1c3   :  { %v613_v49 = vmax.f32 %v598_v48, 0.0  ;;  %v9547_v48 = vld [vmem:[#allocation11 + $0x80] sm:$0xf] }
 0x1c5   :  { %v625_v51 = vadd.f32 %v13567_v27, %v613_v49  ;;  %v12750_v49 = vld [vmem:[#allocation11 + $0x84] sm:$0xf0] }
 0x1c6   :  { %v9548_v50 = vor.u32 %v12750_v49, %v9547_v48 }
 0x1c7   :  { %v633_v53 = vpack.c.bf16 %v625_v51, %v625_v51  ;;  %v12748_v51 = vld [vmem:[#allocation11 + $0x74] sm:$0xf0] }
 0x1c8   :  { %v600_v54 = vpop.f32.mrf.mxu2 }
 0x1c9   :  { %v649_v56 = vunpack.c.l.b16 %v633_v53  ;;  %v601_v57 = vadd.f32 %v600_v54, %v572_v52  ;;  %v12747_v52 = vld [vmem:[#allocation11 + $0x74] sm:$0xf]  ;;  %v9541_v54 = vld [vmem:[#allocation11 + $0x78] sm:$0xf0] }
 0x1cb   :  { %v14254_v58 = vpack.c.b16 %v649_v56, %v648_v55  ;;  %v614_v59 = vmax.f32 %v601_v57, 0.0  ;;  %v9544_v55 = vor.u32 %v12747_v52, %v9541_v54  ;;  %v9531_v56 = vld [vmem:[#allocation11 + $0x60] sm:$0xf]  ;;  %v12746_v57 = vld [vmem:[#allocation11 + $0x64] sm:$0xf0] }
 0x1cd   :  { %1021 = vmatmul.bf16.gmra.mxu2 %v14254_v58  ;;  %v626_v62 = vadd.f32 %v13567_v27, %v614_v59  ;;  %979 = vmatpush.bf16.msrb.mxu1 %v9544_v55  ;;  %v12745_v59 = vld [vmem:[#allocation11 + $0x64] sm:$0xf] }
 0x1cf   :  { %v634_v3 = vpack.c.bf16 %v626_v62, %v626_v62  ;;  %v12744_v62 = vld [vmem:[#allocation11 + $0x54] sm:$0xf0] }
 0x1d0   :  { %v602_v61 = vpop.f32.mrf.mxu2 }
 0x1d1   :  { %v603_v2 = vadd.f32 %v602_v61, %v574_v60  ;;  %v650_v9 = vunpack.c.l.b16 %v634_v3  ;;  %v9532_v60 = vor.u32 %v12746_v57, %v9531_v56  ;;  %v9523_v61 = vld [vmem:[#allocation11 + $0x50] sm:$0xf]  ;;  %v9515_v3 = vld [vmem:[#allocation11 + $0x40] sm:$0xf] }
 0x1d3   :  { %v615_v1 = vmax.f32 %v603_v2, 0.0  ;;  %v12743_v2 = vld [vmem:[#allocation11 + $0x54] sm:$0xf] }
 0x1d5   :  { %v627_v0 = vadd.f32 %v13567_v27, %v615_v1 }
 0x1d7   :  { %v635_v7 = vpack.c.bf16 %v627_v0, %v627_v0  ;;  %v12742_v0 = vld [vmem:[#allocation11 + $0x44] sm:$0xf0] }
 0x1d8   :  { %v605_v63 = vpop.f32.mrf.mxu2 }
 0x1d9   :  { %v651_v12 = vunpack.c.l.b16 %v635_v7  ;;  %v606_v13 = vadd.f32 %v605_v63, %v577_v6  ;;  %v12741_v6 = vld [vmem:[#allocation11 + $0x44] sm:$0xf]  ;;  %v9516_v7 = vor.u32 %v12742_v0, %v9515_v3  ;;  %v9517_v63 = vld [vmem:[#allocation11 + $0x48] sm:$0xf0] }
 0x1db   :  { %v14257_v14 = vpack.c.b16 %v651_v12, %v650_v9  ;;  %v616_v15 = vmax.f32 %v606_v13, 0.0  ;;  %v9520_v9 = vor.u32 %v12741_v6, %v9517_v63  ;;  %v9507_v12 = vld [vmem:[#allocation11 + $0x30] sm:$0xf]  ;;  %v12740_v13 = vld [vmem:[#allocation11 + $0x34] sm:$0xf0] }
 0x1dd   :  { %1026 = vmatmul.bf16.gmra.mxu2 %v14257_v14  ;;  %v628_v8 = vadd.f32 %v13567_v27, %v616_v15  ;;  %v12739_v15 = vld [vmem:[#allocation11 + $0x34] sm:$0xf] }
 0x1df   :  { %v636_v23 = vpack.c.bf16 %v628_v8, %v628_v8 }
 0x1e0   :  { %v607_v18 = vpop.f32.mrf.mxu2 }
 0x1e1   :  { %v608_v19 = vadd.f32 %v607_v18, %v579_v16  ;;  %v652_v26 = vunpack.c.l.b16 %v636_v23  ;;  %v9508_v16 = vor.u32 %v12740_v13, %v9507_v12  ;;  %v9509_v18 = vld [vmem:[#allocation11 + $0x38] sm:$0xf0]  ;;  %v12737_v23 = vld [vmem:[#allocation11 + $0x24] sm:$0xf] }
 0x1e2   :  { %v9512_v8 = vor.u32 %v12739_v15, %v9509_v18 }
 0x1e3   :  { %v617_v22 = vmax.f32 %v608_v19, 0.0  ;;  %v9499_v19 = vld [vmem:[#allocation11 + $0x20] sm:$0xf] }
 0x1e5   :  { %v629_v24 = vadd.f32 %v13567_v27, %v617_v22  ;;  %v9595_v27 = vld [vmem:[#allocation11 + $0xe0] sm:$0xf]  ;;  %v12738_v22 = vld [vmem:[#allocation11 + $0x24] sm:$0xf0] }
 0x1e6   :  { %v9596_v31 = vor.u32 %v12762_v30, %v9595_v27  ;;  %v9483_v30 = vld [vmem:[#allocation11] sm:$0xf] }
 0x1e7   :  { %v637_v25 = vpack.c.bf16 %v629_v24, %v629_v24  ;;  %v9500_v24 = vor.u32 %v12738_v22, %v9499_v19 }
 0x1e9   :  { %v653_v17 = vunpack.c.l.b16 %v637_v25  ;;  %v9501_v25 = vld [vmem:[#allocation11 + $0x28] sm:$0xf0] }
 0x1eb   :  { %v14260_v28 = vpack.c.b16 %v653_v17, %v652_v26  ;;  %v9504_v26 = vor.u32 %v12737_v23, %v9501_v25  ;;  %v9491_v17 = vld [vmem:[#allocation11 + $0x10] sm:$0xf] }
 0x1ec   :  { %v9492_v21 = vor.u32 %v12736_v20, %v9491_v17 }
 0x1ed   :  { %666 = vmatpush.bf16.msra.mxu3 %v14260_v28  ;;  %1031 = vmatmul.bf16.gmra.mxu2 %v14260_v28 }
 0x1f1   :  { %667 = vmatpush.bf16.msra.mxu3 %v14257_v14 }
 0x1f5   :  { %668 = vmatpush.bf16.msra.mxu3 %v14254_v58 }
 0x1f9   :  { %669 = vmatpush.bf16.msra.mxu3 %v14251_v42 }
 0x1fc   :  { %9477 = vmatmul.msk.bf16.vlgmr.msra.gmra.mxu3 %vm346_vm0, %v14230_v4 }
 0x1fd   :  { %950 = vmatpush.bf16.msrb.mxu3 %v9604_v29  ;;  %v9493_v29 = vld [vmem:[#allocation11 + $0x18] sm:$0xf0] }
 0x201   :  { %951 = vmatpush.bf16.msrb.mxu3 %v9596_v31  ;;  %v12734_v31 = vld [vmem:[#allocation11 + $0x4] sm:$0xf0] }
 0x202   :  { %v9484_v33 = vor.u32 %v12734_v31, %v9483_v30 }
 0x205   :  { %952 = vmatpush.bf16.msrb.mxu3 %v9588_v34  ;;  %v9485_v34 = vld [vmem:[#allocation11 + $0x8] sm:$0xf0] }
 0x206   :  { %v9488_v35 = vor.u32 %v12733_v32, %v9485_v34 }
 0x209   :  { %953 = vmatpush.bf16.msrb.mxu3 %v9580_v37 }
 0x20c   :  { %9478 = vmatmul.msk.bf16.gmra.mxu3 %vm346_vm0, %v14235_v5  ;;  %v9539_v5 = vld [vmem:[#allocation11 + $0x70] sm:$0xf] }
 0x20d   :  { %954 = vmatpush.bf16.msrb.mxu3 %v9572_v40  ;;  %v9540_v53 = vor.u32 %v12748_v51, %v9539_v5 }
 0x20f   :  { %921 = vmatpush.bf16.msrb.mxu0 %v9540_v53 }
 0x211   :  { %955 = vmatpush.bf16.msrb.mxu3 %v9564_v44 }
 0x213   :  { %922 = vmatpush.bf16.msrb.mxu0 %v9532_v60 }
 0x215   :  { %956 = vmatpush.bf16.msrb.mxu3 %v9556_v47 }
 0x219   :  { %957 = vmatpush.bf16.msrb.mxu3 %v9548_v50 }
 0x21c   :  { %9479 = vmatmul.msk.bf16.gmra.mxu3 %vm346_vm0, %v14239_v10  ;;  %v9533_v10 = vld [vmem:[#allocation11 + $0x68] sm:$0xf0] }
 0x22c   :  { %9480 = vmatmul.msk.bf16.gmra.mxu3 %vm346_vm0, %v14243_v11  ;;  %v9536_v11 = vor.u32 %v12745_v59, %v9533_v10 }
 0x22e   :  { %980 = vmatpush.bf16.msrb.mxu1 %v9536_v11 }
 0x23c   :  { %958 = vmatmul.bf16.vlgmr.msrb.gmra.mxu3 %v14251_v42  ;;  %v9525_v42 = vld [vmem:[#allocation11 + $0x58] sm:$0xf0] }
 0x23d   :  { %v9528_v1 = vor.u32 %v12743_v2, %v9525_v42  ;;  %v755_v42 = vld [vmem:[#allocation13] sm:$0x3] }
 0x23e   :  { %v14283_v3 = vperm.slane %v755_v42, 0  ;;  %v14285_v0 = vperm.slane %v755_v42, 1 }
 0x23f   :  { %981 = vmatpush.bf16.msrb.mxu1 %v9528_v1 }
 0x240   :  { %v1017_v11 = vpop.f32.mrf.mxu2 }
 0x243   :  { %982 = vmatpush.bf16.msrb.mxu1 %v9520_v9 }
 0x247   :  { %983 = vmatpush.bf16.msrb.mxu1 %v9512_v8 }
 0x24b   :  { %984 = vmatpush.bf16.msrb.mxu1 %v9504_v26 }
 0x24c   :  { %963 = vmatmul.bf16.gmra.mxu3 %v14254_v58  ;;  %v9524_v58 = vor.u32 %v12744_v62, %v9523_v61 }
 0x24e   :  { %923 = vmatpush.bf16.msrb.mxu0 %v9524_v58  ;;  %v14279_v58 = vpop.f32.mrf.mxu2 }
 0x252   :  { %924 = vmatpush.bf16.msrb.mxu0 %v9516_v7  ;;  %v1053_v7 = vld [vmem:[#allocation14] sm:$0x3] }
 0x253   :  { %v14289_v15 = vperm.slane %v1053_v7, 0  ;;  %v14291_v18 = vperm.slane %v1053_v7, 1 }
 0x256   :  { %925 = vmatpush.bf16.msrb.mxu0 %v9508_v16  ;;  %v1022_v22 = vpop.f32.mrf.mxu2 }
 0x25a   :  { %926 = vmatpush.bf16.msrb.mxu0 %v9500_v24 }
 0x25c   :  { %968 = vmatmul.bf16.gmra.mxu3 %v14257_v14  ;;  %v12735_v14 = vld [vmem:[#allocation11 + $0x14] sm:$0xf] }
 0x25d   :  { %v9496_v27 = vor.u32 %v12735_v14, %v9493_v29 }
 0x25e   :  { %927 = vmatpush.bf16.msrb.mxu0 %v9492_v21  ;;  %v1024_v29 = vpop.f32.mrf.mxu2 }
 0x25f   :  { %985 = vmatpush.bf16.msrb.mxu1 %v9496_v27 }
 0x262   :  { %928 = vmatpush.bf16.msrb.mxu0 %v9484_v33 }
 0x263   :  { %986 = vmatpush.bf16.msrb.mxu1 %v9488_v35 }
 0x266   :  { %v1027_v32 = vpop.f32.mrf.mxu2 }
 0x26c   :  { %973 = vmatmul.bf16.gmra.mxu3 %v14260_v28 }
 0x27f   :  { %v671_v36 = vpop.f32.mrf.mxu3 }
 0x280   :  { %v691_v37 = vpack.c.bf16 %v671_v36, %v671_v36  ;;  %v1029_v36 = vpop.f32.mrf.mxu2 }
 0x282   :  { %v707_v40 = vunpack.c.l.b16 %v691_v37 }
 0x287   :  { %v673_v38 = vpop.f32.mrf.mxu3 }
 0x288   :  { %v692_v39 = vpack.c.bf16 %v673_v38, %v673_v38 }
 0x28a   :  { %v708_v41 = vunpack.c.l.b16 %v692_v39 }
 0x28c   :  { %v715_v43 = vpack.c.b16 %v708_v41, %v707_v40  ;;  %v1032_v40 = vpop.f32.mrf.mxu2 }
 0x28e   :  { %929 = vmatmul.bf16.vlgmr.msrb.gmra.mxu0 %v715_v43  ;;  %987 = vmatmul.bf16.vlgmr.msrb.gmra.mxu1 %v715_v43 }
 0x28f   :  { %v676_v44 = vpop.f32.mrf.mxu3 }
 0x290   :  { %v693_v45 = vpack.c.bf16 %v676_v44, %v676_v44 }
 0x292   :  { %v709_v48 = vunpack.c.l.b16 %v693_v45 }
 0x297   :  { %v678_v46 = vpop.f32.mrf.mxu3 }
 0x298   :  { %v694_v47 = vpack.c.bf16 %v678_v46, %v678_v46 }
 0x29a   :  { %v710_v49 = vunpack.c.l.b16 %v694_v47 }
 0x29c   :  { %v716_v50 = vpack.c.b16 %v710_v49, %v709_v48 }
 0x29e   :  { %934 = vmatmul.bf16.gmra.mxu0 %v716_v50  ;;  %992 = vmatmul.bf16.gmra.mxu1 %v716_v50 }
 0x29f   :  { %v681_v28 = vpop.f32.mrf.mxu3 }
 0x2a0   :  { %v695_v5 = vpack.c.bf16 %v681_v28, %v681_v28 }
 0x2a2   :  { %v711_v53 = vunpack.c.l.b16 %v695_v5 }
 0x2a7   :  { %v683_v51 = vpop.f32.mrf.mxu3 }
 0x2a8   :  { %v696_v52 = vpack.c.bf16 %v683_v51, %v683_v51 }
 0x2aa   :  { %v712_v54 = vunpack.c.l.b16 %v696_v52 }
 0x2ac   :  { %v717_v55 = vpack.c.b16 %v712_v54, %v711_v53 }
 0x2ae   :  { %939 = vmatmul.bf16.gmra.mxu0 %v717_v55  ;;  %997 = vmatmul.bf16.gmra.mxu1 %v717_v55 }
 0x2af   :  { %v686_v56 = vpop.f32.mrf.mxu3 }
 0x2b0   :  { %v697_v57 = vpack.c.bf16 %v686_v56, %v686_v56 }
 0x2b2   :  { %v713_v10 = vunpack.c.l.b16 %v697_v57 }
 0x2b7   :  { %v688_v59 = vpop.f32.mrf.mxu3 }
 0x2b8   :  { %v698_v60 = vpack.c.bf16 %v688_v59, %v688_v59 }
 0x2ba   :  { %v714_v61 = vunpack.c.l.b16 %v698_v60 }
 0x2bc   :  { %v718_v62 = vpack.c.b16 %v714_v61, %v713_v10 }
 0x2be   :  { %944 = vmatmul.bf16.gmra.mxu0 %v718_v62  ;;  %1002 = vmatmul.bf16.gmra.mxu1 %v718_v62 }
 0x2bf   :  { %v959_v2 = vpop.f32.mrf.mxu3 }
 0x2c7   :  { %v14281_v1 = vpop.f32.mrf.mxu3 }
 0x2cf   :  { %v964_v23 = vpop.f32.mrf.mxu3 }
 0x2d7   :  { %v966_v27 = vpop.f32.mrf.mxu3 }
 0x2df   :  { %v969_v33 = vpop.f32.mrf.mxu3 }
 0x2e7   :  { %v971_v37 = vpop.f32.mrf.mxu3 }
 0x2ef   :  { %v974_v41 = vpop.f32.mrf.mxu3 }
 0x30b   :  { %v930_v6 = vpop.f32.mrf.mxu0  ;;  %v988_v63 = vpop.f32.mrf.mxu1 }
 0x30c   :  { %v931_v9 = vadd.f32 %v930_v6, %v14283_v3  ;;  %v989_v12 = vadd.f32 %v988_v63, %v14285_v0 }
 0x30e   :  { %v960_v13 = vadd.f32 %v959_v2, %v931_v9  ;;  %v1018_v16 = vadd.f32 %v1017_v11, %v989_v12 }
 0x310   :  { %v1037_v8 = vmax.f32 %v960_v13, 0.0  ;;  %v1038_v19 = vmax.f32 %v1018_v16, 0.0  ;;  %v1034_v13 = vpop.f32.mrf.mxu2  ;;  %v976_v16 = vpop.f32.mrf.mxu3 }
 0x312   :  { %v1059_v24 = vadd.f32 %v14289_v15, %v1037_v8  ;;  %v1060_v25 = vadd.f32 %v14291_v18, %v1038_v19 }
 0x313   :  { %v932_v26 = vpop.f32.mrf.mxu0  ;;  %v990_v17 = vpop.f32.mrf.mxu1 }
 0x314   :  { %v14295_v20 = vpack.c.bf16 %v1060_v25, %v1059_v24  ;;  %v933_v61 = vadd.f32 %v932_v26, %v14283_v3  ;;  %v991_v62 = vadd.f32 %v990_v17, %v14285_v0 }
 0x31b   :  { %v935_v14 = vpop.f32.mrf.mxu0  ;;  %v993_v21 = vpop.f32.mrf.mxu1 }
 0x31c   :  { %v936_v55 = vadd.f32 %v935_v14, %v14283_v3  ;;  %v994_v56 = vadd.f32 %v993_v21, %v14285_v0 }
 0x31e   :  { %v965_v8 = vadd.f32 %v964_v23, %v936_v55  ;;  %v1023_v19 = vadd.f32 %v1022_v22, %v994_v56 }
 0x323   :  { %v937_v30 = vpop.f32.mrf.mxu0  ;;  %v995_v31 = vpop.f32.mrf.mxu1 }
 0x324   :  { %v938_v51 = vadd.f32 %v937_v30, %v14283_v3  ;;  %v996_v52 = vadd.f32 %v995_v31, %v14285_v0 }
 0x326   :  { %v967_v11 = vadd.f32 %v966_v27, %v938_v51  ;;  %v1025_v2 = vadd.f32 %v1024_v29, %v996_v52  ;;  %v962_v29 = vadd.f32 %v14281_v1, %v933_v61  ;;  %v1020_v27 = vadd.f32 %v14279_v58, %v991_v62 }
 0x328   :  { %v1043_v30 = vmax.f32 %v967_v11, 0.0  ;;  %v1039_v58 = vmax.f32 %v962_v29, 0.0  ;;  %v12887_v29 = vld [vmem:[#allocation16 + $0x3cc] sm:$0xf0] }
 0x32b   :  { %v940_v34 = vpop.f32.mrf.mxu0  ;;  %v998_v35 = vpop.f32.mrf.mxu1 }
 0x32c   :  { %v941_v49 = vadd.f32 %v940_v34, %v14283_v3  ;;  %v999_v50 = vadd.f32 %v998_v35, %v14285_v0 }
 0x32e   :  { %v970_v57 = vadd.f32 %v969_v33, %v941_v49  ;;  %v1028_v59 = vadd.f32 %v1027_v32, %v999_v50  ;;  %v1041_v32 = vmax.f32 %v965_v8, 0.0  ;;  %v1042_v33 = vmax.f32 %v1023_v19, 0.0  ;;  %v12859_v8 = vld [vmem:[#allocation16 + $0x2ec] sm:$0xf0]  ;;  %v10115_v19 = vld [vmem:[#allocation16 + $0x3e0] sm:$0xf] }
 0x330   :  { %v1045_v24 = vmax.f32 %v970_v57, 0.0  ;;  %v1046_v25 = vmax.f32 %v1028_v59, 0.0 }
 0x332   :  { %v1067_v34 = vadd.f32 %v14289_v15, %v1045_v24  ;;  %v1068_v35 = vadd.f32 %v14291_v18, %v1046_v25  ;;  %v12891_v25 = vld [vmem:[#allocation16 + $0x3ec] sm:$0xf0] }
 0x333   :  { %v942_v38 = vpop.f32.mrf.mxu0  ;;  %v1000_v39 = vpop.f32.mrf.mxu1 }
 0x334   :  { %v943_v45 = vadd.f32 %v942_v38, %v14283_v3  ;;  %v1001_v46 = vadd.f32 %v1000_v39, %v14285_v0  ;;  %v1040_v38 = vmax.f32 %v1020_v27, 0.0  ;;  %v1065_v39 = vadd.f32 %v14289_v15, %v1043_v30  ;;  %v9955_v30 = vld [vmem:[#allocation16 + $0x2a0] sm:$0xf] }
 0x336   :  { %v972_v53 = vadd.f32 %v971_v37, %v943_v45  ;;  %v1030_v54 = vadd.f32 %v1029_v36, %v1001_v46  ;;  %v1064_v45 = vadd.f32 %v14291_v18, %v1042_v33  ;;  %v1079_v46 = vpack.c.bf16 %v1068_v35, %v1067_v34  ;;  %v12847_v33 = vld [vmem:[#allocation16 + $0x28c] sm:$0xf0] }
 0x337   :  { %v12879_v34 = vld [vmem:[#allocation16 + $0x38c] sm:$0xf0] }
 0x338   :  { %v1047_v7 = vmax.f32 %v972_v53, 0.0  ;;  %v1048_v63 = vmax.f32 %v1030_v54, 0.0  ;;  %v1099_v57 = vunpack.c.l.b16 %v1079_v46  ;;  %v1100_v59 = vunpack.c.h.b16 %v1079_v46 }
 0x33a   :  { %v1070_v31 = vadd.f32 %v14291_v18, %v1048_v63  ;;  %v1091_v63 = vunpack.c.l.b16 %v14295_v20 }
 0x33b   :  { %v945_v43 = vpop.f32.mrf.mxu0  ;;  %v1003_v44 = vpop.f32.mrf.mxu1 }
 0x33c   :  { %v946_v47 = vadd.f32 %v945_v43, %v14283_v3  ;;  %v1004_v48 = vadd.f32 %v1003_v44, %v14285_v0  ;;  %v1063_v44 = vadd.f32 %v14289_v15, %v1041_v32  ;;  %v9939_v32 = vld [vmem:[#allocation16 + $0x280] sm:$0xf] }
 0x33d   :  { %v9940_v35 = vor.u32 %v12847_v33, %v9939_v32  ;;  %v12841_v33 = vld [vmem:[#allocation16 + $0x264] sm:$0xf] }
 0x33e   :  { %v975_v28 = vadd.f32 %v974_v41, %v946_v47  ;;  %v1033_v5 = vadd.f32 %v1032_v40, %v1004_v48  ;;  %v1077_v56 = vpack.c.bf16 %v1064_v45, %v1063_v44  ;;  %v12839_v44 = vld [vmem:[#allocation16 + $0x24c] sm:$0xf0]  ;;  %v10035_v45 = vld [vmem:[#allocation16 + $0x340] sm:$0xf] }
 0x340   :  { %v1049_v60 = vmax.f32 %v975_v28, 0.0  ;;  %v1050_v10 = vmax.f32 %v1033_v5, 0.0  ;;  %v1061_v28 = vadd.f32 %v14289_v15, %v1039_v58  ;;  %v1062_v5 = vadd.f32 %v14291_v18, %v1040_v38  ;;  %v10051_v58 = vld [vmem:[#allocation16 + $0x360] sm:$0xf] }
 0x341   :  { %v1095_v62 = vunpack.c.l.b16 %v1077_v56  ;;  %v1096_v11 = vunpack.c.h.b16 %v1077_v56  ;;  %v12831_v56 = vld [vmem:[#allocation16 + $0x20c] sm:$0xf0] }
 0x342   :  { %v1071_v26 = vadd.f32 %v14289_v15, %v1049_v60  ;;  %v1072_v17 = vadd.f32 %v14291_v18, %v1050_v10  ;;  %v1076_v60 = vpack.c.bf16 %v1062_v5, %v1061_v28  ;;  %v10019_v28 = vld [vmem:[#allocation16 + $0x320] sm:$0xf]  ;;  %v12867_v5 = vld [vmem:[#allocation16 + $0x32c] sm:$0xf0] }
 0x343   :  { %v947_v42 = vpop.f32.mrf.mxu0  ;;  %v1005_v6 = vpop.f32.mrf.mxu1 }
 0x344   :  { %v948_v9 = vadd.f32 %v947_v42, %v14283_v3  ;;  %v1006_v12 = vadd.f32 %v1005_v6, %v14285_v0  ;;  %v1044_v3 = vmax.f32 %v1025_v2, 0.0  ;;  %v1069_v0 = vadd.f32 %v14289_v15, %v1047_v7 }
 0x345   :  { %v1081_v36 = vpack.c.bf16 %v1072_v17, %v1071_v26  ;;  %v1093_v2 = vunpack.c.l.b16 %v1076_v60  ;;  %v1094_v42 = vunpack.c.h.b16 %v1076_v60  ;;  %v9971_v26 = vld [vmem:[#allocation16 + $0x2c0] sm:$0xf]  ;;  %v12855_v17 = vld [vmem:[#allocation16 + $0x2cc] sm:$0xf0] }
 0x346   :  { %v977_v14 = vadd.f32 %v976_v16, %v948_v9  ;;  %v1035_v21 = vadd.f32 %v1034_v13, %v1006_v12  ;;  %v1066_v40 = vadd.f32 %v14291_v18, %v1044_v3  ;;  %v1080_v41 = vpack.c.bf16 %v1070_v31, %v1069_v0  ;;  %v9987_v16 = vld [vmem:[#allocation16 + $0x2e0] sm:$0xf]  ;;  %v12851_v3 = vld [vmem:[#allocation16 + $0x2ac] sm:$0xf0] }
 0x347   :  { %v1103_v47 = vunpack.c.l.b16 %v1081_v36  ;;  %v1104_v48 = vunpack.c.h.b16 %v1081_v36  ;;  %v1092_v9 = vunpack.c.h.b16 %v14295_v20  ;;  %v14347_v12 = vpack.c.b16 %v1093_v2, %v1091_v63  ;;  %v10083_v0 = vld [vmem:[#allocation16 + $0x3a0] sm:$0xf]  ;;  %v12883_v31 = vld [vmem:[#allocation16 + $0x3ac] sm:$0xf0]  ;;  %v9989_v2 = vld [vmem:[#allocation16 + $0x2f0] sm:$0xf0] }
 0x348   :  { %v1051_v23 = vmax.f32 %v977_v14, 0.0  ;;  %v1052_v22 = vmax.f32 %v1035_v21, 0.0  ;;  %v1078_v51 = vpack.c.bf16 %v1066_v40, %v1065_v39  ;;  %v1101_v52 = vunpack.c.l.b16 %v1080_v41  ;;  %v10099_v14 = vld [vmem:[#allocation16 + $0x3c0] sm:$0xf]  ;;  %v12875_v39 = vld [vmem:[#allocation16 + $0x36c] sm:$0xf0] }
 0x349   :  { %v1102_v53 = vunpack.c.h.b16 %v1080_v41  ;;  %v14349_v13 = vpack.c.b16 %v1094_v42, %v1092_v9  ;;  %v9988_v24 = vor.u32 %v12859_v8, %v9987_v16  ;;  %v10116_v20 = vor.u32 %v12891_v25, %v10115_v19  ;;  %v13601_v40 = vld [vmem:[#allocation2 + $0x8] sm:$0xff]  ;;  %v10117_v9 = vld [vmem:[#allocation16 + $0x3f0] sm:$0xf0] }
 0x34a   :  { %v1073_v37 = vadd.f32 %v14289_v15, %v1051_v23  ;;  %v1074_v1 = vadd.f32 %v14291_v18, %v1052_v22  ;;  %v1097_v10 = vunpack.c.l.b16 %v1078_v51  ;;  %v1098_v61 = vunpack.c.h.b16 %v1078_v51  ;;  %v12889_v42 = vld [vmem:[#allocation16 + $0x3e4] sm:$0xf]  ;;  %v9973_v19 = vld [vmem:[#allocation16 + $0x2d0] sm:$0xf0] }
 0x34b   :  { %v14333_v15 = vpack.c.b16 %v1101_v52, %v1099_v57  ;;  %v14335_v18 = vpack.c.b16 %v1102_v53, %v1100_v59  ;;  %v9972_v21 = vor.u32 %v12855_v17, %v9971_v26  ;;  %v10100_v27 = vor.u32 %v12887_v29, %v10099_v14  ;;  %v9875_v53 = vld [vmem:[#allocation16 + $0x200] sm:$0xf]  ;;  %v12863_v59 = vld [vmem:[#allocation16 + $0x30c] sm:$0xf0]  ;;  %v12853_v8 = vld [vmem:[#allocation16 + $0x2c4] sm:$0xf] }
 0x34c   :  { %v1082_v43 = vpack.c.bf16 %v1074_v1, %v1073_v37  ;;  %v14339_v6 = vpack.c.b16 %v1097_v10, %v1095_v62  ;;  %v14341_v7 = vpack.c.b16 %v1098_v61, %v1096_v11  ;;  %v9956_v23 = vor.u32 %v12851_v3, %v9955_v30  ;;  %v9923_v37 = vld [vmem:[#allocation16 + $0x260] sm:$0xf]  ;;  %v12843_v1 = vld [vmem:[#allocation16 + $0x26c] sm:$0xf0]  ;;  %v13602_v61 = vld [vmem:[#allocation2 + $0x10] sm:$0xff] }
 0x34d   :  { %v10084_v22 = vor.u32 %v12883_v31, %v10083_v0  ;;  %v9924_v38 = vor.u32 %v12843_v1, %v9923_v37  ;;  %v10052_v41 = vor.u32 %v12875_v39, %v10051_v58  ;;  %v10020_v52 = vor.u32 %v12867_v5, %v10019_v28  ;;  %v10003_v57 = vld [vmem:[#allocation16 + $0x300] sm:$0xf]  ;;  %v13603_v62 = vld [vmem:[#allocation2 + $0x18] sm:$0xff]  ;;  %v12857_v11 = vld [vmem:[#allocation16 + $0x2e4] sm:$0xf] }
 0x34e   :  { %v1105_v49 = vunpack.c.l.b16 %v1082_v43  ;;  %v1106_v50 = vunpack.c.h.b16 %v1082_v43  ;;  %v9907_v43 = vld [vmem:[#allocation16 + $0x240] sm:$0xf]  ;;  %v9876_v60 = vor.u32 %v12831_v56, %v9875_v53  ;;  %v10004_v10 = vor.u32 %v12863_v59, %v10003_v57  ;;  %v12849_v17 = vld [vmem:[#allocation16 + $0x2a4] sm:$0xf]  ;;  %v9957_v14 = vld [vmem:[#allocation16 + $0x2b0] sm:$0xf0] }
 0x34f   :  { %v9908_v46 = vor.u32 %v12839_v44, %v9907_v43  ;;  %v9992_v63 = vor.u32 %v12857_v11, %v9989_v2  ;;  %v10120_v16 = vor.u32 %v12889_v42, %v10117_v9  ;;  %v9976_v25 = vor.u32 %v12853_v8, %v9973_v19  ;;  %v10085_v29 = vld [vmem:[#allocation16 + $0x3b0] sm:$0xf0]  ;;  %v12845_v3 = vld [vmem:[#allocation16 + $0x284] sm:$0xf]  ;;  %v9731_v1 = vld [vmem:[#allocation16 + $0xe0] sm:$0xf] }
 0x350   :  { %v14327_v54 = vpack.c.b16 %v1105_v49, %v1103_v47  ;;  %v14329_v55 = vpack.c.b16 %v1106_v50, %v1104_v48  ;;  %v12871_v47 = vld [vmem:[#allocation16 + $0x34c] sm:$0xf0]  ;;  %v9891_v49 = vld [vmem:[#allocation16 + $0x220] sm:$0xf]  ;;  %v9941_v0 = vld [vmem:[#allocation16 + $0x290] sm:$0xf0] }
 0x351   :  { %v10036_v48 = vor.u32 %v12871_v47, %v10035_v45  ;;  %v12835_v50 = vld [vmem:[#allocation16 + $0x22c] sm:$0xf0]  ;;  %v12877_v31 = vld [vmem:[#allocation16 + $0x384] sm:$0xf]  ;;  %v9909_v43 = vld [vmem:[#allocation16 + $0x250] sm:$0xf0] }
 0x352   :  { %1127 = vmatpush.bf16.msra.mxu0 %v14327_v54  ;;  %1156 = vmatpush.bf16.msra.mxu3 %v14329_v55  ;;  %v9892_v51 = vor.u32 %v12835_v50, %v9891_v49  ;;  %v12795_v58 = vld [vmem:[#allocation16 + $0xec] sm:$0xf0]  ;;  %v10037_v47 = vld [vmem:[#allocation16 + $0x350] sm:$0xf0]  ;;  %v9843_v28 = vld [vmem:[#allocation16 + $0x1c0] sm:$0xf] }
 0x353   :  { %v9732_v39 = vor.u32 %v12795_v58, %v9731_v1  ;;  %v12791_v50 = vld [vmem:[#allocation16 + $0xcc] sm:$0xf0]  ;;  %v12833_v53 = vld [vmem:[#allocation16 + $0x224] sm:$0xf]  ;;  %v9893_v56 = vld [vmem:[#allocation16 + $0x230] sm:$0xf0] }
 0x354   :  { %v12823_v5 = vld [vmem:[#allocation16 + $0x1cc] sm:$0xf0]  ;;  %v12865_v57 = vld [vmem:[#allocation16 + $0x324] sm:$0xf]  ;;  %v9896_v59 = vor.u32 %v12833_v53, %v9893_v56  ;;  %v9827_v11 = vld [vmem:[#allocation16 + $0x1a0] sm:$0xf] }
 0x355   :  { %2007 = vmatpush.bf16.msra.mxu1 %v9732_v39  ;;  %v12819_v2 = vld [vmem:[#allocation16 + $0x1ac] sm:$0xf0]  ;;  %v12829_v9 = vld [vmem:[#allocation16 + $0x204] sm:$0xf]  ;;  %v9763_v1 = vld [vmem:[#allocation16 + $0x120] sm:$0xf] }
 0x356   :  { %1128 = vmatpush.bf16.msra.mxu0 %v14333_v15  ;;  %1157 = vmatpush.bf16.msra.mxu3 %v14335_v18  ;;  %v12861_v8 = vld [vmem:[#allocation16 + $0x304] sm:$0xf]  ;;  %v12856_v53 = vld [vmem:[#allocation16 + $0x2d4] sm:$0xf0]  ;;  %v10107_v56 = vld [vmem:[#allocation16 + $0x3c8] sm:$0xf] }
 0x35a   :  { %1129 = vmatpush.bf16.msra.mxu0 %v14339_v6  ;;  %1158 = vmatpush.bf16.msra.mxu3 %v14341_v7 }
 0x35e   :  { %1130 = vmatpush.bf16.msra.mxu0 %v14347_v12  ;;  %1159 = vmatpush.bf16.msra.mxu3 %v14349_v13 }
 0x361   :  { %9609 = vmatmul.msk.bf16.vlgmr.msra.gmra.mxu0 %vm346_vm0, %v14230_v4  ;;  %9613 = vmatmul.msk.bf16.vlgmr.msra.gmra.mxu3 %vm346_vm0, %v14230_v4  ;;  %v10067_v4 = vld [vmem:[#allocation16 + $0x380] sm:$0xf] }
 0x362   :  { %2065 = vmatpush.bf16.msrb.mxu0 %v9988_v24  ;;  %2094 = vmatpush.bf16.msrb.mxu3 %v10116_v20  ;;  %v10068_v36 = vor.u32 %v12879_v34, %v10067_v4  ;;  %v12885_v24 = vld [vmem:[#allocation16 + $0x3c4] sm:$0xf]  ;;  %v10101_v20 = vld [vmem:[#allocation16 + $0x3d0] sm:$0xf0] }
 0x363   :  { %v10104_v26 = vor.u32 %v12885_v24, %v10101_v20  ;;  %v9925_v4 = vld [vmem:[#allocation16 + $0x270] sm:$0xf0]  ;;  %v12873_v34 = vld [vmem:[#allocation16 + $0x364] sm:$0xf]  ;;  %v9683_v20 = vld [vmem:[#allocation16 + $0x80] sm:$0xf] }
 0x364   :  { %v10005_v24 = vld [vmem:[#allocation16 + $0x310] sm:$0xf0] }
 0x366   :  { %2066 = vmatpush.bf16.msrb.mxu0 %v9972_v21  ;;  %2095 = vmatpush.bf16.msrb.mxu3 %v10100_v27  ;;  %v12881_v21 = vld [vmem:[#allocation16 + $0x3a4] sm:$0xf]  ;;  %v9960_v27 = vor.u32 %v12849_v17, %v9957_v14  ;;  %v9811_v17 = vld [vmem:[#allocation16 + $0x180] sm:$0xf] }
 0x367   :  { %v10088_v30 = vor.u32 %v12881_v21, %v10085_v29  ;;  %v12815_v21 = vld [vmem:[#allocation16 + $0x18c] sm:$0xf0] }
 0x368   :  { %v9812_v29 = vor.u32 %v12815_v21, %v9811_v17 }
 0x36a   :  { %2067 = vmatpush.bf16.msrb.mxu0 %v9956_v23  ;;  %2096 = vmatpush.bf16.msrb.mxu3 %v10084_v22  ;;  %v10069_v23 = vld [vmem:[#allocation16 + $0x390] sm:$0xf0]  ;;  %v9944_v22 = vor.u32 %v12845_v3, %v9941_v0  ;;  %v9795_v3 = vld [vmem:[#allocation16 + $0x160] sm:$0xf] }
 0x36b   :  { %v10072_v32 = vor.u32 %v12877_v31, %v10069_v23  ;;  %v12811_v31 = vld [vmem:[#allocation16 + $0x16c] sm:$0xf0] }
 0x36c   :  { %v9796_v23 = vor.u32 %v12811_v31, %v9795_v3  ;;  %v12844_v31 = vld [vmem:[#allocation16 + $0x274] sm:$0xf0] }
 0x36e   :  { %2068 = vmatpush.bf16.msrb.mxu0 %v9940_v35  ;;  %2097 = vmatpush.bf16.msrb.mxu3 %v10068_v36  ;;  %v9928_v35 = vor.u32 %v12841_v33, %v9925_v4  ;;  %v10053_v36 = vld [vmem:[#allocation16 + $0x370] sm:$0xf0]  ;;  %v9779_v33 = vld [vmem:[#allocation16 + $0x140] sm:$0xf] }
 0x36f   :  { %v10056_v37 = vor.u32 %v12873_v34, %v10053_v36  ;;  %v12807_v34 = vld [vmem:[#allocation16 + $0x14c] sm:$0xf0]  ;;  %v9635_v36 = vld [vmem:[#allocation16 + $0x20] sm:$0xf] }
 0x371   :  { %9610 = vmatmul.msk.bf16.gmra.mxu0 %vm346_vm0, %v13601_v40  ;;  %9614 = vmatmul.msk.bf16.gmra.mxu3 %vm346_vm0, %v13601_v40  ;;  %v12827_v40 = vld [vmem:[#allocation16 + $0x1ec] sm:$0xf0] }
 0x372   :  { %2069 = vmatpush.bf16.msrb.mxu0 %v9924_v38  ;;  %2098 = vmatpush.bf16.msrb.mxu3 %v10052_v41  ;;  %v9859_v38 = vld [vmem:[#allocation16 + $0x1e0] sm:$0xf]  ;;  %v12837_v41 = vld [vmem:[#allocation16 + $0x244] sm:$0xf] }
 0x373   :  { %v9860_v44 = vor.u32 %v12827_v40, %v9859_v38  ;;  %v9912_v45 = vor.u32 %v12837_v41, %v9909_v43  ;;  %v12803_v38 = vld [vmem:[#allocation16 + $0x12c] sm:$0xf0]  ;;  %v9619_v40 = vld [vmem:[#allocation16] sm:$0xf] }
 0x374   :  { %v9764_v39 = vor.u32 %v12803_v38, %v9763_v1  ;;  %v12767_v41 = vld [vmem:[#allocation16 + $0xc] sm:$0xf0]  ;;  %v9747_v43 = vld [vmem:[#allocation16 + $0x100] sm:$0xf] }
 0x375   :  { %2036 = vmatpush.bf16.msrb.mxu2 %v9860_v44  ;;  %v9620_v44 = vor.u32 %v12767_v41, %v9619_v40  ;;  %v12840_v40 = vld [vmem:[#allocation16 + $0x254] sm:$0xf0]  ;;  %v10043_v41 = vld [vmem:[#allocation16 + $0x348] sm:$0xf] }
 0x376   :  { %2070 = vmatpush.bf16.msrb.mxu0 %v9908_v46  ;;  %2099 = vmatpush.bf16.msrb.mxu3 %v10036_v48  ;;  %v12869_v46 = vld [vmem:[#allocation16 + $0x344] sm:$0xf]  ;;  %v9715_v48 = vld [vmem:[#allocation16 + $0xc0] sm:$0xf] }
 0x377   :  { %v10040_v49 = vor.u32 %v12869_v46, %v10037_v47 }
 0x37a   :  { %2071 = vmatpush.bf16.msrb.mxu0 %v9892_v51  ;;  %2100 = vmatpush.bf16.msrb.mxu3 %v10020_v52  ;;  %v9716_v51 = vor.u32 %v12791_v50, %v9715_v48  ;;  %v9844_v52 = vor.u32 %v12823_v5, %v9843_v28  ;;  %v9995_v48 = vld [vmem:[#allocation16 + $0x2e8] sm:$0xf]  ;;  %v12892_v5 = vld [vmem:[#allocation16 + $0x3f4] sm:$0xf0] }
 0x37b   :  { %v10123_v50 = vld [vmem:[#allocation16 + $0x3e8] sm:$0xf] }
 0x37c   :  { %2008 = vmatpush.bf16.msra.mxu1 %v9716_v51  ;;  %2037 = vmatpush.bf16.msrb.mxu2 %v9844_v52  ;;  %v10124_v51 = vor.u32 %v12892_v5, %v10123_v50  ;;  %v9979_v52 = vld [vmem:[#allocation16 + $0x2c8] sm:$0xf]  ;;  %v9845_v5 = vld [vmem:[#allocation16 + $0x1d0] sm:$0xf0] }
 0x37e   :  { %2072 = vmatpush.bf16.msrb.mxu0 %v9876_v60  ;;  %2101 = vmatpush.bf16.msrb.mxu3 %v10004_v10  ;;  %v10021_v60 = vld [vmem:[#allocation16 + $0x330] sm:$0xf0]  ;;  %v9699_v10 = vld [vmem:[#allocation16 + $0xa0] sm:$0xf] }
 0x381   :  { %9611 = vmatmul.msk.bf16.gmra.mxu0 %vm346_vm0, %v13602_v61  ;;  %9615 = vmatmul.msk.bf16.gmra.mxu3 %vm346_vm0, %v13602_v61  ;;  %v12787_v61 = vld [vmem:[#allocation16 + $0xac] sm:$0xf0] }
 0x382   :  { %2181 = vmatpush.bf16.msra.mxu0 %v9992_v63  ;;  %2210 = vmatpush.bf16.msra.mxu3 %v10120_v16  ;;  %v9700_v42 = vor.u32 %v12787_v61, %v9699_v10  ;;  %v9828_v63 = vor.u32 %v12819_v2, %v9827_v11  ;;  %v9877_v16 = vld [vmem:[#allocation16 + $0x210] sm:$0xf0]  ;;  %v12852_v11 = vld [vmem:[#allocation16 + $0x2b4] sm:$0xf0]  ;;  %v10091_v2 = vld [vmem:[#allocation16 + $0x3a8] sm:$0xf] }
 0x383   :  { %v9880_v19 = vor.u32 %v12829_v9, %v9877_v16 }
 0x384   :  { %2009 = vmatpush.bf16.msra.mxu1 %v9700_v42  ;;  %2038 = vmatpush.bf16.msrb.mxu2 %v9828_v63  ;;  %v12884_v63 = vld [vmem:[#allocation16 + $0x3b4] sm:$0xf0] }
 0x385   :  { %v10092_v9 = vor.u32 %v12884_v63, %v10091_v2 }
 0x386   :  { %2182 = vmatpush.bf16.msra.mxu0 %v9976_v25  ;;  %2211 = vmatpush.bf16.msra.mxu3 %v10104_v26  ;;  %v10008_v25 = vor.u32 %v12861_v8, %v10005_v24  ;;  %v12783_v26 = vld [vmem:[#allocation16 + $0x8c] sm:$0xf0]  ;;  %v9947_v8 = vld [vmem:[#allocation16 + $0x288] sm:$0xf] }
 0x387   :  { %v9684_v14 = vor.u32 %v12783_v26, %v9683_v20  ;;  %v10075_v24 = vld [vmem:[#allocation16 + $0x388] sm:$0xf]  ;;  %v12880_v26 = vld [vmem:[#allocation16 + $0x394] sm:$0xf0] }
 0x388   :  { %2039 = vmatpush.bf16.msrb.mxu2 %v9812_v29 }
 0x389   :  { %2010 = vmatpush.bf16.msra.mxu1 %v9684_v14  ;;  %v10076_v14 = vor.u32 %v12880_v26, %v10075_v24 }
 0x38a   :  { %2183 = vmatpush.bf16.msra.mxu0 %v9960_v27  ;;  %2212 = vmatpush.bf16.msra.mxu3 %v10088_v30  ;;  %v9667_v27 = vld [vmem:[#allocation16 + $0x60] sm:$0xf]  ;;  %v12779_v30 = vld [vmem:[#allocation16 + $0x6c] sm:$0xf0] }
 0x38b   :  { %v9668_v0 = vor.u32 %v12779_v30, %v9667_v27 }
 0x38c   :  { %2040 = vmatpush.bf16.msrb.mxu2 %v9796_v23  ;;  %v10059_v23 = vld [vmem:[#allocation16 + $0x368] sm:$0xf] }
 0x38d   :  { %2011 = vmatpush.bf16.msra.mxu1 %v9668_v0  ;;  %v9931_v0 = vld [vmem:[#allocation16 + $0x268] sm:$0xf] }
 0x38e   :  { %2184 = vmatpush.bf16.msra.mxu0 %v9944_v22  ;;  %2213 = vmatpush.bf16.msra.mxu3 %v10072_v32  ;;  %v9651_v22 = vld [vmem:[#allocation16 + $0x40] sm:$0xf]  ;;  %v12775_v32 = vld [vmem:[#allocation16 + $0x4c] sm:$0xf0] }
 0x38f   :  { %v9652_v4 = vor.u32 %v12775_v32, %v9651_v22  ;;  %v9932_v22 = vor.u32 %v12844_v31, %v9931_v0  ;;  %v12876_v32 = vld [vmem:[#allocation16 + $0x374] sm:$0xf0] }
 0x391   :  { %9612 = vmatmul.msk.bf16.gmra.mxu0 %vm346_vm0, %v13603_v62  ;;  %9616 = vmatmul.msk.bf16.gmra.mxu3 %vm346_vm0, %v13603_v62  ;;  %v10024_v62 = vor.u32 %v12865_v57, %v10021_v60  ;;  %v12888_v60 = vld [vmem:[#allocation16 + $0x3d4] sm:$0xf0] }
 0x392   :  { %2185 = vmatpush.bf16.msra.mxu0 %v9928_v35  ;;  %2214 = vmatpush.bf16.msra.mxu3 %v10056_v37  ;;  %v9780_v35 = vor.u32 %v12807_v34, %v9779_v33  ;;  %v12771_v37 = vld [vmem:[#allocation16 + $0x2c] sm:$0xf0]  ;;  %v10108_v10 = vor.u32 %v12888_v60, %v10107_v56  ;;  %v10060_v34 = vor.u32 %v12876_v32, %v10059_v23  ;;  %v10027_v56 = vld [vmem:[#allocation16 + $0x328] sm:$0xf] }
 0x393   :  { %2012 = vmatpush.bf16.msra.mxu1 %v9652_v4  ;;  %v9636_v58 = vor.u32 %v12771_v37, %v9635_v36  ;;  %v9733_v36 = vld [vmem:[#allocation16 + $0xf0] sm:$0xf0]  ;;  %v12825_v37 = vld [vmem:[#allocation16 + $0x1e4] sm:$0xf] }
 0x394   :  { %2041 = vmatpush.bf16.msrb.mxu2 %v9780_v35  ;;  %v12793_v35 = vld [vmem:[#allocation16 + $0xe4] sm:$0xf] }
 0x395   :  { %v9736_v1 = vor.u32 %v12793_v35, %v9733_v36  ;;  %v12777_v35 = vld [vmem:[#allocation16 + $0x64] sm:$0xf]  ;;  %v9669_v36 = vld [vmem:[#allocation16 + $0x70] sm:$0xf0] }
 0x396   :  { %2186 = vmatpush.bf16.msra.mxu0 %v9912_v45  ;;  %2215 = vmatpush.bf16.msra.mxu3 %v10040_v49  ;;  %v12799_v45 = vld [vmem:[#allocation16 + $0x10c] sm:$0xf0]  ;;  %v12860_v49 = vld [vmem:[#allocation16 + $0x2f4] sm:$0xf0] }
 0x397   :  { %2013 = vmatpush.bf16.msra.mxu1 %v9636_v58  ;;  %v9748_v46 = vor.u32 %v12799_v45, %v9747_v43  ;;  %v9996_v28 = vor.u32 %v12860_v49, %v9995_v48  ;;  %v9861_v58 = vld [vmem:[#allocation16 + $0x1f0] sm:$0xf0]  ;;  %v12872_v45 = vld [vmem:[#allocation16 + $0x354] sm:$0xf0]  ;;  %v12821_v49 = vld [vmem:[#allocation16 + $0x1c4] sm:$0xf] }
 0x398   :  { %2042 = vmatpush.bf16.msrb.mxu2 %v9764_v39  ;;  %v9864_v38 = vor.u32 %v12825_v37, %v9861_v58  ;;  %v9915_v39 = vld [vmem:[#allocation16 + $0x248] sm:$0xf]  ;;  %v9717_v48 = vld [vmem:[#allocation16 + $0xd0] sm:$0xf0]  ;;  %v12809_v37 = vld [vmem:[#allocation16 + $0x164] sm:$0xf] }
 0x399   :  { %v9797_v58 = vld [vmem:[#allocation16 + $0x170] sm:$0xf0] }
 0x39a   :  { %2187 = vmatpush.bf16.msra.mxu0 %v9896_v59  ;;  %2216 = vmatpush.bf16.msra.mxu3 %v10024_v62  ;;  %v9980_v59 = vor.u32 %v12856_v53, %v9979_v52  ;;  %v9963_v62 = vld [vmem:[#allocation16 + $0x2a8] sm:$0xf]  ;;  %v12836_v53 = vld [vmem:[#allocation16 + $0x234] sm:$0xf0] }
 0x39b   :  { %2014 = vmatpush.bf16.msra.mxu1 %v9620_v44  ;;  %v9964_v42 = vor.u32 %v12852_v11, %v9963_v62  ;;  %v9916_v44 = vor.u32 %v12840_v40, %v9915_v39  ;;  %v9899_v52 = vld [vmem:[#allocation16 + $0x228] sm:$0xf]  ;;  %v12817_v62 = vld [vmem:[#allocation16 + $0x1a4] sm:$0xf] }
 0x39c   :  { %2043 = vmatpush.bf16.msrb.mxu2 %v9748_v46  ;;  %v10044_v46 = vor.u32 %v12872_v45, %v10043_v41  ;;  %v12773_v40 = vld [vmem:[#allocation16 + $0x44] sm:$0xf]  ;;  %v9653_v41 = vld [vmem:[#allocation16 + $0x50] sm:$0xf0] }
 0x39d   :  { %v9781_v45 = vld [vmem:[#allocation16 + $0x150] sm:$0xf0] }
 0x39e   :  { %2188 = vmatpush.bf16.msra.mxu0 %v9880_v19  ;;  %2217 = vmatpush.bf16.msra.mxu3 %v10008_v25  ;;  %v12848_v19 = vld [vmem:[#allocation16 + $0x294] sm:$0xf0] }
 0x39f   :  { %v9948_v20 = vor.u32 %v12848_v19, %v9947_v8  ;;  %2123 = vmatpush.bf16.msrb.mxu1 %v9736_v1  ;;  %v10011_v8 = vld [vmem:[#allocation16 + $0x308] sm:$0xf]  ;;  %v9672_v1 = vor.u32 %v12777_v35, %v9669_v36  ;;  %v12854_v36 = vld [vmem:[#allocation16 + $0x2cc] sm:$0xf] }
 0x3a0   :  { %2152 = vmatpush.bf16.msra.mxu2 %v9864_v38  ;;  %v9800_v38 = vor.u32 %v12809_v37, %v9797_v58  ;;  %v9981_v37 = vld [vmem:[#allocation16 + $0x2d8] sm:$0xf0] }
 0x3a1   :  { %2073 = vmatmul.bf16.vlgmr.msrb.gmra.mxu0 %v14347_v12  ;;  %2102 = vmatmul.bf16.vlgmr.msrb.gmra.mxu3 %v14349_v13  ;;  %v9984_v58 = vor.u32 %v12854_v36, %v9981_v37  ;;  %v9707_v36 = vld [vmem:[#allocation16 + $0xa8] sm:$0xf]  ;;  %v12788_v37 = vld [vmem:[#allocation16 + $0xb4] sm:$0xf0] }
 0x3a2   :  { %2297 = vmatpush.bf16.msrb.mxu0 %v9996_v28  ;;  %2326 = vmatpush.bf16.msrb.mxu3 %v10124_v51  ;;  %v9848_v51 = vor.u32 %v12821_v49, %v9845_v5  ;;  %v9637_v49 = vld [vmem:[#allocation16 + $0x30] sm:$0xf0] }
 0x3a4   :  { %2153 = vmatpush.bf16.msra.mxu2 %v9848_v51  ;;  %v9765_v51 = vld [vmem:[#allocation16 + $0x130] sm:$0xf0] }
 0x3a6   :  { %2298 = vmatpush.bf16.msrb.mxu0 %v9980_v59  ;;  %2327 = vmatpush.bf16.msrb.mxu3 %v10108_v10  ;;  %v12868_v59 = vld [vmem:[#allocation16 + $0x334] sm:$0xf0]  ;;  %v12785_v10 = vld [vmem:[#allocation16 + $0xa4] sm:$0xf] }
 0x3a7   :  { %v10028_v60 = vor.u32 %v12868_v59, %v10027_v56  ;;  %v9621_v59 = vld [vmem:[#allocation16 + $0x10] sm:$0xf0] }
 0x3aa   :  { %2299 = vmatpush.bf16.msrb.mxu0 %v9964_v42  ;;  %2328 = vmatpush.bf16.msrb.mxu3 %v10092_v9  ;;  %v9829_v42 = vld [vmem:[#allocation16 + $0x1b0] sm:$0xf0]  ;;  %v9883_v9 = vld [vmem:[#allocation16 + $0x208] sm:$0xf] }
 0x3ab   :  { %v9832_v63 = vor.u32 %v12817_v62, %v9829_v42  ;;  %v9749_v62 = vld [vmem:[#allocation16 + $0x110] sm:$0xf0] }
 0x3ad   :  { %2154 = vmatpush.bf16.msra.mxu2 %v9832_v63 }
 0x3ae   :  { %2300 = vmatpush.bf16.msrb.mxu0 %v9948_v20  ;;  %2329 = vmatpush.bf16.msrb.mxu3 %v10076_v14  ;;  %v9685_v14 = vld [vmem:[#allocation16 + $0x90] sm:$0xf0] }
 0x3b1   :  { %2078 = vmatmul.bf16.gmra.mxu0 %v14339_v6  ;;  %2107 = vmatmul.bf16.gmra.mxu3 %v14341_v7 }
 0x3b2   :  { %2301 = vmatpush.bf16.msrb.mxu0 %v9932_v22  ;;  %2330 = vmatpush.bf16.msrb.mxu3 %v10060_v34 }
 0x3b6   :  { %2302 = vmatpush.bf16.msrb.mxu0 %v9916_v44  ;;  %2331 = vmatpush.bf16.msrb.mxu3 %v10044_v46  ;;  %v9656_v44 = vor.u32 %v12773_v40, %v9653_v41  ;;  %v12850_v40 = vld [vmem:[#allocation16 + $0x2ac] sm:$0xf]  ;;  %v9965_v41 = vld [vmem:[#allocation16 + $0x2b8] sm:$0xf0] }
 0x3ba   :  { %2332 = vmatpush.bf16.msrb.mxu3 %v10028_v60  ;;  %v12797_v60 = vld [vmem:[#allocation16 + $0x104] sm:$0xf] }
 0x3bb   :  { %v9752_v63 = vor.u32 %v12797_v60, %v9749_v62  ;;  %v9739_v60 = vld [vmem:[#allocation16 + $0xe8] sm:$0xf] }
 0x3c1   :  { %2083 = vmatmul.bf16.gmra.mxu0 %v14333_v15  ;;  %2112 = vmatmul.bf16.gmra.mxu3 %v14335_v18 }
 0x3d1   :  { %2088 = vmatmul.bf16.gmra.mxu0 %v14327_v54  ;;  %2117 = vmatmul.bf16.gmra.mxu3 %v14329_v55 }
 0x3de   :  { %v1132_v47 = vpop.f32.mrf.mxu0 }
 0x3e1   :  { %2189 = vmatmul.bf16.vlgmr.msra.gmra.mxu0 %v14347_v12  ;;  %2218 = vmatmul.bf16.vlgmr.msra.gmra.mxu3 %v14349_v13 }
 0x3e4   :  { %v1161_v57 = vpop.f32.mrf.mxu3 }
 0x3e5   :  { %v1181_v16 = vpack.c.bf16 %v1161_v57, %v1132_v47  ;;  %v12789_v47 = vld [vmem:[#allocation16 + $0xc4] sm:$0xf]  ;;  %v9900_v57 = vor.u32 %v12836_v53, %v9899_v52 }
 0x3e6   :  { %v1134_v61 = vpop.f32.mrf.mxu0  ;;  %v9720_v28 = vor.u32 %v12789_v47, %v9717_v48  ;;  %v12769_v48 = vld [vmem:[#allocation16 + $0x24] sm:$0xf] }
 0x3e7   :  { %v1197_v29 = vunpack.c.l.b16 %v1181_v16  ;;  %v1198_v27 = vunpack.c.h.b16 %v1181_v16  ;;  %2303 = vmatpush.bf16.msrb.mxu0 %v9900_v57  ;;  %v12832_v16 = vld [vmem:[#allocation16 + $0x214] sm:$0xf0]  ;;  %v9640_v5 = vor.u32 %v12769_v48, %v9637_v49  ;;  %v12765_v57 = vld [vmem:[#allocation16 + $0x4] sm:$0xf]  ;;  %v9949_v48 = vld [vmem:[#allocation16 + $0x298] sm:$0xf0] }
 0x3e8   :  { %2124 = vmatpush.bf16.msrb.mxu1 %v9720_v28  ;;  %v9884_v24 = vor.u32 %v12832_v16, %v9883_v9  ;;  %v12878_v49 = vld [vmem:[#allocation16 + $0x38c] sm:$0xf] }
 0x3eb   :  { %2304 = vmatpush.bf16.msrb.mxu0 %v9884_v24 }
 0x3ec   :  { %v1163_v25 = vpop.f32.mrf.mxu3 }
 0x3ed   :  { %v1182_v17 = vpack.c.bf16 %v1163_v25, %v1134_v61  ;;  %v9701_v61 = vld [vmem:[#allocation16 + $0xb0] sm:$0xf0]  ;;  %v12864_v25 = vld [vmem:[#allocation16 + $0x314] sm:$0xf0] }
 0x3ee   :  { %v1137_v21 = vpop.f32.mrf.mxu0  ;;  %v9704_v2 = vor.u32 %v12785_v10, %v9701_v61  ;;  %v10012_v26 = vor.u32 %v12864_v25, %v10011_v8  ;;  %v9624_v61 = vor.u32 %v12765_v57, %v9621_v59  ;;  %v10061_v57 = vld [vmem:[#allocation16 + $0x378] sm:$0xf0] }
 0x3ef   :  { %v1199_v30 = vunpack.c.l.b16 %v1182_v17  ;;  %v1200_v3 = vunpack.c.h.b16 %v1182_v17  ;;  %v12781_v17 = vld [vmem:[#allocation16 + $0x84] sm:$0xf] }
 0x3f0   :  { %2125 = vmatpush.bf16.msrb.mxu1 %v9704_v2  ;;  %2333 = vmatpush.bf16.msrb.mxu3 %v10012_v26 }
 0x3f1   :  { %v14373_v33 = vpack.c.b16 %v1199_v30, %v1197_v29  ;;  %v14375_v4 = vpack.c.b16 %v1200_v3, %v1198_v27  ;;  %2194 = vmatmul.bf16.gmra.mxu0 %v14339_v6  ;;  %2223 = vmatmul.bf16.gmra.mxu3 %v14341_v7  ;;  %v12813_v29 = vld [vmem:[#allocation16 + $0x184] sm:$0xf]  ;;  %v9688_v30 = vor.u32 %v12781_v17, %v9685_v14  ;;  %v9813_v3 = vld [vmem:[#allocation16 + $0x190] sm:$0xf0] }
 0x3f2   :  { %v9816_v22 = vor.u32 %v12813_v29, %v9813_v3  ;;  %v12890_v3 = vld [vmem:[#allocation16 + $0x3ec] sm:$0xf] }
 0x3f3   :  { %2015 = vmatmul.bf16.vlgmr.msra.gmra.mxu1 %v14373_v33  ;;  %2044 = vmatmul.bf16.vlgmr.msrb.gmra.mxu2 %v14375_v4 }
 0x3f4   :  { %v1166_v43 = vpop.f32.mrf.mxu3  ;;  %2126 = vmatpush.bf16.msrb.mxu1 %v9688_v30  ;;  %2155 = vmatpush.bf16.msra.mxu2 %v9816_v22  ;;  %v9997_v30 = vld [vmem:[#allocation16 + $0x2f8] sm:$0xf0] }
 0x3f5   :  { %v1183_v11 = vpack.c.bf16 %v1166_v43, %v1137_v21  ;;  %v12805_v43 = vld [vmem:[#allocation16 + $0x144] sm:$0xf] }
 0x3f6   :  { %v1139_v50 = vpop.f32.mrf.mxu0  ;;  %v9784_v46 = vor.u32 %v12805_v43, %v9781_v45  ;;  %v12882_v43 = vld [vmem:[#allocation16 + $0x3ac] sm:$0xf]  ;;  %v10093_v45 = vld [vmem:[#allocation16 + $0x3b8] sm:$0xf0] }
 0x3f7   :  { %v1201_v27 = vunpack.c.l.b16 %v1183_v11  ;;  %v1202_v0 = vunpack.c.h.b16 %v1183_v11 }
 0x3f8   :  { %2127 = vmatpush.bf16.msrb.mxu1 %v9672_v1  ;;  %2156 = vmatpush.bf16.msra.mxu2 %v9800_v38  ;;  %v12886_v1 = vld [vmem:[#allocation16 + $0x3cc] sm:$0xf]  ;;  %v10109_v38 = vld [vmem:[#allocation16 + $0x3d8] sm:$0xf0] }
 0x3fc   :  { %v1168_v19 = vpop.f32.mrf.mxu3  ;;  %2128 = vmatpush.bf16.msrb.mxu1 %v9656_v44  ;;  %2157 = vmatpush.bf16.msra.mxu2 %v9784_v46  ;;  %v9968_v44 = vor.u32 %v12850_v40, %v9965_v41  ;;  %v10096_v46 = vor.u32 %v12882_v43, %v10093_v45  ;;  %v12830_v41 = vld [vmem:[#allocation16 + $0x20c] sm:$0xf]  ;;  %v9885_v43 = vld [vmem:[#allocation16 + $0x218] sm:$0xf0] }
 0x3fd   :  { %v1184_v20 = vpack.c.bf16 %v1168_v19, %v1139_v50  ;;  %v12801_v50 = vld [vmem:[#allocation16 + $0x124] sm:$0xf] }
 0x3fe   :  { %v1142_v21 = vpop.f32.mrf.mxu0  ;;  %v9768_v52 = vor.u32 %v12801_v50, %v9765_v51  ;;  %v12842_v51 = vld [vmem:[#allocation16 + $0x26c] sm:$0xf] }
 0x3ff   :  { %v1203_v31 = vunpack.c.l.b16 %v1184_v20  ;;  %v1204_v23 = vunpack.c.h.b16 %v1184_v20 }
 0x400   :  { %2129 = vmatpush.bf16.msrb.mxu1 %v9640_v5  ;;  %2158 = vmatpush.bf16.msra.mxu2 %v9768_v52  ;;  %v9933_v52 = vld [vmem:[#allocation16 + $0x278] sm:$0xf0] }
 0x401   :  { %v14381_v32 = vpack.c.b16 %v1203_v31, %v1201_v27  ;;  %v14383_v34 = vpack.c.b16 %v1204_v23, %v1202_v0  ;;  %2199 = vmatmul.bf16.gmra.mxu0 %v14333_v15  ;;  %2228 = vmatmul.bf16.gmra.mxu3 %v14335_v18  ;;  %v10125_v31 = vld [vmem:[#allocation16 + $0x3f8] sm:$0xf0] }
 0x402   :  { %v10128_v35 = vor.u32 %v12890_v3, %v10125_v31  ;;  %v10029_v31 = vld [vmem:[#allocation16 + $0x338] sm:$0xf0] }
 0x403   :  { %2020 = vmatmul.bf16.gmra.mxu1 %v14381_v32  ;;  %2049 = vmatmul.bf16.gmra.mxu2 %v14383_v34 }
 0x404   :  { %v1171_v39 = vpop.f32.mrf.mxu3  ;;  %2130 = vmatpush.bf16.msrb.mxu1 %v9624_v61  ;;  %2159 = vmatpush.bf16.msra.mxu2 %v9752_v63  ;;  %v9867_v61 = vld [vmem:[#allocation16 + $0x1e8] sm:$0xf]  ;;  %v9917_v63 = vld [vmem:[#allocation16 + $0x258] sm:$0xf0] }
 0x405   :  { %v1185_v28 = vpack.c.bf16 %v1171_v39, %v1142_v21  ;;  %v12858_v21 = vld [vmem:[#allocation16 + $0x2ec] sm:$0xf]  ;;  %2442 = vmatpush.bf16.msra.mxu3 %v10128_v35  ;;  %v10112_v39 = vor.u32 %v12886_v1, %v10109_v38  ;;  %v9835_v1 = vld [vmem:[#allocation16 + $0x1a8] sm:$0xf]  ;;  %v9708_v38 = vor.u32 %v12788_v37, %v9707_v36 }
 0x406   :  { %v1144_v47 = vpop.f32.mrf.mxu0  ;;  %v10000_v0 = vor.u32 %v12858_v21, %v9997_v30  ;;  %v9901_v21 = vld [vmem:[#allocation16 + $0x238] sm:$0xf0] }
 0x407   :  { %v1205_v10 = vunpack.c.l.b16 %v1185_v28  ;;  %v1206_v11 = vunpack.c.h.b16 %v1185_v28  ;;  %v10077_v28 = vld [vmem:[#allocation16 + $0x398] sm:$0xf0] }
 0x408   :  { %2413 = vmatpush.bf16.msra.mxu0 %v10000_v0  ;;  %v10080_v5 = vor.u32 %v12878_v49, %v10077_v28  ;;  %v12866_v0 = vld [vmem:[#allocation16 + $0x32c] sm:$0xf]  ;;  %v9691_v49 = vld [vmem:[#allocation16 + $0x88] sm:$0xf] }
 0x409   :  { %2443 = vmatpush.bf16.msra.mxu3 %v10112_v39  ;;  %v10032_v35 = vor.u32 %v12866_v0, %v10029_v31  ;;  %v12820_v39 = vld [vmem:[#allocation16 + $0x1b4] sm:$0xf0]  ;;  %v9819_v28 = vld [vmem:[#allocation16 + $0x188] sm:$0xf] }
 0x40a   :  { %v9836_v40 = vor.u32 %v12820_v39, %v9835_v1  ;;  %v12800_v0 = vld [vmem:[#allocation16 + $0x114] sm:$0xf0] }
 0x40c   :  { %v1173_v53 = vpop.f32.mrf.mxu3  ;;  %2414 = vmatpush.bf16.msra.mxu0 %v9984_v58 }
 0x40d   :  { %v1186_v56 = vpack.c.bf16 %v1173_v53, %v1144_v47  ;;  %v12846_v47 = vld [vmem:[#allocation16 + $0x28c] sm:$0xf]  ;;  %2444 = vmatpush.bf16.msra.mxu3 %v10096_v46  ;;  %v9888_v46 = vor.u32 %v12830_v41, %v9885_v43 }
 0x40e   :  { %v1147_v8 = vpop.f32.mrf.mxu0  ;;  %v9952_v50 = vor.u32 %v12846_v47, %v9949_v48  ;;  %v12874_v53 = vld [vmem:[#allocation16 + $0x36c] sm:$0xf]  ;;  %v10013_v47 = vld [vmem:[#allocation16 + $0x318] sm:$0xf0] }
 0x40f   :  { %v1207_v2 = vunpack.c.l.b16 %v1186_v56  ;;  %v1208_v42 = vunpack.c.h.b16 %v1186_v56  ;;  %v9936_v56 = vor.u32 %v12842_v51, %v9933_v52  ;;  %v10064_v59 = vor.u32 %v12874_v53, %v10061_v57  ;;  %v12816_v51 = vld [vmem:[#allocation16 + $0x194] sm:$0xf0]  ;;  %v9675_v53 = vld [vmem:[#allocation16 + $0x68] sm:$0xf] }
 0x410   :  { %2415 = vmatpush.bf16.msra.mxu0 %v9968_v44  ;;  %v12862_v44 = vld [vmem:[#allocation16 + $0x30c] sm:$0xf]  ;;  %v9820_v52 = vor.u32 %v12816_v51, %v9819_v28  ;;  %v9803_v57 = vld [vmem:[#allocation16 + $0x168] sm:$0xf] }
 0x411   :  { %v14389_v9 = vpack.c.b16 %v1207_v2, %v1205_v10  ;;  %v14391_v16 = vpack.c.b16 %v1208_v42, %v1206_v11  ;;  %2204 = vmatmul.bf16.gmra.mxu0 %v14327_v54  ;;  %2233 = vmatmul.bf16.gmra.mxu3 %v14329_v55  ;;  %v12796_v10 = vld [vmem:[#allocation16 + $0xf4] sm:$0xf0]  ;;  %v12838_v42 = vld [vmem:[#allocation16 + $0x24c] sm:$0xf]  ;;  %v10016_v48 = vor.u32 %v12862_v44, %v10013_v47  ;;  %v9741_v44 = vld [vmem:[#allocation16 + $0xf8] sm:$0xf0] }
 0x412   :  { %2445 = vmatpush.bf16.msra.mxu3 %v10080_v5  ;;  %v9740_v62 = vor.u32 %v12796_v10, %v9739_v60  ;;  %v12828_v11 = vld [vmem:[#allocation16 + $0x1f4] sm:$0xf0]  ;;  %v12790_v28 = vld [vmem:[#allocation16 + $0xcc] sm:$0xf] }
 0x413   :  { %2025 = vmatmul.bf16.gmra.mxu1 %v14389_v9  ;;  %2054 = vmatmul.bf16.gmra.mxu2 %v14391_v16  ;;  %v9868_v2 = vor.u32 %v12828_v11, %v9867_v61  ;;  %v12812_v60 = vld [vmem:[#allocation16 + $0x174] sm:$0xf0]  ;;  %v12822_v51 = vld [vmem:[#allocation16 + $0x1cc] sm:$0xf] }
 0x414   :  { %v1176_v19 = vpop.f32.mrf.mxu3  ;;  %2416 = vmatpush.bf16.msra.mxu0 %v9952_v50  ;;  %2239 = vmatpush.bf16.msra.mxu1 %v9740_v62  ;;  %v12784_v50 = vld [vmem:[#allocation16 + $0x94] sm:$0xf0]  ;;  %v9804_v10 = vor.u32 %v12812_v60, %v9803_v57  ;;  %v9659_v62 = vld [vmem:[#allocation16 + $0x48] sm:$0xf] }
 0x415   :  { %v1187_v24 = vpack.c.bf16 %v1176_v19, %v1147_v8  ;;  %v12870_v8 = vld [vmem:[#allocation16 + $0x34c] sm:$0xf]  ;;  %v9920_v19 = vor.u32 %v12838_v42, %v9917_v63  ;;  %2268 = vmatpush.bf16.msrb.mxu2 %v9868_v2  ;;  %v9692_v5 = vor.u32 %v12784_v50, %v9691_v49  ;;  %v12776_v11 = vld [vmem:[#allocation16 + $0x54] sm:$0xf0]  ;;  %v9787_v2 = vld [vmem:[#allocation16 + $0x148] sm:$0xf] }
 0x416   :  { %v1149_v25 = vpop.f32.mrf.mxu0  ;;  %2446 = vmatpush.bf16.msra.mxu3 %v10064_v59  ;;  %v9660_v63 = vor.u32 %v12776_v11, %v9659_v62  ;;  %v9709_v62 = vld [vmem:[#allocation16 + $0xb8] sm:$0xf0]  ;;  %v12818_v11 = vld [vmem:[#allocation16 + $0x1ac] sm:$0xf] }
 0x417   :  { %v1209_v17 = vunpack.c.l.b16 %v1187_v24  ;;  %v1210_v14 = vunpack.c.h.b16 %v1187_v24  ;;  %v10045_v24 = vld [vmem:[#allocation16 + $0x358] sm:$0xf0] }
 0x418   :  { %2417 = vmatpush.bf16.msra.mxu0 %v9936_v56  ;;  %v12780_v56 = vld [vmem:[#allocation16 + $0x74] sm:$0xf0] }
 0x419   :  { %v9676_v59 = vor.u32 %v12780_v56, %v9675_v53  ;;  %v9853_v53 = vld [vmem:[#allocation16 + $0x1d8] sm:$0xf0] }
 0x41a   :  { %v9856_v57 = vor.u32 %v12822_v51, %v9853_v53  ;;  %v12770_v53 = vld [vmem:[#allocation16 + $0x2c] sm:$0xf] }
 0x41c   :  { %v1178_v20 = vpop.f32.mrf.mxu3  ;;  %2418 = vmatpush.bf16.msra.mxu0 %v9920_v19 }
 0x41d   :  { %v1188_v26 = vpack.c.bf16 %v1178_v20, %v1149_v25  ;;  %v10048_v25 = vor.u32 %v12870_v8, %v10045_v24  ;;  %v9723_v20 = vld [vmem:[#allocation16 + $0xc8] sm:$0xf]  ;;  %v12808_v8 = vld [vmem:[#allocation16 + $0x154] sm:$0xf0] }
 0x41e   :  { %v14409_v58 = vpop.f32.mrf.mxu0  ;;  %v9788_v19 = vor.u32 %v12808_v8, %v9787_v2  ;;  %v9643_v24 = vld [vmem:[#allocation16 + $0x28] sm:$0xf] }
 0x41f   :  { %v1211_v29 = vunpack.c.l.b16 %v1188_v26  ;;  %v1212_v27 = vunpack.c.h.b16 %v1188_v26  ;;  %v12792_v26 = vld [vmem:[#allocation16 + $0xd4] sm:$0xf0]  ;;  %2447 = vmatpush.bf16.msra.mxu3 %v10048_v25 }
 0x420   :  { %v12772_v25 = vld [vmem:[#allocation16 + $0x34] sm:$0xf0] }
 0x421   :  { %v14397_v23 = vpack.c.b16 %v1211_v29, %v1209_v17  ;;  %v14399_v22 = vpack.c.b16 %v1212_v27, %v1210_v14  ;;  %2305 = vmatmul.bf16.vlgmr.msrb.gmra.mxu0 %v14347_v12  ;;  %2334 = vmatmul.bf16.vlgmr.msrb.gmra.mxu3 %v14349_v13  ;;  %v9851_v17 = vld [vmem:[#allocation16 + $0x1c8] sm:$0xf]  ;;  %v9724_v14 = vor.u32 %v12792_v26, %v9723_v20  ;;  %v12824_v29 = vld [vmem:[#allocation16 + $0x1d4] sm:$0xf0]  ;;  %v12834_v27 = vld [vmem:[#allocation16 + $0x22c] sm:$0xf] }
 0x422   :  { %v9852_v30 = vor.u32 %v12824_v29, %v9851_v17  ;;  %v9904_v3 = vor.u32 %v12834_v27, %v9901_v21  ;;  %v9771_v20 = vld [vmem:[#allocation16 + $0x128] sm:$0xf]  ;;  %v9644_v26 = vor.u32 %v12772_v25, %v9643_v24  ;;  %v12804_v17 = vld [vmem:[#allocation16 + $0x134] sm:$0xf0]  ;;  %v12782_v24 = vld [vmem:[#allocation16 + $0x8c] sm:$0xf] }
 0x423   :  { %2030 = vmatmul.bf16.gmra.mxu1 %v14397_v23  ;;  %2059 = vmatmul.bf16.gmra.mxu2 %v14399_v22  ;;  %v9627_v29 = vld [vmem:[#allocation16 + $0x8] sm:$0xf]  ;;  %v12768_v27 = vld [vmem:[#allocation16 + $0x14] sm:$0xf0]  ;;  %v9693_v25 = vld [vmem:[#allocation16 + $0x98] sm:$0xf0] }
 0x424   :  { %2240 = vmatpush.bf16.msra.mxu1 %v9724_v14  ;;  %2269 = vmatpush.bf16.msrb.mxu2 %v9852_v30  ;;  %v14411_v45 = vpop.f32.mrf.mxu3  ;;  %v9772_v14 = vor.u32 %v12804_v17, %v9771_v20  ;;  %v9755_v21 = vld [vmem:[#allocation16 + $0x108] sm:$0xf]  ;;  %v12814_v17 = vld [vmem:[#allocation16 + $0x18c] sm:$0xf] }
 0x425   :  { %2419 = vmatpush.bf16.msra.mxu0 %v9904_v3  ;;  %2448 = vmatpush.bf16.msra.mxu3 %v10032_v35  ;;  %v9628_v3 = vor.u32 %v12768_v27, %v9627_v29  ;;  %v9756_v31 = vor.u32 %v12800_v0, %v9755_v21  ;;  %v12778_v0 = vld [vmem:[#allocation16 + $0x6c] sm:$0xf] }
 0x426   :  { %v14417_v61 = vpop.f32.mrf.mxu0 }
 0x428   :  { %2241 = vmatpush.bf16.msra.mxu1 %v9708_v38  ;;  %2270 = vmatpush.bf16.msrb.mxu2 %v9836_v40  ;;  %v14443_v40 = vld [vmem:[#allocation17] sm:$0xf] }
 0x429   :  { %2420 = vmatpush.bf16.msra.mxu0 %v9888_v46  ;;  %2449 = vmatpush.bf16.msra.mxu3 %v10016_v48  ;;  %v14448_v43 = vperm.slane %v14443_v40, 0  ;;  %v12826_v46 = vld [vmem:[#allocation16 + $0x1ec] sm:$0xf]  ;;  %v9869_v48 = vld [vmem:[#allocation16 + $0x1f8] sm:$0xf0] }
 0x42a   :  { %v9872_v49 = vor.u32 %v12826_v46, %v9869_v48  ;;  %v9805_v46 = vld [vmem:[#allocation16 + $0x178] sm:$0xf0] }
 0x42c   :  { %2242 = vmatpush.bf16.msra.mxu1 %v9692_v5  ;;  %2271 = vmatpush.bf16.msrb.mxu2 %v9820_v52  ;;  %v14419_v42 = vpop.f32.mrf.mxu3  ;;  %v9725_v5 = vld [vmem:[#allocation16 + $0xd8] sm:$0xf0] }
 0x42d   :  { %v9728_v52 = vor.u32 %v12790_v28, %v9725_v5  ;;  %v12806_v28 = vld [vmem:[#allocation16 + $0x14c] sm:$0xf]  ;;  %v9789_v5 = vld [vmem:[#allocation16 + $0x158] sm:$0xf0] }
 0x42e   :  { %v14421_v30 = vpop.f32.mrf.mxu0 }
 0x430   :  { %2243 = vmatpush.bf16.msra.mxu1 %v9676_v59  ;;  %2272 = vmatpush.bf16.msrb.mxu2 %v9804_v10  ;;  %v12786_v10 = vld [vmem:[#allocation16 + $0xac] sm:$0xf] }
 0x431   :  { %2310 = vmatmul.bf16.gmra.mxu0 %v14339_v6  ;;  %2339 = vmatmul.bf16.gmra.mxu3 %v14341_v7  ;;  %v9712_v2 = vor.u32 %v12786_v10, %v9709_v62 }
 0x433   :  { %2131 = vmatmul.bf16.vlgmr.msrb.gmra.mxu1 %v14373_v33  ;;  %2160 = vmatmul.bf16.vlgmr.msra.gmra.mxu2 %v14375_v4 }
 0x434   :  { %2244 = vmatpush.bf16.msra.mxu1 %v9660_v63  ;;  %2273 = vmatpush.bf16.msrb.mxu2 %v9788_v19  ;;  %v14423_v35 = vpop.f32.mrf.mxu3  ;;  %v9837_v63 = vld [vmem:[#allocation16 + $0x1b8] sm:$0xf0] }
 0x435   :  { %v9840_v8 = vor.u32 %v12818_v11, %v9837_v63  ;;  %v9773_v11 = vld [vmem:[#allocation16 + $0x138] sm:$0xf0] }
 0x436   :  { %v14429_v36 = vpop.f32.mrf.mxu0 }
 0x438   :  { %2245 = vmatpush.bf16.msra.mxu1 %v9644_v26  ;;  %2274 = vmatpush.bf16.msrb.mxu2 %v9772_v14  ;;  %v9696_v26 = vor.u32 %v12782_v24, %v9693_v25  ;;  %v9821_v14 = vld [vmem:[#allocation16 + $0x198] sm:$0xf0] }
 0x439   :  { %v9824_v27 = vor.u32 %v12814_v17, %v9821_v14  ;;  %v9629_v24 = vld [vmem:[#allocation16 + $0x18] sm:$0xf0] }
 0x43a   :  { %v9757_v17 = vld [vmem:[#allocation16 + $0x118] sm:$0xf0] }
 0x43c   :  { %2246 = vmatpush.bf16.msra.mxu1 %v9628_v3  ;;  %2275 = vmatpush.bf16.msrb.mxu2 %v9756_v31  ;;  %v14431_v37 = vpop.f32.mrf.mxu3  ;;  %v9677_v31 = vld [vmem:[#allocation16 + $0x78] sm:$0xf0] }
 0x43e   :  { %v14435_v1 = vpop.f32.mrf.mxu0 }
 0x440   :  { %2384 = vmatpush.bf16.msra.mxu2 %v9872_v49  ;;  %v12774_v49 = vld [vmem:[#allocation16 + $0x4c] sm:$0xf] }
 0x441   :  { %2315 = vmatmul.bf16.gmra.mxu0 %v14333_v15  ;;  %2344 = vmatmul.bf16.gmra.mxu3 %v14335_v18 }
 0x443   :  { %2136 = vmatmul.bf16.gmra.mxu1 %v14381_v32  ;;  %2165 = vmatmul.bf16.gmra.mxu2 %v14383_v34 }
 0x444   :  { %v14439_v38 = vpop.f32.mrf.mxu3  ;;  %2385 = vmatpush.bf16.msra.mxu2 %v9856_v57  ;;  %v9645_v57 = vld [vmem:[#allocation16 + $0x38] sm:$0xf0] }
 0x445   :  { %v9648_v62 = vor.u32 %v12770_v53, %v9645_v57 }
 0x446   :  { %v14441_v39 = vpop.f32.mrf.mxu0 }
 0x448   :  { %2386 = vmatpush.bf16.msra.mxu2 %v9840_v8 }
 0x44c   :  { %v14445_v41 = vpop.f32.mrf.mxu3  ;;  %2387 = vmatpush.bf16.msra.mxu2 %v9824_v27 }
 0x451   :  { %2320 = vmatmul.bf16.gmra.mxu0 %v14327_v54  ;;  %2349 = vmatmul.bf16.gmra.mxu3 %v14329_v55 }
 0x453   :  { %2141 = vmatmul.bf16.gmra.mxu1 %v14389_v9  ;;  %2170 = vmatmul.bf16.gmra.mxu2 %v14391_v16 }
 0x454   :  { %v14459_v59 = vpop.f32.mrf.mxu3 }
 0x461   :  { %2421 = vmatmul.bf16.vlgmr.msra.gmra.mxu0 %v14347_v12  ;;  %2450 = vmatmul.bf16.vlgmr.msra.gmra.mxu3 %v14349_v13  ;;  %v12794_v13 = vld [vmem:[#allocation16 + $0xec] sm:$0xf] }
 0x462   :  { %v9744_v47 = vor.u32 %v12794_v13, %v9741_v44  ;;  %v14468_v13 = vpop.f32.mrf.mxu3  ;;  %v9680_v44 = vor.u32 %v12778_v0, %v9677_v31 }
 0x463   :  { %2146 = vmatmul.bf16.gmra.mxu1 %v14397_v23  ;;  %2175 = vmatmul.bf16.gmra.mxu2 %v14399_v22 }
 0x464   :  { %2355 = vmatpush.bf16.msrb.mxu1 %v9744_v47 }
 0x468   :  { %2356 = vmatpush.bf16.msrb.mxu1 %v9728_v52 }
 0x46a   :  { %v2219_v63 = vpop.f32.mrf.mxu3 }
 0x46c   :  { %2357 = vmatpush.bf16.msrb.mxu1 %v9712_v2 }
 0x470   :  { %v2016_v12 = vpop.f32.mrf.mxu1  ;;  %2358 = vmatpush.bf16.msrb.mxu1 %v9696_v26  ;;  %v12798_v26 = vld [vmem:[#allocation16 + $0x10c] sm:$0xf] }
 0x471   :  { %2426 = vmatmul.bf16.gmra.mxu0 %v14339_v6  ;;  %2455 = vmatmul.bf16.gmra.mxu3 %v14341_v7  ;;  %v2017_v50 = vadd.f32 %v2016_v12, %v14448_v43  ;;  %v14455_v6 = vpop.f32.mrf.mxu0  ;;  %v12810_v12 = vld [vmem:[#allocation16 + $0x16c] sm:$0xf]  ;;  %v9760_v27 = vor.u32 %v12798_v26, %v9757_v17  ;;  %v14515_v26 = vld [vmem:[#allocation19] sm:$0xf] }
 0x472   :  { %v9808_v47 = vor.u32 %v12810_v12, %v9805_v46  ;;  %v2221_v12 = vpop.f32.mrf.mxu3 }
 0x473   :  { %2247 = vmatmul.bf16.vlgmr.msra.gmra.mxu1 %v14373_v33  ;;  %2276 = vmatmul.bf16.vlgmr.msrb.gmra.mxu2 %v14375_v4 }
 0x474   :  { %2359 = vmatpush.bf16.msrb.mxu1 %v9680_v44  ;;  %2388 = vmatpush.bf16.msra.mxu2 %v9808_v47 }
 0x476   :  { %v2045_v7 = vpop.f32.mrf.mxu2 }
 0x477   :  { %v14457_v56 = vadd.f32 %v2045_v7, %v2017_v50  ;;  %v9792_v7 = vor.u32 %v12806_v28, %v9789_v5 }
 0x478   :  { %v2018_v60 = vpop.f32.mrf.mxu1 }
 0x479   :  { %v2019_v19 = vadd.f32 %v2018_v60, %v14448_v43  ;;  %v14464_v21 = vpop.f32.mrf.mxu0  ;;  %v12802_v60 = vld [vmem:[#allocation16 + $0x12c] sm:$0xf]  ;;  %2389 = vmatpush.bf16.msra.mxu2 %v9792_v7 }
 0x47a   :  { %v9776_v2 = vor.u32 %v12802_v60, %v9773_v11 }
 0x47d   :  { %2390 = vmatpush.bf16.msra.mxu2 %v9776_v2  ;;  %v14503_v2 = vperm.slane %v14443_v40, 1 }
 0x47e   :  { %v2047_v20 = vpop.f32.mrf.mxu2 }
 0x47f   :  { %v14462_v29 = vadd.f32 %v2047_v20, %v2019_v19  ;;  %v12766_v19 = vld [vmem:[#allocation16 + $0xc] sm:$0xf] }
 0x480   :  { %v2021_v3 = vpop.f32.mrf.mxu1  ;;  %v9632_v20 = vor.u32 %v12766_v19, %v9629_v24  ;;  %v2075_v19 = vadd.f32 %v14409_v58, %v14457_v56  ;;  %v14523_v56 = vperm.slane %v14515_v26, 1 }
 0x481   :  { %2431 = vmatmul.bf16.gmra.mxu0 %v14333_v15  ;;  %2460 = vmatmul.bf16.gmra.mxu3 %v14335_v18  ;;  %v2022_v48 = vadd.f32 %v2021_v3, %v14448_v43  ;;  %v9661_v15 = vld [vmem:[#allocation16 + $0x58] sm:$0xf0]  ;;  %v2190_v10 = vpop.f32.mrf.mxu0 }
 0x482   :  { %v9664_v18 = vor.u32 %v12774_v49, %v9661_v15  ;;  %2391 = vmatpush.bf16.msra.mxu2 %v9760_v27 }
 0x483   :  { %2252 = vmatmul.bf16.gmra.mxu1 %v14381_v32  ;;  %2281 = vmatmul.bf16.gmra.mxu2 %v14383_v34 }
 0x484   :  { %2360 = vmatpush.bf16.msrb.mxu1 %v9664_v18 }
 0x486   :  { %v2050_v50 = vpop.f32.mrf.mxu2 }
 0x487   :  { %v14473_v51 = vadd.f32 %v2050_v50, %v2022_v48 }
 0x488   :  { %v2023_v52 = vpop.f32.mrf.mxu1  ;;  %2361 = vmatpush.bf16.msrb.mxu1 %v9648_v62 }
 0x489   :  { %v2024_v8 = vadd.f32 %v2023_v52, %v14448_v43  ;;  %v2192_v0 = vpop.f32.mrf.mxu0 }
 0x48c   :  { %2362 = vmatpush.bf16.msrb.mxu1 %v9632_v20  ;;  %v2104_v20 = vadd.f32 %v14411_v45, %v2075_v19 }
 0x48e   :  { %v2052_v25 = vpop.f32.mrf.mxu2  ;;  %v2471_v58 = vmax.f32 %v2104_v20, 0.0 }
 0x48f   :  { %v14476_v14 = vadd.f32 %v2052_v25, %v2024_v8 }
 0x490   :  { %v2026_v3 = vpop.f32.mrf.mxu1 }
 0x491   :  { %2436 = vmatmul.bf16.gmra.mxu0 %v14327_v54  ;;  %2465 = vmatmul.bf16.gmra.mxu3 %v14329_v55  ;;  %v2027_v31 = vadd.f32 %v2026_v3, %v14448_v43  ;;  %v2195_v49 = vpop.f32.mrf.mxu0  ;;  %v14488_v55 = vpop.f32.mrf.mxu3 }
 0x493   :  { %2257 = vmatmul.bf16.gmra.mxu1 %v14389_v9  ;;  %2286 = vmatmul.bf16.gmra.mxu2 %v14391_v16 }
 0x496   :  { %v2055_v44 = vpop.f32.mrf.mxu2 }
 0x497   :  { %v14483_v46 = vadd.f32 %v2055_v44, %v2027_v31  ;;  %v14518_v31 = vperm.slane %v14515_v26, 0 }
 0x498   :  { %v2028_v47 = vpop.f32.mrf.mxu1 }
 0x499   :  { %v2029_v48 = vadd.f32 %v2028_v47, %v14448_v43  ;;  %v14495_v7 = vpop.f32.mrf.mxu0  ;;  %v14497_v53 = vpop.f32.mrf.mxu3 }
 0x49e   :  { %v2057_v15 = vpop.f32.mrf.mxu2 }
 0x49f   :  { %v14486_v54 = vadd.f32 %v2057_v15, %v2029_v48 }
 0x4a0   :  { %v2031_v50 = vpop.f32.mrf.mxu1 }
 0x4a1   :  { %v2032_v18 = vadd.f32 %v2031_v50, %v14448_v43  ;;  %v14505_v8 = vpop.f32.mrf.mxu0  ;;  %v14511_v24 = vpop.f32.mrf.mxu3 }
 0x4a3   :  { %2262 = vmatmul.bf16.gmra.mxu1 %v14397_v23  ;;  %2291 = vmatmul.bf16.gmra.mxu2 %v14399_v22 }
 0x4a6   :  { %v2060_v28 = vpop.f32.mrf.mxu2 }
 0x4a7   :  { %v14493_v5 = vadd.f32 %v2060_v28, %v2032_v18 }
 0x4a8   :  { %v2033_v52 = vpop.f32.mrf.mxu1 }
 0x4a9   :  { %v2034_v57 = vadd.f32 %v2033_v52, %v14448_v43  ;;  %v14525_v44 = vpop.f32.mrf.mxu0  ;;  %v14528_v48 = vpop.f32.mrf.mxu3 }
 0x4ae   :  { %v2062_v60 = vpop.f32.mrf.mxu2 }
 0x4af   :  { %v14500_v62 = vadd.f32 %v2062_v60, %v2034_v57 }
 0x4b0   :  { %v2132_v11 = vpop.f32.mrf.mxu1 }
 0x4b1   :  { %v2133_v43 = vadd.f32 %v2132_v11, %v14503_v2  ;;  %v14536_v19 = vpop.f32.mrf.mxu0 }
 0x4b3   :  { %2363 = vmatmul.bf16.vlgmr.msrb.gmra.mxu1 %v14373_v33  ;;  %2392 = vmatmul.bf16.vlgmr.msra.gmra.mxu2 %v14375_v4  ;;  %v2077_v33 = vadd.f32 %v14417_v61, %v14462_v29 }
 0x4b5   :  { %v2106_v50 = vadd.f32 %v14419_v42, %v2077_v33 }
 0x4b6   :  { %v2161_v25 = vpop.f32.mrf.mxu2 }
 0x4b7   :  { %v2162_v17 = vadd.f32 %v2161_v25, %v2133_v43  ;;  %v2475_v52 = vmax.f32 %v2106_v50, 0.0 }
 0x4b8   :  { %v2134_v27 = vpop.f32.mrf.mxu1 }
 0x4b9   :  { %v2191_v3 = vadd.f32 %v2190_v10, %v2162_v17  ;;  %v2135_v45 = vadd.f32 %v2134_v27, %v14503_v2  ;;  %v2513_v10 = vadd.f32 %v14518_v31, %v2471_v58  ;;  %v2517_v42 = vadd.f32 %v14518_v31, %v2475_v52  ;;  %v14542_v17 = vpop.f32.mrf.mxu3 }
 0x4bb   :  { %v2220_v4 = vadd.f32 %v2219_v63, %v2191_v3 }
 0x4bd   :  { %v2472_v47 = vmax.f32 %v2220_v4, 0.0 }
 0x4be   :  { %v2163_v15 = vpop.f32.mrf.mxu2 }
 0x4bf   :  { %v2514_v18 = vadd.f32 %v14523_v56, %v2472_v47  ;;  %v2164_v28 = vadd.f32 %v2163_v15, %v2135_v45 }
 0x4c0   :  { %v2137_v61 = vpop.f32.mrf.mxu1 }
 0x4c1   :  { %v2545_v29 = vpack.c.bf16 %v2514_v18, %v2513_v10  ;;  %v2193_v63 = vadd.f32 %v2192_v0, %v2164_v28  ;;  %v2138_v11 = vadd.f32 %v2137_v61, %v14503_v2  ;;  %v2080_v0 = vadd.f32 %v14421_v30, %v14473_v51 }
 0x4c3   :  { %v2222_v57 = vadd.f32 %v2221_v12, %v2193_v63  ;;  %2368 = vmatmul.bf16.gmra.mxu1 %v14381_v32  ;;  %2397 = vmatmul.bf16.gmra.mxu2 %v14383_v34  ;;  %v2082_v34 = vadd.f32 %v14429_v36, %v14476_v14  ;;  %v2577_v3 = vunpack.c.l.b16 %v2545_v29  ;;  %v2578_v58 = vunpack.c.h.b16 %v2545_v29  ;;  %v14554_v14 = vpop.f32.mrf.mxu0 }
 0x4c4   :  { %v2109_v45 = vadd.f32 %v14423_v35, %v2080_v0 }
 0x4c5   :  { %v2476_v60 = vmax.f32 %v2222_v57, 0.0 }
 0x4c6   :  { %v2166_v43 = vpop.f32.mrf.mxu2  ;;  %v2479_v36 = vmax.f32 %v2109_v45, 0.0 }
 0x4c7   :  { %v2518_v25 = vadd.f32 %v14523_v56, %v2476_v60  ;;  %v2167_v20 = vadd.f32 %v2166_v43, %v2138_v11 }
 0x4c8   :  { %v2139_v12 = vpop.f32.mrf.mxu1 }
 0x4c9   :  { %v2547_v32 = vpack.c.bf16 %v2518_v25, %v2517_v42  ;;  %v2196_v27 = vadd.f32 %v2195_v49, %v2167_v20  ;;  %v2140_v30 = vadd.f32 %v2139_v12, %v14503_v2  ;;  %v2111_v49 = vadd.f32 %v14431_v37, %v2082_v34 }
 0x4ca   :  { %v2521_v37 = vadd.f32 %v14518_v31, %v2479_v36  ;;  %v2085_v25 = vadd.f32 %v14435_v1, %v14483_v46 }
 0x4cb   :  { %v2581_v33 = vunpack.c.l.b16 %v2547_v32  ;;  %v2582_v4 = vunpack.c.h.b16 %v2547_v32  ;;  %v2225_v47 = vadd.f32 %v14488_v55, %v2196_v27  ;;  %v14557_v55 = vpop.f32.mrf.mxu3  ;;  %v2483_v29 = vmax.f32 %v2111_v49, 0.0  ;;  %v14572_v0 = vpop.f32.mrf.mxu0 }
 0x4cd   :  { %v14548_v15 = vpack.c.b16 %v2581_v33, %v2577_v3  ;;  %v14550_v10 = vpack.c.b16 %v2582_v4, %v2578_v58  ;;  %v2480_v51 = vmax.f32 %v2225_v47, 0.0  ;;  %v2114_v58 = vadd.f32 %v14439_v38, %v2085_v25 }
 0x4ce   :  { %v2168_v50 = vpop.f32.mrf.mxu2 }
 0x4cf   :  { %16546 = vst [vmem:[#allocation39_spill] sm:$0xff] %v14548_v15  ;;  %v2169_v18 = vadd.f32 %v2168_v50, %v2140_v30  ;;  %v2522_v35 = vadd.f32 %v14523_v56, %v2480_v51  ;;  %v2487_v45 = vmax.f32 %v2114_v58, 0.0 }
 0x4d0   :  { %16547 = vst [vmem:[#allocation40_spill] sm:$0xff] %v14550_v10  ;;  %v2142_v28 = vpop.f32.mrf.mxu1 }
 0x4d1   :  { %v2198_v61 = vadd.f32 %v14495_v7, %v2169_v18  ;;  %v2143_v57 = vadd.f32 %v2142_v28, %v14503_v2  ;;  %v2549_v60 = vpack.c.bf16 %v2522_v35, %v2521_v37  ;;  %v2525_v7 = vadd.f32 %v14518_v31, %v2483_v29 }
 0x4d2   :  { %v2529_v49 = vadd.f32 %v14518_v31, %v2487_v45 }
 0x4d3   :  { %v2227_v63 = vadd.f32 %v14497_v53, %v2198_v61  ;;  %2373 = vmatmul.bf16.gmra.mxu1 %v14389_v9  ;;  %2402 = vmatmul.bf16.gmra.mxu2 %v14391_v16  ;;  %v2087_v16 = vadd.f32 %v14441_v39, %v14486_v54  ;;  %v2585_v12 = vunpack.c.l.b16 %v2549_v60  ;;  %v2586_v32 = vunpack.c.h.b16 %v2549_v60  ;;  %v14576_v33 = vpop.f32.mrf.mxu3  ;;  %v14590_v18 = vpop.f32.mrf.mxu0 }
 0x4d5   :  { %v2484_v52 = vmax.f32 %v2227_v63, 0.0  ;;  %v2116_v54 = vadd.f32 %v14445_v41, %v2087_v16 }
 0x4d6   :  { %v2171_v11 = vpop.f32.mrf.mxu2 }
 0x4d7   :  { %v2526_v43 = vadd.f32 %v14523_v56, %v2484_v52  ;;  %v2172_v42 = vadd.f32 %v2171_v11, %v2143_v57  ;;  %v2491_v38 = vmax.f32 %v2116_v54, 0.0  ;;  %v2092_v52 = vadd.f32 %v14464_v21, %v14500_v62 }
 0x4d8   :  { %v2144_v53 = vpop.f32.mrf.mxu1 }
 0x4d9   :  { %v2551_v20 = vpack.c.bf16 %v2526_v43, %v2525_v7  ;;  %v2201_v9 = vadd.f32 %v14505_v8, %v2172_v42  ;;  %v2145_v8 = vadd.f32 %v2144_v53, %v14503_v2  ;;  %v2533_v35 = vadd.f32 %v14518_v31, %v2491_v38 }
 0x4db   :  { %v2589_v27 = vunpack.c.l.b16 %v2551_v20  ;;  %v2590_v34 = vunpack.c.h.b16 %v2551_v20  ;;  %v2230_v3 = vadd.f32 %v14511_v24, %v2201_v9  ;;  %v14593_v28 = vpop.f32.mrf.mxu3  ;;  %v2121_v20 = vadd.f32 %v14468_v13, %v2092_v52 }
 0x4dd   :  { %v14578_v1 = vpack.c.b16 %v2589_v27, %v2585_v12  ;;  %v14580_v46 = vpack.c.b16 %v2590_v34, %v2586_v32  ;;  %v2488_v4 = vmax.f32 %v2230_v3, 0.0  ;;  %v2499_v32 = vmax.f32 %v2121_v20, 0.0 }
 0x4de   :  { %v2173_v39 = vpop.f32.mrf.mxu2 }
 0x4df   :  { %16548 = vst [vmem:[#allocation41_spill] sm:$0xff] %v14578_v1  ;;  %v2174_v47 = vadd.f32 %v2173_v39, %v2145_v8  ;;  %v2530_v24 = vadd.f32 %v14523_v56, %v2488_v4  ;;  %v2541_v8 = vadd.f32 %v14518_v31, %v2499_v32 }
 0x4e0   :  { %16549 = vst [vmem:[#allocation42_spill] sm:$0xff] %v14580_v46  ;;  %v2147_v30 = vpop.f32.mrf.mxu1 }
 0x4e1   :  { %v2203_v51 = vadd.f32 %v14525_v44, %v2174_v47  ;;  %v2148_v41 = vadd.f32 %v2147_v30, %v14503_v2  ;;  %v2553_v61 = vpack.c.bf16 %v2530_v24, %v2529_v49 }
 0x4e3   :  { %v2232_v50 = vadd.f32 %v14528_v48, %v2203_v51  ;;  %2378 = vmatmul.bf16.gmra.mxu1 %v14397_v23  ;;  %2407 = vmatmul.bf16.gmra.mxu2 %v14399_v22  ;;  %v2090_v23 = vadd.f32 %v14455_v6, %v14493_v5  ;;  %v2593_v57 = vunpack.c.l.b16 %v2553_v61  ;;  %v2594_v60 = vunpack.c.h.b16 %v2553_v61  ;;  %v14609_v5 = vpop.f32.mrf.mxu0  ;;  %v14612_v9 = vpop.f32.mrf.mxu3 }
 0x4e5   :  { %v2492_v36 = vmax.f32 %v2232_v50, 0.0  ;;  %v2119_v42 = vadd.f32 %v14459_v59, %v2090_v23  ;;  %v14616_v59 = vperm.slane %v14443_v40, 2 }
 0x4e6   :  { %v2176_v44 = vpop.f32.mrf.mxu2 }
 0x4e7   :  { %v2534_v29 = vadd.f32 %v14523_v56, %v2492_v36  ;;  %v2177_v48 = vadd.f32 %v2176_v44, %v2148_v41  ;;  %v2495_v12 = vmax.f32 %v2119_v42, 0.0 }
 0x4e8   :  { %v2149_v63 = vpop.f32.mrf.mxu1 }
 0x4e9   :  { %v2555_v22 = vpack.c.bf16 %v2534_v29, %v2533_v35  ;;  %v2206_v37 = vadd.f32 %v14536_v19, %v2177_v48  ;;  %v2150_v6 = vadd.f32 %v2149_v63, %v14503_v2  ;;  %v2537_v34 = vadd.f32 %v14518_v31, %v2495_v12 }
 0x4eb   :  { %v2597_v11 = vunpack.c.l.b16 %v2555_v22  ;;  %v2598_v7 = vunpack.c.h.b16 %v2555_v22  ;;  %v2235_v43 = vadd.f32 %v14542_v17, %v2206_v37  ;;  %v14624_v54 = vpop.f32.mrf.mxu0  ;;  %v14628_v30 = vpop.f32.mrf.mxu3  ;;  %v14659_v22 = vld [vmem:[#allocation2] sm:$0xff] }
 0x4ec   :  { %16554 = vst [vmem:[#allocation47_spill] sm:$0xff] %v14659_v22 }
 0x4ed   :  { %v14604_v25 = vpack.c.b16 %v2597_v11, %v2593_v57  ;;  %v14606_v53 = vpack.c.b16 %v2598_v7, %v2594_v60  ;;  %v2496_v21 = vmax.f32 %v2235_v43, 0.0 }
 0x4ee   :  { %v2178_v19 = vpop.f32.mrf.mxu2 }
 0x4ef   :  { %16550 = vst [vmem:[#allocation43_spill] sm:$0xff] %v14604_v25  ;;  %v2179_v62 = vadd.f32 %v2178_v19, %v2150_v6  ;;  %v2538_v27 = vadd.f32 %v14523_v56, %v2496_v21  ;;  %v14676_v6 = vld [vmem:[#allocation2 + $0x8] sm:$0xff] }
 0x4f0   :  { %16551 = vst [vmem:[#allocation44_spill] sm:$0xff] %v14606_v53  ;;  %v2248_v16 = vpop.f32.mrf.mxu1 }
 0x4f1   :  { %v2208_v17 = vadd.f32 %v14554_v14, %v2179_v62  ;;  %v2249_v13 = vadd.f32 %v2248_v16, %v14616_v59  ;;  %v2557_v4 = vpack.c.bf16 %v2538_v27, %v2537_v34  ;;  %16555 = vst [vmem:[#allocation48_spill] sm:$0xff] %v14676_v6  ;;  %v14693_v34 = vld [vmem:[#allocation2 + $0x10] sm:$0xff] }
 0x4f2   :  { %16556 = vst [vmem:[#allocation49_spill] sm:$0xff] %v14693_v34 }
 0x4f3   :  { %v2237_v2 = vadd.f32 %v14557_v55, %v2208_v17  ;;  %v2601_v55 = vunpack.c.l.b16 %v2557_v4  ;;  %v2602_v51 = vunpack.c.h.b16 %v2557_v4  ;;  %v14638_v36 = vpop.f32.mrf.mxu0  ;;  %v14642_v41 = vpop.f32.mrf.mxu3 }
 0x4f5   :  { %v2500_v3 = vmax.f32 %v2237_v2, 0.0 }
 0x4f6   :  { %v2277_v58 = vpop.f32.mrf.mxu2 }
 0x4f7   :  { %v2542_v39 = vadd.f32 %v14523_v56, %v2500_v3  ;;  %v2278_v14 = vadd.f32 %v2277_v58, %v2249_v13  ;;  %v14700_v13 = vperm.slane %v14443_v40, 3 }
 0x4f8   :  { %v14626_v47 = vpop.f32.mrf.mxu1 }
 0x4f9   :  { %v2559_v45 = vpack.c.bf16 %v2542_v39, %v2541_v8  ;;  %v2307_v58 = vadd.f32 %v14572_v0, %v2278_v14  ;;  %v14715_v0 = vperm.slane %v14515_v26, 3 }
 0x4fb   :  { %v2605_v24 = vunpack.c.l.b16 %v2559_v45  ;;  %v2606_v38 = vunpack.c.h.b16 %v2559_v45  ;;  %v14653_v48 = vpop.f32.mrf.mxu0  ;;  %v14655_v63 = vpop.f32.mrf.mxu3 }
 0x4fd   :  { %v14630_v50 = vpack.c.b16 %v2605_v24, %v2601_v55  ;;  %v14632_v49 = vpack.c.b16 %v2606_v38, %v2602_v51  ;;  %v2336_v55 = vadd.f32 %v14576_v33, %v2307_v58 }
 0x4fe   :  { %v14634_v31 = vpop.f32.mrf.mxu2 }
 0x4ff   :  { %16552 = vst [vmem:[#allocation45_spill] sm:$0xff] %v14630_v50  ;;  %2645 = vmatpush.bf16.msra.mxu1 %v14630_v50  ;;  %2674 = vmatpush.bf16.msrb.mxu2 %v14632_v49 }
 0x500   :  { %16553 = vst [vmem:[#allocation46_spill] sm:$0xff] %v14632_v49  ;;  %v2253_v56 = vpop.f32.mrf.mxu1  ;;  %v10371_v49 = vld [vmem:[#allocation20 + $0x1c0] sm:$0xf] }
 0x501   :  { %v2254_v61 = vadd.f32 %v2253_v56, %v14616_v59  ;;  %v2473_v56 = vmax.f32 %v2336_v55, 0.0 }
 0x503   :  { %2646 = vmatpush.bf16.msra.mxu1 %v14604_v25  ;;  %2675 = vmatpush.bf16.msrb.mxu2 %v14606_v53  ;;  %v14666_v57 = vpop.f32.mrf.mxu0  ;;  %v14670_v7 = vpop.f32.mrf.mxu3  ;;  %v13017_v53 = vld [vmem:[#allocation20 + $0x3dc] sm:$0xf0] }
 0x506   :  { %v2282_v44 = vpop.f32.mrf.mxu2 }
 0x507   :  { %v14645_v35 = vadd.f32 %v2282_v44, %v2254_v61  ;;  %2647 = vmatpush.bf16.msra.mxu1 %v14578_v1  ;;  %2676 = vmatpush.bf16.msrb.mxu2 %v14580_v46  ;;  %v14712_v61 = vperm.slane %v14515_v26, 2 }
 0x508   :  { %v14649_v29 = vpop.f32.mrf.mxu1 }
 0x509   :  { %v2515_v33 = vadd.f32 %v14712_v61, %v2473_v56  ;;  %v2312_v25 = vadd.f32 %v14609_v5, %v14645_v35 }
 0x50b   :  { %2648 = vmatpush.bf16.msra.mxu1 %v14548_v15  ;;  %2677 = vmatpush.bf16.msrb.mxu2 %v14550_v10  ;;  %v14682_v19 = vpop.f32.mrf.mxu0  ;;  %v14684_v21 = vpop.f32.mrf.mxu3  ;;  %v2251_v15 = vadd.f32 %v14626_v47, %v14616_v59 }
 0x50e   :  { %v14657_v23 = vpop.f32.mrf.mxu2  ;;  %10133 = vmatmul.msk.bf16.vlgmr.msrb.gmra.mxu2 %vm346_vm0, %v14659_v22  ;;  %10129 = vmatmul.msk.bf16.vlgmr.msra.gmra.mxu1 %vm346_vm0, %v14659_v22  ;;  %v13009_v22 = vld [vmem:[#allocation20 + $0x39c] sm:$0xf0] }
 0x510   :  { %v2258_v37 = vpop.f32.mrf.mxu1 }
 0x511   :  { %v2259_v52 = vadd.f32 %v2258_v37, %v14616_v59 }
 0x513   :  { %v2422_v32 = vpop.f32.mrf.mxu0  ;;  %v2451_v27 = vpop.f32.mrf.mxu3 }
 0x516   :  { %v2287_v60 = vpop.f32.mrf.mxu2 }
 0x517   :  { %v14668_v11 = vadd.f32 %v2287_v60, %v2259_v52  ;;  %v14721_v52 = vld [vmem:[#allocation2 + $0x18] sm:$0xff] }
 0x518   :  { %v14672_v43 = vpop.f32.mrf.mxu1  ;;  %16557 = vst [vmem:[#allocation50_spill] sm:$0xff] %v14721_v52 }
 0x519   :  { %v2317_v46 = vadd.f32 %v14638_v36, %v14668_v11  ;;  %v14752_v36 = vadd.f32 %v14612_v9, %v2312_v25 }
 0x51b   :  { %v14703_v8 = vpop.f32.mrf.mxu0  ;;  %v14706_v39 = vpop.f32.mrf.mxu3 }
 0x51e   :  { %v14674_v42 = vpop.f32.mrf.mxu2  ;;  %10134 = vmatmul.msk.bf16.gmra.mxu2 %vm346_vm0, %v14676_v6  ;;  %10130 = vmatmul.msk.bf16.gmra.mxu1 %vm346_vm0, %v14676_v6  ;;  %v10595_v6 = vld [vmem:[#allocation20 + $0x380] sm:$0xf] }
 0x51f   :  { %v10596_v47 = vor.u32 %v13009_v22, %v10595_v6  ;;  %v10307_v22 = vld [vmem:[#allocation20 + $0x140] sm:$0xf] }
 0x520   :  { %v2263_v20 = vpop.f32.mrf.mxu1  ;;  %v10563_v6 = vld [vmem:[#allocation20 + $0x340] sm:$0xf] }
 0x521   :  { %v2264_v62 = vadd.f32 %v2263_v20, %v14616_v59 }
 0x523   :  { %v14717_v44 = vpop.f32.mrf.mxu0  ;;  %v14729_v20 = vpop.f32.mrf.mxu3 }
 0x526   :  { %v2292_v16 = vpop.f32.mrf.mxu2 }
 0x527   :  { %v14687_v12 = vadd.f32 %v2292_v16, %v2264_v62 }
 0x528   :  { %v14689_v17 = vpop.f32.mrf.mxu1 }
 0x52e   :  { %v14691_v2 = vpop.f32.mrf.mxu2  ;;  %10135 = vmatmul.msk.bf16.gmra.mxu2 %vm346_vm0, %v14693_v34  ;;  %10131 = vmatmul.msk.bf16.gmra.mxu1 %vm346_vm0, %v14693_v34  ;;  %v12945_v34 = vld [vmem:[#allocation20 + $0x19c] sm:$0xf0] }
 0x530   :  { %v2364_v3 = vpop.f32.mrf.mxu1 }
 0x531   :  { %v2365_v4 = vadd.f32 %v2364_v3, %v14700_v13  ;;  %v14735_v3 = vpop.f32.mrf.mxu3 }
 0x536   :  { %v2393_v45 = vpop.f32.mrf.mxu2 }
 0x537   :  { %v2394_v51 = vadd.f32 %v2393_v45, %v2365_v4 }
 0x538   :  { %v14709_v24 = vpop.f32.mrf.mxu1 }
 0x539   :  { %v2423_v38 = vadd.f32 %v2422_v32, %v2394_v51  ;;  %v14733_v32 = vpop.f32.mrf.mxu0  ;;  %v14737_v55 = vpop.f32.mrf.mxu3 }
 0x53b   :  { %v2452_v40 = vadd.f32 %v2451_v27, %v2423_v38 }
 0x53d   :  { %v2474_v14 = vmax.f32 %v2452_v40, 0.0 }
 0x53e   :  { %v14719_v37 = vpop.f32.mrf.mxu2  ;;  %10136 = vmatmul.msk.bf16.gmra.mxu2 %vm346_vm0, %v14721_v52  ;;  %10132 = vmatmul.msk.bf16.gmra.mxu1 %vm346_vm0, %v14721_v52  ;;  %v10339_v52 = vld [vmem:[#allocation20 + $0x180] sm:$0xf] }
 0x53f   :  { %v2516_v60 = vadd.f32 %v14715_v0, %v2474_v14  ;;  %v10340_v35 = vor.u32 %v12945_v34, %v10339_v52 }
 0x540   :  { %v2369_v26 = vpop.f32.mrf.mxu1 }
 0x541   :  { %v14731_v62 = vpack.c.bf16 %v2516_v60, %v2515_v33  ;;  %v2432_v45 = vpop.f32.mrf.mxu0  ;;  %v14739_v40 = vpop.f32.mrf.mxu3  ;;  %v12953_v33 = vld [vmem:[#allocation20 + $0x1dc] sm:$0xf0] }
 0x542   :  { %v10627_v60 = vld [vmem:[#allocation20 + $0x3c0] sm:$0xf]  ;;  %v10372_v50 = vor.u32 %v12953_v33, %v10371_v49  ;;  %v2256_v49 = vadd.f32 %v14649_v29, %v14616_v59 }
 0x543   :  { %v10628_v10 = vor.u32 %v13017_v53, %v10627_v60  ;;  %v14755_v53 = vadd.f32 %v14642_v41, %v2317_v46  ;;  %v2370_v46 = vadd.f32 %v2369_v26, %v14700_v13 }
 0x544   :  { %5943 = vmatpush.bf16.msrb.mxu1 %v10372_v50  ;;  %v2266_v50 = vadd.f32 %v14689_v17, %v14616_v59  ;;  %v2285_v34 = vadd.f32 %v14657_v23, %v2256_v49  ;;  %v13001_v23 = vld [vmem:[#allocation20 + $0x35c] sm:$0xf0] }
 0x545   :  { %5972 = vmatpush.bf16.msra.mxu2 %v10628_v10  ;;  %v2261_v10 = vadd.f32 %v14672_v43, %v14616_v59  ;;  %v12937_v43 = vld [vmem:[#allocation20 + $0x15c] sm:$0xf0]  ;;  %v2322_v59 = vadd.f32 %v14666_v57, %v14687_v12  ;;  %v10564_v60 = vor.u32 %v13001_v23, %v10563_v6 }
 0x546   :  { %v2398_v16 = vpop.f32.mrf.mxu2  ;;  %v2314_v57 = vadd.f32 %v14624_v54, %v2285_v34  ;;  %v10211_v23 = vld [vmem:[#allocation20 + $0x80] sm:$0xf] }
 0x547   :  { %v2290_v25 = vadd.f32 %v14674_v42, %v2261_v10 }
 0x548   :  { %v2371_v27 = vpop.f32.mrf.mxu1  ;;  %5944 = vmatpush.bf16.msrb.mxu1 %v10340_v35  ;;  %v2280_v35 = vadd.f32 %v14634_v31, %v2251_v15 }
 0x549   :  { %v2434_v56 = vpop.f32.mrf.mxu0  ;;  %v2372_v9 = vadd.f32 %v2371_v27, %v14700_v13  ;;  %5973 = vmatpush.bf16.msra.mxu2 %v10596_v47  ;;  %v2466_v42 = vpop.f32.mrf.mxu3  ;;  %v2489_v27 = vmax.f32 %v14755_v53, 0.0  ;;  %v2319_v12 = vadd.f32 %v14653_v48, %v2290_v25  ;;  %v10531_v47 = vld [vmem:[#allocation20 + $0x300] sm:$0xf] }
 0x54a   :  { %v12897_v53 = vld [vmem:[#allocation20 + $0x1c] sm:$0xf0] }
 0x54d   :  { %5974 = vmatpush.bf16.msra.mxu2 %v10564_v60 }
 0x54e   :  { %v2400_v58 = vpop.f32.mrf.mxu2 }
 0x54f   :  { %v2401_v26 = vadd.f32 %v2400_v58, %v2372_v9  ;;  %v12929_v58 = vld [vmem:[#allocation20 + $0x11c] sm:$0xf0] }
 0x550   :  { %v2374_v4 = vpop.f32.mrf.mxu1 }
 0x551   :  { %v2375_v33 = vadd.f32 %v2374_v4, %v14700_v13  ;;  %v2437_v52 = vpop.f32.mrf.mxu0  ;;  %v2430_v31 = vadd.f32 %v14733_v32, %v2401_v26  ;;  %v2348_v32 = vadd.f32 %v14655_v63, %v2319_v12 }
 0x556   :  { %v2403_v51 = vpop.f32.mrf.mxu2 }
 0x557   :  { %v2404_v29 = vadd.f32 %v2403_v51, %v2375_v33  ;;  %v10308_v51 = vor.u32 %v12937_v43, %v10307_v22 }
 0x558   :  { %v2376_v38 = vpop.f32.mrf.mxu1 }
 0x559   :  { %v2377_v5 = vadd.f32 %v2376_v38, %v14700_v13  ;;  %v2481_v38 = vmax.f32 %v14752_v36, 0.0  ;;  %v2433_v49 = vadd.f32 %v2432_v45, %v2404_v29  ;;  %5945 = vmatpush.bf16.msrb.mxu1 %v10308_v51  ;;  %v2439_v22 = vpop.f32.mrf.mxu0 }
 0x55e   :  { %v2405_v14 = vpop.f32.mrf.mxu2 }
 0x55f   :  { %v2406_v11 = vadd.f32 %v2405_v14, %v2377_v5  ;;  %v2399_v14 = vadd.f32 %v2398_v16, %v2370_v46  ;;  %v10275_v16 = vld [vmem:[#allocation20 + $0x100] sm:$0xf] }
 0x560   :  { %v2379_v1 = vpop.f32.mrf.mxu1  ;;  %v10276_v29 = vor.u32 %v12929_v58, %v10275_v16  ;;  %v12921_v46 = vld [vmem:[#allocation20 + $0xdc] sm:$0xf0] }
 0x561   :  { %v2380_v4 = vadd.f32 %v2379_v1, %v14700_v13  ;;  %v2295_v1 = vadd.f32 %v14691_v2, %v2266_v50  ;;  %v2435_v33 = vadd.f32 %v2434_v56, %v2406_v11  ;;  %v2367_v2 = vadd.f32 %v14709_v24, %v14700_v13  ;;  %v12993_v11 = vld [vmem:[#allocation20 + $0x31c] sm:$0xf0] }
 0x562   :  { %v2351_v50 = vadd.f32 %v14670_v7, %v2322_v59  ;;  %v2428_v54 = vadd.f32 %v14717_v44, %v2399_v14  ;;  %v10532_v48 = vor.u32 %v12993_v11, %v10531_v47  ;;  %v2462_v24 = vadd.f32 %v14737_v55, %v2433_v49  ;;  %5946 = vmatpush.bf16.msrb.mxu1 %v10276_v29  ;;  %v10499_v44 = vld [vmem:[#allocation20 + $0x2c0] sm:$0xf] }
 0x563   :  { %v2324_v45 = vadd.f32 %v14682_v19, %v2295_v1  ;;  %v2396_v15 = vadd.f32 %v14719_v37, %v2367_v2  ;;  %v2309_v7 = vadd.f32 %v14590_v18, %v2280_v35  ;;  %v2343_v19 = vadd.f32 %v14628_v30, %v2314_v57  ;;  %v10243_v37 = vld [vmem:[#allocation20 + $0xc0] sm:$0xf] }
 0x564   :  { %5975 = vmatpush.bf16.msra.mxu2 %v10532_v48  ;;  %v2497_v43 = vmax.f32 %v2351_v50, 0.0  ;;  %v2459_v18 = vadd.f32 %v14735_v3, %v2430_v31  ;;  %v2457_v30 = vadd.f32 %v14729_v20, %v2428_v54  ;;  %v2490_v59 = vmax.f32 %v2462_v24, 0.0  ;;  %v10467_v14 = vld [vmem:[#allocation20 + $0x280] sm:$0xf] }
 0x565   :  { %v2353_v9 = vadd.f32 %v14684_v21, %v2324_v45  ;;  %v14792_v63 = vadd.f32 %v14593_v28, %v2309_v7  ;;  %v2468_v21 = vpop.f32.mrf.mxu3  ;;  %v12977_v49 = vld [vmem:[#allocation20 + $0x29c] sm:$0xf0]  ;;  %v2485_v28 = vmax.f32 %v2343_v19, 0.0 }
 0x566   :  { %v2408_v41 = vpop.f32.mrf.mxu2  ;;  %v2539_v20 = vadd.f32 %v14712_v61, %v2497_v43  ;;  %v10468_v35 = vor.u32 %v12977_v49, %v10467_v14  ;;  %v2482_v57 = vmax.f32 %v2457_v30, 0.0  ;;  %v10179_v58 = vld [vmem:[#allocation20 + $0x40] sm:$0xf] }
 0x567   :  { %v2409_v17 = vadd.f32 %v2408_v41, %v2380_v4  ;;  %v2464_v4 = vadd.f32 %v14739_v40, %v2435_v33  ;;  %v10244_v41 = vor.u32 %v12921_v46, %v10243_v37  ;;  %v12985_v40 = vld [vmem:[#allocation20 + $0x2dc] sm:$0xf0]  ;;  %v2501_v26 = vmax.f32 %v2353_v9, 0.0 }
 0x568   :  { %v2381_v10 = vpop.f32.mrf.mxu1  ;;  %v10500_v6 = vor.u32 %v12985_v40, %v10499_v44  ;;  %v12905_v47 = vld [vmem:[#allocation20 + $0x5c] sm:$0xf0]  ;;  %v2477_v24 = vmax.f32 %v14792_v63, 0.0  ;;  %v2524_v7 = vadd.f32 %v14715_v0, %v2482_v57 }
 0x569   :  { %v2438_v5 = vadd.f32 %v2437_v52, %v2409_v17  ;;  %v2382_v52 = vadd.f32 %v2381_v10, %v14700_v13  ;;  %v2425_v13 = vadd.f32 %v14703_v8, %v2396_v15  ;;  %v2494_v1 = vmax.f32 %v2464_v4, 0.0  ;;  %5947 = vmatpush.bf16.msrb.mxu1 %v10244_v41  ;;  %v10435_v50 = vld [vmem:[#allocation20 + $0x240] sm:$0xf] }
 0x56a   :  { %5976 = vmatpush.bf16.msra.mxu2 %v10500_v6  ;;  %v2493_v8 = vmax.f32 %v2348_v32, 0.0  ;;  %v2532_v10 = vadd.f32 %v14715_v0, %v2490_v59  ;;  %v10180_v29 = vor.u32 %v12905_v47, %v10179_v58  ;;  %v12969_v11 = vld [vmem:[#allocation20 + $0x25c] sm:$0xf0]  ;;  %v2531_v15 = vadd.f32 %v14712_v61, %v2489_v27 }
 0x56b   :  { %v2467_v56 = vadd.f32 %v2466_v42, %v2438_v5  ;;  %v12913_v42 = vld [vmem:[#allocation20 + $0x9c] sm:$0xf0]  ;;  %v2454_v33 = vadd.f32 %v14706_v39, %v2425_v13  ;;  %v2486_v5 = vmax.f32 %v2459_v18, 0.0  ;;  %v2536_v12 = vadd.f32 %v14715_v0, %v2494_v1 }
 0x56c   :  { %v10212_v60 = vor.u32 %v12913_v42, %v10211_v23  ;;  %v2535_v45 = vadd.f32 %v14712_v61, %v2493_v8  ;;  %v10436_v48 = vor.u32 %v12969_v11, %v10435_v50  ;;  %v2554_v19 = vpack.c.bf16 %v2532_v10, %v2531_v15  ;;  %v10147_v37 = vld [vmem:[#allocation20] sm:$0xf] }
 0x56d   :  { %v2498_v34 = vmax.f32 %v2467_v56, 0.0  ;;  %v2543_v56 = vadd.f32 %v14712_v61, %v2501_v26  ;;  %v2478_v54 = vmax.f32 %v2454_v33, 0.0  ;;  %v2528_v31 = vadd.f32 %v14715_v0, %v2486_v5  ;;  %v10403_v46 = vld [vmem:[#allocation20 + $0x200] sm:$0xf]  ;;  %v16564_v5 = vld [vmem:[#allocation47_spill] sm:$0xff] }
 0x56e   :  { %v2410_v25 = vpop.f32.mrf.mxu2  ;;  %5948 = vmatpush.bf16.msrb.mxu1 %v10212_v60  ;;  %5977 = vmatpush.bf16.msra.mxu2 %v10468_v35  ;;  %v2556_v4 = vpack.c.bf16 %v2536_v12, %v2535_v45  ;;  %v10148_v9 = vor.u32 %v12897_v53, %v10147_v37  ;;  %v2523_v41 = vadd.f32 %v14712_v61, %v2481_v38  ;;  %v2596_v63 = vunpack.c.h.b16 %v2554_v19  ;;  %v11651_v11 = vld [vmem:[#allocation20 + $0xbc0] sm:$0xf] }
 0x56f   :  { %v2411_v55 = vadd.f32 %v2410_v25, %v2382_v52  ;;  %v2540_v51 = vadd.f32 %v14715_v0, %v2498_v34  ;;  %v2527_v52 = vadd.f32 %v14712_v61, %v2485_v28  ;;  %v2520_v40 = vadd.f32 %v14715_v0, %v2478_v54  ;;  %v13273_v54 = vld [vmem:[#allocation20 + $0xbdc] sm:$0xf0] }
 0x570   :  { %v2599_v13 = vunpack.c.l.b16 %v2556_v4  ;;  %v2600_v18 = vunpack.c.h.b16 %v2556_v4  ;;  %v2519_v59 = vadd.f32 %v14712_v61, %v2477_v24  ;;  %v2550_v1 = vpack.c.bf16 %v2524_v7, %v2523_v41  ;;  %v11363_v24 = vld [vmem:[#allocation20 + $0x980] sm:$0xf] }
 0x571   :  { %v2440_v17 = vadd.f32 %v2439_v22, %v2411_v55  ;;  %v2558_v16 = vpack.c.bf16 %v2540_v51, %v2539_v20  ;;  %v12961_v55 = vld [vmem:[#allocation20 + $0x21c] sm:$0xf0]  ;;  %v2552_v22 = vpack.c.bf16 %v2528_v31, %v2527_v52  ;;  %v2580_v60 = vunpack.c.h.b16 %v14731_v62 }
 0x572   :  { %5949 = vmatpush.bf16.msrb.mxu1 %v10180_v29  ;;  %5978 = vmatpush.bf16.msra.mxu2 %v10436_v48  ;;  %v10404_v43 = vor.u32 %v12961_v55, %v10403_v46  ;;  %v14822_v51 = vpack.c.b16 %v2600_v18, %v2596_v63  ;;  %v2587_v23 = vunpack.c.l.b16 %v2550_v1  ;;  %v2588_v42 = vunpack.c.h.b16 %v2550_v1  ;;  %v13209_v29 = vld [vmem:[#allocation20 + $0x9dc] sm:$0xf0] }
 0x573   :  { %v2469_v3 = vadd.f32 %v2468_v21, %v2440_v17  ;;  %v2603_v25 = vunpack.c.l.b16 %v2558_v16  ;;  %v2604_v27 = vunpack.c.h.b16 %v2558_v16  ;;  %v2595_v17 = vunpack.c.l.b16 %v2554_v19  ;;  %v13201_v4 = vld [vmem:[#allocation20 + $0x99c] sm:$0xf0] }
 0x574   :  { %v2591_v36 = vunpack.c.l.b16 %v2552_v22  ;;  %v2592_v38 = vunpack.c.h.b16 %v2552_v22  ;;  %16561 = vst [vmem:[#allocation54_spill] sm:$0xff] %v14822_v51  ;;  %v11652_v31 = vor.u32 %v13273_v54, %v11651_v11  ;;  %v11364_v7 = vor.u32 %v13201_v4, %v11363_v24  ;;  %v13265_v19 = vld [vmem:[#allocation20 + $0xb9c] sm:$0xf0] }
 0x575   :  { %v2502_v2 = vmax.f32 %v2469_v3, 0.0  ;;  %v14820_v21 = vpack.c.b16 %v2599_v13, %v2595_v17  ;;  %v2579_v3 = vunpack.c.l.b16 %v14731_v62  ;;  %v11331_v53 = vld [vmem:[#allocation20 + $0x940] sm:$0xf] }
 0x576   :  { %5950 = vmatpush.bf16.msrb.mxu1 %v10148_v9  ;;  %5979 = vmatpush.bf16.msra.mxu2 %v10404_v43  ;;  %v14826_v8 = vpack.c.b16 %v2591_v36, %v2587_v23  ;;  %v14828_v26 = vpack.c.b16 %v2592_v38, %v2588_v42  ;;  %v13193_v46 = vld [vmem:[#allocation20 + $0x95c] sm:$0xf0] }
 0x577   :  { %v2544_v39 = vadd.f32 %v14715_v0, %v2502_v2  ;;  %v2548_v0 = vpack.c.bf16 %v2520_v40, %v2519_v59  ;;  %16560 = vst [vmem:[#allocation53_spill] sm:$0xff] %v14820_v21  ;;  %v11299_v43 = vld [vmem:[#allocation20 + $0x900] sm:$0xf] }
 0x578   :  { %16562 = vst [vmem:[#allocation55_spill] sm:$0xff] %v14826_v8  ;;  %v13185_v13 = vld [vmem:[#allocation20 + $0x91c] sm:$0xf0] }
 0x579   :  { %v2560_v34 = vpack.c.bf16 %v2544_v39, %v2543_v56  ;;  %v2583_v61 = vunpack.c.l.b16 %v2548_v0  ;;  %v2584_v14 = vunpack.c.h.b16 %v2548_v0  ;;  %16563 = vst [vmem:[#allocation56_spill] sm:$0xff] %v14828_v26  ;;  %v16567_v56 = vld [vmem:[#allocation48_spill] sm:$0xff]  ;;  %v11300_v1 = vor.u32 %v13185_v13, %v11299_v43  ;;  %v16568_v42 = vld [vmem:[#allocation49_spill] sm:$0xff] }
 0x57a   :  { %v11395_v39 = vld [vmem:[#allocation20 + $0x9c0] sm:$0xf]  ;;  %6088 = vmatpush.bf16.msrb.mxu2 %v11652_v31 }
 0x57b   :  { %v2607_v44 = vunpack.c.l.b16 %v2560_v34  ;;  %v2608_v32 = vunpack.c.h.b16 %v2560_v34  ;;  %v14834_v49 = vpack.c.b16 %v2583_v61, %v2579_v3  ;;  %v14836_v20 = vpack.c.b16 %v2584_v14, %v2580_v60  ;;  %v11619_v34 = vld [vmem:[#allocation20 + $0xb80] sm:$0xf] }
 0x57c   :  { %v11396_v15 = vor.u32 %v13209_v29, %v11395_v39  ;;  %v11555_v18 = vld [vmem:[#allocation20 + $0xb00] sm:$0xf] }
 0x57d   :  { %v14813_v6 = vpack.c.b16 %v2607_v44, %v2603_v25  ;;  %v14815_v30 = vpack.c.b16 %v2608_v32, %v2604_v27  ;;  %v11620_v25 = vor.u32 %v13265_v19, %v11619_v34  ;;  %v11587_v27 = vld [vmem:[#allocation20 + $0xb40] sm:$0xf]  ;;  %v11332_v44 = vor.u32 %v13193_v46, %v11331_v53 }
 0x57e   :  { %6059 = vmatpush.bf16.msra.mxu1 %v11396_v15  ;;  %v13257_v32 = vld [vmem:[#allocation20 + $0xb5c] sm:$0xf0] }
 0x57f   :  { %16558 = vst [vmem:[#allocation51_spill] sm:$0xff] %v14813_v6  ;;  %2703 = vmatpush.bf16.msrb.mxu0 %v14813_v6  ;;  %2732 = vmatpush.bf16.msrb.mxu3 %v14815_v30  ;;  %v11588_v9 = vor.u32 %v13257_v32, %v11587_v27  ;;  %v13249_v17 = vld [vmem:[#allocation20 + $0xb1c] sm:$0xf0]  ;;  %v16569_v32 = vld [vmem:[#allocation50_spill] sm:$0xff] }
 0x580   :  { %16559 = vst [vmem:[#allocation52_spill] sm:$0xff] %v14815_v30  ;;  %6089 = vmatpush.bf16.msrb.mxu2 %v11620_v25  ;;  %v11556_v36 = vor.u32 %v13249_v17, %v11555_v18  ;;  %v11267_v61 = vld [vmem:[#allocation20 + $0x8c0] sm:$0xf] }
 0x581   :  { %v13177_v14 = vld [vmem:[#allocation20 + $0x8dc] sm:$0xf0] }
 0x582   :  { %6060 = vmatpush.bf16.msra.mxu1 %v11364_v7  ;;  %v11523_v3 = vld [vmem:[#allocation20 + $0xac0] sm:$0xf]  ;;  %v11268_v60 = vor.u32 %v13177_v14, %v11267_v61  ;;  %v12949_v14 = vld [vmem:[#allocation20 + $0x1c4] sm:$0xf] }
 0x583   :  { %2704 = vmatpush.bf16.msrb.mxu0 %v14820_v21  ;;  %2733 = vmatpush.bf16.msrb.mxu3 %v14822_v51  ;;  %v13225_v39 = vld [vmem:[#allocation20 + $0xa5c] sm:$0xf0] }
 0x584   :  { %6090 = vmatpush.bf16.msrb.mxu2 %v11588_v9  ;;  %v11171_v15 = vld [vmem:[#allocation20 + $0x800] sm:$0xf] }
 0x585   :  { %v13153_v54 = vld [vmem:[#allocation20 + $0x81c] sm:$0xf0] }
 0x586   :  { %6061 = vmatpush.bf16.msra.mxu1 %v11332_v44  ;;  %v13217_v24 = vld [vmem:[#allocation20 + $0xa1c] sm:$0xf0]  ;;  %v11172_v34 = vor.u32 %v13153_v54, %v11171_v15  ;;  %v10597_v15 = vld [vmem:[#allocation20 + $0x3a0] sm:$0xf0] }
 0x587   :  { %2705 = vmatpush.bf16.msrb.mxu0 %v14826_v8  ;;  %2734 = vmatpush.bf16.msrb.mxu3 %v14828_v26  ;;  %v13145_v61 = vld [vmem:[#allocation20 + $0x7dc] sm:$0xf0] }
 0x588   :  { %6091 = vmatpush.bf16.msrb.mxu2 %v11556_v36  ;;  %v11139_v36 = vld [vmem:[#allocation20 + $0x7c0] sm:$0xf] }
 0x589   :  { %v10819_v54 = vld [vmem:[#allocation20 + $0x540] sm:$0xf] }
 0x58a   :  { %6062 = vmatpush.bf16.msra.mxu1 %v11300_v1 }
 0x58b   :  { %2706 = vmatpush.bf16.msrb.mxu0 %v14834_v49  ;;  %2735 = vmatpush.bf16.msrb.mxu3 %v14836_v20  ;;  %v2650_v33 = vpop.f32.mrf.mxu1 }
 0x58e   :  { %10137 = vmatmul.msk.bf16.vlgmr.msrb.gmra.mxu0 %vm346_vm0, %v16564_v5  ;;  %10141 = vmatmul.msk.bf16.vlgmr.msrb.gmra.mxu3 %vm346_vm0, %v16564_v5 }
 0x58f   :  { %6063 = vmatpush.bf16.msra.mxu1 %v11268_v60  ;;  %v16570_v60 = vld [vmem:[#allocation39_spill] sm:$0xff] }
 0x591   :  { %v2679_v62 = vpop.f32.mrf.mxu2 }
 0x592   :  { %v2757_v28 = vpack.c.bf16 %v2679_v62, %v2650_v33  ;;  %v13241_v33 = vld [vmem:[#allocation20 + $0xadc] sm:$0xf0] }
 0x593   :  { %v2652_v35 = vpop.f32.mrf.mxu1  ;;  %v11524_v5 = vor.u32 %v13241_v33, %v11523_v3  ;;  %v11235_v62 = vld [vmem:[#allocation20 + $0x880] sm:$0xf]  ;;  %v10373_v3 = vld [vmem:[#allocation20 + $0x1e0] sm:$0xf0] }
 0x594   :  { %v2789_v12 = vunpack.c.l.b16 %v2757_v28  ;;  %v2790_v2 = vunpack.c.h.b16 %v2757_v28  ;;  %v11491_v28 = vld [vmem:[#allocation20 + $0xa80] sm:$0xf] }
 0x595   :  { %6092 = vmatpush.bf16.msrb.mxu2 %v11524_v5  ;;  %v16571_v33 = vld [vmem:[#allocation40_spill] sm:$0xff]  ;;  %v11140_v5 = vor.u32 %v13145_v61, %v11139_v36 }
 0x596   :  { %v10755_v36 = vld [vmem:[#allocation20 + $0x4c0] sm:$0xf] }
 0x597   :  { %6030 = vmatpush.bf16.msra.mxu3 %v11140_v5  ;;  %v11011_v61 = vld [vmem:[#allocation20 + $0x6c0] sm:$0xf]  ;;  %v12917_v5 = vld [vmem:[#allocation20 + $0xc4] sm:$0xf] }
 0x599   :  { %v2681_v57 = vpop.f32.mrf.mxu2 }
 0x59a   :  { %v2759_v10 = vpack.c.bf16 %v2681_v57, %v2652_v35  ;;  %v13169_v35 = vld [vmem:[#allocation20 + $0x89c] sm:$0xf0] }
 0x59b   :  { %v2655_v16 = vpop.f32.mrf.mxu1 }
 0x59c   :  { %v2793_v58 = vunpack.c.l.b16 %v2759_v10  ;;  %v2794_v47 = vunpack.c.h.b16 %v2759_v10  ;;  %v11203_v10 = vld [vmem:[#allocation20 + $0x840] sm:$0xf] }
 0x59e   :  { %v14844_v50 = vpack.c.b16 %v2793_v58, %v2789_v12  ;;  %v14846_v45 = vpack.c.b16 %v2794_v47, %v2790_v2  ;;  %10138 = vmatmul.msk.bf16.gmra.mxu0 %vm346_vm0, %v16567_v56  ;;  %10142 = vmatmul.msk.bf16.gmra.mxu3 %vm346_vm0, %v16567_v56  ;;  %v11236_v12 = vor.u32 %v13169_v35, %v11235_v62  ;;  %v13233_v2 = vld [vmem:[#allocation20 + $0xa9c] sm:$0xf0]  ;;  %v13013_v35 = vld [vmem:[#allocation20 + $0x3c4] sm:$0xf] }
 0x59f   :  { %v11492_v47 = vor.u32 %v13233_v2, %v11491_v28  ;;  %v11459_v56 = vld [vmem:[#allocation20 + $0xa40] sm:$0xf]  ;;  %v10376_v62 = vor.u32 %v12949_v14, %v10373_v3  ;;  %v10629_v28 = vld [vmem:[#allocation20 + $0x3e0] sm:$0xf0] }
 0x5a0   :  { %16565 = vst [vmem:[#allocation47_spill] sm:$0xff] %v14844_v50  ;;  %5951 = vmatmul.bf16.vlgmr.msrb.gmra.mxu1 %v14844_v50  ;;  %5980 = vmatmul.bf16.vlgmr.msra.gmra.mxu2 %v14846_v45  ;;  %v11460_v31 = vor.u32 %v13225_v39, %v11459_v56  ;;  %v13073_v2 = vld [vmem:[#allocation20 + $0x59c] sm:$0xf0]  ;;  %v12941_v56 = vld [vmem:[#allocation20 + $0x184] sm:$0xf] }
 0x5a1   :  { %16566 = vst [vmem:[#allocation57_spill] sm:$0xff] %v14846_v45  ;;  %v2684_v48 = vpop.f32.mrf.mxu2  ;;  %6064 = vmatpush.bf16.msra.mxu1 %v11236_v12  ;;  %6093 = vmatpush.bf16.msrb.mxu2 %v11492_v47  ;;  %v10632_v12 = vor.u32 %v13013_v35, %v10629_v28  ;;  %v10341_v39 = vld [vmem:[#allocation20 + $0x1a0] sm:$0xf0]  ;;  %v13113_v3 = vld [vmem:[#allocation20 + $0x6dc] sm:$0xf0]  ;;  %v16573_v28 = vld [vmem:[#allocation42_spill] sm:$0xff] }
 0x5a2   :  { %v2761_v37 = vpack.c.bf16 %v2684_v48, %v2655_v16  ;;  %v13161_v16 = vld [vmem:[#allocation20 + $0x85c] sm:$0xf0] }
 0x5a3   :  { %v2657_v52 = vpop.f32.mrf.mxu1  ;;  %v11204_v29 = vor.u32 %v13161_v16, %v11203_v10  ;;  %v11427_v48 = vld [vmem:[#allocation20 + $0xa00] sm:$0xf] }
 0x5a4   :  { %v2797_v41 = vunpack.c.l.b16 %v2761_v37  ;;  %v2798_v40 = vunpack.c.h.b16 %v2761_v37  ;;  %v11428_v25 = vor.u32 %v13217_v24, %v11427_v48  ;;  %v11107_v10 = vld [vmem:[#allocation20 + $0x780] sm:$0xf] }
 0x5a5   :  { %6065 = vmatpush.bf16.msra.mxu1 %v11204_v29  ;;  %6094 = vmatpush.bf16.msrb.mxu2 %v11460_v31  ;;  %v13137_v16 = vld [vmem:[#allocation20 + $0x79c] sm:$0xf0]  ;;  %v13005_v29 = vld [vmem:[#allocation20 + $0x384] sm:$0xf] }
 0x5a6   :  { %v11108_v47 = vor.u32 %v13137_v16, %v11107_v10  ;;  %v13065_v31 = vld [vmem:[#allocation20 + $0x55c] sm:$0xf0]  ;;  %v10600_v48 = vor.u32 %v13005_v29, %v10597_v15  ;;  %v10501_v10 = vld [vmem:[#allocation20 + $0x2e0] sm:$0xf0] }
 0x5a7   :  { %v11075_v24 = vld [vmem:[#allocation20 + $0x740] sm:$0xf]  ;;  %v10213_v15 = vld [vmem:[#allocation20 + $0xa0] sm:$0xf0] }
 0x5a8   :  { %6031 = vmatpush.bf16.msra.mxu3 %v11108_v47  ;;  %v16572_v35 = vld [vmem:[#allocation41_spill] sm:$0xff] }
 0x5a9   :  { %v2686_v55 = vpop.f32.mrf.mxu2  ;;  %6066 = vmatpush.bf16.msra.mxu1 %v11172_v34  ;;  %6095 = vmatpush.bf16.msrb.mxu2 %v11428_v25  ;;  %v12933_v34 = vld [vmem:[#allocation20 + $0x144] sm:$0xf]  ;;  %v13041_v47 = vld [vmem:[#allocation20 + $0x49c] sm:$0xf0] }
 0x5aa   :  { %v2763_v22 = vpack.c.bf16 %v2686_v55, %v2657_v52  ;;  %v10565_v25 = vld [vmem:[#allocation20 + $0x360] sm:$0xf0]  ;;  %v13105_v29 = vld [vmem:[#allocation20 + $0x69c] sm:$0xf0] }
 0x5ab   :  { %v2660_v59 = vpop.f32.mrf.mxu1 }
 0x5ac   :  { %v2801_v63 = vunpack.c.l.b16 %v2763_v22  ;;  %v2802_v0 = vunpack.c.h.b16 %v2763_v22 }
 0x5ad   :  { %6175 = vmatpush.bf16.msrb.mxu1 %v10376_v62  ;;  %6204 = vmatpush.bf16.msra.mxu2 %v10632_v12  ;;  %v10245_v62 = vld [vmem:[#allocation20 + $0xe0] sm:$0xf0] }
 0x5ae   :  { %v14854_v38 = vpack.c.b16 %v2801_v63, %v2797_v41  ;;  %v14856_v23 = vpack.c.b16 %v2802_v0, %v2798_v40  ;;  %10139 = vmatmul.msk.bf16.gmra.mxu0 %vm346_vm0, %v16568_v42  ;;  %10143 = vmatmul.msk.bf16.gmra.mxu3 %vm346_vm0, %v16568_v42  ;;  %v10883_v63 = vld [vmem:[#allocation20 + $0x5c0] sm:$0xf]  ;;  %v10248_v12 = vor.u32 %v12917_v5, %v10245_v62 }
 0x5af   :  { %v13081_v0 = vld [vmem:[#allocation20 + $0x5dc] sm:$0xf0] }
 0x5b0   :  { %5956 = vmatmul.bf16.gmra.mxu1 %v14854_v38  ;;  %5985 = vmatmul.bf16.gmra.mxu2 %v14856_v23  ;;  %v10884_v42 = vor.u32 %v13081_v0, %v10883_v63  ;;  %v10533_v63 = vld [vmem:[#allocation20 + $0x320] sm:$0xf0]  ;;  %v16575_v5 = vld [vmem:[#allocation44_spill] sm:$0xff] }
 0x5b1   :  { %v2689_v57 = vpop.f32.mrf.mxu2  ;;  %6205 = vmatpush.bf16.msra.mxu2 %v10600_v48  ;;  %v12973_v48 = vld [vmem:[#allocation20 + $0x284] sm:$0xf] }
 0x5b2   :  { %v2765_v11 = vpack.c.bf16 %v2689_v57, %v2660_v59  ;;  %v10851_v57 = vld [vmem:[#allocation20 + $0x580] sm:$0xf]  ;;  %6001 = vmatpush.bf16.msra.mxu0 %v10884_v42 }
 0x5b3   :  { %v2662_v58 = vpop.f32.mrf.mxu1  ;;  %v13049_v42 = vld [vmem:[#allocation20 + $0x4dc] sm:$0xf0] }
 0x5b4   :  { %v2805_v52 = vunpack.c.l.b16 %v2765_v11  ;;  %v2806_v7 = vunpack.c.h.b16 %v2765_v11  ;;  %v10344_v11 = vor.u32 %v12941_v56, %v10341_v39  ;;  %v10756_v14 = vor.u32 %v13049_v42, %v10755_v36  ;;  %v10979_v56 = vld [vmem:[#allocation20 + $0x680] sm:$0xf]  ;;  %v12957_v42 = vld [vmem:[#allocation20 + $0x204] sm:$0xf] }
 0x5b6   :  { %6176 = vmatpush.bf16.msrb.mxu1 %v10344_v11  ;;  %v12909_v11 = vld [vmem:[#allocation20 + $0x84] sm:$0xf] }
 0x5b9   :  { %v2691_v4 = vpop.f32.mrf.mxu2 }
 0x5ba   :  { %v2767_v19 = vpack.c.bf16 %v2691_v4, %v2662_v58  ;;  %v10852_v58 = vor.u32 %v13073_v2, %v10851_v57  ;;  %v13129_v4 = vld [vmem:[#allocation20 + $0x75c] sm:$0xf0]  ;;  %v11012_v57 = vor.u32 %v13113_v3, %v11011_v61  ;;  %v12981_v2 = vld [vmem:[#allocation20 + $0x2c4] sm:$0xf]  ;;  %v16574_v3 = vld [vmem:[#allocation43_spill] sm:$0xff] }
 0x5bb   :  { %v2665_v46 = vpop.f32.mrf.mxu1  ;;  %v10504_v16 = vor.u32 %v12981_v2, %v10501_v10  ;;  %v10405_v61 = vld [vmem:[#allocation20 + $0x220] sm:$0xf0] }
 0x5bc   :  { %v2809_v37 = vunpack.c.l.b16 %v2767_v19  ;;  %v2810_v53 = vunpack.c.h.b16 %v2767_v19  ;;  %6002 = vmatpush.bf16.msra.mxu0 %v10852_v58  ;;  %v12997_v19 = vld [vmem:[#allocation20 + $0x344] sm:$0xf]  ;;  %v10723_v58 = vld [vmem:[#allocation20 + $0x480] sm:$0xf] }
 0x5bd   :  { %v10724_v39 = vor.u32 %v13041_v47, %v10723_v58  ;;  %v14888_v58 = vld [vmem:[#allocation22] sm:$0xff] }
 0x5be   :  { %v14864_v27 = vpack.c.b16 %v2809_v37, %v2805_v52  ;;  %v14866_v44 = vpack.c.b16 %v2810_v53, %v2806_v7  ;;  %10140 = vmatmul.msk.bf16.gmra.mxu0 %vm346_vm0, %v16569_v32  ;;  %10144 = vmatmul.msk.bf16.gmra.mxu3 %vm346_vm0, %v16569_v32  ;;  %v10820_v52 = vor.u32 %v13065_v31, %v10819_v54  ;;  %v10309_v7 = vld [vmem:[#allocation20 + $0x160] sm:$0xf0]  ;;  %v10787_v32 = vld [vmem:[#allocation20 + $0x500] sm:$0xf] }
 0x5bf   :  { %v11076_v37 = vor.u32 %v13129_v4, %v11075_v24  ;;  %v10312_v53 = vor.u32 %v12933_v34, %v10309_v7  ;;  %v10980_v54 = vor.u32 %v13105_v29, %v10979_v56  ;;  %v10216_v31 = vor.u32 %v12909_v11, %v10213_v15  ;;  %v10469_v24 = vld [vmem:[#allocation20 + $0x2a0] sm:$0xf0]  ;;  %v10691_v34 = vld [vmem:[#allocation20 + $0x440] sm:$0xf] }
 0x5c0   :  { %5961 = vmatmul.bf16.gmra.mxu1 %v14864_v27  ;;  %5990 = vmatmul.bf16.gmra.mxu2 %v14866_v44  ;;  %v10472_v4 = vor.u32 %v12973_v48, %v10469_v24  ;;  %v10947_v7 = vld [vmem:[#allocation20 + $0x640] sm:$0xf]  ;;  %v14891_v29 = vperm.slane %v14888_v58, 0 }
 0x5c1   :  { %v2694_v9 = vpop.f32.mrf.mxu2  ;;  %6003 = vmatpush.bf16.msra.mxu0 %v10820_v52  ;;  %6032 = vmatpush.bf16.msra.mxu3 %v11076_v37  ;;  %v13033_v52 = vld [vmem:[#allocation20 + $0x45c] sm:$0xf0]  ;;  %v12901_v37 = vld [vmem:[#allocation20 + $0x44] sm:$0xf] }
 0x5c2   :  { %v2769_v55 = vpack.c.bf16 %v2694_v9, %v2665_v46  ;;  %v10568_v46 = vor.u32 %v12997_v19, %v10565_v25  ;;  %6177 = vmatpush.bf16.msrb.mxu1 %v10312_v53  ;;  %v13057_v9 = vld [vmem:[#allocation20 + $0x51c] sm:$0xf0]  ;;  %v10692_v19 = vor.u32 %v13033_v52, %v10691_v34  ;;  %v10181_v53 = vld [vmem:[#allocation20 + $0x60] sm:$0xf0] }
 0x5c3   :  { %v2667_v41 = vpop.f32.mrf.mxu1  ;;  %v13097_v25 = vld [vmem:[#allocation20 + $0x65c] sm:$0xf0] }
 0x5c4   :  { %v2813_v22 = vunpack.c.l.b16 %v2769_v55  ;;  %v2814_v43 = vunpack.c.h.b16 %v2769_v55  ;;  %v11043_v55 = vld [vmem:[#allocation20 + $0x700] sm:$0xf]  ;;  %6206 = vmatpush.bf16.msra.mxu2 %v10568_v46  ;;  %v10948_v46 = vor.u32 %v13097_v25, %v10947_v7 }
 0x5c5   :  { %v11907_v34 = vld [vmem:[#allocation20 + $0xdc0] sm:$0xf] }
 0x5c6   :  { %v13337_v52 = vld [vmem:[#allocation20 + $0xddc] sm:$0xf0] }
 0x5c7   :  { %v12163_v7 = vld [vmem:[#allocation20 + $0xfc0] sm:$0xf]  ;;  %v11908_v25 = vor.u32 %v13337_v52, %v11907_v34 }
 0x5c8   :  { %v13385_v52 = vld [vmem:[#allocation20 + $0xf5c] sm:$0xf0] }
 0x5c9   :  { %v2696_v40 = vpop.f32.mrf.mxu2 }
 0x5ca   :  { %v2771_v13 = vpack.c.bf16 %v2696_v40, %v2667_v41  ;;  %v10788_v41 = vor.u32 %v13057_v9, %v10787_v32  ;;  %v13121_v40 = vld [vmem:[#allocation20 + $0x71c] sm:$0xf0]  ;;  %v10184_v32 = vor.u32 %v12901_v37, %v10181_v53  ;;  %v12965_v9 = vld [vmem:[#allocation20 + $0x244] sm:$0xf] }
 0x5cb   :  { %v13401_v37 = vld [vmem:[#allocation20 + $0xfdc] sm:$0xf0]  ;;  %v13205_v53 = vld [vmem:[#allocation20 + $0x9c4] sm:$0xf] }
 0x5cc   :  { %v2817_v18 = vunpack.c.l.b16 %v2771_v13  ;;  %v2818_v59 = vunpack.c.h.b16 %v2771_v13  ;;  %v11044_v13 = vor.u32 %v13121_v40, %v11043_v55  ;;  %6004 = vmatpush.bf16.msra.mxu0 %v10788_v41  ;;  %v10437_v55 = vld [vmem:[#allocation20 + $0x260] sm:$0xf0]  ;;  %v10659_v40 = vld [vmem:[#allocation20 + $0x400] sm:$0xf] }
 0x5cd   :  { %v10440_v41 = vor.u32 %v12965_v9, %v10437_v55  ;;  %v12164_v9 = vor.u32 %v13401_v37, %v12163_v7  ;;  %v13189_v7 = vld [vmem:[#allocation20 + $0x944] sm:$0xf] }
 0x5ce   :  { %v14874_v1 = vpack.c.b16 %v2817_v18, %v2813_v22  ;;  %v14876_v17 = vpack.c.b16 %v2818_v59, %v2814_v43  ;;  %v12925_v22 = vld [vmem:[#allocation20 + $0x104] sm:$0xf]  ;;  %6033 = vmatpush.bf16.msra.mxu3 %v11044_v13 }
 0x5cf   :  { %v10277_v43 = vld [vmem:[#allocation20 + $0x120] sm:$0xf0] }
 0x5d0   :  { %5966 = vmatmul.bf16.gmra.mxu1 %v14874_v1  ;;  %5995 = vmatmul.bf16.gmra.mxu2 %v14876_v17  ;;  %v10280_v18 = vor.u32 %v12925_v22, %v10277_v43  ;;  %v12989_v59 = vld [vmem:[#allocation20 + $0x304] sm:$0xf]  ;;  %v13025_v22 = vld [vmem:[#allocation20 + $0x41c] sm:$0xf0] }
 0x5d1   :  { %v10536_v0 = vor.u32 %v12989_v59, %v10533_v63  ;;  %6005 = vmatpush.bf16.msra.mxu0 %v10756_v14  ;;  %v10915_v43 = vld [vmem:[#allocation20 + $0x600] sm:$0xf]  ;;  %v10660_v13 = vor.u32 %v13025_v22, %v10659_v40  ;;  %v12893_v59 = vld [vmem:[#allocation20 + $0x4] sm:$0xf]  ;;  %v10408_v14 = vor.u32 %v12957_v42, %v10405_v61 }
 0x5d2   :  { %6178 = vmatpush.bf16.msrb.mxu1 %v10280_v18  ;;  %6034 = vmatpush.bf16.msra.mxu3 %v11012_v57  ;;  %v13089_v18 = vld [vmem:[#allocation20 + $0x61c] sm:$0xf0]  ;;  %v10149_v63 = vld [vmem:[#allocation20 + $0x20] sm:$0xf0] }
 0x5d3   :  { %6207 = vmatpush.bf16.msra.mxu2 %v10536_v0  ;;  %v10916_v0 = vor.u32 %v13089_v18, %v10915_v43  ;;  %v10152_v36 = vor.u32 %v12893_v59, %v10149_v63  ;;  %v16576_v57 = vld [vmem:[#allocation45_spill] sm:$0xff] }
 0x5d4   :  { %v11653_v40 = vld [vmem:[#allocation20 + $0xbe0] sm:$0xf0]  ;;  %v11875_v18 = vld [vmem:[#allocation20 + $0xd80] sm:$0xf] }
 0x5d5   :  { %6006 = vmatpush.bf16.msra.mxu0 %v10724_v39  ;;  %v13329_v59 = vld [vmem:[#allocation20 + $0xd9c] sm:$0xf0]  ;;  %v13197_v61 = vld [vmem:[#allocation20 + $0x984] sm:$0xf] }
 0x5d6   :  { %6179 = vmatpush.bf16.msrb.mxu1 %v10248_v12  ;;  %6035 = vmatpush.bf16.msra.mxu3 %v10980_v54  ;;  %v16577_v12 = vld [vmem:[#allocation46_spill] sm:$0xff]  ;;  %v12131_v63 = vld [vmem:[#allocation20 + $0xf80] sm:$0xf] }
 0x5d7   :  { %6208 = vmatpush.bf16.msra.mxu2 %v10504_v16  ;;  %v13393_v42 = vld [vmem:[#allocation20 + $0xf9c] sm:$0xf0] }
 0x5d9   :  { %6007 = vmatpush.bf16.msra.mxu0 %v10692_v19 }
 0x5da   :  { %6180 = vmatpush.bf16.msrb.mxu1 %v10216_v31  ;;  %6036 = vmatpush.bf16.msra.mxu3 %v10948_v46  ;;  %v11397_v46 = vld [vmem:[#allocation20 + $0x9e0] sm:$0xf0] }
 0x5db   :  { %6209 = vmatpush.bf16.msra.mxu2 %v10472_v4  ;;  %v11400_v55 = vor.u32 %v13205_v53, %v11397_v46  ;;  %v13253_v46 = vld [vmem:[#allocation20 + $0xb44] sm:$0xf] }
 0x5dd   :  { %6008 = vmatpush.bf16.msra.mxu0 %v10660_v13 }
 0x5de   :  { %6181 = vmatpush.bf16.msrb.mxu1 %v10184_v32  ;;  %6037 = vmatpush.bf16.msra.mxu3 %v10916_v0 }
 0x5df   :  { %6210 = vmatpush.bf16.msra.mxu2 %v10440_v41  ;;  %v13269_v41 = vld [vmem:[#allocation20 + $0xbc4] sm:$0xf] }
 0x5e0   :  { %6067 = vmatmul.bf16.vlgmr.msra.gmra.mxu1 %v16570_v60  ;;  %6096 = vmatmul.bf16.vlgmr.msrb.gmra.mxu2 %v16571_v33  ;;  %v11656_v22 = vor.u32 %v13269_v41, %v11653_v40 }
 0x5e1   :  { %6117 = vmatpush.bf16.msrb.mxu0 %v11908_v25 }
 0x5e2   :  { %6182 = vmatpush.bf16.msrb.mxu1 %v10152_v36  ;;  %6146 = vmatpush.bf16.msrb.mxu3 %v12164_v9  ;;  %v11876_v36 = vor.u32 %v13329_v59, %v11875_v18  ;;  %v11589_v9 = vld [vmem:[#allocation20 + $0xb60] sm:$0xf0]  ;;  %v13313_v18 = vld [vmem:[#allocation20 + $0xd1c] sm:$0xf0] }
 0x5e3   :  { %6211 = vmatpush.bf16.msra.mxu2 %v10408_v14  ;;  %v11365_v14 = vld [vmem:[#allocation20 + $0x9a0] sm:$0xf0]  ;;  %v12067_v59 = vld [vmem:[#allocation20 + $0xf00] sm:$0xf] }
 0x5e5   :  { %6118 = vmatpush.bf16.msrb.mxu0 %v11876_v36 }
 0x5e6   :  { %6291 = vmatpush.bf16.msra.mxu1 %v11400_v55 }
 0x5e7   :  { %6320 = vmatpush.bf16.msrb.mxu2 %v11656_v22 }
 0x5f0   :  { %6072 = vmatmul.bf16.gmra.mxu1 %v16572_v35  ;;  %6101 = vmatmul.bf16.gmra.mxu2 %v16573_v28 }
 0x600   :  { %6077 = vmatmul.bf16.gmra.mxu1 %v16574_v3  ;;  %6106 = vmatmul.bf16.gmra.mxu2 %v16575_v5 }
 0x60b   :  { %v2708_v62 = vpop.f32.mrf.mxu0 }
 0x610   :  { %6082 = vmatmul.bf16.gmra.mxu1 %v16576_v57  ;;  %6111 = vmatmul.bf16.gmra.mxu2 %v16577_v12 }
 0x611   :  { %v2737_v2 = vpop.f32.mrf.mxu3 }
 0x612   :  { %v2758_v16 = vpack.c.bf16 %v2737_v2, %v2708_v62  ;;  %v12132_v2 = vor.u32 %v13393_v42, %v12131_v63 }
 0x613   :  { %v2710_v10 = vpop.f32.mrf.mxu0 }
 0x614   :  { %v2791_v11 = vunpack.c.l.b16 %v2758_v16  ;;  %v2792_v15 = vunpack.c.h.b16 %v2758_v16  ;;  %v13261_v16 = vld [vmem:[#allocation20 + $0xb84] sm:$0xf]  ;;  %6147 = vmatpush.bf16.msrb.mxu3 %v12132_v2 }
 0x619   :  { %v2739_v47 = vpop.f32.mrf.mxu3 }
 0x61a   :  { %v2760_v56 = vpack.c.bf16 %v2739_v47, %v2710_v10  ;;  %v11368_v10 = vor.u32 %v13197_v61, %v11365_v14  ;;  %v11621_v47 = vld [vmem:[#allocation20 + $0xba0] sm:$0xf0]  ;;  %v13377_v14 = vld [vmem:[#allocation20 + $0xf1c] sm:$0xf0] }
 0x61b   :  { %v2713_v39 = vpop.f32.mrf.mxu0 }
 0x61c   :  { %v2795_v54 = vunpack.c.l.b16 %v2760_v56  ;;  %v2796_v31 = vunpack.c.h.b16 %v2760_v56  ;;  %v11624_v56 = vor.u32 %v13261_v16, %v11621_v47  ;;  %6292 = vmatpush.bf16.msra.mxu1 %v11368_v10  ;;  %v12068_v10 = vor.u32 %v13377_v14, %v12067_v59  ;;  %v13245_v47 = vld [vmem:[#allocation20 + $0xb04] sm:$0xf] }
 0x61d   :  { %v5952_v48 = vpop.f32.mrf.mxu1  ;;  %v11237_v14 = vld [vmem:[#allocation20 + $0x8a0] sm:$0xf0] }
 0x61e   :  { %v14893_v24 = vpack.c.b16 %v2795_v54, %v2791_v11  ;;  %v14895_v4 = vpack.c.b16 %v2796_v31, %v2792_v15  ;;  %v5953_v19 = vadd.f32 %v5952_v48, %v14891_v29  ;;  %v11843_v15 = vld [vmem:[#allocation20 + $0xd40] sm:$0xf]  ;;  %6321 = vmatpush.bf16.msrb.mxu2 %v11624_v56  ;;  %v11557_v56 = vld [vmem:[#allocation20 + $0xb20] sm:$0xf0] }
 0x61f   :  { %v13321_v54 = vld [vmem:[#allocation20 + $0xd5c] sm:$0xf0] }
 0x620   :  { %16578 = vst [vmem:[#allocation48_spill] sm:$0xff] %v14893_v24  ;;  %6009 = vmatmul.bf16.vlgmr.msra.gmra.mxu0 %v14893_v24  ;;  %6038 = vmatmul.bf16.vlgmr.msra.gmra.mxu3 %v14895_v4  ;;  %v12099_v31 = vld [vmem:[#allocation20 + $0xf40] sm:$0xf]  ;;  %v11844_v34 = vor.u32 %v13321_v54, %v11843_v15  ;;  %v11560_v54 = vor.u32 %v13245_v47, %v11557_v56  ;;  %v11493_v47 = vld [vmem:[#allocation20 + $0xaa0] sm:$0xf0] }
 0x621   :  { %16579 = vst [vmem:[#allocation49_spill] sm:$0xff] %v14895_v4  ;;  %6183 = vmatmul.bf16.vlgmr.msrb.gmra.mxu1 %v14844_v50  ;;  %6212 = vmatmul.bf16.vlgmr.msra.gmra.mxu2 %v14846_v45  ;;  %v2742_v32 = vpop.f32.mrf.mxu3  ;;  %v12100_v37 = vor.u32 %v13385_v52, %v12099_v31  ;;  %v11779_v31 = vld [vmem:[#allocation20 + $0xcc0] sm:$0xf] }
 0x622   :  { %v2762_v11 = vpack.c.bf16 %v2742_v32, %v2713_v39  ;;  %6119 = vmatpush.bf16.msrb.mxu0 %v11844_v34  ;;  %v11592_v39 = vor.u32 %v13253_v46, %v11589_v9  ;;  %v12035_v34 = vld [vmem:[#allocation20 + $0xec0] sm:$0xf] }
 0x623   :  { %v2715_v43 = vpop.f32.mrf.mxu0  ;;  %v5981_v13 = vpop.f32.mrf.mxu2  ;;  %6148 = vmatpush.bf16.msrb.mxu3 %v12100_v37  ;;  %v11269_v37 = vld [vmem:[#allocation20 + $0x8e0] sm:$0xf0] }
 0x624   :  { %v14902_v0 = vadd.f32 %v5981_v13, %v5953_v19  ;;  %v11333_v19 = vld [vmem:[#allocation20 + $0x960] sm:$0xf0]  ;;  %v2799_v32 = vunpack.c.l.b16 %v2762_v11  ;;  %v2800_v41 = vunpack.c.h.b16 %v2762_v11  ;;  %v11811_v13 = vld [vmem:[#allocation20 + $0xd00] sm:$0xf]  ;;  %6322 = vmatpush.bf16.msrb.mxu2 %v11592_v39 }
 0x625   :  { %v5954_v62 = vpop.f32.mrf.mxu1  ;;  %v11336_v53 = vor.u32 %v13189_v7, %v11333_v19  ;;  %v11812_v61 = vor.u32 %v13313_v18, %v11811_v13  ;;  %v13369_v19 = vld [vmem:[#allocation20 + $0xedc] sm:$0xf0]  ;;  %v11525_v39 = vld [vmem:[#allocation20 + $0xae0] sm:$0xf0] }
 0x626   :  { %v5955_v48 = vadd.f32 %v5954_v62, %v14891_v29  ;;  %v11301_v62 = vld [vmem:[#allocation20 + $0x920] sm:$0xf0]  ;;  %v12036_v46 = vor.u32 %v13369_v19, %v12035_v34  ;;  %v13297_v13 = vld [vmem:[#allocation20 + $0xc9c] sm:$0xf0] }
 0x627   :  { %6293 = vmatpush.bf16.msra.mxu1 %v11336_v53  ;;  %6120 = vmatpush.bf16.msrb.mxu0 %v11812_v61  ;;  %v12003_v18 = vld [vmem:[#allocation20 + $0xe80] sm:$0xf]  ;;  %v13165_v61 = vld [vmem:[#allocation20 + $0x884] sm:$0xf] }
 0x628   :  { %6149 = vmatpush.bf16.msrb.mxu3 %v12068_v10  ;;  %6323 = vmatpush.bf16.msrb.mxu2 %v11560_v54  ;;  %v11240_v10 = vor.u32 %v13165_v61, %v11237_v14  ;;  %v11715_v54 = vld [vmem:[#allocation20 + $0xc40] sm:$0xf]  ;;  %v13157_v19 = vld [vmem:[#allocation20 + $0x844] sm:$0xf] }
 0x629   :  { %v2744_v25 = vpop.f32.mrf.mxu3 }
 0x62a   :  { %v2764_v55 = vpack.c.bf16 %v2744_v25, %v2715_v43  ;;  %v13181_v43 = vld [vmem:[#allocation20 + $0x904] sm:$0xf] }
 0x62b   :  { %v14905_v40 = vpop.f32.mrf.mxu0  ;;  %v5983_v22 = vpop.f32.mrf.mxu2  ;;  %v11304_v16 = vor.u32 %v13181_v43, %v11301_v62  ;;  %v13173_v25 = vld [vmem:[#allocation20 + $0x8c4] sm:$0xf] }
 0x62c   :  { %v2803_v63 = vunpack.c.l.b16 %v2764_v55  ;;  %v2804_v36 = vunpack.c.h.b16 %v2764_v55  ;;  %v14907_v42 = vadd.f32 %v5983_v22, %v5955_v48  ;;  %v13305_v48 = vld [vmem:[#allocation20 + $0xcdc] sm:$0xf0]  ;;  %v11272_v9 = vor.u32 %v13173_v25, %v11269_v37  ;;  %v13237_v55 = vld [vmem:[#allocation20 + $0xac4] sm:$0xf]  ;;  %6150 = vmatpush.bf16.msrb.mxu3 %v12036_v46 }
 0x62d   :  { %v5957_v2 = vpop.f32.mrf.mxu1  ;;  %6294 = vmatpush.bf16.msra.mxu1 %v11304_v16  ;;  %v11780_v7 = vor.u32 %v13305_v48, %v11779_v31  ;;  %v11747_v22 = vld [vmem:[#allocation20 + $0xc80] sm:$0xf]  ;;  %v13229_v16 = vld [vmem:[#allocation20 + $0xa84] sm:$0xf] }
 0x62e   :  { %v14909_v11 = vpack.c.b16 %v2803_v63, %v2799_v32  ;;  %v14911_v15 = vpack.c.b16 %v2804_v36, %v2800_v41  ;;  %v5958_v52 = vadd.f32 %v5957_v2, %v14891_v29  ;;  %v11528_v32 = vor.u32 %v13237_v55, %v11525_v39  ;;  %v13361_v36 = vld [vmem:[#allocation20 + $0xe9c] sm:$0xf0]  ;;  %v11205_v25 = vld [vmem:[#allocation20 + $0x860] sm:$0xf0] }
 0x62f   :  { %6121 = vmatpush.bf16.msrb.mxu0 %v11780_v7  ;;  %v11748_v63 = vor.u32 %v13297_v13, %v11747_v22  ;;  %v12004_v2 = vor.u32 %v13361_v36, %v12003_v18  ;;  %v11496_v56 = vor.u32 %v13229_v16, %v11493_v47  ;;  %v13289_v31 = vld [vmem:[#allocation20 + $0xc5c] sm:$0xf0]  ;;  %v13221_v55 = vld [vmem:[#allocation20 + $0xa44] sm:$0xf] }
 0x630   :  { %6014 = vmatmul.bf16.gmra.mxu0 %v14909_v11  ;;  %6043 = vmatmul.bf16.gmra.mxu3 %v14911_v15  ;;  %v11971_v48 = vld [vmem:[#allocation20 + $0xe40] sm:$0xf]  ;;  %v11461_v39 = vld [vmem:[#allocation20 + $0xa60] sm:$0xf0] }
 0x631   :  { %6188 = vmatmul.bf16.gmra.mxu1 %v14854_v38  ;;  %6217 = vmatmul.bf16.gmra.mxu2 %v14856_v23  ;;  %v2747_v53 = vpop.f32.mrf.mxu3  ;;  %v13353_v7 = vld [vmem:[#allocation20 + $0xe5c] sm:$0xf0]  ;;  %v11464_v22 = vor.u32 %v13221_v55, %v11461_v39  ;;  %v13149_v16 = vld [vmem:[#allocation20 + $0x804] sm:$0xf] }
 0x632   :  { %6295 = vmatpush.bf16.msra.mxu1 %v11272_v9  ;;  %6324 = vmatpush.bf16.msrb.mxu2 %v11528_v32  ;;  %v2766_v34 = vpack.c.bf16 %v2747_v53, %v14905_v40  ;;  %v11972_v46 = vor.u32 %v13353_v7, %v11971_v48  ;;  %v11208_v9 = vor.u32 %v13157_v19, %v11205_v25  ;;  %v11683_v53 = vld [vmem:[#allocation20 + $0xc00] sm:$0xf]  ;;  %v11173_v47 = vld [vmem:[#allocation20 + $0x820] sm:$0xf0] }
 0x633   :  { %v5986_v41 = vpop.f32.mrf.mxu2  ;;  %v2720_v43 = vpop.f32.mrf.mxu0  ;;  %6122 = vmatpush.bf16.msrb.mxu0 %v11748_v63  ;;  %6151 = vmatpush.bf16.msrb.mxu3 %v12004_v2  ;;  %v13281_v63 = vld [vmem:[#allocation20 + $0xc1c] sm:$0xf0]  ;;  %v11429_v48 = vld [vmem:[#allocation20 + $0xa20] sm:$0xf0] }
 0x634   :  { %v14918_v59 = vadd.f32 %v5986_v41, %v5958_v52  ;;  %v11716_v52 = vor.u32 %v13289_v31, %v11715_v54  ;;  %v2807_v13 = vunpack.c.l.b16 %v2766_v34  ;;  %v2808_v18 = vunpack.c.h.b16 %v2766_v34  ;;  %v11939_v36 = vld [vmem:[#allocation20 + $0xe00] sm:$0xf]  ;;  %v13213_v31 = vld [vmem:[#allocation20 + $0xa04] sm:$0xf] }
 0x635   :  { %v5959_v62 = vpop.f32.mrf.mxu1  ;;  %v11684_v2 = vor.u32 %v13281_v63, %v11683_v53  ;;  %v11176_v54 = vor.u32 %v13149_v16, %v11173_v47  ;;  %v11432_v19 = vor.u32 %v13213_v31, %v11429_v48 }
 0x636   :  { %6296 = vmatpush.bf16.msra.mxu1 %v11240_v10  ;;  %v5960_v37 = vadd.f32 %v5959_v62, %v14891_v29  ;;  %6325 = vmatpush.bf16.msrb.mxu2 %v11496_v56  ;;  %v13345_v10 = vld [vmem:[#allocation20 + $0xe1c] sm:$0xf0] }
 0x637   :  { %6123 = vmatpush.bf16.msrb.mxu0 %v11716_v52  ;;  %6152 = vmatpush.bf16.msrb.mxu3 %v11972_v46  ;;  %v11940_v56 = vor.u32 %v13345_v10, %v11939_v36 }
 0x639   :  { %v2749_v32 = vpop.f32.mrf.mxu3 }
 0x63a   :  { %v2768_v41 = vpack.c.bf16 %v2749_v32, %v2720_v43  ;;  %6297 = vmatpush.bf16.msra.mxu1 %v11208_v9  ;;  %6326 = vmatpush.bf16.msrb.mxu2 %v11464_v22 }
 0x63b   :  { %v5988_v40 = vpop.f32.mrf.mxu2  ;;  %6124 = vmatpush.bf16.msrb.mxu0 %v11684_v2  ;;  %v2723_v7 = vpop.f32.mrf.mxu0  ;;  %6153 = vmatpush.bf16.msrb.mxu3 %v11940_v56 }
 0x63c   :  { %v2811_v61 = vunpack.c.l.b16 %v2768_v41  ;;  %v2812_v14 = vunpack.c.h.b16 %v2768_v41  ;;  %v14922_v62 = vadd.f32 %v5988_v40, %v5960_v37 }
 0x63d   :  { %v5962_v43 = vpop.f32.mrf.mxu1 }
 0x63e   :  { %v14924_v34 = vpack.c.b16 %v2811_v61, %v2807_v13  ;;  %v14926_v52 = vpack.c.b16 %v2812_v14, %v2808_v18  ;;  %6298 = vmatpush.bf16.msra.mxu1 %v11176_v54  ;;  %v5963_v25 = vadd.f32 %v5962_v43, %v14891_v29  ;;  %6327 = vmatpush.bf16.msrb.mxu2 %v11432_v19  ;;  %v13077_v19 = vld [vmem:[#allocation20 + $0x5c4] sm:$0xf] }
 0x640   :  { %6019 = vmatmul.bf16.gmra.mxu0 %v14924_v34  ;;  %6048 = vmatmul.bf16.gmra.mxu3 %v14926_v52 }
 0x641   :  { %6193 = vmatmul.bf16.gmra.mxu1 %v14864_v27  ;;  %6222 = vmatmul.bf16.gmra.mxu2 %v14866_v44  ;;  %v2752_v37 = vpop.f32.mrf.mxu3 }
 0x642   :  { %v2770_v39 = vpack.c.bf16 %v2752_v37, %v2723_v7  ;;  %v13141_v37 = vld [vmem:[#allocation20 + $0x7c4] sm:$0xf] }
 0x643   :  { %v5991_v46 = vpop.f32.mrf.mxu2  ;;  %v2725_v41 = vpop.f32.mrf.mxu0 }
 0x644   :  { %v14933_v9 = vadd.f32 %v5991_v46, %v5963_v25  ;;  %v2815_v18 = vunpack.c.l.b16 %v2770_v39  ;;  %v2816_v53 = vunpack.c.h.b16 %v2770_v39  ;;  %v10885_v25 = vld [vmem:[#allocation20 + $0x5e0] sm:$0xf0]  ;;  %v10379_v39 = vld [vmem:[#allocation20 + $0x1c8] sm:$0xf] }
 0x645   :  { %v5964_v55 = vpop.f32.mrf.mxu1  ;;  %v10888_v46 = vor.u32 %v13077_v19, %v10885_v25  ;;  %v10603_v25 = vld [vmem:[#allocation20 + $0x388] sm:$0xf] }
 0x646   :  { %v5965_v32 = vadd.f32 %v5964_v55, %v14891_v29  ;;  %v11141_v55 = vld [vmem:[#allocation20 + $0x7e0] sm:$0xf0] }
 0x647   :  { %6233 = vmatpush.bf16.msra.mxu0 %v10888_v46  ;;  %v13061_v46 = vld [vmem:[#allocation20 + $0x544] sm:$0xf] }
 0x649   :  { %v2754_v22 = vpop.f32.mrf.mxu3 }
 0x64a   :  { %v2772_v13 = vpack.c.bf16 %v2754_v22, %v2725_v41  ;;  %v10635_v22 = vld [vmem:[#allocation20 + $0x3c8] sm:$0xf] }
 0x64b   :  { %v5993_v40 = vpop.f32.mrf.mxu2 }
 0x64c   :  { %v2819_v63 = vunpack.c.l.b16 %v2772_v13  ;;  %v2820_v36 = vunpack.c.h.b16 %v2772_v13  ;;  %v14936_v61 = vadd.f32 %v5993_v40, %v5965_v32  ;;  %v12954_v32 = vld [vmem:[#allocation20 + $0x1e4] sm:$0xf0] }
 0x64d   :  { %v5967_v14 = vpop.f32.mrf.mxu1  ;;  %v10380_v41 = vor.u32 %v12954_v32, %v10379_v39  ;;  %v13018_v13 = vld [vmem:[#allocation20 + $0x3e4] sm:$0xf0]  ;;  %v10821_v39 = vld [vmem:[#allocation20 + $0x560] sm:$0xf0] }
 0x64e   :  { %v14938_v2 = vpack.c.b16 %v2819_v63, %v2815_v18  ;;  %v14940_v10 = vpack.c.b16 %v2820_v36, %v2816_v53  ;;  %v5968_v16 = vadd.f32 %v5967_v14, %v14891_v29  ;;  %v10636_v18 = vor.u32 %v13018_v13, %v10635_v22  ;;  %v13069_v53 = vld [vmem:[#allocation20 + $0x584] sm:$0xf]  ;;  %v10315_v13 = vld [vmem:[#allocation20 + $0x148] sm:$0xf] }
 0x64f   :  { %6407 = vmatpush.bf16.msrb.mxu1 %v10380_v41  ;;  %v10853_v63 = vld [vmem:[#allocation20 + $0x5a0] sm:$0xf0]  ;;  %v10824_v41 = vor.u32 %v13061_v46, %v10821_v39 }
 0x650   :  { %6024 = vmatmul.bf16.gmra.mxu0 %v14938_v2  ;;  %6053 = vmatmul.bf16.gmra.mxu3 %v14940_v10  ;;  %v13133_v36 = vld [vmem:[#allocation20 + $0x784] sm:$0xf]  ;;  %v10856_v14 = vor.u32 %v13069_v53, %v10853_v63  ;;  %v10571_v53 = vld [vmem:[#allocation20 + $0x348] sm:$0xf] }
 0x651   :  { %6198 = vmatmul.bf16.gmra.mxu1 %v14874_v1  ;;  %6227 = vmatmul.bf16.gmra.mxu2 %v14876_v17  ;;  %v13125_v32 = vld [vmem:[#allocation20 + $0x744] sm:$0xf] }
 0x652   :  { %6436 = vmatpush.bf16.msra.mxu2 %v10636_v18  ;;  %6234 = vmatpush.bf16.msra.mxu0 %v10856_v14  ;;  %v12938_v18 = vld [vmem:[#allocation20 + $0x164] sm:$0xf0]  ;;  %v13053_v14 = vld [vmem:[#allocation20 + $0x504] sm:$0xf] }
 0x653   :  { %v5996_v47 = vpop.f32.mrf.mxu2  ;;  %v10316_v63 = vor.u32 %v12938_v18, %v10315_v13  ;;  %v13109_v13 = vld [vmem:[#allocation20 + $0x6c4] sm:$0xf] }
 0x654   :  { %v14947_v43 = vadd.f32 %v5996_v47, %v5968_v16  ;;  %v11109_v16 = vld [vmem:[#allocation20 + $0x7a0] sm:$0xf0]  ;;  %v10347_v47 = vld [vmem:[#allocation20 + $0x188] sm:$0xf] }
 0x655   :  { %v5969_v56 = vpop.f32.mrf.mxu1 }
 0x656   :  { %v5970_v54 = vadd.f32 %v5969_v56, %v14891_v29  ;;  %v11144_v29 = vor.u32 %v13141_v37, %v11141_v55  ;;  %v12946_v56 = vld [vmem:[#allocation20 + $0x1a4] sm:$0xf0]  ;;  %6235 = vmatpush.bf16.msra.mxu0 %v10824_v41  ;;  %v13045_v41 = vld [vmem:[#allocation20 + $0x4c4] sm:$0xf] }
 0x657   :  { %v10348_v19 = vor.u32 %v12946_v56, %v10347_v47  ;;  %v13010_v37 = vld [vmem:[#allocation20 + $0x3a4] sm:$0xf0]  ;;  %v10789_v47 = vld [vmem:[#allocation20 + $0x520] sm:$0xf0] }
 0x658   :  { %6262 = vmatpush.bf16.msra.mxu3 %v11144_v29  ;;  %v10604_v55 = vor.u32 %v13010_v37, %v10603_v25  ;;  %v11077_v29 = vld [vmem:[#allocation20 + $0x760] sm:$0xf0]  ;;  %v10283_v25 = vld [vmem:[#allocation20 + $0x108] sm:$0xf] }
 0x659   :  { %6408 = vmatpush.bf16.msrb.mxu1 %v10348_v19  ;;  %v11080_v22 = vor.u32 %v13125_v32, %v11077_v29  ;;  %v13117_v56 = vld [vmem:[#allocation20 + $0x704] sm:$0xf]  ;;  %v12930_v37 = vld [vmem:[#allocation20 + $0x124] sm:$0xf0] }
 0x65a   :  { %6437 = vmatpush.bf16.msra.mxu2 %v10604_v55  ;;  %v11045_v19 = vld [vmem:[#allocation20 + $0x720] sm:$0xf0]  ;;  %v10284_v55 = vor.u32 %v12930_v37, %v10283_v25  ;;  %v10539_v32 = vld [vmem:[#allocation20 + $0x308] sm:$0xf] }
 0x65b   :  { %v5998_v31 = vpop.f32.mrf.mxu2  ;;  %v11048_v39 = vor.u32 %v13117_v56, %v11045_v19  ;;  %v12994_v29 = vld [vmem:[#allocation20 + $0x324] sm:$0xf0]  ;;  %v13037_v37 = vld [vmem:[#allocation20 + $0x484] sm:$0xf] }
 0x65c   :  { %v14950_v48 = vadd.f32 %v5998_v31, %v5970_v54  ;;  %v11112_v31 = vor.u32 %v13133_v36, %v11109_v16  ;;  %v10507_v56 = vld [vmem:[#allocation20 + $0x2c8] sm:$0xf] }
 0x65d   :  { %v14952_v7 = vpop.f32.mrf.mxu1  ;;  %6409 = vmatpush.bf16.msrb.mxu1 %v10316_v63  ;;  %v10251_v63 = vld [vmem:[#allocation20 + $0xc8] sm:$0xf] }
 0x65e   :  { %6263 = vmatpush.bf16.msra.mxu3 %v11112_v31  ;;  %v10792_v31 = vor.u32 %v13053_v14, %v10789_v47 }
 0x660   :  { %6125 = vmatmul.bf16.vlgmr.msrb.gmra.mxu0 %v14834_v49  ;;  %6154 = vmatmul.bf16.vlgmr.msrb.gmra.mxu3 %v14836_v20 }
 0x661   :  { %6299 = vmatmul.bf16.vlgmr.msra.gmra.mxu1 %v16570_v60  ;;  %6328 = vmatmul.bf16.vlgmr.msrb.gmra.mxu2 %v16571_v33  ;;  %v13002_v33 = vld [vmem:[#allocation20 + $0x364] sm:$0xf0] }
 0x662   :  { %v10572_v36 = vor.u32 %v13002_v33, %v10571_v53  ;;  %6264 = vmatpush.bf16.msra.mxu3 %v11080_v22  ;;  %6236 = vmatpush.bf16.msra.mxu0 %v10792_v31  ;;  %v10540_v33 = vor.u32 %v12994_v29, %v10539_v32  ;;  %v10757_v22 = vld [vmem:[#allocation20 + $0x4e0] sm:$0xf0]  ;;  %v12986_v31 = vld [vmem:[#allocation20 + $0x2e4] sm:$0xf0] }
 0x663   :  { %v14958_v40 = vpop.f32.mrf.mxu2  ;;  %6410 = vmatpush.bf16.msrb.mxu1 %v10284_v55  ;;  %v10760_v18 = vor.u32 %v13045_v41, %v10757_v22  ;;  %v11013_v53 = vld [vmem:[#allocation20 + $0x6e0] sm:$0xf0]  ;;  %v10508_v19 = vor.u32 %v12986_v31, %v10507_v56  ;;  %v10219_v41 = vld [vmem:[#allocation20 + $0x88] sm:$0xf] }
 0x664   :  { %6438 = vmatpush.bf16.msra.mxu2 %v10572_v36  ;;  %v12922_v36 = vld [vmem:[#allocation20 + $0xe4] sm:$0xf0]  ;;  %v11016_v14 = vor.u32 %v13109_v13, %v11013_v53  ;;  %v13101_v55 = vld [vmem:[#allocation20 + $0x684] sm:$0xf] }
 0x665   :  { %v14960_v54 = vpop.f32.mrf.mxu1  ;;  %v10252_v47 = vor.u32 %v12922_v36, %v10251_v63  ;;  %v10981_v29 = vld [vmem:[#allocation20 + $0x6a0] sm:$0xf0]  ;;  %v12914_v22 = vld [vmem:[#allocation20 + $0xa4] sm:$0xf0] }
 0x666   :  { %6265 = vmatpush.bf16.msra.mxu3 %v11048_v39  ;;  %6237 = vmatpush.bf16.msra.mxu0 %v10760_v18  ;;  %v10725_v39 = vld [vmem:[#allocation20 + $0x4a0] sm:$0xf0]  ;;  %v10984_v13 = vor.u32 %v13101_v55, %v10981_v29  ;;  %v10220_v53 = vor.u32 %v12914_v22, %v10219_v41  ;;  %v10475_v63 = vld [vmem:[#allocation20 + $0x288] sm:$0xf] }
 0x667   :  { %6411 = vmatpush.bf16.msrb.mxu1 %v10252_v47  ;;  %v10728_v32 = vor.u32 %v13037_v37, %v10725_v39  ;;  %v12978_v36 = vld [vmem:[#allocation20 + $0x2a4] sm:$0xf0]  ;;  %v10693_v56 = vld [vmem:[#allocation20 + $0x460] sm:$0xf0] }
 0x668   :  { %6439 = vmatpush.bf16.msra.mxu2 %v10540_v33  ;;  %v13029_v33 = vld [vmem:[#allocation20 + $0x444] sm:$0xf]  ;;  %v10476_v18 = vor.u32 %v12978_v36, %v10475_v63  ;;  %v10187_v39 = vld [vmem:[#allocation20 + $0x48] sm:$0xf] }
 0x669   :  { %v10949_v47 = vld [vmem:[#allocation20 + $0x660] sm:$0xf0]  ;;  %v10696_v31 = vor.u32 %v13029_v33, %v10693_v56  ;;  %v12970_v60 = vld [vmem:[#allocation20 + $0x264] sm:$0xf0] }
 0x66a   :  { %6266 = vmatpush.bf16.msra.mxu3 %v11016_v14  ;;  %6238 = vmatpush.bf16.msra.mxu0 %v10728_v32  ;;  %v13093_v14 = vld [vmem:[#allocation20 + $0x644] sm:$0xf]  ;;  %v12898_v63 = vld [vmem:[#allocation20 + $0x24] sm:$0xf0] }
 0x66b   :  { %v14962_v16 = vpop.f32.mrf.mxu2  ;;  %6412 = vmatpush.bf16.msrb.mxu1 %v10220_v53  ;;  %v10952_v37 = vor.u32 %v13093_v14, %v10949_v47  ;;  %v10661_v32 = vld [vmem:[#allocation20 + $0x420] sm:$0xf0]  ;;  %v10155_v53 = vld [vmem:[#allocation20 + $0x8] sm:$0xf] }
 0x66c   :  { %6440 = vmatpush.bf16.msra.mxu2 %v10508_v19  ;;  %v13021_v19 = vld [vmem:[#allocation20 + $0x404] sm:$0xf]  ;;  %v10156_v56 = vor.u32 %v12898_v63, %v10155_v53  ;;  %v12962_v14 = vld [vmem:[#allocation20 + $0x224] sm:$0xf0] }
 0x66d   :  { %v14964_v46 = vpop.f32.mrf.mxu1  ;;  %v13085_v41 = vld [vmem:[#allocation20 + $0x604] sm:$0xf]  ;;  %v10664_v22 = vor.u32 %v13021_v19, %v10661_v32  ;;  %v15002_v32 = vperm.slane %v14888_v58, 1  ;;  %v11659_v58 = vld [vmem:[#allocation20 + $0xbc8] sm:$0xf] }
 0x66e   :  { %6267 = vmatpush.bf16.msra.mxu3 %v10984_v13  ;;  %6239 = vmatpush.bf16.msra.mxu0 %v10696_v31  ;;  %v10917_v13 = vld [vmem:[#allocation20 + $0x620] sm:$0xf0] }
 0x66f   :  { %v10920_v33 = vor.u32 %v13085_v41, %v10917_v13  ;;  %v11909_v13 = vld [vmem:[#allocation20 + $0xde0] sm:$0xf0] }
 0x670   :  { %6130 = vmatmul.bf16.gmra.mxu0 %v14826_v8  ;;  %6159 = vmatmul.bf16.gmra.mxu3 %v14828_v26  ;;  %v10443_v26 = vld [vmem:[#allocation20 + $0x248] sm:$0xf]  ;;  %v13397_v53 = vld [vmem:[#allocation20 + $0xfc4] sm:$0xf] }
 0x671   :  { %6304 = vmatmul.bf16.gmra.mxu1 %v16572_v35  ;;  %6333 = vmatmul.bf16.gmra.mxu2 %v16573_v28  ;;  %v12906_v28 = vld [vmem:[#allocation20 + $0x64] sm:$0xf0]  ;;  %v10444_v55 = vor.u32 %v12970_v60, %v10443_v26 }
 0x672   :  { %v10188_v8 = vor.u32 %v12906_v28, %v10187_v39  ;;  %6441 = vmatpush.bf16.msra.mxu2 %v10476_v18  ;;  %6268 = vmatpush.bf16.msra.mxu3 %v10952_v37  ;;  %v10411_v28 = vld [vmem:[#allocation20 + $0x208] sm:$0xf] }
 0x673   :  { %v14970_v25 = vpop.f32.mrf.mxu2  ;;  %6240 = vmatpush.bf16.msra.mxu0 %v10664_v22  ;;  %v10412_v26 = vor.u32 %v12962_v14, %v10411_v28  ;;  %v13333_v22 = vld [vmem:[#allocation20 + $0xdc4] sm:$0xf]  ;;  %v13210_v28 = vld [vmem:[#allocation20 + $0x9e4] sm:$0xf0] }
 0x674   :  { %6413 = vmatpush.bf16.msrb.mxu1 %v10188_v8  ;;  %v11912_v63 = vor.u32 %v13333_v22, %v11909_v13  ;;  %v11877_v22 = vld [vmem:[#allocation20 + $0xda0] sm:$0xf0] }
 0x675   :  { %v14972_v35 = vpop.f32.mrf.mxu1  ;;  %v13389_v13 = vld [vmem:[#allocation20 + $0xf84] sm:$0xf] }
 0x676   :  { %6442 = vmatpush.bf16.msra.mxu2 %v10444_v55  ;;  %6269 = vmatpush.bf16.msra.mxu3 %v10920_v33  ;;  %v12165_v33 = vld [vmem:[#allocation20 + $0xfe0] sm:$0xf0] }
 0x677   :  { %6349 = vmatpush.bf16.msrb.mxu0 %v11912_v63 }
 0x678   :  { %6414 = vmatpush.bf16.msrb.mxu1 %v10156_v56  ;;  %v11403_v56 = vld [vmem:[#allocation20 + $0x9c8] sm:$0xf] }
 0x679   :  { %v11404_v14 = vor.u32 %v13210_v28, %v11403_v56 }
 0x67a   :  { %6443 = vmatpush.bf16.msra.mxu2 %v10412_v26  ;;  %v13274_v26 = vld [vmem:[#allocation20 + $0xbe4] sm:$0xf0] }
 0x67b   :  { %v14974_v29 = vpop.f32.mrf.mxu2 }
 0x67c   :  { %6523 = vmatpush.bf16.msra.mxu1 %v11404_v14 }
 0x67d   :  { %v14976_v36 = vpop.f32.mrf.mxu1 }
 0x680   :  { %6135 = vmatmul.bf16.gmra.mxu0 %v14820_v21  ;;  %6164 = vmatmul.bf16.gmra.mxu3 %v14822_v51 }
 0x681   :  { %6309 = vmatmul.bf16.gmra.mxu1 %v16574_v3  ;;  %6338 = vmatmul.bf16.gmra.mxu2 %v16575_v5 }
 0x683   :  { %v14982_v8 = vpop.f32.mrf.mxu2 }
 0x685   :  { %v14984_v60 = vpop.f32.mrf.mxu1 }
 0x68b   :  { %v14986_v18 = vpop.f32.mrf.mxu2 }
 0x68d   :  { %v14988_v47 = vpop.f32.mrf.mxu1 }
 0x690   :  { %6140 = vmatmul.bf16.gmra.mxu0 %v14813_v6  ;;  %6169 = vmatmul.bf16.gmra.mxu3 %v14815_v30  ;;  %v12133_v6 = vld [vmem:[#allocation20 + $0xfa0] sm:$0xf0] }
 0x691   :  { %6314 = vmatmul.bf16.gmra.mxu1 %v16576_v57  ;;  %6343 = vmatmul.bf16.gmra.mxu2 %v16577_v12  ;;  %v12136_v63 = vor.u32 %v13389_v13, %v12133_v6  ;;  %v13194_v6 = vld [vmem:[#allocation20 + $0x964] sm:$0xf0] }
 0x693   :  { %v14994_v31 = vpop.f32.mrf.mxu2 }
 0x695   :  { %v14996_v37 = vpop.f32.mrf.mxu1 }
 0x69b   :  { %v14998_v39 = vpop.f32.mrf.mxu2 }
 0x69d   :  { %v6010_v55 = vpop.f32.mrf.mxu0 }
 0x69e   :  { %v6011_v19 = vadd.f32 %v6010_v55, %v14902_v0  ;;  %v6184_v41 = vpop.f32.mrf.mxu1  ;;  %v12168_v0 = vor.u32 %v13397_v53, %v12165_v33  ;;  %v11660_v55 = vor.u32 %v13274_v26, %v11659_v58  ;;  %v13202_v53 = vld [vmem:[#allocation20 + $0x9a4] sm:$0xf0] }
 0x69f   :  { %v6185_v12 = vadd.f32 %v6184_v41, %v15002_v32  ;;  %v11627_v58 = vld [vmem:[#allocation20 + $0xb88] sm:$0xf] }
 0x6a0   :  { %6241 = vmatmul.bf16.vlgmr.msra.gmra.mxu0 %v14893_v24  ;;  %6270 = vmatmul.bf16.vlgmr.msra.gmra.mxu3 %v14895_v4  ;;  %v13325_v4 = vld [vmem:[#allocation20 + $0xd84] sm:$0xf]  ;;  %v13266_v41 = vld [vmem:[#allocation20 + $0xba4] sm:$0xf0] }
 0x6a1   :  { %6415 = vmatmul.bf16.vlgmr.msrb.gmra.mxu1 %v14844_v50  ;;  %6444 = vmatmul.bf16.vlgmr.msra.gmra.mxu2 %v14846_v45  ;;  %v11880_v50 = vor.u32 %v13325_v4, %v11877_v22  ;;  %v11371_v45 = vld [vmem:[#allocation20 + $0x988] sm:$0xf]  ;;  %v13317_v4 = vld [vmem:[#allocation20 + $0xd44] sm:$0xf] }
 0x6a2   :  { %6378 = vmatpush.bf16.msrb.mxu3 %v12168_v0  ;;  %6552 = vmatpush.bf16.msrb.mxu2 %v11660_v55  ;;  %v11372_v28 = vor.u32 %v13202_v53, %v11371_v45  ;;  %v13381_v55 = vld [vmem:[#allocation20 + $0xf44] sm:$0xf]  ;;  %v11339_v22 = vld [vmem:[#allocation20 + $0x948] sm:$0xf] }
 0x6a3   :  { %v6039_v57 = vpop.f32.mrf.mxu3  ;;  %6350 = vmatpush.bf16.msrb.mxu0 %v11880_v50 }
 0x6a4   :  { %v6040_v24 = vadd.f32 %v6039_v57, %v6011_v19  ;;  %v6213_v30 = vpop.f32.mrf.mxu2  ;;  %v11628_v57 = vor.u32 %v13266_v41, %v11627_v58  ;;  %6524 = vmatpush.bf16.msra.mxu1 %v11372_v28  ;;  %v11845_v19 = vld [vmem:[#allocation20 + $0xd60] sm:$0xf0] }
 0x6a5   :  { %v15009_v33 = vadd.f32 %v6213_v30, %v6185_v12  ;;  %v6012_v56 = vpop.f32.mrf.mxu0  ;;  %v11848_v30 = vor.u32 %v13317_v4, %v11845_v19  ;;  %v12101_v12 = vld [vmem:[#allocation20 + $0xf60] sm:$0xf0]  ;;  %v13186_v19 = vld [vmem:[#allocation20 + $0x924] sm:$0xf0] }
 0x6a6   :  { %v6069_v0 = vadd.f32 %v14952_v7, %v6040_v24  ;;  %v6013_v14 = vadd.f32 %v6012_v56, %v14907_v42  ;;  %v6186_v26 = vpop.f32.mrf.mxu1  ;;  %6379 = vmatpush.bf16.msrb.mxu3 %v12136_v63  ;;  %6553 = vmatpush.bf16.msrb.mxu2 %v11628_v57  ;;  %v12104_v13 = vor.u32 %v13381_v55, %v12101_v12  ;;  %v11595_v7 = vld [vmem:[#allocation20 + $0xb48] sm:$0xf]  ;;  %v13309_v63 = vld [vmem:[#allocation20 + $0xd04] sm:$0xf] }
 0x6a7   :  { %v11340_v24 = vor.u32 %v13194_v6, %v11339_v22  ;;  %v13258_v42 = vld [vmem:[#allocation20 + $0xb64] sm:$0xf0]  ;;  %6351 = vmatpush.bf16.msrb.mxu0 %v11848_v30  ;;  %v6187_v53 = vadd.f32 %v6186_v26, %v15002_v32  ;;  %v11813_v28 = vld [vmem:[#allocation20 + $0xd20] sm:$0xf0] }
 0x6a8   :  { %v15014_v45 = vadd.f32 %v14958_v40, %v6069_v0  ;;  %v11596_v50 = vor.u32 %v13258_v42, %v11595_v7  ;;  %v13373_v58 = vld [vmem:[#allocation20 + $0xf04] sm:$0xf]  ;;  %v11816_v4 = vor.u32 %v13309_v63, %v11813_v28  ;;  %v11307_v0 = vld [vmem:[#allocation20 + $0x908] sm:$0xf] }
 0x6a9   :  { %6525 = vmatpush.bf16.msra.mxu1 %v11340_v24  ;;  %v12069_v40 = vld [vmem:[#allocation20 + $0xf20] sm:$0xf0]  ;;  %v11308_v22 = vor.u32 %v13186_v19, %v11307_v0  ;;  %v11563_v6 = vld [vmem:[#allocation20 + $0xb08] sm:$0xf] }
 0x6aa   :  { %6380 = vmatpush.bf16.msrb.mxu3 %v12104_v13  ;;  %6554 = vmatpush.bf16.msrb.mxu2 %v11596_v50  ;;  %v12072_v30 = vor.u32 %v13373_v58, %v12069_v40  ;;  %v13250_v26 = vld [vmem:[#allocation20 + $0xb24] sm:$0xf0]  ;;  %v13301_v42 = vld [vmem:[#allocation20 + $0xcc4] sm:$0xf] }
 0x6ab   :  { %v6041_v56 = vpop.f32.mrf.mxu3  ;;  %6352 = vmatpush.bf16.msrb.mxu0 %v11816_v4  ;;  %v11781_v50 = vld [vmem:[#allocation20 + $0xce0] sm:$0xf0]  ;;  %v11275_v28 = vld [vmem:[#allocation20 + $0x8c8] sm:$0xf] }
 0x6ac   :  { %v6042_v41 = vadd.f32 %v6041_v56, %v6013_v14  ;;  %v6215_v57 = vpop.f32.mrf.mxu2  ;;  %v11564_v14 = vor.u32 %v13250_v26, %v11563_v6  ;;  %v13365_v56 = vld [vmem:[#allocation20 + $0xec4] sm:$0xf]  ;;  %v13178_v58 = vld [vmem:[#allocation20 + $0x8e4] sm:$0xf0] }
 0x6ad   :  { %v15017_v55 = vadd.f32 %v6215_v57, %v6187_v53  ;;  %v6015_v12 = vpop.f32.mrf.mxu0  ;;  %6526 = vmatpush.bf16.msra.mxu1 %v11308_v22  ;;  %v11784_v53 = vor.u32 %v13301_v42, %v11781_v50  ;;  %v12037_v63 = vld [vmem:[#allocation20 + $0xee0] sm:$0xf0]  ;;  %v11531_v57 = vld [vmem:[#allocation20 + $0xac8] sm:$0xf] }
 0x6ae   :  { %v6071_v13 = vadd.f32 %v14960_v54, %v6042_v41  ;;  %v6016_v24 = vadd.f32 %v6015_v12, %v14918_v59  ;;  %v6189_v7 = vpop.f32.mrf.mxu1  ;;  %6381 = vmatpush.bf16.msrb.mxu3 %v12072_v30  ;;  %v12040_v59 = vor.u32 %v13365_v56, %v12037_v63  ;;  %v11276_v41 = vor.u32 %v13178_v58, %v11275_v28  ;;  %v13242_v4 = vld [vmem:[#allocation20 + $0xae4] sm:$0xf0]  ;;  %v13293_v12 = vld [vmem:[#allocation20 + $0xc84] sm:$0xf] }
 0x6af   :  { %6555 = vmatpush.bf16.msrb.mxu2 %v11564_v14  ;;  %6353 = vmatpush.bf16.msrb.mxu0 %v11784_v53  ;;  %v11532_v40 = vor.u32 %v13242_v4, %v11531_v57  ;;  %v6190_v0 = vadd.f32 %v6189_v7, %v15002_v32  ;;  %v11749_v30 = vld [vmem:[#allocation20 + $0xca0] sm:$0xf0]  ;;  %v11243_v42 = vld [vmem:[#allocation20 + $0x888] sm:$0xf] }
 0x6b0   :  { %6246 = vmatmul.bf16.gmra.mxu0 %v14909_v11  ;;  %6275 = vmatmul.bf16.gmra.mxu3 %v14911_v15  ;;  %v15024_v54 = vadd.f32 %v14962_v16, %v6071_v13  ;;  %v13357_v16 = vld [vmem:[#allocation20 + $0xe84] sm:$0xf]  ;;  %v11752_v26 = vor.u32 %v13293_v12, %v11749_v30  ;;  %v13170_v50 = vld [vmem:[#allocation20 + $0x8a4] sm:$0xf0] }
 0x6b1   :  { %6420 = vmatmul.bf16.gmra.mxu1 %v14854_v38  ;;  %6449 = vmatmul.bf16.gmra.mxu2 %v14856_v23  ;;  %v12005_v13 = vld [vmem:[#allocation20 + $0xea0] sm:$0xf0]  ;;  %v11244_v53 = vor.u32 %v13170_v50, %v11243_v42  ;;  %v11499_v28 = vld [vmem:[#allocation20 + $0xa88] sm:$0xf] }
 0x6b2   :  { %6382 = vmatpush.bf16.msrb.mxu3 %v12040_v59  ;;  %6527 = vmatpush.bf16.msra.mxu1 %v11276_v41  ;;  %v12008_v14 = vor.u32 %v13357_v16, %v12005_v13  ;;  %v13234_v58 = vld [vmem:[#allocation20 + $0xaa4] sm:$0xf0]  ;;  %v13285_v57 = vld [vmem:[#allocation20 + $0xc44] sm:$0xf] }
 0x6b3   :  { %v6044_v19 = vpop.f32.mrf.mxu3  ;;  %6556 = vmatpush.bf16.msrb.mxu2 %v11532_v40  ;;  %6354 = vmatpush.bf16.msrb.mxu0 %v11752_v26  ;;  %v11717_v4 = vld [vmem:[#allocation20 + $0xc60] sm:$0xf0]  ;;  %v11211_v30 = vld [vmem:[#allocation20 + $0x848] sm:$0xf] }
 0x6b4   :  { %v6045_v22 = vadd.f32 %v6044_v19, %v6016_v24  ;;  %v6218_v6 = vpop.f32.mrf.mxu2  ;;  %v11500_v24 = vor.u32 %v13234_v58, %v11499_v28  ;;  %v13349_v19 = vld [vmem:[#allocation20 + $0xe44] sm:$0xf]  ;;  %v13162_v16 = vld [vmem:[#allocation20 + $0x864] sm:$0xf0] }
 0x6b5   :  { %v15029_v56 = vadd.f32 %v6218_v6, %v6190_v0  ;;  %v6017_v63 = vpop.f32.mrf.mxu0  ;;  %v11720_v0 = vor.u32 %v13285_v57, %v11717_v4  ;;  %v11973_v12 = vld [vmem:[#allocation20 + $0xe60] sm:$0xf0]  ;;  %v13154_v57 = vld [vmem:[#allocation20 + $0x824] sm:$0xf0] }
 0x6b6   :  { %v6074_v7 = vadd.f32 %v14964_v46, %v6045_v22  ;;  %v6018_v59 = vadd.f32 %v6017_v63, %v14922_v62  ;;  %v6191_v41 = vpop.f32.mrf.mxu1  ;;  %6383 = vmatpush.bf16.msrb.mxu3 %v12008_v14  ;;  %6528 = vmatpush.bf16.msra.mxu1 %v11244_v53  ;;  %v11976_v13 = vor.u32 %v13349_v19, %v11973_v12  ;;  %v11467_v22 = vld [vmem:[#allocation20 + $0xa48] sm:$0xf]  ;;  %v13277_v50 = vld [vmem:[#allocation20 + $0xc04] sm:$0xf] }
 0x6b7   :  { %v11212_v46 = vor.u32 %v13162_v16, %v11211_v30  ;;  %v13226_v62 = vld [vmem:[#allocation20 + $0xa64] sm:$0xf0]  ;;  %6557 = vmatpush.bf16.msrb.mxu2 %v11500_v24  ;;  %6355 = vmatpush.bf16.msrb.mxu0 %v11720_v0  ;;  %v6192_v26 = vadd.f32 %v6191_v41, %v15002_v32  ;;  %v11685_v63 = vld [vmem:[#allocation20 + $0xc20] sm:$0xf0] }
 0x6b8   :  { %v15034_v6 = vadd.f32 %v14970_v25, %v6074_v7  ;;  %v11468_v40 = vor.u32 %v13226_v62, %v11467_v22  ;;  %v13341_v14 = vld [vmem:[#allocation20 + $0xe04] sm:$0xf]  ;;  %v11688_v58 = vor.u32 %v13277_v50, %v11685_v63  ;;  %v11179_v7 = vld [vmem:[#allocation20 + $0x808] sm:$0xf] }
 0x6b9   :  { %v11941_v25 = vld [vmem:[#allocation20 + $0xe20] sm:$0xf0]  ;;  %v11180_v0 = vor.u32 %v13154_v57, %v11179_v7  ;;  %v11435_v12 = vld [vmem:[#allocation20 + $0xa08] sm:$0xf] }
 0x6ba   :  { %6384 = vmatpush.bf16.msrb.mxu3 %v11976_v13  ;;  %6529 = vmatpush.bf16.msra.mxu1 %v11212_v46  ;;  %v11944_v24 = vor.u32 %v13341_v14, %v11941_v25  ;;  %v13218_v30 = vld [vmem:[#allocation20 + $0xa24] sm:$0xf0] }
 0x6bb   :  { %v6046_v42 = vpop.f32.mrf.mxu3  ;;  %6558 = vmatpush.bf16.msrb.mxu2 %v11468_v40  ;;  %6356 = vmatpush.bf16.msrb.mxu0 %v11688_v58 }
 0x6bc   :  { %v6047_v53 = vadd.f32 %v6046_v42, %v6018_v59  ;;  %v6220_v28 = vpop.f32.mrf.mxu2  ;;  %v11436_v59 = vor.u32 %v13218_v30, %v11435_v12 }
 0x6bd   :  { %v15037_v4 = vadd.f32 %v6220_v28, %v6192_v26  ;;  %v6020_v19 = vpop.f32.mrf.mxu0 }
 0x6be   :  { %v6076_v41 = vadd.f32 %v14972_v35, %v6047_v53  ;;  %v6021_v16 = vadd.f32 %v6020_v19, %v14933_v9  ;;  %v6194_v13 = vpop.f32.mrf.mxu1  ;;  %6385 = vmatpush.bf16.msrb.mxu3 %v11944_v24  ;;  %6530 = vmatpush.bf16.msra.mxu1 %v11180_v0 }
 0x6bf   :  { %6559 = vmatpush.bf16.msrb.mxu2 %v11436_v59  ;;  %v6195_v35 = vadd.f32 %v6194_v13, %v15002_v32 }
 0x6c0   :  { %6251 = vmatmul.bf16.gmra.mxu0 %v14924_v34  ;;  %6280 = vmatmul.bf16.gmra.mxu3 %v14926_v52  ;;  %v15044_v46 = vadd.f32 %v14974_v29, %v6076_v41 }
 0x6c1   :  { %6425 = vmatmul.bf16.gmra.mxu1 %v14864_v27  ;;  %6454 = vmatmul.bf16.gmra.mxu2 %v14866_v44 }
 0x6c3   :  { %v6049_v9 = vpop.f32.mrf.mxu3 }
 0x6c4   :  { %v6050_v22 = vadd.f32 %v6049_v9, %v6021_v16  ;;  %v6223_v62 = vpop.f32.mrf.mxu2 }
 0x6c5   :  { %v15049_v40 = vadd.f32 %v6223_v62, %v6195_v35  ;;  %v6022_v26 = vpop.f32.mrf.mxu0 }
 0x6c6   :  { %v6079_v42 = vadd.f32 %v14976_v36, %v6050_v22  ;;  %v6023_v50 = vadd.f32 %v6022_v26, %v14936_v61  ;;  %v6196_v63 = vpop.f32.mrf.mxu1 }
 0x6c7   :  { %v6197_v14 = vadd.f32 %v6196_v63, %v15002_v32  ;;  %v11147_v63 = vld [vmem:[#allocation20 + $0x7c8] sm:$0xf] }
 0x6c8   :  { %v15054_v29 = vadd.f32 %v14982_v8, %v6079_v42 }
 0x6cb   :  { %v6051_v53 = vpop.f32.mrf.mxu3 }
 0x6cc   :  { %v6052_v28 = vadd.f32 %v6051_v53, %v6023_v50  ;;  %v6225_v58 = vpop.f32.mrf.mxu2  ;;  %v10381_v53 = vld [vmem:[#allocation20 + $0x1e8] sm:$0xf0] }
 0x6cd   :  { %v15057_v25 = vadd.f32 %v6225_v58, %v6197_v14  ;;  %v6025_v7 = vpop.f32.mrf.mxu0  ;;  %v12950_v14 = vld [vmem:[#allocation20 + $0x1cc] sm:$0xf]  ;;  %v16580_v58 = vld [vmem:[#allocation39_spill] sm:$0xff] }
 0x6ce   :  { %v6081_v57 = vadd.f32 %v14984_v60, %v6052_v28  ;;  %v6026_v19 = vadd.f32 %v6025_v7, %v14947_v43  ;;  %v6199_v24 = vpop.f32.mrf.mxu1  ;;  %v10384_v7 = vor.u32 %v12950_v14, %v10381_v53  ;;  %v11083_v14 = vld [vmem:[#allocation20 + $0x748] sm:$0xf] }
 0x6cf   :  { %v6200_v36 = vadd.f32 %v6199_v24, %v15002_v32 }
 0x6d0   :  { %6256 = vmatmul.bf16.gmra.mxu0 %v14938_v2  ;;  %6285 = vmatmul.bf16.gmra.mxu3 %v14940_v10  ;;  %v15064_v61 = vadd.f32 %v14986_v18, %v6081_v57  ;;  %v13014_v57 = vld [vmem:[#allocation20 + $0x3cc] sm:$0xf] }
 0x6d1   :  { %6430 = vmatmul.bf16.gmra.mxu1 %v14874_v1  ;;  %6459 = vmatmul.bf16.gmra.mxu2 %v14876_v17 }
 0x6d2   :  { %6639 = vmatpush.bf16.msrb.mxu1 %v10384_v7  ;;  %v12934_v7 = vld [vmem:[#allocation20 + $0x14c] sm:$0xf] }
 0x6d3   :  { %v6054_v8 = vpop.f32.mrf.mxu3 }
 0x6d4   :  { %v6055_v0 = vadd.f32 %v6054_v8, %v6026_v19  ;;  %v6228_v12 = vpop.f32.mrf.mxu2  ;;  %v10637_v19 = vld [vmem:[#allocation20 + $0x3e8] sm:$0xf0]  ;;  %v10859_v8 = vld [vmem:[#allocation20 + $0x588] sm:$0xf] }
 0x6d5   :  { %v15069_v60 = vadd.f32 %v6228_v12, %v6200_v36  ;;  %v6027_v43 = vpop.f32.mrf.mxu0  ;;  %v10640_v24 = vor.u32 %v13014_v57, %v10637_v19  ;;  %v11115_v12 = vld [vmem:[#allocation20 + $0x788] sm:$0xf]  ;;  %v10317_v57 = vld [vmem:[#allocation20 + $0x168] sm:$0xf0] }
 0x6d6   :  { %v6084_v30 = vadd.f32 %v14988_v47, %v6055_v0  ;;  %v6028_v41 = vadd.f32 %v6027_v43, %v14950_v48  ;;  %v6201_v16 = vpop.f32.mrf.mxu1  ;;  %v10891_v47 = vld [vmem:[#allocation20 + $0x5c8] sm:$0xf] }
 0x6d7   :  { %v6202_v13 = vadd.f32 %v6201_v16, %v15002_v32  ;;  %v13082_v48 = vld [vmem:[#allocation20 + $0x5e4] sm:$0xf0]  ;;  %6668 = vmatpush.bf16.msra.mxu2 %v10640_v24  ;;  %v12942_v16 = vld [vmem:[#allocation20 + $0x18c] sm:$0xf]  ;;  %v10320_v24 = vor.u32 %v12934_v7, %v10317_v57 }
 0x6d8   :  { %v15074_v18 = vadd.f32 %v14994_v31, %v6084_v30  ;;  %v10892_v31 = vor.u32 %v13082_v48, %v10891_v47  ;;  %v13146_v32 = vld [vmem:[#allocation20 + $0x7e4] sm:$0xf0] }
 0x6d9   :  { %v13074_v0 = vld [vmem:[#allocation20 + $0x5a4] sm:$0xf0] }
 0x6da   :  { %6465 = vmatpush.bf16.msra.mxu0 %v10892_v31  ;;  %v10860_v30 = vor.u32 %v13074_v0, %v10859_v8  ;;  %v15094_v47 = vld [vmem:[#allocation23] sm:$0xff] }
 0x6db   :  { %v6056_v59 = vpop.f32.mrf.mxu3  ;;  %v10827_v31 = vld [vmem:[#allocation20 + $0x548] sm:$0xf]  ;;  %v10573_v8 = vld [vmem:[#allocation20 + $0x368] sm:$0xf0]  ;;  %v15101_v0 = vperm.slane %v15094_v47, 0 }
 0x6dc   :  { %v6057_v35 = vadd.f32 %v6056_v59, %v6028_v41  ;;  %v6230_v9 = vpop.f32.mrf.mxu2  ;;  %v13138_v41 = vld [vmem:[#allocation20 + $0x7a4] sm:$0xf0] }
 0x6dd   :  { %v15077_v22 = vadd.f32 %v6230_v9, %v6202_v13  ;;  %v6126_v62 = vpop.f32.mrf.mxu0  ;;  %v10349_v13 = vld [vmem:[#allocation20 + $0x1a8] sm:$0xf0] }
 0x6de   :  { %v6086_v26 = vadd.f32 %v14996_v37, %v6057_v35  ;;  %v6127_v42 = vadd.f32 %v6126_v62, %v15014_v45  ;;  %v15081_v50 = vpop.f32.mrf.mxu1  ;;  %v16581_v37 = vld [vmem:[#allocation40_spill] sm:$0xff]  ;;  %v11148_v45 = vor.u32 %v13146_v32, %v11147_v63  ;;  %v11116_v35 = vor.u32 %v13138_v41, %v11115_v12  ;;  %v13006_v62 = vld [vmem:[#allocation20 + $0x38c] sm:$0xf]  ;;  %6466 = vmatpush.bf16.msra.mxu0 %v10860_v30  ;;  %v13066_v32 = vld [vmem:[#allocation20 + $0x564] sm:$0xf0] }
 0x6df   :  { %v10352_v9 = vor.u32 %v12942_v16, %v10349_v13  ;;  %v10828_v53 = vor.u32 %v13066_v32, %v10827_v31  ;;  %v10795_v41 = vld [vmem:[#allocation20 + $0x508] sm:$0xf] }
 0x6e0   :  { %6357 = vmatmul.bf16.vlgmr.msrb.gmra.mxu0 %v14834_v49  ;;  %6386 = vmatmul.bf16.vlgmr.msrb.gmra.mxu3 %v14836_v20  ;;  %v15086_v28 = vadd.f32 %v14998_v39, %v6086_v26  ;;  %v10605_v26 = vld [vmem:[#allocation20 + $0x3a8] sm:$0xf0]  ;;  %v13058_v16 = vld [vmem:[#allocation20 + $0x524] sm:$0xf0] }
 0x6e1   :  { %6531 = vmatmul.bf16.vlgmr.msra.gmra.mxu1 %v16580_v58  ;;  %6560 = vmatmul.bf16.vlgmr.msrb.gmra.mxu2 %v16581_v37  ;;  %v11051_v13 = vld [vmem:[#allocation20 + $0x708] sm:$0xf] }
 0x6e2   :  { %6494 = vmatpush.bf16.msra.mxu3 %v11148_v45  ;;  %6640 = vmatpush.bf16.msrb.mxu1 %v10352_v9  ;;  %v13130_v45 = vld [vmem:[#allocation20 + $0x764] sm:$0xf0]  ;;  %v10796_v9 = vor.u32 %v13058_v16, %v10795_v41  ;;  %v16583_v41 = vld [vmem:[#allocation56_spill] sm:$0xff] }
 0x6e3   :  { %v6155_v36 = vpop.f32.mrf.mxu3  ;;  %v11084_v19 = vor.u32 %v13130_v45, %v11083_v14  ;;  %6467 = vmatpush.bf16.msra.mxu0 %v10828_v53  ;;  %v12990_v14 = vld [vmem:[#allocation20 + $0x30c] sm:$0xf] }
 0x6e4   :  { %v15090_v43 = vadd.f32 %v6155_v36, %v6127_v42  ;;  %v15092_v39 = vpop.f32.mrf.mxu2  ;;  %v10608_v42 = vor.u32 %v13006_v62, %v10605_v26  ;;  %v12998_v36 = vld [vmem:[#allocation20 + $0x34c] sm:$0xf]  ;;  %v13122_v62 = vld [vmem:[#allocation20 + $0x724] sm:$0xf0] }
 0x6e5   :  { %v6128_v59 = vpop.f32.mrf.mxu0  ;;  %v10576_v12 = vor.u32 %v12998_v36, %v10573_v8  ;;  %v12926_v26 = vld [vmem:[#allocation20 + $0x10c] sm:$0xf]  ;;  %v11052_v31 = vor.u32 %v13122_v62, %v11051_v13  ;;  %v11019_v36 = vld [vmem:[#allocation20 + $0x6c8] sm:$0xf] }
 0x6e6   :  { %v6129_v48 = vadd.f32 %v6128_v59, %v15024_v54  ;;  %v15097_v63 = vpop.f32.mrf.mxu1  ;;  %6495 = vmatpush.bf16.msra.mxu3 %v11116_v35  ;;  %6669 = vmatpush.bf16.msra.mxu2 %v10608_v42  ;;  %v7799_v54 = vmax.f32 %v15090_v43, 0.0  ;;  %v10285_v42 = vld [vmem:[#allocation20 + $0x128] sm:$0xf0]  ;;  %v13114_v13 = vld [vmem:[#allocation20 + $0x6e4] sm:$0xf0] }
 0x6e7   :  { %6641 = vmatpush.bf16.msrb.mxu1 %v10320_v24  ;;  %v10288_v32 = vor.u32 %v12926_v26, %v10285_v42  ;;  %v10541_v53 = vld [vmem:[#allocation20 + $0x328] sm:$0xf0]  ;;  %6468 = vmatpush.bf16.msra.mxu0 %v10796_v9  ;;  %v13050_v24 = vld [vmem:[#allocation20 + $0x4e4] sm:$0xf0]  ;;  %v11020_v26 = vor.u32 %v13114_v13, %v11019_v36 }
 0x6e8   :  { %v7881_v8 = vadd.f32 %v15101_v0, %v7799_v54  ;;  %v16584_v62 = vld [vmem:[#allocation41_spill] sm:$0xff]  ;;  %v16585_v9 = vld [vmem:[#allocation42_spill] sm:$0xff] }
 0x6e9   :  { %v12910_v36 = vld [vmem:[#allocation20 + $0x8c] sm:$0xf] }
 0x6ea   :  { %6496 = vmatpush.bf16.msra.mxu3 %v11084_v19  ;;  %6670 = vmatpush.bf16.msra.mxu2 %v10576_v12  ;;  %v10544_v19 = vor.u32 %v12990_v14, %v10541_v53  ;;  %v10731_v53 = vld [vmem:[#allocation20 + $0x488] sm:$0xf]  ;;  %v10221_v13 = vld [vmem:[#allocation20 + $0xa8] sm:$0xf0] }
 0x6eb   :  { %v6157_v30 = vpop.f32.mrf.mxu3  ;;  %6642 = vmatpush.bf16.msrb.mxu1 %v10288_v32 }
 0x6ec   :  { %v6158_v59 = vadd.f32 %v6157_v30, %v6129_v48  ;;  %v15103_v35 = vpop.f32.mrf.mxu2  ;;  %v10763_v48 = vld [vmem:[#allocation20 + $0x4c8] sm:$0xf]  ;;  %v16582_v30 = vld [vmem:[#allocation55_spill] sm:$0xff] }
 0x6ed   :  { %v6131_v43 = vpop.f32.mrf.mxu0  ;;  %v10764_v16 = vor.u32 %v13050_v24, %v10763_v48  ;;  %v10987_v48 = vld [vmem:[#allocation20 + $0x688] sm:$0xf] }
 0x6ee   :  { %v7807_v45 = vmax.f32 %v6158_v59, 0.0  ;;  %v6132_v7 = vadd.f32 %v6131_v43, %v15034_v6  ;;  %v15106_v57 = vpop.f32.mrf.mxu1  ;;  %6497 = vmatpush.bf16.msra.mxu3 %v11052_v31  ;;  %v12918_v6 = vld [vmem:[#allocation20 + $0xcc] sm:$0xf]  ;;  %6671 = vmatpush.bf16.msra.mxu2 %v10544_v19 }
 0x6ef   :  { %v10253_v59 = vld [vmem:[#allocation20 + $0xe8] sm:$0xf0]  ;;  %6469 = vmatpush.bf16.msra.mxu0 %v10764_v16 }
 0x6f0   :  { %v7889_v12 = vadd.f32 %v15101_v0, %v7807_v45  ;;  %6362 = vmatmul.bf16.gmra.mxu0 %v16582_v30  ;;  %6391 = vmatmul.bf16.gmra.mxu3 %v16583_v41  ;;  %v10256_v42 = vor.u32 %v12918_v6, %v10253_v59  ;;  %v12982_v43 = vld [vmem:[#allocation20 + $0x2cc] sm:$0xf]  ;;  %v13042_v45 = vld [vmem:[#allocation20 + $0x4a4] sm:$0xf0] }
 0x6f1   :  { %6536 = vmatmul.bf16.gmra.mxu1 %v16584_v62  ;;  %6565 = vmatmul.bf16.gmra.mxu2 %v16585_v9  ;;  %v10509_v31 = vld [vmem:[#allocation20 + $0x2e8] sm:$0xf0]  ;;  %v10732_v62 = vor.u32 %v13042_v45, %v10731_v53  ;;  %v13106_v9 = vld [vmem:[#allocation20 + $0x6a4] sm:$0xf0] }
 0x6f2   :  { %v15114_v32 = vpack.c.bf16 %v7889_v12, %v7881_v8  ;;  %v10512_v54 = vor.u32 %v12982_v43, %v10509_v31  ;;  %6498 = vmatpush.bf16.msra.mxu3 %v11020_v26  ;;  %6643 = vmatpush.bf16.msrb.mxu1 %v10256_v42  ;;  %v10988_v59 = vor.u32 %v13106_v9, %v10987_v48  ;;  %v12974_v12 = vld [vmem:[#allocation20 + $0x28c] sm:$0xf]  ;;  %v13034_v42 = vld [vmem:[#allocation20 + $0x464] sm:$0xf0] }
 0x6f3   :  { %v6160_v14 = vpop.f32.mrf.mxu3  ;;  %v10224_v8 = vor.u32 %v12910_v36, %v10221_v13  ;;  %v10477_v19 = vld [vmem:[#allocation20 + $0x2a8] sm:$0xf0]  ;;  %6470 = vmatpush.bf16.msra.mxu0 %v10732_v62  ;;  %v10955_v31 = vld [vmem:[#allocation20 + $0x648] sm:$0xf] }
 0x6f4   :  { %16586 = vst [vmem:[#allocation50_spill] sm:$0xff] %v15114_v32  ;;  %v6161_v24 = vadd.f32 %v6160_v14, %v6132_v7  ;;  %v15116_v41 = vpop.f32.mrf.mxu2  ;;  %6672 = vmatpush.bf16.msra.mxu2 %v10512_v54  ;;  %v10480_v26 = vor.u32 %v12974_v12, %v10477_v19  ;;  %v10699_v7 = vld [vmem:[#allocation20 + $0x448] sm:$0xf]  ;;  %v12902_v45 = vld [vmem:[#allocation20 + $0x4c] sm:$0xf] }
 0x6f5   :  { %v6133_v6 = vpop.f32.mrf.mxu0  ;;  %v10700_v14 = vor.u32 %v13034_v42, %v10699_v7  ;;  %v13098_v53 = vld [vmem:[#allocation20 + $0x664] sm:$0xf0]  ;;  %v10189_v32 = vld [vmem:[#allocation20 + $0x68] sm:$0xf0] }
 0x6f6   :  { %v6134_v16 = vadd.f32 %v6133_v6, %v15044_v46  ;;  %v15119_v43 = vpop.f32.mrf.mxu1  ;;  %6499 = vmatpush.bf16.msra.mxu3 %v10988_v59  ;;  %6644 = vmatpush.bf16.msrb.mxu1 %v10224_v8  ;;  %v10956_v9 = vor.u32 %v13098_v53, %v10955_v31  ;;  %v10192_v48 = vor.u32 %v12902_v45, %v10189_v32  ;;  %v12966_v36 = vld [vmem:[#allocation20 + $0x24c] sm:$0xf]  ;;  %v7815_v30 = vmax.f32 %v6161_v24, 0.0  ;;  %v10667_v62 = vld [vmem:[#allocation20 + $0x408] sm:$0xf] }
 0x6f7   :  { %v10445_v13 = vld [vmem:[#allocation20 + $0x268] sm:$0xf0]  ;;  %6471 = vmatpush.bf16.msra.mxu0 %v10700_v14  ;;  %v13026_v6 = vld [vmem:[#allocation20 + $0x424] sm:$0xf0] }
 0x6f8   :  { %6673 = vmatpush.bf16.msra.mxu2 %v10480_v26  ;;  %v10448_v46 = vor.u32 %v12966_v36, %v10445_v13  ;;  %v10923_v59 = vld [vmem:[#allocation20 + $0x608] sm:$0xf]  ;;  %v10668_v19 = vor.u32 %v13026_v6, %v10667_v62  ;;  %v12894_v42 = vld [vmem:[#allocation20 + $0xc] sm:$0xf] }
 0x6f9   :  { %v13090_v7 = vld [vmem:[#allocation20 + $0x624] sm:$0xf0]  ;;  %v10157_v31 = vld [vmem:[#allocation20 + $0x28] sm:$0xf0] }
 0x6fa   :  { %6500 = vmatpush.bf16.msra.mxu3 %v10956_v9  ;;  %6645 = vmatpush.bf16.msrb.mxu1 %v10192_v48  ;;  %v10924_v53 = vor.u32 %v13090_v7, %v10923_v59  ;;  %v10160_v45 = vor.u32 %v12894_v42, %v10157_v31  ;;  %v12958_v24 = vld [vmem:[#allocation20 + $0x20c] sm:$0xf] }
 0x6fb   :  { %v6162_v54 = vpop.f32.mrf.mxu3  ;;  %v10413_v26 = vld [vmem:[#allocation20 + $0x228] sm:$0xf0]  ;;  %6472 = vmatpush.bf16.msra.mxu0 %v10668_v19 }
 0x6fc   :  { %v6163_v8 = vadd.f32 %v6162_v54, %v6134_v16  ;;  %v15121_v12 = vpop.f32.mrf.mxu2  ;;  %6674 = vmatpush.bf16.msra.mxu2 %v10448_v46  ;;  %v10416_v48 = vor.u32 %v12958_v24, %v10413_v26  ;;  %v7897_v16 = vadd.f32 %v15101_v0, %v7815_v30 }
 0x6fd   :  { %v6136_v32 = vpop.f32.mrf.mxu0 }
 0x6fe   :  { %v7823_v14 = vmax.f32 %v6163_v8, 0.0  ;;  %v6137_v36 = vadd.f32 %v6136_v32, %v15054_v29  ;;  %v15124_v9 = vpop.f32.mrf.mxu1  ;;  %6501 = vmatpush.bf16.msra.mxu3 %v10924_v53  ;;  %6646 = vmatpush.bf16.msrb.mxu1 %v10160_v45 }
 0x700   :  { %v7905_v13 = vadd.f32 %v15101_v0, %v7823_v14  ;;  %6367 = vmatmul.bf16.gmra.mxu0 %v14820_v21  ;;  %6396 = vmatmul.bf16.gmra.mxu3 %v14822_v51  ;;  %v16588_v14 = vld [vmem:[#allocation51_spill] sm:$0xff]  ;;  %v11661_v51 = vld [vmem:[#allocation20 + $0xbe8] sm:$0xf0] }
 0x701   :  { %6541 = vmatmul.bf16.gmra.mxu1 %v16574_v3  ;;  %6570 = vmatmul.bf16.gmra.mxu2 %v16575_v5  ;;  %v13270_v3 = vld [vmem:[#allocation20 + $0xbcc] sm:$0xf] }
 0x702   :  { %6675 = vmatpush.bf16.msra.mxu2 %v10416_v48  ;;  %v15132_v29 = vpack.c.bf16 %v7905_v13, %v7897_v16  ;;  %v16591_v48 = vld [vmem:[#allocation46_spill] sm:$0xff] }
 0x703   :  { %v6165_v46 = vpop.f32.mrf.mxu3 }
 0x704   :  { %16587 = vst [vmem:[#allocation39_spill] sm:$0xff] %v15132_v29  ;;  %v6166_v54 = vadd.f32 %v6165_v46, %v6137_v36  ;;  %v15134_v62 = vpop.f32.mrf.mxu2  ;;  %v16590_v36 = vld [vmem:[#allocation45_spill] sm:$0xff] }
 0x705   :  { %v6138_v6 = vpop.f32.mrf.mxu0 }
 0x706   :  { %v6139_v30 = vadd.f32 %v6138_v6, %v15064_v61  ;;  %v15137_v59 = vpop.f32.mrf.mxu1  ;;  %v7831_v19 = vmax.f32 %v6166_v54, 0.0  ;;  %v16589_v61 = vld [vmem:[#allocation52_spill] sm:$0xff] }
 0x708   :  { %v7913_v24 = vadd.f32 %v15101_v0, %v7831_v19 }
 0x70b   :  { %v6167_v8 = vpop.f32.mrf.mxu3 }
 0x70c   :  { %v6168_v7 = vadd.f32 %v6167_v8, %v6139_v30  ;;  %v15139_v42 = vpop.f32.mrf.mxu2 }
 0x70d   :  { %v6141_v31 = vpop.f32.mrf.mxu0 }
 0x70e   :  { %v7839_v32 = vmax.f32 %v6168_v7, 0.0  ;;  %v6142_v53 = vadd.f32 %v6141_v31, %v15074_v18  ;;  %v15142_v45 = vpop.f32.mrf.mxu1 }
 0x710   :  { %v7921_v26 = vadd.f32 %v15101_v0, %v7839_v32  ;;  %6372 = vmatmul.bf16.gmra.mxu0 %v16588_v14  ;;  %6401 = vmatmul.bf16.gmra.mxu3 %v16589_v61  ;;  %v16596_v61 = vld [vmem:[#allocation47_spill] sm:$0xff] }
 0x711   :  { %6546 = vmatmul.bf16.gmra.mxu1 %v16590_v36  ;;  %6575 = vmatmul.bf16.gmra.mxu2 %v16591_v48  ;;  %v13402_v36 = vld [vmem:[#allocation20 + $0xfe4] sm:$0xf0] }
 0x712   :  { %v15150_v16 = vpack.c.bf16 %v7921_v26, %v7913_v24  ;;  %v15160_v24 = vld [vmem:[#allocation22] sm:$0xff] }
 0x713   :  { %v6170_v13 = vpop.f32.mrf.mxu3  ;;  %16593 = vst [vmem:[#allocation58_spill] sm:$0xff] %v15160_v24 }
 0x714   :  { %16592 = vst [vmem:[#allocation40_spill] sm:$0xff] %v15150_v16  ;;  %v6171_v46 = vadd.f32 %v6170_v13, %v6142_v53  ;;  %v15152_v54 = vpop.f32.mrf.mxu2  ;;  %v15163_v53 = vperm.slane %v15160_v24, 2  ;;  %v11915_v13 = vld [vmem:[#allocation20 + $0xdc8] sm:$0xf] }
 0x715   :  { %v6143_v18 = vpop.f32.mrf.mxu0  ;;  %v13338_v16 = vld [vmem:[#allocation20 + $0xde4] sm:$0xf0] }
 0x716   :  { %v6144_v6 = vadd.f32 %v6143_v18, %v15086_v28  ;;  %v15155_v30 = vpop.f32.mrf.mxu1  ;;  %v7847_v19 = vmax.f32 %v6171_v46, 0.0  ;;  %v12171_v28 = vld [vmem:[#allocation20 + $0xfc8] sm:$0xf] }
 0x717   :  { %v16597_v24 = vld [vmem:[#allocation57_spill] sm:$0xff]  ;;  %v12172_v14 = vor.u32 %v13402_v36, %v12171_v28  ;;  %v13198_v28 = vld [vmem:[#allocation20 + $0x98c] sm:$0xf] }
 0x718   :  { %v7929_v18 = vadd.f32 %v15101_v0, %v7847_v19  ;;  %v11664_v19 = vor.u32 %v13270_v3, %v11661_v51  ;;  %v13394_v36 = vld [vmem:[#allocation20 + $0xfa4] sm:$0xf0] }
 0x719   :  { %6610 = vmatpush.bf16.msrb.mxu3 %v12172_v14 }
 0x71a   :  { %6784 = vmatpush.bf16.msrb.mxu2 %v11664_v19  ;;  %v11851_v19 = vld [vmem:[#allocation20 + $0xd48] sm:$0xf] }
 0x71b   :  { %v6172_v8 = vpop.f32.mrf.mxu3 }
 0x71c   :  { %v6173_v7 = vadd.f32 %v6172_v8, %v6144_v6  ;;  %v15157_v31 = vpop.f32.mrf.mxu2  ;;  %v16594_v6 = vld [vmem:[#allocation48_spill] sm:$0xff]  ;;  %v16595_v8 = vld [vmem:[#allocation49_spill] sm:$0xff] }
 0x71d   :  { %v6242_v32 = vpop.f32.mrf.mxu0 }
 0x71e   :  { %v7855_v29 = vmax.f32 %v6173_v7, 0.0  ;;  %v6243_v48 = vadd.f32 %v6242_v32, %v15009_v33  ;;  %v6416_v26 = vpop.f32.mrf.mxu1  ;;  %v11916_v7 = vor.u32 %v13338_v16, %v11915_v13  ;;  %v13206_v33 = vld [vmem:[#allocation20 + $0x9cc] sm:$0xf]  ;;  %v11883_v16 = vld [vmem:[#allocation20 + $0xd88] sm:$0xf] }
 0x71f   :  { %v11405_v32 = vld [vmem:[#allocation20 + $0x9e8] sm:$0xf0]  ;;  %v13330_v13 = vld [vmem:[#allocation20 + $0xda4] sm:$0xf0] }
 0x720   :  { %v7937_v46 = vadd.f32 %v15101_v0, %v7855_v29  ;;  %6473 = vmatmul.bf16.vlgmr.msra.gmra.mxu0 %v16594_v6  ;;  %6502 = vmatmul.bf16.vlgmr.msra.gmra.mxu3 %v16595_v8  ;;  %v11408_v5 = vor.u32 %v13206_v33, %v11405_v32  ;;  %v6417_v0 = vadd.f32 %v6416_v26, %v15163_v53  ;;  %v12139_v8 = vld [vmem:[#allocation20 + $0xf88] sm:$0xf]  ;;  %v11373_v33 = vld [vmem:[#allocation20 + $0x9a8] sm:$0xf0] }
 0x721   :  { %6647 = vmatmul.bf16.vlgmr.msrb.gmra.mxu1 %v16596_v61  ;;  %6676 = vmatmul.bf16.vlgmr.msra.gmra.mxu2 %v16597_v24  ;;  %v11884_v24 = vor.u32 %v13330_v13, %v11883_v16  ;;  %v12140_v3 = vor.u32 %v13394_v36, %v12139_v8  ;;  %v11629_v26 = vld [vmem:[#allocation20 + $0xba8] sm:$0xf0]  ;;  %v12107_v16 = vld [vmem:[#allocation20 + $0xf48] sm:$0xf] }
 0x722   :  { %6581 = vmatpush.bf16.msrb.mxu0 %v11916_v7  ;;  %v15171_v21 = vpack.c.bf16 %v7937_v46, %v7929_v18  ;;  %6755 = vmatpush.bf16.msra.mxu1 %v11408_v5  ;;  %v11376_v18 = vor.u32 %v13198_v28, %v11373_v33  ;;  %v13262_v46 = vld [vmem:[#allocation20 + $0xb8c] sm:$0xf] }
 0x723   :  { %v6271_v29 = vpop.f32.mrf.mxu3  ;;  %6611 = vmatpush.bf16.msrb.mxu3 %v12140_v3  ;;  %v13190_v13 = vld [vmem:[#allocation20 + $0x94c] sm:$0xf]  ;;  %v11819_v3 = vld [vmem:[#allocation20 + $0xd08] sm:$0xf] }
 0x724   :  { %16598 = vst [vmem:[#allocation59_spill] sm:$0xff] %v15171_v21  ;;  %v6272_v6 = vadd.f32 %v6271_v29, %v6243_v48  ;;  %v6445_v61 = vpop.f32.mrf.mxu2  ;;  %v11632_v48 = vor.u32 %v13262_v46, %v11629_v26  ;;  %v13322_v29 = vld [vmem:[#allocation20 + $0xd64] sm:$0xf0]  ;;  %v11341_v8 = vld [vmem:[#allocation20 + $0x968] sm:$0xf0] }
 0x725   :  { %v15174_v32 = vadd.f32 %v6445_v61, %v6417_v0  ;;  %v6244_v51 = vpop.f32.mrf.mxu0  ;;  %v11852_v61 = vor.u32 %v13322_v29, %v11851_v19  ;;  %v13386_v0 = vld [vmem:[#allocation20 + $0xf64] sm:$0xf0]  ;;  %v11309_v29 = vld [vmem:[#allocation20 + $0x928] sm:$0xf0] }
 0x726   :  { %v6301_v14 = vadd.f32 %v15081_v50, %v6272_v6  ;;  %v6245_v5 = vadd.f32 %v6244_v51, %v15017_v55  ;;  %v6418_v7 = vpop.f32.mrf.mxu1  ;;  %6582 = vmatpush.bf16.msrb.mxu0 %v11884_v24  ;;  %6756 = vmatpush.bf16.msra.mxu1 %v11376_v18  ;;  %v12108_v28 = vor.u32 %v13386_v0, %v12107_v16  ;;  %v13254_v6 = vld [vmem:[#allocation20 + $0xb4c] sm:$0xf]  ;;  %v13314_v18 = vld [vmem:[#allocation20 + $0xd24] sm:$0xf0] }
 0x727   :  { %6785 = vmatpush.bf16.msrb.mxu2 %v11632_v48  ;;  %v11344_v50 = vor.u32 %v13190_v13, %v11341_v8  ;;  %v11597_v55 = vld [vmem:[#allocation20 + $0xb68] sm:$0xf0]  ;;  %v6419_v33 = vadd.f32 %v6418_v7, %v15163_v53  ;;  %v12075_v46 = vld [vmem:[#allocation20 + $0xf08] sm:$0xf]  ;;  %v11820_v19 = vor.u32 %v13314_v18, %v11819_v3 }
 0x728   :  { %v15179_v36 = vadd.f32 %v15092_v39, %v6301_v14  ;;  %v11600_v24 = vor.u32 %v13254_v6, %v11597_v55  ;;  %6612 = vmatpush.bf16.msrb.mxu3 %v12108_v28  ;;  %v13378_v39 = vld [vmem:[#allocation20 + $0xf24] sm:$0xf0]  ;;  %v13182_v14 = vld [vmem:[#allocation20 + $0x90c] sm:$0xf] }
 0x729   :  { %v11312_v13 = vor.u32 %v13182_v14, %v11309_v29  ;;  %v13246_v8 = vld [vmem:[#allocation20 + $0xb0c] sm:$0xf]  ;;  %v11787_v55 = vld [vmem:[#allocation20 + $0xcc8] sm:$0xf] }
 0x72a   :  { %6583 = vmatpush.bf16.msrb.mxu0 %v11852_v61  ;;  %6757 = vmatpush.bf16.msra.mxu1 %v11344_v50  ;;  %v12076_v61 = vor.u32 %v13378_v39, %v12075_v46  ;;  %v11565_v7 = vld [vmem:[#allocation20 + $0xb28] sm:$0xf0]  ;;  %v13370_v3 = vld [vmem:[#allocation20 + $0xee4] sm:$0xf0] }
 0x72b   :  { %v6273_v51 = vpop.f32.mrf.mxu3  ;;  %6786 = vmatpush.bf16.msrb.mxu2 %v11600_v24  ;;  %v13306_v24 = vld [vmem:[#allocation20 + $0xce4] sm:$0xf0]  ;;  %v13174_v18 = vld [vmem:[#allocation20 + $0x8cc] sm:$0xf] }
 0x72c   :  { %v6274_v26 = vadd.f32 %v6273_v51, %v6245_v5  ;;  %v6447_v48 = vpop.f32.mrf.mxu2  ;;  %v11568_v5 = vor.u32 %v13246_v8, %v11565_v7  ;;  %6613 = vmatpush.bf16.msrb.mxu3 %v12076_v61  ;;  %v12043_v51 = vld [vmem:[#allocation20 + $0xec8] sm:$0xf]  ;;  %v11277_v46 = vld [vmem:[#allocation20 + $0x8e8] sm:$0xf0] }
 0x72d   :  { %v15182_v16 = vadd.f32 %v6447_v48, %v6419_v33  ;;  %v6247_v0 = vpop.f32.mrf.mxu0  ;;  %v11788_v33 = vor.u32 %v13306_v24, %v11787_v55  ;;  %v13238_v48 = vld [vmem:[#allocation20 + $0xacc] sm:$0xf]  ;;  %v13298_v61 = vld [vmem:[#allocation20 + $0xca4] sm:$0xf0] }
 0x72e   :  { %v6303_v28 = vadd.f32 %v15097_v63, %v6274_v26  ;;  %v6248_v50 = vadd.f32 %v6247_v0, %v15029_v56  ;;  %v6421_v6 = vpop.f32.mrf.mxu1  ;;  %6584 = vmatpush.bf16.msrb.mxu0 %v11820_v19  ;;  %6758 = vmatpush.bf16.msra.mxu1 %v11312_v13  ;;  %v12044_v56 = vor.u32 %v13370_v3, %v12043_v51  ;;  %v11533_v19 = vld [vmem:[#allocation20 + $0xae8] sm:$0xf0]  ;;  %v11755_v0 = vld [vmem:[#allocation20 + $0xc88] sm:$0xf] }
 0x72f   :  { %v11280_v26 = vor.u32 %v13174_v18, %v11277_v46  ;;  %6787 = vmatpush.bf16.msrb.mxu2 %v11568_v5  ;;  %v11536_v39 = vor.u32 %v13238_v48, %v11533_v19  ;;  %v6422_v14 = vadd.f32 %v6421_v6, %v15163_v53  ;;  %v11756_v7 = vor.u32 %v13298_v61, %v11755_v0  ;;  %v13166_v55 = vld [vmem:[#allocation20 + $0x88c] sm:$0xf]  ;;  %v11723_v48 = vld [vmem:[#allocation20 + $0xc48] sm:$0xf] }
 0x730   :  { %6478 = vmatmul.bf16.gmra.mxu0 %v14909_v11  ;;  %6507 = vmatmul.bf16.gmra.mxu3 %v14911_v15  ;;  %v15189_v63 = vadd.f32 %v15103_v35, %v6303_v28  ;;  %v12011_v35 = vld [vmem:[#allocation20 + $0xe88] sm:$0xf]  ;;  %v11245_v24 = vld [vmem:[#allocation20 + $0x8a8] sm:$0xf0] }
 0x731   :  { %6652 = vmatmul.bf16.gmra.mxu1 %v14854_v38  ;;  %6681 = vmatmul.bf16.gmra.mxu2 %v14856_v23  ;;  %v13362_v28 = vld [vmem:[#allocation20 + $0xea4] sm:$0xf0]  ;;  %v13230_v18 = vld [vmem:[#allocation20 + $0xa8c] sm:$0xf] }
 0x732   :  { %6585 = vmatpush.bf16.msrb.mxu0 %v11788_v33  ;;  %6614 = vmatpush.bf16.msrb.mxu3 %v12044_v56  ;;  %v12012_v5 = vor.u32 %v13362_v28, %v12011_v35  ;;  %v11248_v33 = vor.u32 %v13166_v55, %v11245_v24  ;;  %v11501_v46 = vld [vmem:[#allocation20 + $0xaa8] sm:$0xf0]  ;;  %v13290_v19 = vld [vmem:[#allocation20 + $0xc64] sm:$0xf0] }
 0x733   :  { %v6276_v29 = vpop.f32.mrf.mxu3  ;;  %6759 = vmatpush.bf16.msra.mxu1 %v11280_v26  ;;  %6788 = vmatpush.bf16.msrb.mxu2 %v11536_v39  ;;  %v13354_v0 = vld [vmem:[#allocation20 + $0xe64] sm:$0xf0]  ;;  %v13158_v61 = vld [vmem:[#allocation20 + $0x84c] sm:$0xf] }
 0x734   :  { %v6277_v13 = vadd.f32 %v6276_v29, %v6248_v50  ;;  %v6450_v8 = vpop.f32.mrf.mxu2  ;;  %v11504_v50 = vor.u32 %v13230_v18, %v11501_v46  ;;  %v11979_v29 = vld [vmem:[#allocation20 + $0xe48] sm:$0xf]  ;;  %v11213_v35 = vld [vmem:[#allocation20 + $0x868] sm:$0xf0] }
 0x735   :  { %v15194_v51 = vadd.f32 %v6450_v8, %v6422_v14  ;;  %v6249_v3 = vpop.f32.mrf.mxu0  ;;  %v11724_v14 = vor.u32 %v13290_v19, %v11723_v48  ;;  %v11980_v28 = vor.u32 %v13354_v0, %v11979_v29  ;;  %v11691_v24 = vld [vmem:[#allocation20 + $0xc08] sm:$0xf]  ;;  %v11181_v48 = vld [vmem:[#allocation20 + $0x828] sm:$0xf0] }
 0x736   :  { %v6306_v6 = vadd.f32 %v15106_v57, %v6277_v13  ;;  %v6250_v56 = vadd.f32 %v6249_v3, %v15037_v4  ;;  %v6423_v26 = vpop.f32.mrf.mxu1  ;;  %6586 = vmatpush.bf16.msrb.mxu0 %v11756_v7  ;;  %6615 = vmatpush.bf16.msrb.mxu3 %v12012_v5  ;;  %v11216_v57 = vor.u32 %v13158_v61, %v11213_v35  ;;  %v13222_v13 = vld [vmem:[#allocation20 + $0xa4c] sm:$0xf]  ;;  %v13282_v3 = vld [vmem:[#allocation20 + $0xc24] sm:$0xf0] }
 0x737   :  { %6760 = vmatpush.bf16.msra.mxu1 %v11248_v33  ;;  %v11469_v4 = vld [vmem:[#allocation20 + $0xa68] sm:$0xf0]  ;;  %6789 = vmatpush.bf16.msrb.mxu2 %v11504_v50  ;;  %v6424_v7 = vadd.f32 %v6423_v26, %v15163_v53  ;;  %v11947_v5 = vld [vmem:[#allocation20 + $0xe08] sm:$0xf]  ;;  %v11692_v46 = vor.u32 %v13282_v3, %v11691_v24 }
 0x738   :  { %v15199_v8 = vadd.f32 %v15116_v41, %v6306_v6  ;;  %v11472_v39 = vor.u32 %v13222_v13, %v11469_v4  ;;  %v13346_v41 = vld [vmem:[#allocation20 + $0xe24] sm:$0xf0]  ;;  %v13150_v6 = vld [vmem:[#allocation20 + $0x80c] sm:$0xf] }
 0x739   :  { %v11948_v50 = vor.u32 %v13346_v41, %v11947_v5  ;;  %v13214_v0 = vld [vmem:[#allocation20 + $0xa0c] sm:$0xf] }
 0x73a   :  { %6587 = vmatpush.bf16.msrb.mxu0 %v11724_v14  ;;  %6616 = vmatpush.bf16.msrb.mxu3 %v11980_v28  ;;  %v11184_v14 = vor.u32 %v13150_v6, %v11181_v48  ;;  %v11437_v61 = vld [vmem:[#allocation20 + $0xa28] sm:$0xf0] }
 0x73b   :  { %v6278_v55 = vpop.f32.mrf.mxu3  ;;  %6761 = vmatpush.bf16.msra.mxu1 %v11216_v57  ;;  %6790 = vmatpush.bf16.msrb.mxu2 %v11472_v39 }
 0x73c   :  { %v6279_v33 = vadd.f32 %v6278_v55, %v6250_v56  ;;  %v6452_v18 = vpop.f32.mrf.mxu2  ;;  %v11440_v56 = vor.u32 %v13214_v0, %v11437_v61 }
 0x73d   :  { %v15202_v19 = vadd.f32 %v6452_v18, %v6424_v7  ;;  %v6252_v29 = vpop.f32.mrf.mxu0 }
 0x73e   :  { %v6308_v26 = vadd.f32 %v15119_v43, %v6279_v33  ;;  %v6253_v35 = vadd.f32 %v6252_v29, %v15049_v40  ;;  %v6426_v28 = vpop.f32.mrf.mxu1  ;;  %6588 = vmatpush.bf16.msrb.mxu0 %v11692_v46  ;;  %6617 = vmatpush.bf16.msrb.mxu3 %v11948_v50 }
 0x73f   :  { %6762 = vmatpush.bf16.msra.mxu1 %v11184_v14  ;;  %6791 = vmatpush.bf16.msrb.mxu2 %v11440_v56  ;;  %v6427_v40 = vadd.f32 %v6426_v28, %v15163_v53 }
 0x740   :  { %6483 = vmatmul.bf16.gmra.mxu0 %v14924_v34  ;;  %6512 = vmatmul.bf16.gmra.mxu3 %v14926_v52  ;;  %v15209_v57 = vadd.f32 %v15121_v12, %v6308_v26 }
 0x741   :  { %6657 = vmatmul.bf16.gmra.mxu1 %v14864_v27  ;;  %6686 = vmatmul.bf16.gmra.mxu2 %v14866_v44 }
 0x743   :  { %v6281_v43 = vpop.f32.mrf.mxu3 }
 0x744   :  { %v6282_v13 = vadd.f32 %v6281_v43, %v6253_v35  ;;  %v6455_v4 = vpop.f32.mrf.mxu2 }
 0x745   :  { %v15214_v39 = vadd.f32 %v6455_v4, %v6427_v40  ;;  %v6254_v7 = vpop.f32.mrf.mxu0 }
 0x746   :  { %v6311_v55 = vadd.f32 %v15124_v9, %v6282_v13  ;;  %v6255_v24 = vadd.f32 %v6254_v7, %v15057_v25  ;;  %v6428_v3 = vpop.f32.mrf.mxu1 }
 0x747   :  { %v6429_v5 = vadd.f32 %v6428_v3, %v15163_v53  ;;  %v13142_v3 = vld [vmem:[#allocation20 + $0x7cc] sm:$0xf] }
 0x748   :  { %v15219_v12 = vadd.f32 %v15134_v62, %v6311_v55 }
 0x74b   :  { %v6283_v33 = vpop.f32.mrf.mxu3 }
 0x74c   :  { %v6284_v18 = vadd.f32 %v6283_v33, %v6255_v24  ;;  %v6457_v46 = vpop.f32.mrf.mxu2  ;;  %v12955_v33 = vld [vmem:[#allocation20 + $0x1ec] sm:$0xf0] }
 0x74d   :  { %v15222_v41 = vadd.f32 %v6457_v46, %v6429_v5  ;;  %v6257_v6 = vpop.f32.mrf.mxu0  ;;  %v10387_v5 = vld [vmem:[#allocation20 + $0x1d0] sm:$0xf] }
 0x74e   :  { %v6313_v48 = vadd.f32 %v15137_v59, %v6284_v18  ;;  %v6258_v29 = vadd.f32 %v6257_v6, %v15069_v60  ;;  %v6431_v50 = vpop.f32.mrf.mxu1  ;;  %v10643_v46 = vld [vmem:[#allocation20 + $0x3d0] sm:$0xf] }
 0x74f   :  { %v6432_v9 = vadd.f32 %v6431_v50, %v15163_v53  ;;  %v13019_v6 = vld [vmem:[#allocation20 + $0x3ec] sm:$0xf0]  ;;  %v13070_v50 = vld [vmem:[#allocation20 + $0x58c] sm:$0xf] }
 0x750   :  { %6488 = vmatmul.bf16.gmra.mxu0 %v14938_v2  ;;  %6517 = vmatmul.bf16.gmra.mxu3 %v14940_v10  ;;  %v15229_v25 = vadd.f32 %v15139_v42, %v6313_v48  ;;  %v10644_v48 = vor.u32 %v13019_v6, %v10643_v46  ;;  %v10579_v46 = vld [vmem:[#allocation20 + $0x350] sm:$0xf] }
 0x751   :  { %6662 = vmatmul.bf16.gmra.mxu1 %v14874_v1  ;;  %6691 = vmatmul.bf16.gmra.mxu2 %v14876_v17  ;;  %v13003_v6 = vld [vmem:[#allocation20 + $0x36c] sm:$0xf0] }
 0x752   :  { %6900 = vmatpush.bf16.msra.mxu2 %v10644_v48  ;;  %v15264_v48 = vperm.slane %v15094_v47, 1 }
 0x753   :  { %v6286_v62 = vpop.f32.mrf.mxu3 }
 0x754   :  { %v6287_v14 = vadd.f32 %v6286_v62, %v6258_v29  ;;  %v6460_v0 = vpop.f32.mrf.mxu2  ;;  %v13134_v62 = vld [vmem:[#allocation20 + $0x78c] sm:$0xf] }
 0x755   :  { %v15234_v59 = vadd.f32 %v6460_v0, %v6432_v9  ;;  %v6259_v60 = vpop.f32.mrf.mxu0  ;;  %v10861_v9 = vld [vmem:[#allocation20 + $0x5a8] sm:$0xf0] }
 0x756   :  { %v6316_v61 = vadd.f32 %v15142_v45, %v6287_v14  ;;  %v6260_v26 = vadd.f32 %v6259_v60, %v15077_v22  ;;  %v6433_v35 = vpop.f32.mrf.mxu1  ;;  %v13078_v45 = vld [vmem:[#allocation20 + $0x5cc] sm:$0xf]  ;;  %v10864_v0 = vor.u32 %v13070_v50, %v10861_v9 }
 0x757   :  { %v6434_v28 = vadd.f32 %v6433_v35, %v15163_v53  ;;  %v10893_v22 = vld [vmem:[#allocation20 + $0x5e8] sm:$0xf0] }
 0x758   :  { %v15239_v42 = vadd.f32 %v15152_v54, %v6316_v61  ;;  %v10896_v54 = vor.u32 %v13078_v45, %v10893_v22  ;;  %v11149_v53 = vld [vmem:[#allocation20 + $0x7e8] sm:$0xf0]  ;;  %v10355_v61 = vld [vmem:[#allocation20 + $0x190] sm:$0xf] }
 0x759   :  { %v11117_v60 = vld [vmem:[#allocation20 + $0x7a8] sm:$0xf0] }
 0x75a   :  { %6697 = vmatpush.bf16.msra.mxu0 %v10896_v54  ;;  %v10829_v22 = vld [vmem:[#allocation20 + $0x568] sm:$0xf0] }
 0x75b   :  { %v6288_v56 = vpop.f32.mrf.mxu3  ;;  %v13054_v9 = vld [vmem:[#allocation20 + $0x50c] sm:$0xf] }
 0x75c   :  { %v6289_v40 = vadd.f32 %v6288_v56, %v6260_v26  ;;  %v6462_v43 = vpop.f32.mrf.mxu2  ;;  %v12947_v26 = vld [vmem:[#allocation20 + $0x1ac] sm:$0xf0] }
 0x75d   :  { %v15242_v13 = vadd.f32 %v6462_v43, %v6434_v28  ;;  %v6358_v4 = vpop.f32.mrf.mxu0  ;;  %v11120_v28 = vor.u32 %v13134_v62, %v11117_v60  ;;  %v10356_v56 = vor.u32 %v12947_v26, %v10355_v61  ;;  %v13011_v43 = vld [vmem:[#allocation20 + $0x3ac] sm:$0xf0]  ;;  %v10797_v62 = vld [vmem:[#allocation20 + $0x528] sm:$0xf0] }
 0x75e   :  { %v6318_v7 = vadd.f32 %v15155_v30, %v6289_v40  ;;  %v6359_v55 = vadd.f32 %v6358_v4, %v15179_v36  ;;  %v15246_v24 = vpop.f32.mrf.mxu1  ;;  %v11152_v30 = vor.u32 %v13142_v3, %v11149_v53  ;;  %v10388_v36 = vor.u32 %v12955_v33, %v10387_v5  ;;  %v10611_v40 = vld [vmem:[#allocation20 + $0x390] sm:$0xf]  ;;  %6698 = vmatpush.bf16.msra.mxu0 %v10864_v0  ;;  %v13126_v3 = vld [vmem:[#allocation20 + $0x74c] sm:$0xf] }
 0x75f   :  { %v10612_v45 = vor.u32 %v13011_v43, %v10611_v40  ;;  %v11085_v53 = vld [vmem:[#allocation20 + $0x768] sm:$0xf0]  ;;  %v10323_v5 = vld [vmem:[#allocation20 + $0x150] sm:$0xf]  ;;  %v10800_v26 = vor.u32 %v13054_v9, %v10797_v62  ;;  %v16601_v9 = vld [vmem:[#allocation41_spill] sm:$0xff] }
 0x760   :  { %6589 = vmatmul.bf16.vlgmr.msrb.gmra.mxu0 %v14834_v49  ;;  %6618 = vmatmul.bf16.vlgmr.msrb.gmra.mxu3 %v14836_v20  ;;  %v15251_v18 = vadd.f32 %v15157_v31, %v6318_v7  ;;  %v12939_v33 = vld [vmem:[#allocation20 + $0x16c] sm:$0xf0]  ;;  %v13118_v0 = vld [vmem:[#allocation20 + $0x70c] sm:$0xf] }
 0x761   :  { %6763 = vmatmul.bf16.vlgmr.msra.gmra.mxu1 %v16580_v58  ;;  %6792 = vmatmul.bf16.vlgmr.msrb.gmra.mxu2 %v16581_v37  ;;  %v10547_v43 = vld [vmem:[#allocation20 + $0x310] sm:$0xf] }
 0x762   :  { %6726 = vmatpush.bf16.msra.mxu3 %v11152_v30  ;;  %6871 = vmatpush.bf16.msrb.mxu1 %v10388_v36  ;;  %v11088_v30 = vor.u32 %v13126_v3, %v11085_v53  ;;  %v10324_v36 = vor.u32 %v12939_v33, %v10323_v5  ;;  %v10765_v53 = vld [vmem:[#allocation20 + $0x4e8] sm:$0xf0] }
 0x763   :  { %v6387_v29 = vpop.f32.mrf.mxu3  ;;  %6901 = vmatpush.bf16.msra.mxu2 %v10612_v45  ;;  %v12995_v45 = vld [vmem:[#allocation20 + $0x32c] sm:$0xf0]  ;;  %v13110_v5 = vld [vmem:[#allocation20 + $0x6cc] sm:$0xf] }
 0x764   :  { %v15255_v14 = vadd.f32 %v6387_v29, %v6359_v55  ;;  %v15257_v31 = vpop.f32.mrf.mxu2  ;;  %v13062_v55 = vld [vmem:[#allocation20 + $0x54c] sm:$0xf]  ;;  %v10580_v29 = vor.u32 %v13003_v6, %v10579_v46  ;;  %v16600_v46 = vld [vmem:[#allocation56_spill] sm:$0xff] }
 0x765   :  { %v6360_v35 = vpop.f32.mrf.mxu0  ;;  %v10832_v54 = vor.u32 %v13062_v55, %v10829_v22  ;;  %v16602_v62 = vld [vmem:[#allocation42_spill] sm:$0xff] }
 0x766   :  { %v6361_v4 = vadd.f32 %v6360_v35, %v15189_v63  ;;  %v15260_v7 = vpop.f32.mrf.mxu1  ;;  %6727 = vmatpush.bf16.msra.mxu3 %v11120_v28  ;;  %6872 = vmatpush.bf16.msrb.mxu1 %v10356_v56  ;;  %v7800_v63 = vmax.f32 %v15255_v14, 0.0  ;;  %v11053_v35 = vld [vmem:[#allocation20 + $0x728] sm:$0xf0]  ;;  %v10291_v28 = vld [vmem:[#allocation20 + $0x110] sm:$0xf] }
 0x767   :  { %6699 = vmatpush.bf16.msra.mxu0 %v10832_v54  ;;  %6902 = vmatpush.bf16.msra.mxu2 %v10580_v29  ;;  %v12931_v56 = vld [vmem:[#allocation20 + $0x12c] sm:$0xf0]  ;;  %v11056_v40 = vor.u32 %v13118_v0, %v11053_v35  ;;  %v10548_v54 = vor.u32 %v12995_v45, %v10547_v43  ;;  %v11021_v29 = vld [vmem:[#allocation20 + $0x6e8] sm:$0xf0] }
 0x768   :  { %v10292_v47 = vor.u32 %v12931_v56, %v10291_v28  ;;  %v7882_v33 = vadd.f32 %v15264_v48, %v7800_v63  ;;  %v11024_v0 = vor.u32 %v13110_v5, %v11021_v29  ;;  %v12987_v35 = vld [vmem:[#allocation20 + $0x2ec] sm:$0xf0] }
 0x769   :  { %v12915_v5 = vld [vmem:[#allocation20 + $0xac] sm:$0xf0] }
 0x76a   :  { %6728 = vmatpush.bf16.msra.mxu3 %v11088_v30  ;;  %6873 = vmatpush.bf16.msrb.mxu1 %v10324_v36  ;;  %v16599_v36 = vld [vmem:[#allocation55_spill] sm:$0xff] }
 0x76b   :  { %v6389_v50 = vpop.f32.mrf.mxu3  ;;  %6700 = vmatpush.bf16.msra.mxu0 %v10800_v26  ;;  %v10515_v26 = vld [vmem:[#allocation20 + $0x2d0] sm:$0xf]  ;;  %6903 = vmatpush.bf16.msra.mxu2 %v10548_v54 }
 0x76c   :  { %v6390_v60 = vadd.f32 %v6389_v50, %v6361_v4  ;;  %v15266_v61 = vpop.f32.mrf.mxu2  ;;  %v13046_v4 = vld [vmem:[#allocation20 + $0x4cc] sm:$0xf]  ;;  %v12923_v50 = vld [vmem:[#allocation20 + $0xec] sm:$0xf0]  ;;  %v10516_v63 = vor.u32 %v12987_v35, %v10515_v26 }
 0x76d   :  { %v6363_v14 = vpop.f32.mrf.mxu0  ;;  %v10768_v6 = vor.u32 %v13046_v4, %v10765_v53  ;;  %v10989_v4 = vld [vmem:[#allocation20 + $0x6a8] sm:$0xf0]  ;;  %v10227_v53 = vld [vmem:[#allocation20 + $0x90] sm:$0xf] }
 0x76e   :  { %v7808_v55 = vmax.f32 %v6390_v60, 0.0  ;;  %v6364_v22 = vadd.f32 %v6363_v14, %v15199_v8  ;;  %v15269_v3 = vpop.f32.mrf.mxu1  ;;  %6729 = vmatpush.bf16.msra.mxu3 %v11056_v40  ;;  %6874 = vmatpush.bf16.msrb.mxu1 %v10292_v47  ;;  %v10259_v8 = vld [vmem:[#allocation20 + $0xd0] sm:$0xf]  ;;  %v13038_v14 = vld [vmem:[#allocation20 + $0x48c] sm:$0xf] }
 0x76f   :  { %v10260_v60 = vor.u32 %v12923_v50, %v10259_v8  ;;  %6701 = vmatpush.bf16.msra.mxu0 %v10768_v6  ;;  %v10733_v40 = vld [vmem:[#allocation20 + $0x4a8] sm:$0xf0]  ;;  %v12979_v54 = vld [vmem:[#allocation20 + $0x2ac] sm:$0xf0]  ;;  %6904 = vmatpush.bf16.msra.mxu2 %v10516_v63 }
 0x770   :  { %v7890_v30 = vadd.f32 %v15264_v48, %v7808_v55  ;;  %6594 = vmatmul.bf16.gmra.mxu0 %v16599_v36  ;;  %6623 = vmatmul.bf16.gmra.mxu3 %v16600_v46  ;;  %v13102_v47 = vld [vmem:[#allocation20 + $0x68c] sm:$0xf]  ;;  %v10736_v55 = vor.u32 %v13038_v14, %v10733_v40  ;;  %v10195_v14 = vld [vmem:[#allocation20 + $0x50] sm:$0xf] }
 0x771   :  { %6768 = vmatmul.bf16.gmra.mxu1 %v16601_v9  ;;  %6797 = vmatmul.bf16.gmra.mxu2 %v16602_v62  ;;  %v10992_v8 = vor.u32 %v13102_v47, %v10989_v4  ;;  %v13094_v26 = vld [vmem:[#allocation20 + $0x64c] sm:$0xf]  ;;  %v12907_v40 = vld [vmem:[#allocation20 + $0x6c] sm:$0xf0] }
 0x772   :  { %v15277_v28 = vpack.c.bf16 %v7890_v30, %v7882_v33  ;;  %6730 = vmatpush.bf16.msra.mxu3 %v11024_v0  ;;  %6875 = vmatpush.bf16.msrb.mxu1 %v10260_v60  ;;  %v10228_v33 = vor.u32 %v12915_v5, %v10227_v53  ;;  %v10483_v30 = vld [vmem:[#allocation20 + $0x290] sm:$0xf]  ;;  %v10701_v60 = vld [vmem:[#allocation20 + $0x468] sm:$0xf0]  ;;  %v10196_v4 = vor.u32 %v12907_v40, %v10195_v14 }
 0x773   :  { %v6392_v56 = vpop.f32.mrf.mxu3  ;;  %6702 = vmatpush.bf16.msra.mxu0 %v10736_v55  ;;  %v10484_v0 = vor.u32 %v12979_v54, %v10483_v30  ;;  %v10451_v53 = vld [vmem:[#allocation20 + $0x250] sm:$0xf]  ;;  %v13022_v55 = vld [vmem:[#allocation20 + $0x40c] sm:$0xf] }
 0x774   :  { %16603 = vst [vmem:[#allocation60_spill] sm:$0xff] %v15277_v28  ;;  %v6393_v43 = vadd.f32 %v6392_v56, %v6364_v22  ;;  %v15279_v45 = vpop.f32.mrf.mxu2  ;;  %v13030_v22 = vld [vmem:[#allocation20 + $0x44c] sm:$0xf]  ;;  %v12971_v5 = vld [vmem:[#allocation20 + $0x26c] sm:$0xf0] }
 0x775   :  { %v6365_v29 = vpop.f32.mrf.mxu0  ;;  %v10704_v35 = vor.u32 %v13030_v22, %v10701_v60  ;;  %v10957_v56 = vld [vmem:[#allocation20 + $0x668] sm:$0xf0]  ;;  %6905 = vmatpush.bf16.msra.mxu2 %v10484_v0  ;;  %v10163_v60 = vld [vmem:[#allocation20 + $0x10] sm:$0xf] }
 0x776   :  { %v6366_v6 = vadd.f32 %v6365_v29, %v15209_v57  ;;  %v15282_v50 = vpop.f32.mrf.mxu1  ;;  %6731 = vmatpush.bf16.msra.mxu3 %v10992_v8  ;;  %6876 = vmatpush.bf16.msrb.mxu1 %v10228_v33  ;;  %v10960_v47 = vor.u32 %v13094_v26, %v10957_v56  ;;  %v7816_v21 = vmax.f32 %v6393_v43, 0.0  ;;  %v10452_v57 = vor.u32 %v12971_v5, %v10451_v53  ;;  %v10669_v29 = vld [vmem:[#allocation20 + $0x428] sm:$0xf0]  ;;  %v12899_v26 = vld [vmem:[#allocation20 + $0x2c] sm:$0xf0] }
 0x777   :  { %6703 = vmatpush.bf16.msra.mxu0 %v10704_v35  ;;  %v13086_v8 = vld [vmem:[#allocation20 + $0x60c] sm:$0xf]  ;;  %v10672_v54 = vor.u32 %v13022_v55, %v10669_v29  ;;  %v10164_v40 = vor.u32 %v12899_v26, %v10163_v60  ;;  %v10419_v43 = vld [vmem:[#allocation20 + $0x210] sm:$0xf] }
 0x778   :  { %v10925_v22 = vld [vmem:[#allocation20 + $0x628] sm:$0xf0]  ;;  %v12963_v0 = vld [vmem:[#allocation20 + $0x22c] sm:$0xf0] }
 0x779   :  { %v10928_v14 = vor.u32 %v13086_v8, %v10925_v22  ;;  %6906 = vmatpush.bf16.msra.mxu2 %v10452_v57  ;;  %v16605_v55 = vld [vmem:[#allocation54_spill] sm:$0xff]  ;;  %v16606_v29 = vld [vmem:[#allocation43_spill] sm:$0xff]  ;;  %v16607_v8 = vld [vmem:[#allocation44_spill] sm:$0xff] }
 0x77a   :  { %6732 = vmatpush.bf16.msra.mxu3 %v10960_v47  ;;  %6877 = vmatpush.bf16.msrb.mxu1 %v10196_v4  ;;  %v10420_v4 = vor.u32 %v12963_v0, %v10419_v43  ;;  %v11667_v62 = vld [vmem:[#allocation20 + $0xbd0] sm:$0xf] }
 0x77b   :  { %v6394_v63 = vpop.f32.mrf.mxu3  ;;  %6704 = vmatpush.bf16.msra.mxu0 %v10672_v54  ;;  %v13275_v9 = vld [vmem:[#allocation20 + $0xbec] sm:$0xf0] }
 0x77c   :  { %v6395_v33 = vadd.f32 %v6394_v63, %v6366_v6  ;;  %v15284_v30 = vpop.f32.mrf.mxu2  ;;  %v7898_v6 = vadd.f32 %v15264_v48, %v7816_v21  ;;  %v16604_v63 = vld [vmem:[#allocation53_spill] sm:$0xff] }
 0x77d   :  { %v6368_v56 = vpop.f32.mrf.mxu0  ;;  %6907 = vmatpush.bf16.msra.mxu2 %v10420_v4 }
 0x77e   :  { %v7824_v35 = vmax.f32 %v6395_v33, 0.0  ;;  %v6369_v53 = vadd.f32 %v6368_v56, %v15219_v12  ;;  %v15287_v47 = vpop.f32.mrf.mxu1  ;;  %6733 = vmatpush.bf16.msra.mxu3 %v10928_v14  ;;  %6878 = vmatpush.bf16.msrb.mxu1 %v10164_v40 }
 0x780   :  { %v7906_v5 = vadd.f32 %v15264_v48, %v7824_v35  ;;  %6599 = vmatmul.bf16.gmra.mxu0 %v16604_v63  ;;  %6628 = vmatmul.bf16.gmra.mxu3 %v16605_v55  ;;  %v13211_v55 = vld [vmem:[#allocation20 + $0x9ec] sm:$0xf0] }
 0x781   :  { %6773 = vmatmul.bf16.gmra.mxu1 %v16606_v29  ;;  %6802 = vmatmul.bf16.gmra.mxu2 %v16607_v8  ;;  %v13398_v8 = vld [vmem:[#allocation20 + $0xfcc] sm:$0xf]  ;;  %v16615_v29 = vld [vmem:[#allocation48_spill] sm:$0xff] }
 0x782   :  { %v15295_v12 = vpack.c.bf16 %v7906_v5, %v7898_v6  ;;  %v16609_v5 = vld [vmem:[#allocation51_spill] sm:$0xff] }
 0x783   :  { %v6397_v57 = vpop.f32.mrf.mxu3 }
 0x784   :  { %16608 = vst [vmem:[#allocation61_spill] sm:$0xff] %v15295_v12  ;;  %v6398_v33 = vadd.f32 %v6397_v57, %v6369_v53  ;;  %v15297_v54 = vpop.f32.mrf.mxu2  ;;  %v16611_v57 = vld [vmem:[#allocation45_spill] sm:$0xff] }
 0x785   :  { %v6370_v22 = vpop.f32.mrf.mxu0 }
 0x786   :  { %v6371_v21 = vadd.f32 %v6370_v22, %v15229_v25  ;;  %v15300_v60 = vpop.f32.mrf.mxu1  ;;  %v7832_v56 = vmax.f32 %v6398_v33, 0.0  ;;  %v16610_v25 = vld [vmem:[#allocation52_spill] sm:$0xff]  ;;  %v16612_v33 = vld [vmem:[#allocation46_spill] sm:$0xff] }
 0x788   :  { %v7914_v53 = vadd.f32 %v15264_v48, %v7832_v56 }
 0x78b   :  { %v6399_v26 = vpop.f32.mrf.mxu3 }
 0x78c   :  { %v6400_v14 = vadd.f32 %v6399_v26, %v6371_v21  ;;  %v15302_v40 = vpop.f32.mrf.mxu2 }
 0x78d   :  { %v6373_v43 = vpop.f32.mrf.mxu0 }
 0x78e   :  { %v7840_v0 = vmax.f32 %v6400_v14, 0.0  ;;  %v6374_v35 = vadd.f32 %v6373_v43, %v15239_v42  ;;  %v15305_v4 = vpop.f32.mrf.mxu1 }
 0x790   :  { %v7922_v6 = vadd.f32 %v15264_v48, %v7840_v0  ;;  %6604 = vmatmul.bf16.gmra.mxu0 %v16609_v5  ;;  %6633 = vmatmul.bf16.gmra.mxu3 %v16610_v25 }
 0x791   :  { %6778 = vmatmul.bf16.gmra.mxu1 %v16611_v57  ;;  %6807 = vmatmul.bf16.gmra.mxu2 %v16612_v33 }
 0x792   :  { %v15313_v22 = vpack.c.bf16 %v7922_v6, %v7914_v53  ;;  %v16614_v53 = vld [vmem:[#allocation58_spill] sm:$0xff] }
 0x793   :  { %v6402_v21 = vpop.f32.mrf.mxu3  ;;  %v15324_v6 = vperm.slane %v16614_v53, 3 }
 0x794   :  { %16613 = vst [vmem:[#allocation62_spill] sm:$0xff] %v15313_v22  ;;  %v6403_v26 = vadd.f32 %v6402_v21, %v6374_v35  ;;  %v15315_v14 = vpop.f32.mrf.mxu2  ;;  %v13334_v21 = vld [vmem:[#allocation20 + $0xdcc] sm:$0xf] }
 0x795   :  { %v6375_v42 = vpop.f32.mrf.mxu0  ;;  %v11917_v22 = vld [vmem:[#allocation20 + $0xde8] sm:$0xf0] }
 0x796   :  { %v6376_v43 = vadd.f32 %v6375_v42, %v15251_v18  ;;  %v15318_v56 = vpop.f32.mrf.mxu1  ;;  %v7848_v12 = vmax.f32 %v6403_v26, 0.0  ;;  %v16616_v26 = vld [vmem:[#allocation49_spill] sm:$0xff] }
 0x798   :  { %v7930_v18 = vadd.f32 %v15264_v48, %v7848_v12  ;;  %v11668_v12 = vor.u32 %v13275_v9, %v11667_v62 }
 0x79a   :  { %7016 = vmatpush.bf16.msrb.mxu2 %v11668_v12  ;;  %v13318_v12 = vld [vmem:[#allocation20 + $0xd4c] sm:$0xf] }
 0x79b   :  { %v6404_v0 = vpop.f32.mrf.mxu3 }
 0x79c   :  { %v6405_v28 = vadd.f32 %v6404_v0, %v6376_v43  ;;  %v15320_v5 = vpop.f32.mrf.mxu2  ;;  %v11920_v43 = vor.u32 %v13334_v21, %v11917_v22  ;;  %v12173_v0 = vld [vmem:[#allocation20 + $0xfe8] sm:$0xf0] }
 0x79d   :  { %v6474_v25 = vpop.f32.mrf.mxu0  ;;  %v12176_v53 = vor.u32 %v13398_v8, %v12173_v0  ;;  %v13326_v22 = vld [vmem:[#allocation20 + $0xd8c] sm:$0xf]  ;;  %v13203_v0 = vld [vmem:[#allocation20 + $0x9ac] sm:$0xf0] }
 0x79e   :  { %v7856_v57 = vmax.f32 %v6405_v28, 0.0  ;;  %v6475_v33 = vadd.f32 %v6474_v25, %v15174_v32  ;;  %v6648_v35 = vpop.f32.mrf.mxu1  ;;  %v11411_v28 = vld [vmem:[#allocation20 + $0x9d0] sm:$0xf]  ;;  %v16618_v25 = vld [vmem:[#allocation57_spill] sm:$0xff]  ;;  %6813 = vmatpush.bf16.msrb.mxu0 %v11920_v43  ;;  %v11885_v21 = vld [vmem:[#allocation20 + $0xda8] sm:$0xf0] }
 0x79f   :  { %v16617_v32 = vld [vmem:[#allocation47_spill] sm:$0xff]  ;;  %v11412_v63 = vor.u32 %v13211_v55, %v11411_v28  ;;  %6842 = vmatpush.bf16.msrb.mxu3 %v12176_v53  ;;  %v12141_v8 = vld [vmem:[#allocation20 + $0xfa8] sm:$0xf0] }
 0x7a0   :  { %v7938_v42 = vadd.f32 %v15264_v48, %v7856_v57  ;;  %6705 = vmatmul.bf16.vlgmr.msra.gmra.mxu0 %v16615_v29  ;;  %6734 = vmatmul.bf16.vlgmr.msra.gmra.mxu3 %v16616_v26  ;;  %v6649_v48 = vadd.f32 %v6648_v35, %v15324_v6  ;;  %v13390_v26 = vld [vmem:[#allocation20 + $0xf8c] sm:$0xf]  ;;  %v11379_v55 = vld [vmem:[#allocation20 + $0x990] sm:$0xf] }
 0x7a1   :  { %6879 = vmatmul.bf16.vlgmr.msrb.gmra.mxu1 %v16617_v32  ;;  %6908 = vmatmul.bf16.vlgmr.msra.gmra.mxu2 %v16618_v25  ;;  %v11888_v25 = vor.u32 %v13326_v22, %v11885_v21  ;;  %v12144_v62 = vor.u32 %v13390_v26, %v12141_v8  ;;  %v13267_v35 = vld [vmem:[#allocation20 + $0xbac] sm:$0xf0]  ;;  %v13382_v22 = vld [vmem:[#allocation20 + $0xf4c] sm:$0xf] }
 0x7a2   :  { %v15332_v46 = vpack.c.bf16 %v7938_v42, %v7930_v18  ;;  %6987 = vmatpush.bf16.msra.mxu1 %v11412_v63  ;;  %v11380_v18 = vor.u32 %v13203_v0, %v11379_v55  ;;  %v11635_v42 = vld [vmem:[#allocation20 + $0xb90] sm:$0xf] }
 0x7a3   :  { %v6503_v57 = vpop.f32.mrf.mxu3  ;;  %6814 = vmatpush.bf16.msrb.mxu0 %v11888_v25  ;;  %6843 = vmatpush.bf16.msrb.mxu3 %v12144_v62  ;;  %v11347_v21 = vld [vmem:[#allocation20 + $0x950] sm:$0xf]  ;;  %v13310_v62 = vld [vmem:[#allocation20 + $0xd0c] sm:$0xf] }
 0x7a4   :  { %16619 = vst [vmem:[#allocation58_spill] sm:$0xff] %v15332_v46  ;;  %v6504_v29 = vadd.f32 %v6503_v57, %v6475_v33  ;;  %v6677_v32 = vpop.f32.mrf.mxu2  ;;  %v11636_v33 = vor.u32 %v13267_v35, %v11635_v42  ;;  %v11853_v57 = vld [vmem:[#allocation20 + $0xd68] sm:$0xf0]  ;;  %v13195_v26 = vld [vmem:[#allocation20 + $0x96c] sm:$0xf0] }
 0x7a5   :  { %v15335_v28 = vadd.f32 %v6677_v32, %v6649_v48  ;;  %v6476_v9 = vpop.f32.mrf.mxu0  ;;  %v11856_v32 = vor.u32 %v13318_v12, %v11853_v57  ;;  %v12109_v48 = vld [vmem:[#allocation20 + $0xf68] sm:$0xf0]  ;;  %v13187_v57 = vld [vmem:[#allocation20 + $0x92c] sm:$0xf0] }
 0x7a6   :  { %v6533_v43 = vadd.f32 %v15246_v24, %v6504_v29  ;;  %v6477_v63 = vadd.f32 %v6476_v9, %v15182_v16  ;;  %v6650_v53 = vpop.f32.mrf.mxu1  ;;  %6988 = vmatpush.bf16.msra.mxu1 %v11380_v18  ;;  %7017 = vmatpush.bf16.msrb.mxu2 %v11636_v33  ;;  %v12112_v55 = vor.u32 %v13382_v22, %v12109_v48  ;;  %v11603_v29 = vld [vmem:[#allocation20 + $0xb50] sm:$0xf]  ;;  %v11821_v18 = vld [vmem:[#allocation20 + $0xd28] sm:$0xf0] }
 0x7a7   :  { %v11348_v24 = vor.u32 %v13195_v26, %v11347_v21  ;;  %v13259_v16 = vld [vmem:[#allocation20 + $0xb6c] sm:$0xf0]  ;;  %6815 = vmatpush.bf16.msrb.mxu0 %v11856_v32  ;;  %v6651_v0 = vadd.f32 %v6650_v53, %v15324_v6  ;;  %v13374_v42 = vld [vmem:[#allocation20 + $0xf0c] sm:$0xf]  ;;  %v11824_v12 = vor.u32 %v13310_v62, %v11821_v18 }
 0x7a8   :  { %v15340_v8 = vadd.f32 %v15257_v31, %v6533_v43  ;;  %v11604_v25 = vor.u32 %v13259_v16, %v11603_v29  ;;  %6844 = vmatpush.bf16.msrb.mxu3 %v12112_v55  ;;  %v12077_v31 = vld [vmem:[#allocation20 + $0xf28] sm:$0xf0]  ;;  %v11315_v43 = vld [vmem:[#allocation20 + $0x910] sm:$0xf] }
 0x7a9   :  { %v12080_v32 = vor.u32 %v13374_v42, %v12077_v31  ;;  %v11316_v21 = vor.u32 %v13187_v57, %v11315_v43  ;;  %v11571_v26 = vld [vmem:[#allocation20 + $0xb10] sm:$0xf]  ;;  %v13302_v16 = vld [vmem:[#allocation20 + $0xccc] sm:$0xf] }
 0x7aa   :  { %6989 = vmatpush.bf16.msra.mxu1 %v11348_v24  ;;  %7018 = vmatpush.bf16.msrb.mxu2 %v11604_v25  ;;  %v13251_v53 = vld [vmem:[#allocation20 + $0xb2c] sm:$0xf0]  ;;  %v11789_v25 = vld [vmem:[#allocation20 + $0xce8] sm:$0xf0] }
 0x7ab   :  { %v6505_v9 = vpop.f32.mrf.mxu3  ;;  %6816 = vmatpush.bf16.msrb.mxu0 %v11824_v12  ;;  %v12045_v62 = vld [vmem:[#allocation20 + $0xee8] sm:$0xf0]  ;;  %v11283_v18 = vld [vmem:[#allocation20 + $0x8d0] sm:$0xf] }
 0x7ac   :  { %v6506_v35 = vadd.f32 %v6505_v9, %v6477_v63  ;;  %v6679_v33 = vpop.f32.mrf.mxu2  ;;  %v11572_v63 = vor.u32 %v13251_v53, %v11571_v26  ;;  %6845 = vmatpush.bf16.msrb.mxu3 %v12080_v32  ;;  %v13366_v9 = vld [vmem:[#allocation20 + $0xecc] sm:$0xf]  ;;  %v13179_v42 = vld [vmem:[#allocation20 + $0x8ec] sm:$0xf0] }
 0x7ad   :  { %v15343_v22 = vadd.f32 %v6679_v33, %v6651_v0  ;;  %v6479_v48 = vpop.f32.mrf.mxu0  ;;  %v11792_v0 = vor.u32 %v13302_v16, %v11789_v25  ;;  %v11539_v33 = vld [vmem:[#allocation20 + $0xad0] sm:$0xf]  ;;  %v11757_v32 = vld [vmem:[#allocation20 + $0xca8] sm:$0xf0] }
 0x7ae   :  { %v6535_v55 = vadd.f32 %v15260_v7, %v6506_v35  ;;  %v6480_v24 = vadd.f32 %v6479_v48, %v15194_v51  ;;  %v6653_v29 = vpop.f32.mrf.mxu1  ;;  %6990 = vmatpush.bf16.msra.mxu1 %v11316_v21  ;;  %v12048_v51 = vor.u32 %v13366_v9, %v12045_v62  ;;  %v11284_v35 = vor.u32 %v13179_v42, %v11283_v18  ;;  %v13243_v12 = vld [vmem:[#allocation20 + $0xaec] sm:$0xf0]  ;;  %v13294_v48 = vld [vmem:[#allocation20 + $0xc8c] sm:$0xf] }
 0x7af   :  { %7019 = vmatpush.bf16.msrb.mxu2 %v11572_v63  ;;  %6817 = vmatpush.bf16.msrb.mxu0 %v11792_v0  ;;  %v11540_v31 = vor.u32 %v13243_v12, %v11539_v33  ;;  %v6654_v43 = vadd.f32 %v6653_v29, %v15324_v6  ;;  %v11760_v53 = vor.u32 %v13294_v48, %v11757_v32  ;;  %v11251_v16 = vld [vmem:[#allocation20 + $0x890] sm:$0xf]  ;;  %v13286_v33 = vld [vmem:[#allocation20 + $0xc4c] sm:$0xf] }
 0x7b0   :  { %6710 = vmatmul.bf16.gmra.mxu0 %v14909_v11  ;;  %6739 = vmatmul.bf16.gmra.mxu3 %v14911_v15  ;;  %v15350_v7 = vadd.f32 %v15266_v61, %v6535_v55  ;;  %v13358_v61 = vld [vmem:[#allocation20 + $0xe8c] sm:$0xf]  ;;  %v13171_v25 = vld [vmem:[#allocation20 + $0x8ac] sm:$0xf0] }
 0x7b1   :  { %6884 = vmatmul.bf16.gmra.mxu1 %v14854_v38  ;;  %6913 = vmatmul.bf16.gmra.mxu2 %v14856_v23  ;;  %v12013_v55 = vld [vmem:[#allocation20 + $0xea8] sm:$0xf0]  ;;  %v11252_v0 = vor.u32 %v13171_v25, %v11251_v16  ;;  %v11507_v18 = vld [vmem:[#allocation20 + $0xa90] sm:$0xf] }
 0x7b2   :  { %6846 = vmatpush.bf16.msrb.mxu3 %v12048_v51  ;;  %6991 = vmatpush.bf16.msra.mxu1 %v11284_v35  ;;  %v12016_v63 = vor.u32 %v13358_v61, %v12013_v55  ;;  %v13235_v42 = vld [vmem:[#allocation20 + $0xaac] sm:$0xf0]  ;;  %v11725_v12 = vld [vmem:[#allocation20 + $0xc68] sm:$0xf0] }
 0x7b3   :  { %v6508_v57 = vpop.f32.mrf.mxu3  ;;  %7020 = vmatpush.bf16.msrb.mxu2 %v11540_v31  ;;  %6818 = vmatpush.bf16.msrb.mxu0 %v11760_v53  ;;  %v11981_v48 = vld [vmem:[#allocation20 + $0xe68] sm:$0xf0]  ;;  %v11219_v32 = vld [vmem:[#allocation20 + $0x850] sm:$0xf] }
 0x7b4   :  { %v6509_v21 = vadd.f32 %v6508_v57, %v6480_v24  ;;  %v6682_v26 = vpop.f32.mrf.mxu2  ;;  %v11508_v24 = vor.u32 %v13235_v42, %v11507_v18  ;;  %v13350_v57 = vld [vmem:[#allocation20 + $0xe4c] sm:$0xf]  ;;  %v13163_v61 = vld [vmem:[#allocation20 + $0x86c] sm:$0xf0] }
 0x7b5   :  { %v15355_v9 = vadd.f32 %v6682_v26, %v6654_v43  ;;  %v6481_v62 = vpop.f32.mrf.mxu0  ;;  %v11728_v43 = vor.u32 %v13286_v33, %v11725_v12  ;;  %v11984_v55 = vor.u32 %v13350_v57, %v11981_v48  ;;  %v13278_v25 = vld [vmem:[#allocation20 + $0xc0c] sm:$0xf]  ;;  %v13155_v33 = vld [vmem:[#allocation20 + $0x82c] sm:$0xf0] }
 0x7b6   :  { %v6538_v29 = vadd.f32 %v15269_v3, %v6509_v21  ;;  %v6482_v51 = vadd.f32 %v6481_v62, %v15202_v19  ;;  %v6655_v35 = vpop.f32.mrf.mxu1  ;;  %6847 = vmatpush.bf16.msrb.mxu3 %v12016_v63  ;;  %6992 = vmatpush.bf16.msra.mxu1 %v11252_v0  ;;  %v11220_v3 = vor.u32 %v13163_v61, %v11219_v32  ;;  %v11475_v21 = vld [vmem:[#allocation20 + $0xa50] sm:$0xf]  ;;  %v11693_v62 = vld [vmem:[#allocation20 + $0xc28] sm:$0xf0] }
 0x7b7   :  { %v13227_v19 = vld [vmem:[#allocation20 + $0xa6c] sm:$0xf0]  ;;  %7021 = vmatpush.bf16.msrb.mxu2 %v11508_v24  ;;  %6819 = vmatpush.bf16.msrb.mxu0 %v11728_v43  ;;  %v6656_v53 = vadd.f32 %v6655_v35, %v15324_v6  ;;  %v13342_v63 = vld [vmem:[#allocation20 + $0xe0c] sm:$0xf]  ;;  %v11696_v42 = vor.u32 %v13278_v25, %v11693_v62 }
 0x7b8   :  { %v15360_v26 = vadd.f32 %v15279_v45, %v6538_v29  ;;  %v11476_v31 = vor.u32 %v13227_v19, %v11475_v21  ;;  %v11949_v45 = vld [vmem:[#allocation20 + $0xe28] sm:$0xf0]  ;;  %v11187_v29 = vld [vmem:[#allocation20 + $0x810] sm:$0xf] }
 0x7b9   :  { %v11952_v24 = vor.u32 %v13342_v63, %v11949_v45  ;;  %v11188_v43 = vor.u32 %v13155_v33, %v11187_v29  ;;  %v11443_v48 = vld [vmem:[#allocation20 + $0xa10] sm:$0xf] }
 0x7ba   :  { %6848 = vmatpush.bf16.msrb.mxu3 %v11984_v55  ;;  %6993 = vmatpush.bf16.msra.mxu1 %v11220_v3  ;;  %v13219_v32 = vld [vmem:[#allocation20 + $0xa2c] sm:$0xf0] }
 0x7bb   :  { %v6510_v16 = vpop.f32.mrf.mxu3  ;;  %7022 = vmatpush.bf16.msrb.mxu2 %v11476_v31  ;;  %6820 = vmatpush.bf16.msrb.mxu0 %v11696_v42 }
 0x7bc   :  { %v6511_v0 = vadd.f32 %v6510_v16, %v6482_v51  ;;  %v6684_v18 = vpop.f32.mrf.mxu2  ;;  %v11444_v51 = vor.u32 %v13219_v32, %v11443_v48 }
 0x7bd   :  { %v15363_v12 = vadd.f32 %v6684_v18, %v6656_v53  ;;  %v6484_v57 = vpop.f32.mrf.mxu0 }
 0x7be   :  { %v6540_v35 = vadd.f32 %v15282_v50, %v6511_v0  ;;  %v6485_v61 = vadd.f32 %v6484_v57, %v15214_v39  ;;  %v6658_v55 = vpop.f32.mrf.mxu1  ;;  %6849 = vmatpush.bf16.msrb.mxu3 %v11952_v24  ;;  %6994 = vmatpush.bf16.msra.mxu1 %v11188_v43 }
 0x7bf   :  { %7023 = vmatpush.bf16.msrb.mxu2 %v11444_v51  ;;  %v6659_v39 = vadd.f32 %v6658_v55, %v15324_v6 }
 0x7c0   :  { %6715 = vmatmul.bf16.gmra.mxu0 %v14924_v34  ;;  %6744 = vmatmul.bf16.gmra.mxu3 %v14926_v52  ;;  %v15370_v3 = vadd.f32 %v15284_v30, %v6540_v35 }
 0x7c1   :  { %6889 = vmatmul.bf16.gmra.mxu1 %v14864_v27  ;;  %6918 = vmatmul.bf16.gmra.mxu2 %v14866_v44 }
 0x7c3   :  { %v6513_v50 = vpop.f32.mrf.mxu3 }
 0x7c4   :  { %v6514_v21 = vadd.f32 %v6513_v50, %v6485_v61  ;;  %v6687_v19 = vpop.f32.mrf.mxu2 }
 0x7c5   :  { %v15375_v31 = vadd.f32 %v6687_v19, %v6659_v39  ;;  %v6486_v53 = vpop.f32.mrf.mxu0 }
 0x7c6   :  { %v6543_v16 = vadd.f32 %v15287_v47, %v6514_v21  ;;  %v6487_v25 = vadd.f32 %v6486_v53, %v15222_v41  ;;  %v6660_v62 = vpop.f32.mrf.mxu1 }
 0x7c7   :  { %v6661_v63 = vadd.f32 %v6660_v62, %v15324_v6  ;;  %v11155_v62 = vld [vmem:[#allocation20 + $0x7d0] sm:$0xf] }
 0x7c8   :  { %v15380_v30 = vadd.f32 %v15297_v54, %v6543_v16 }
 0x7cb   :  { %v6515_v0 = vpop.f32.mrf.mxu3 }
 0x7cc   :  { %v6516_v18 = vadd.f32 %v6515_v0, %v6487_v25  ;;  %v6689_v42 = vpop.f32.mrf.mxu2  ;;  %v10389_v0 = vld [vmem:[#allocation20 + $0x1f0] sm:$0xf0] }
 0x7cd   :  { %v15383_v45 = vadd.f32 %v6689_v42, %v6661_v63  ;;  %v6489_v29 = vpop.f32.mrf.mxu0  ;;  %v12951_v63 = vld [vmem:[#allocation20 + $0x1d4] sm:$0xf] }
 0x7ce   :  { %v6545_v33 = vadd.f32 %v15300_v60, %v6516_v18  ;;  %v6490_v57 = vadd.f32 %v6489_v29, %v15234_v59  ;;  %v6663_v24 = vpop.f32.mrf.mxu1  ;;  %v13015_v42 = vld [vmem:[#allocation20 + $0x3d4] sm:$0xf] }
 0x7cf   :  { %v6664_v47 = vadd.f32 %v6663_v24, %v15324_v6  ;;  %v10645_v29 = vld [vmem:[#allocation20 + $0x3f0] sm:$0xf0]  ;;  %v10867_v24 = vld [vmem:[#allocation20 + $0x590] sm:$0xf] }
 0x7d0   :  { %6720 = vmatmul.bf16.gmra.mxu0 %v14938_v2  ;;  %6749 = vmatmul.bf16.gmra.mxu3 %v14940_v10  ;;  %v15390_v41 = vadd.f32 %v15302_v40, %v6545_v33  ;;  %v10648_v33 = vor.u32 %v13015_v42, %v10645_v29  ;;  %v12999_v42 = vld [vmem:[#allocation20 + $0x354] sm:$0xf] }
 0x7d1   :  { %6894 = vmatmul.bf16.gmra.mxu1 %v14874_v1  ;;  %6923 = vmatmul.bf16.gmra.mxu2 %v14876_v17  ;;  %v10581_v29 = vld [vmem:[#allocation20 + $0x370] sm:$0xf0] }
 0x7d2   :  { %7132 = vmatpush.bf16.msra.mxu2 %v10648_v33  ;;  %v15424_v33 = vld [vmem:[#allocation23] sm:$0xff] }
 0x7d3   :  { %v6518_v54 = vpop.f32.mrf.mxu3 }
 0x7d4   :  { %v6519_v43 = vadd.f32 %v6518_v54, %v6490_v57  ;;  %v6692_v48 = vpop.f32.mrf.mxu2  ;;  %v11123_v54 = vld [vmem:[#allocation20 + $0x790] sm:$0xf] }
 0x7d5   :  { %v15395_v60 = vadd.f32 %v6692_v48, %v6664_v47  ;;  %v6491_v59 = vpop.f32.mrf.mxu0  ;;  %v13075_v47 = vld [vmem:[#allocation20 + $0x5ac] sm:$0xf0] }
 0x7d6   :  { %v6548_v32 = vadd.f32 %v15305_v4, %v6519_v43  ;;  %v6492_v35 = vadd.f32 %v6491_v59, %v15242_v13  ;;  %v6665_v61 = vpop.f32.mrf.mxu1  ;;  %v10899_v4 = vld [vmem:[#allocation20 + $0x5d0] sm:$0xf]  ;;  %v10868_v48 = vor.u32 %v13075_v47, %v10867_v24  ;;  %v10584_v24 = vor.u32 %v12999_v42, %v10581_v29  ;;  %v16620_v29 = vld [vmem:[#allocation56_spill] sm:$0xff] }
 0x7d7   :  { %v6666_v55 = vadd.f32 %v6665_v61, %v15324_v6  ;;  %v13083_v13 = vld [vmem:[#allocation20 + $0x5ec] sm:$0xf0] }
 0x7d8   :  { %v15400_v40 = vadd.f32 %v15315_v14, %v6548_v32  ;;  %v10900_v14 = vor.u32 %v13083_v13, %v10899_v4  ;;  %v13147_v6 = vld [vmem:[#allocation20 + $0x7ec] sm:$0xf0]  ;;  %v12943_v32 = vld [vmem:[#allocation20 + $0x194] sm:$0xf] }
 0x7d9   :  { %v13139_v59 = vld [vmem:[#allocation20 + $0x7ac] sm:$0xf0] }
 0x7da   :  { %6929 = vmatpush.bf16.msra.mxu0 %v10900_v14  ;;  %v13067_v13 = vld [vmem:[#allocation20 + $0x56c] sm:$0xf0] }
 0x7db   :  { %v6520_v51 = vpop.f32.mrf.mxu3 }
 0x7dc   :  { %v6521_v39 = vadd.f32 %v6520_v51, %v6492_v35  ;;  %v6694_v50 = vpop.f32.mrf.mxu2  ;;  %v10357_v35 = vld [vmem:[#allocation20 + $0x1b0] sm:$0xf0] }
 0x7dd   :  { %v15403_v21 = vadd.f32 %v6694_v50, %v6666_v55  ;;  %v6590_v19 = vpop.f32.mrf.mxu0  ;;  %v11124_v55 = vor.u32 %v13139_v59, %v11123_v54  ;;  %v10360_v51 = vor.u32 %v12943_v32, %v10357_v35  ;;  %v10613_v50 = vld [vmem:[#allocation20 + $0x3b0] sm:$0xf0]  ;;  %v10803_v54 = vld [vmem:[#allocation20 + $0x510] sm:$0xf] }
 0x7de   :  { %v6550_v53 = vadd.f32 %v15318_v56, %v6521_v39  ;;  %v6591_v16 = vadd.f32 %v6590_v19, %v15340_v8  ;;  %v15407_v25 = vpop.f32.mrf.mxu1  ;;  %v11156_v56 = vor.u32 %v13147_v6, %v11155_v62  ;;  %v10392_v8 = vor.u32 %v12951_v63, %v10389_v0  ;;  %v13007_v39 = vld [vmem:[#allocation20 + $0x394] sm:$0xf]  ;;  %6930 = vmatpush.bf16.msra.mxu0 %v10868_v48  ;;  %v11091_v62 = vld [vmem:[#allocation20 + $0x750] sm:$0xf] }
 0x7df   :  { %v10616_v4 = vor.u32 %v13007_v39, %v10613_v50  ;;  %v13131_v6 = vld [vmem:[#allocation20 + $0x76c] sm:$0xf0]  ;;  %v12935_v63 = vld [vmem:[#allocation20 + $0x154] sm:$0xf] }
 0x7e0   :  { %6821 = vmatmul.bf16.vlgmr.msrb.gmra.mxu0 %v14834_v49  ;;  %6850 = vmatmul.bf16.vlgmr.msrb.gmra.mxu3 %v14836_v20  ;;  %v15412_v18 = vadd.f32 %v15320_v5, %v6550_v53  ;;  %v10325_v0 = vld [vmem:[#allocation20 + $0x170] sm:$0xf0]  ;;  %v13059_v48 = vld [vmem:[#allocation20 + $0x52c] sm:$0xf0] }
 0x7e1   :  { %6995 = vmatmul.bf16.vlgmr.msra.gmra.mxu1 %v16580_v58  ;;  %7024 = vmatmul.bf16.vlgmr.msrb.gmra.mxu2 %v16581_v37  ;;  %v11059_v59 = vld [vmem:[#allocation20 + $0x710] sm:$0xf] }
 0x7e2   :  { %6958 = vmatpush.bf16.msra.mxu3 %v11156_v56  ;;  %7103 = vmatpush.bf16.msrb.mxu1 %v10392_v8  ;;  %v11092_v56 = vor.u32 %v13131_v6, %v11091_v62  ;;  %v10328_v8 = vor.u32 %v12935_v63, %v10325_v0  ;;  %v13051_v0 = vld [vmem:[#allocation20 + $0x4ec] sm:$0xf0] }
 0x7e3   :  { %v6619_v57 = vpop.f32.mrf.mxu3  ;;  %7133 = vmatpush.bf16.msra.mxu2 %v10616_v4 }
 0x7e4   :  { %v15416_v43 = vadd.f32 %v6619_v57, %v6591_v16  ;;  %v15418_v5 = vpop.f32.mrf.mxu2  ;;  %v10835_v16 = vld [vmem:[#allocation20 + $0x550] sm:$0xf]  ;;  %v15427_v57 = vperm.slane %v15424_v33, 2 }
 0x7e5   :  { %v6592_v61 = vpop.f32.mrf.mxu0  ;;  %v10836_v14 = vor.u32 %v13067_v13, %v10835_v16  ;;  %v12991_v16 = vld [vmem:[#allocation20 + $0x314] sm:$0xf] }
 0x7e6   :  { %v6593_v19 = vadd.f32 %v6592_v61, %v15350_v7  ;;  %v15421_v53 = vpop.f32.mrf.mxu1  ;;  %6959 = vmatpush.bf16.msra.mxu3 %v11124_v55  ;;  %7104 = vmatpush.bf16.msrb.mxu1 %v10360_v51  ;;  %v7801_v7 = vmax.f32 %v15416_v43, 0.0  ;;  %v10804_v61 = vor.u32 %v13059_v48, %v10803_v54  ;;  %v13123_v55 = vld [vmem:[#allocation20 + $0x72c] sm:$0xf0]  ;;  %v12927_v43 = vld [vmem:[#allocation20 + $0x114] sm:$0xf]  ;;  %v16621_v48 = vld [vmem:[#allocation41_spill] sm:$0xff] }
 0x7e7   :  { %6931 = vmatpush.bf16.msra.mxu0 %v10836_v14  ;;  %7134 = vmatpush.bf16.msra.mxu2 %v10584_v24  ;;  %v10293_v51 = vld [vmem:[#allocation20 + $0x130] sm:$0xf0]  ;;  %v11060_v50 = vor.u32 %v13123_v55, %v11059_v59  ;;  %v16622_v59 = vld [vmem:[#allocation42_spill] sm:$0xff] }
 0x7e8   :  { %v10296_v4 = vor.u32 %v12927_v43, %v10293_v51  ;;  %v10549_v13 = vld [vmem:[#allocation20 + $0x330] sm:$0xf0] }
 0x7e9   :  { %v10552_v63 = vor.u32 %v12991_v16, %v10549_v13  ;;  %v10261_v54 = vld [vmem:[#allocation20 + $0xf0] sm:$0xf0]  ;;  %v10995_v16 = vld [vmem:[#allocation20 + $0x690] sm:$0xf] }
 0x7ea   :  { %6960 = vmatpush.bf16.msra.mxu3 %v11092_v56  ;;  %7105 = vmatpush.bf16.msrb.mxu1 %v10328_v8  ;;  %v11027_v56 = vld [vmem:[#allocation20 + $0x6d0] sm:$0xf]  ;;  %v7883_v8 = vadd.f32 %v15427_v57, %v7801_v7  ;;  %v12983_v55 = vld [vmem:[#allocation20 + $0x2d4] sm:$0xf] }
 0x7eb   :  { %v6621_v47 = vpop.f32.mrf.mxu3  ;;  %6932 = vmatpush.bf16.msra.mxu0 %v10804_v61  ;;  %v10517_v43 = vld [vmem:[#allocation20 + $0x2f0] sm:$0xf0]  ;;  %7135 = vmatpush.bf16.msra.mxu2 %v10552_v63 }
 0x7ec   :  { %v6622_v32 = vadd.f32 %v6621_v47, %v6593_v19  ;;  %v15429_v35 = vpop.f32.mrf.mxu2  ;;  %v10771_v19 = vld [vmem:[#allocation20 + $0x4d0] sm:$0xf]  ;;  %v10520_v7 = vor.u32 %v12983_v55, %v10517_v43  ;;  %v10485_v63 = vld [vmem:[#allocation20 + $0x2b0] sm:$0xf0] }
 0x7ed   :  { %v6595_v39 = vpop.f32.mrf.mxu0  ;;  %v10772_v24 = vor.u32 %v13051_v0, %v10771_v19  ;;  %v13115_v47 = vld [vmem:[#allocation20 + $0x6ec] sm:$0xf0] }
 0x7ee   :  { %v7809_v62 = vmax.f32 %v6622_v32, 0.0  ;;  %v6596_v14 = vadd.f32 %v6595_v39, %v15360_v26  ;;  %v15432_v6 = vpop.f32.mrf.mxu1  ;;  %6961 = vmatpush.bf16.msra.mxu3 %v11060_v50  ;;  %7106 = vmatpush.bf16.msrb.mxu1 %v10296_v4  ;;  %v12919_v26 = vld [vmem:[#allocation20 + $0xd4] sm:$0xf]  ;;  %v11028_v32 = vor.u32 %v13115_v47, %v11027_v56  ;;  %v10739_v50 = vld [vmem:[#allocation20 + $0x490] sm:$0xf] }
 0x7ef   :  { %v10264_v61 = vor.u32 %v12919_v26, %v10261_v54  ;;  %6933 = vmatpush.bf16.msra.mxu0 %v10772_v24  ;;  %v13043_v4 = vld [vmem:[#allocation20 + $0x4ac] sm:$0xf0]  ;;  %v12911_v56 = vld [vmem:[#allocation20 + $0x94] sm:$0xf]  ;;  %7136 = vmatpush.bf16.msra.mxu2 %v10520_v7 }
 0x7f0   :  { %v7891_v42 = vadd.f32 %v15427_v57, %v7809_v62  ;;  %6826 = vmatmul.bf16.gmra.mxu0 %v16599_v36  ;;  %6855 = vmatmul.bf16.gmra.mxu3 %v16620_v29  ;;  %v10740_v19 = vor.u32 %v13043_v4, %v10739_v50  ;;  %v13107_v0 = vld [vmem:[#allocation20 + $0x6ac] sm:$0xf0]  ;;  %v10229_v47 = vld [vmem:[#allocation20 + $0xb0] sm:$0xf0] }
 0x7f1   :  { %7000 = vmatmul.bf16.gmra.mxu1 %v16621_v48  ;;  %7029 = vmatmul.bf16.gmra.mxu2 %v16622_v59  ;;  %v10996_v54 = vor.u32 %v13107_v0, %v10995_v16  ;;  %v10963_v43 = vld [vmem:[#allocation20 + $0x650] sm:$0xf]  ;;  %v12903_v4 = vld [vmem:[#allocation20 + $0x54] sm:$0xf] }
 0x7f2   :  { %v15440_v51 = vpack.c.bf16 %v7891_v42, %v7883_v8  ;;  %6962 = vmatpush.bf16.msra.mxu3 %v11028_v32  ;;  %7107 = vmatpush.bf16.msrb.mxu1 %v10264_v61  ;;  %v10232_v8 = vor.u32 %v12911_v56, %v10229_v47  ;;  %v12975_v42 = vld [vmem:[#allocation20 + $0x294] sm:$0xf]  ;;  %v13035_v61 = vld [vmem:[#allocation20 + $0x46c] sm:$0xf0] }
 0x7f3   :  { %v6624_v39 = vpop.f32.mrf.mxu3  ;;  %6934 = vmatpush.bf16.msra.mxu0 %v10740_v19  ;;  %v10488_v32 = vor.u32 %v12975_v42, %v10485_v63  ;;  %v13099_v50 = vld [vmem:[#allocation20 + $0x66c] sm:$0xf0]  ;;  %v12967_v56 = vld [vmem:[#allocation20 + $0x254] sm:$0xf] }
 0x7f4   :  { %16623 = vst [vmem:[#allocation63_spill] sm:$0xff] %v15440_v51  ;;  %v6625_v13 = vadd.f32 %v6624_v39, %v6596_v14  ;;  %v15442_v62 = vpop.f32.mrf.mxu2  ;;  %v10707_v14 = vld [vmem:[#allocation20 + $0x450] sm:$0xf]  ;;  %v10197_v51 = vld [vmem:[#allocation20 + $0x70] sm:$0xf0]  ;;  %v10964_v16 = vor.u32 %v13099_v50, %v10963_v43 }
 0x7f5   :  { %v6597_v26 = vpop.f32.mrf.mxu0  ;;  %v10708_v39 = vor.u32 %v13035_v61, %v10707_v14  ;;  %v10200_v0 = vor.u32 %v12903_v4, %v10197_v51  ;;  %v10453_v47 = vld [vmem:[#allocation20 + $0x270] sm:$0xf0]  ;;  %7137 = vmatpush.bf16.msra.mxu2 %v10488_v32  ;;  %v10675_v19 = vld [vmem:[#allocation20 + $0x410] sm:$0xf] }
 0x7f6   :  { %v6598_v24 = vadd.f32 %v6597_v26, %v15370_v3  ;;  %v15445_v55 = vpop.f32.mrf.mxu1  ;;  %6963 = vmatpush.bf16.msra.mxu3 %v10996_v54  ;;  %7108 = vmatpush.bf16.msrb.mxu1 %v10232_v8  ;;  %v7817_v46 = vmax.f32 %v6625_v13, 0.0  ;;  %v10456_v3 = vor.u32 %v12967_v56, %v10453_v47  ;;  %v13027_v26 = vld [vmem:[#allocation20 + $0x42c] sm:$0xf0]  ;;  %v12895_v61 = vld [vmem:[#allocation20 + $0x14] sm:$0xf] }
 0x7f7   :  { %6935 = vmatpush.bf16.msra.mxu0 %v10708_v39  ;;  %v10931_v54 = vld [vmem:[#allocation20 + $0x610] sm:$0xf]  ;;  %v10676_v63 = vor.u32 %v13027_v26, %v10675_v19  ;;  %v10165_v43 = vld [vmem:[#allocation20 + $0x30] sm:$0xf0] }
 0x7f8   :  { %v13091_v14 = vld [vmem:[#allocation20 + $0x62c] sm:$0xf0]  ;;  %v10168_v4 = vor.u32 %v12895_v61, %v10165_v43  ;;  %v12959_v13 = vld [vmem:[#allocation20 + $0x214] sm:$0xf] }
 0x7f9   :  { %v10932_v50 = vor.u32 %v13091_v14, %v10931_v54  ;;  %v10421_v32 = vld [vmem:[#allocation20 + $0x230] sm:$0xf0]  ;;  %7138 = vmatpush.bf16.msra.mxu2 %v10456_v3  ;;  %v16625_v19 = vld [vmem:[#allocation54_spill] sm:$0xff]  ;;  %v16627_v54 = vld [vmem:[#allocation44_spill] sm:$0xff] }
 0x7fa   :  { %6964 = vmatpush.bf16.msra.mxu3 %v10964_v16  ;;  %7109 = vmatpush.bf16.msrb.mxu1 %v10200_v0  ;;  %v10424_v0 = vor.u32 %v12959_v13, %v10421_v32  ;;  %v16626_v26 = vld [vmem:[#allocation43_spill] sm:$0xff] }
 0x7fb   :  { %v6626_v7 = vpop.f32.mrf.mxu3  ;;  %6936 = vmatpush.bf16.msra.mxu0 %v10676_v63  ;;  %v13271_v48 = vld [vmem:[#allocation20 + $0xbd4] sm:$0xf] }
 0x7fc   :  { %v6627_v8 = vadd.f32 %v6626_v7, %v6598_v24  ;;  %v15447_v42 = vpop.f32.mrf.mxu2  ;;  %v7899_v24 = vadd.f32 %v15427_v57, %v7817_v46  ;;  %v16624_v7 = vld [vmem:[#allocation53_spill] sm:$0xff]  ;;  %v11669_v29 = vld [vmem:[#allocation20 + $0xbf0] sm:$0xf0] }
 0x7fd   :  { %v6600_v51 = vpop.f32.mrf.mxu0  ;;  %7139 = vmatpush.bf16.msra.mxu2 %v10424_v0 }
 0x7fe   :  { %v7825_v39 = vmax.f32 %v6627_v8, 0.0  ;;  %v6601_v56 = vadd.f32 %v6600_v51, %v15380_v30  ;;  %v15450_v16 = vpop.f32.mrf.mxu1  ;;  %6965 = vmatpush.bf16.msra.mxu3 %v10932_v50  ;;  %7110 = vmatpush.bf16.msrb.mxu1 %v10168_v4 }
 0x800   :  { %v7907_v47 = vadd.f32 %v15427_v57, %v7825_v39  ;;  %6831 = vmatmul.bf16.gmra.mxu0 %v16624_v7  ;;  %6860 = vmatmul.bf16.gmra.mxu3 %v16625_v19  ;;  %v16637_v19 = vld [vmem:[#allocation47_spill] sm:$0xff] }
 0x801   :  { %7005 = vmatmul.bf16.gmra.mxu1 %v16626_v26  ;;  %7034 = vmatmul.bf16.gmra.mxu2 %v16627_v54  ;;  %v13403_v26 = vld [vmem:[#allocation20 + $0xfec] sm:$0xf0] }
 0x802   :  { %v15458_v30 = vpack.c.bf16 %v7907_v47, %v7899_v24  ;;  %v16629_v47 = vld [vmem:[#allocation51_spill] sm:$0xff] }
 0x803   :  { %v6629_v3 = vpop.f32.mrf.mxu3 }
 0x804   :  { %16628 = vst [vmem:[#allocation64_spill] sm:$0xff] %v15458_v30  ;;  %v6630_v8 = vadd.f32 %v6629_v3, %v6601_v56  ;;  %v15460_v63 = vpop.f32.mrf.mxu2  ;;  %v16631_v3 = vld [vmem:[#allocation45_spill] sm:$0xff] }
 0x805   :  { %v6602_v14 = vpop.f32.mrf.mxu0 }
 0x806   :  { %v6603_v46 = vadd.f32 %v6602_v14, %v15390_v41  ;;  %v15463_v61 = vpop.f32.mrf.mxu1  ;;  %v7833_v51 = vmax.f32 %v6630_v8, 0.0  ;;  %v16630_v41 = vld [vmem:[#allocation52_spill] sm:$0xff]  ;;  %v16632_v8 = vld [vmem:[#allocation46_spill] sm:$0xff] }
 0x808   :  { %v7915_v56 = vadd.f32 %v15427_v57, %v7833_v51 }
 0x80b   :  { %v6631_v43 = vpop.f32.mrf.mxu3 }
 0x80c   :  { %v6632_v50 = vadd.f32 %v6631_v43, %v6603_v46  ;;  %v15465_v4 = vpop.f32.mrf.mxu2 }
 0x80d   :  { %v6605_v13 = vpop.f32.mrf.mxu0 }
 0x80e   :  { %v7841_v32 = vmax.f32 %v6632_v50, 0.0  ;;  %v6606_v39 = vadd.f32 %v6605_v13, %v15400_v40  ;;  %v15468_v0 = vpop.f32.mrf.mxu1 }
 0x810   :  { %v7923_v24 = vadd.f32 %v15427_v57, %v7841_v32  ;;  %6836 = vmatmul.bf16.gmra.mxu0 %v16629_v47  ;;  %6865 = vmatmul.bf16.gmra.mxu3 %v16630_v41 }
 0x811   :  { %7010 = vmatmul.bf16.gmra.mxu1 %v16631_v3  ;;  %7039 = vmatmul.bf16.gmra.mxu2 %v16632_v8 }
 0x812   :  { %v15476_v14 = vpack.c.bf16 %v7923_v24, %v7915_v56  ;;  %v15486_v56 = vld [vmem:[#allocation22] sm:$0xff] }
 0x813   :  { %v6634_v46 = vpop.f32.mrf.mxu3  ;;  %16634 = vst [vmem:[#allocation66_spill] sm:$0xff] %v15486_v56 }
 0x814   :  { %16633 = vst [vmem:[#allocation65_spill] sm:$0xff] %v15476_v14  ;;  %v6635_v43 = vadd.f32 %v6634_v46, %v6606_v39  ;;  %v15478_v50 = vpop.f32.mrf.mxu2  ;;  %v15489_v39 = vperm.slane %v15486_v56, 4  ;;  %v11923_v46 = vld [vmem:[#allocation20 + $0xdd0] sm:$0xf]  ;;  %v16638_v56 = vld [vmem:[#allocation57_spill] sm:$0xff] }
 0x815   :  { %v6607_v40 = vpop.f32.mrf.mxu0  ;;  %v13339_v14 = vld [vmem:[#allocation20 + $0xdec] sm:$0xf0] }
 0x816   :  { %v6608_v13 = vadd.f32 %v6607_v40, %v15412_v18  ;;  %v15481_v51 = vpop.f32.mrf.mxu1  ;;  %v7849_v30 = vmax.f32 %v6635_v43, 0.0  ;;  %v12179_v18 = vld [vmem:[#allocation20 + $0xfd0] sm:$0xf] }
 0x817   :  { %v12180_v7 = vor.u32 %v13403_v26, %v12179_v18  ;;  %v13395_v26 = vld [vmem:[#allocation20 + $0xfac] sm:$0xf0]  ;;  %v13199_v18 = vld [vmem:[#allocation20 + $0x994] sm:$0xf] }
 0x818   :  { %v7931_v40 = vadd.f32 %v15427_v57, %v7849_v30  ;;  %v11672_v30 = vor.u32 %v13271_v48, %v11669_v29 }
 0x819   :  { %7074 = vmatpush.bf16.msrb.mxu3 %v12180_v7 }
 0x81a   :  { %7248 = vmatpush.bf16.msrb.mxu2 %v11672_v30  ;;  %v11859_v30 = vld [vmem:[#allocation20 + $0xd50] sm:$0xf] }
 0x81b   :  { %v6636_v32 = vpop.f32.mrf.mxu3 }
 0x81c   :  { %v6637_v47 = vadd.f32 %v6636_v32, %v6608_v13  ;;  %v15483_v54 = vpop.f32.mrf.mxu2  ;;  %v16635_v13 = vld [vmem:[#allocation48_spill] sm:$0xff]  ;;  %v16636_v32 = vld [vmem:[#allocation49_spill] sm:$0xff] }
 0x81d   :  { %v6706_v41 = vpop.f32.mrf.mxu0 }
 0x81e   :  { %v7857_v3 = vmax.f32 %v6637_v47, 0.0  ;;  %v6707_v8 = vadd.f32 %v6706_v41, %v15335_v28  ;;  %v6880_v24 = vpop.f32.mrf.mxu1  ;;  %v11924_v47 = vor.u32 %v13339_v14, %v11923_v46  ;;  %v13207_v28 = vld [vmem:[#allocation20 + $0x9d4] sm:$0xf]  ;;  %v11891_v14 = vld [vmem:[#allocation20 + $0xd90] sm:$0xf] }
 0x81f   :  { %v11413_v41 = vld [vmem:[#allocation20 + $0x9f0] sm:$0xf0]  ;;  %v13331_v46 = vld [vmem:[#allocation20 + $0xdac] sm:$0xf0] }
 0x820   :  { %v7939_v43 = vadd.f32 %v15427_v57, %v7857_v3  ;;  %6937 = vmatmul.bf16.vlgmr.msra.gmra.mxu0 %v16635_v13  ;;  %6966 = vmatmul.bf16.vlgmr.msra.gmra.mxu3 %v16636_v32  ;;  %v11416_v59 = vor.u32 %v13207_v28, %v11413_v41  ;;  %v6881_v57 = vadd.f32 %v6880_v24, %v15489_v39  ;;  %v12147_v32 = vld [vmem:[#allocation20 + $0xf90] sm:$0xf]  ;;  %v11381_v28 = vld [vmem:[#allocation20 + $0x9b0] sm:$0xf0] }
 0x821   :  { %7111 = vmatmul.bf16.vlgmr.msrb.gmra.mxu1 %v16637_v19  ;;  %7140 = vmatmul.bf16.vlgmr.msra.gmra.mxu2 %v16638_v56  ;;  %v11892_v56 = vor.u32 %v13331_v46, %v11891_v14  ;;  %v12148_v48 = vor.u32 %v13395_v26, %v12147_v32  ;;  %v11637_v24 = vld [vmem:[#allocation20 + $0xbb0] sm:$0xf0]  ;;  %v12115_v14 = vld [vmem:[#allocation20 + $0xf50] sm:$0xf] }
 0x822   :  { %7045 = vmatpush.bf16.msrb.mxu0 %v11924_v47  ;;  %v15497_v36 = vpack.c.bf16 %v7939_v43, %v7931_v40  ;;  %7219 = vmatpush.bf16.msra.mxu1 %v11416_v59  ;;  %v11384_v40 = vor.u32 %v13199_v18, %v11381_v28  ;;  %v13263_v43 = vld [vmem:[#allocation20 + $0xb94] sm:$0xf] }
 0x823   :  { %v6735_v3 = vpop.f32.mrf.mxu3  ;;  %7075 = vmatpush.bf16.msrb.mxu3 %v12148_v48  ;;  %v13191_v46 = vld [vmem:[#allocation20 + $0x954] sm:$0xf]  ;;  %v11827_v48 = vld [vmem:[#allocation20 + $0xd10] sm:$0xf] }
 0x824   :  { %16639 = vst [vmem:[#allocation67_spill] sm:$0xff] %v15497_v36  ;;  %v6736_v13 = vadd.f32 %v6735_v3, %v6707_v8  ;;  %v6909_v19 = vpop.f32.mrf.mxu2  ;;  %v11640_v8 = vor.u32 %v13263_v43, %v11637_v24  ;;  %v13323_v3 = vld [vmem:[#allocation20 + $0xd6c] sm:$0xf0]  ;;  %v11349_v32 = vld [vmem:[#allocation20 + $0x970] sm:$0xf0] }
 0x825   :  { %v15500_v41 = vadd.f32 %v6909_v19, %v6881_v57  ;;  %v6708_v29 = vpop.f32.mrf.mxu0  ;;  %v11860_v19 = vor.u32 %v13323_v3, %v11859_v30  ;;  %v13387_v57 = vld [vmem:[#allocation20 + $0xf6c] sm:$0xf0]  ;;  %v11317_v3 = vld [vmem:[#allocation20 + $0x930] sm:$0xf0] }
 0x826   :  { %v6765_v7 = vadd.f32 %v15407_v25, %v6736_v13  ;;  %v6709_v59 = vadd.f32 %v6708_v29, %v15343_v22  ;;  %v6882_v47 = vpop.f32.mrf.mxu1  ;;  %7046 = vmatpush.bf16.msrb.mxu0 %v11892_v56  ;;  %7220 = vmatpush.bf16.msra.mxu1 %v11384_v40  ;;  %v12116_v18 = vor.u32 %v13387_v57, %v12115_v14  ;;  %v13255_v13 = vld [vmem:[#allocation20 + $0xb54] sm:$0xf]  ;;  %v13315_v40 = vld [vmem:[#allocation20 + $0xd2c] sm:$0xf0] }
 0x827   :  { %7249 = vmatpush.bf16.msrb.mxu2 %v11640_v8  ;;  %v11352_v25 = vor.u32 %v13191_v46, %v11349_v32  ;;  %v11605_v22 = vld [vmem:[#allocation20 + $0xb70] sm:$0xf0]  ;;  %v6883_v28 = vadd.f32 %v6882_v47, %v15489_v39  ;;  %v12083_v43 = vld [vmem:[#allocation20 + $0xf10] sm:$0xf]  ;;  %v11828_v30 = vor.u32 %v13315_v40, %v11827_v48 }
 0x828   :  { %v15505_v26 = vadd.f32 %v15418_v5, %v6765_v7  ;;  %v11608_v56 = vor.u32 %v13255_v13, %v11605_v22  ;;  %7076 = vmatpush.bf16.msrb.mxu3 %v12116_v18  ;;  %v13379_v5 = vld [vmem:[#allocation20 + $0xf2c] sm:$0xf0]  ;;  %v13183_v7 = vld [vmem:[#allocation20 + $0x914] sm:$0xf] }
 0x829   :  { %v11320_v46 = vor.u32 %v13183_v7, %v11317_v3  ;;  %v13247_v32 = vld [vmem:[#allocation20 + $0xb14] sm:$0xf]  ;;  %v11795_v22 = vld [vmem:[#allocation20 + $0xcd0] sm:$0xf] }
 0x82a   :  { %7047 = vmatpush.bf16.msrb.mxu0 %v11860_v19  ;;  %7221 = vmatpush.bf16.msra.mxu1 %v11352_v25  ;;  %v12084_v19 = vor.u32 %v13379_v5, %v12083_v43  ;;  %v11573_v47 = vld [vmem:[#allocation20 + $0xb30] sm:$0xf0]  ;;  %v13371_v48 = vld [vmem:[#allocation20 + $0xeec] sm:$0xf0] }
 0x82b   :  { %v6737_v29 = vpop.f32.mrf.mxu3  ;;  %7250 = vmatpush.bf16.msrb.mxu2 %v11608_v56  ;;  %v13307_v56 = vld [vmem:[#allocation20 + $0xcec] sm:$0xf0]  ;;  %v13175_v40 = vld [vmem:[#allocation20 + $0x8d4] sm:$0xf] }
 0x82c   :  { %v6738_v24 = vadd.f32 %v6737_v29, %v6709_v59  ;;  %v6911_v8 = vpop.f32.mrf.mxu2  ;;  %v11576_v59 = vor.u32 %v13247_v32, %v11573_v47  ;;  %7077 = vmatpush.bf16.msrb.mxu3 %v12084_v19  ;;  %v12051_v29 = vld [vmem:[#allocation20 + $0xed0] sm:$0xf]  ;;  %v11285_v43 = vld [vmem:[#allocation20 + $0x8f0] sm:$0xf0] }
 0x82d   :  { %v15508_v14 = vadd.f32 %v6911_v8, %v6883_v28  ;;  %v6711_v57 = vpop.f32.mrf.mxu0  ;;  %v11796_v28 = vor.u32 %v13307_v56, %v11795_v22  ;;  %v13239_v8 = vld [vmem:[#allocation20 + $0xad4] sm:$0xf]  ;;  %v13299_v19 = vld [vmem:[#allocation20 + $0xcac] sm:$0xf0] }
 0x82e   :  { %v6767_v18 = vadd.f32 %v15421_v53, %v6738_v24  ;;  %v6712_v25 = vadd.f32 %v6711_v57, %v15355_v9  ;;  %v6885_v13 = vpop.f32.mrf.mxu1  ;;  %7048 = vmatpush.bf16.msrb.mxu0 %v11828_v30  ;;  %7222 = vmatpush.bf16.msra.mxu1 %v11320_v46  ;;  %v12052_v9 = vor.u32 %v13371_v48, %v12051_v29  ;;  %v11541_v30 = vld [vmem:[#allocation20 + $0xaf0] sm:$0xf0]  ;;  %v11763_v57 = vld [vmem:[#allocation20 + $0xc90] sm:$0xf] }
 0x82f   :  { %v11288_v24 = vor.u32 %v13175_v40, %v11285_v43  ;;  %7251 = vmatpush.bf16.msrb.mxu2 %v11576_v59  ;;  %v11544_v5 = vor.u32 %v13239_v8, %v11541_v30  ;;  %v6886_v7 = vadd.f32 %v6885_v13, %v15489_v39  ;;  %v11764_v47 = vor.u32 %v13299_v19, %v11763_v57  ;;  %v13167_v22 = vld [vmem:[#allocation20 + $0x894] sm:$0xf]  ;;  %v11731_v8 = vld [vmem:[#allocation20 + $0xc50] sm:$0xf] }
 0x830   :  { %6942 = vmatmul.bf16.gmra.mxu0 %v14909_v11  ;;  %6971 = vmatmul.bf16.gmra.mxu3 %v14911_v15  ;;  %v15515_v53 = vadd.f32 %v15429_v35, %v6767_v18  ;;  %v12019_v35 = vld [vmem:[#allocation20 + $0xe90] sm:$0xf]  ;;  %v11253_v56 = vld [vmem:[#allocation20 + $0x8b0] sm:$0xf0] }
 0x831   :  { %7116 = vmatmul.bf16.gmra.mxu1 %v14854_v38  ;;  %7145 = vmatmul.bf16.gmra.mxu2 %v14856_v23  ;;  %v13363_v18 = vld [vmem:[#allocation20 + $0xeac] sm:$0xf0]  ;;  %v13231_v40 = vld [vmem:[#allocation20 + $0xa94] sm:$0xf] }
 0x832   :  { %7049 = vmatpush.bf16.msrb.mxu0 %v11796_v28  ;;  %7078 = vmatpush.bf16.msrb.mxu3 %v12052_v9  ;;  %v12020_v59 = vor.u32 %v13363_v18, %v12019_v35  ;;  %v11256_v28 = vor.u32 %v13167_v22, %v11253_v56  ;;  %v11509_v43 = vld [vmem:[#allocation20 + $0xab0] sm:$0xf0]  ;;  %v13291_v30 = vld [vmem:[#allocation20 + $0xc6c] sm:$0xf0] }
 0x833   :  { %v6740_v3 = vpop.f32.mrf.mxu3  ;;  %7223 = vmatpush.bf16.msra.mxu1 %v11288_v24  ;;  %7252 = vmatpush.bf16.msrb.mxu2 %v11544_v5  ;;  %v13355_v57 = vld [vmem:[#allocation20 + $0xe6c] sm:$0xf0]  ;;  %v13159_v19 = vld [vmem:[#allocation20 + $0x854] sm:$0xf] }
 0x834   :  { %v6741_v46 = vadd.f32 %v6740_v3, %v6712_v25  ;;  %v6914_v32 = vpop.f32.mrf.mxu2  ;;  %v11512_v25 = vor.u32 %v13231_v40, %v11509_v43  ;;  %v11987_v3 = vld [vmem:[#allocation20 + $0xe50] sm:$0xf]  ;;  %v11221_v35 = vld [vmem:[#allocation20 + $0x870] sm:$0xf0] }
 0x835   :  { %v15520_v29 = vadd.f32 %v6914_v32, %v6886_v7  ;;  %v6713_v48 = vpop.f32.mrf.mxu0  ;;  %v11732_v7 = vor.u32 %v13291_v30, %v11731_v8  ;;  %v11988_v18 = vor.u32 %v13355_v57, %v11987_v3  ;;  %v11699_v56 = vld [vmem:[#allocation20 + $0xc10] sm:$0xf]  ;;  %v11189_v8 = vld [vmem:[#allocation20 + $0x830] sm:$0xf0] }
 0x836   :  { %v6770_v13 = vadd.f32 %v15432_v6, %v6741_v46  ;;  %v6714_v9 = vadd.f32 %v6713_v48, %v15363_v12  ;;  %v6887_v24 = vpop.f32.mrf.mxu1  ;;  %7050 = vmatpush.bf16.msrb.mxu0 %v11764_v47  ;;  %7079 = vmatpush.bf16.msrb.mxu3 %v12020_v59  ;;  %v11224_v6 = vor.u32 %v13159_v19, %v11221_v35  ;;  %v13223_v46 = vld [vmem:[#allocation20 + $0xa54] sm:$0xf]  ;;  %v13283_v48 = vld [vmem:[#allocation20 + $0xc2c] sm:$0xf0] }
 0x837   :  { %7224 = vmatpush.bf16.msra.mxu1 %v11256_v28  ;;  %v11477_v12 = vld [vmem:[#allocation20 + $0xa70] sm:$0xf0]  ;;  %7253 = vmatpush.bf16.msrb.mxu2 %v11512_v25  ;;  %v6888_v47 = vadd.f32 %v6887_v24, %v15489_v39  ;;  %v11955_v59 = vld [vmem:[#allocation20 + $0xe10] sm:$0xf]  ;;  %v11700_v43 = vor.u32 %v13283_v48, %v11699_v56 }
 0x838   :  { %v15525_v32 = vadd.f32 %v15442_v62, %v6770_v13  ;;  %v11480_v5 = vor.u32 %v13223_v46, %v11477_v12  ;;  %v13347_v62 = vld [vmem:[#allocation20 + $0xe2c] sm:$0xf0]  ;;  %v13151_v13 = vld [vmem:[#allocation20 + $0x814] sm:$0xf] }
 0x839   :  { %v11956_v25 = vor.u32 %v13347_v62, %v11955_v59  ;;  %v13215_v57 = vld [vmem:[#allocation20 + $0xa14] sm:$0xf] }
 0x83a   :  { %7051 = vmatpush.bf16.msrb.mxu0 %v11732_v7  ;;  %7080 = vmatpush.bf16.msrb.mxu3 %v11988_v18  ;;  %v11192_v7 = vor.u32 %v13151_v13, %v11189_v8  ;;  %v11445_v19 = vld [vmem:[#allocation20 + $0xa30] sm:$0xf0] }
 0x83b   :  { %v6742_v22 = vpop.f32.mrf.mxu3  ;;  %7225 = vmatpush.bf16.msra.mxu1 %v11224_v6  ;;  %7254 = vmatpush.bf16.msrb.mxu2 %v11480_v5 }
 0x83c   :  { %v6743_v28 = vadd.f32 %v6742_v22, %v6714_v9  ;;  %v6916_v40 = vpop.f32.mrf.mxu2  ;;  %v11448_v9 = vor.u32 %v13215_v57, %v11445_v19 }
 0x83d   :  { %v15528_v30 = vadd.f32 %v6916_v40, %v6888_v47  ;;  %v6716_v3 = vpop.f32.mrf.mxu0 }
 0x83e   :  { %v6772_v24 = vadd.f32 %v15445_v55, %v6743_v28  ;;  %v6717_v35 = vadd.f32 %v6716_v3, %v15375_v31  ;;  %v6890_v18 = vpop.f32.mrf.mxu1  ;;  %7052 = vmatpush.bf16.msrb.mxu0 %v11700_v43  ;;  %7081 = vmatpush.bf16.msrb.mxu3 %v11956_v25 }
 0x83f   :  { %7226 = vmatpush.bf16.msra.mxu1 %v11192_v7  ;;  %7255 = vmatpush.bf16.msrb.mxu2 %v11448_v9  ;;  %v6891_v31 = vadd.f32 %v6890_v18, %v15489_v39 }
 0x840   :  { %6947 = vmatmul.bf16.gmra.mxu0 %v14924_v34  ;;  %6976 = vmatmul.bf16.gmra.mxu3 %v14926_v52  ;;  %v15535_v6 = vadd.f32 %v15447_v42, %v6772_v24 }
 0x841   :  { %7121 = vmatmul.bf16.gmra.mxu1 %v14864_v27  ;;  %7150 = vmatmul.bf16.gmra.mxu2 %v14866_v44 }
 0x843   :  { %v6745_v55 = vpop.f32.mrf.mxu3 }
 0x844   :  { %v6746_v46 = vadd.f32 %v6745_v55, %v6717_v35  ;;  %v6919_v12 = vpop.f32.mrf.mxu2 }
 0x845   :  { %v15540_v5 = vadd.f32 %v6919_v12, %v6891_v31  ;;  %v6718_v47 = vpop.f32.mrf.mxu0 }
 0x846   :  { %v6775_v22 = vadd.f32 %v15450_v16, %v6746_v46  ;;  %v6719_v56 = vadd.f32 %v6718_v47, %v15383_v45  ;;  %v6892_v48 = vpop.f32.mrf.mxu1 }
 0x847   :  { %v6893_v59 = vadd.f32 %v6892_v48, %v15489_v39  ;;  %v13143_v48 = vld [vmem:[#allocation20 + $0x7d4] sm:$0xf] }
 0x848   :  { %v15545_v42 = vadd.f32 %v15460_v63, %v6775_v22 }
 0x84b   :  { %v6747_v28 = vpop.f32.mrf.mxu3 }
 0x84c   :  { %v6748_v40 = vadd.f32 %v6747_v28, %v6719_v56  ;;  %v6921_v43 = vpop.f32.mrf.mxu2  ;;  %v12956_v28 = vld [vmem:[#allocation20 + $0x1f4] sm:$0xf0] }
 0x84d   :  { %v15548_v62 = vadd.f32 %v6921_v43, %v6893_v59  ;;  %v6721_v13 = vpop.f32.mrf.mxu0  ;;  %v10395_v59 = vld [vmem:[#allocation20 + $0x1d8] sm:$0xf] }
 0x84e   :  { %v6777_v8 = vadd.f32 %v15463_v61, %v6748_v40  ;;  %v6722_v3 = vadd.f32 %v6721_v13, %v15395_v60  ;;  %v6895_v25 = vpop.f32.mrf.mxu1  ;;  %v10651_v43 = vld [vmem:[#allocation20 + $0x3d8] sm:$0xf] }
 0x84f   :  { %v6896_v16 = vadd.f32 %v6895_v25, %v15489_v39  ;;  %v13020_v13 = vld [vmem:[#allocation20 + $0x3f4] sm:$0xf0]  ;;  %v13071_v25 = vld [vmem:[#allocation20 + $0x594] sm:$0xf] }
 0x850   :  { %6952 = vmatmul.bf16.gmra.mxu0 %v14938_v2  ;;  %6981 = vmatmul.bf16.gmra.mxu3 %v14940_v10  ;;  %v15555_v45 = vadd.f32 %v15465_v4, %v6777_v8  ;;  %v10652_v8 = vor.u32 %v13020_v13, %v10651_v43  ;;  %v10587_v43 = vld [vmem:[#allocation20 + $0x358] sm:$0xf] }
 0x851   :  { %7126 = vmatmul.bf16.gmra.mxu1 %v14874_v1  ;;  %7155 = vmatmul.bf16.gmra.mxu2 %v14876_v17  ;;  %v13004_v13 = vld [vmem:[#allocation20 + $0x374] sm:$0xf0] }
 0x852   :  { %7364 = vmatpush.bf16.msra.mxu2 %v10652_v8  ;;  %v15590_v8 = vperm.slane %v15424_v33, 3 }
 0x853   :  { %v6750_v63 = vpop.f32.mrf.mxu3 }
 0x854   :  { %v6751_v7 = vadd.f32 %v6750_v63, %v6722_v3  ;;  %v6924_v57 = vpop.f32.mrf.mxu2  ;;  %v13135_v63 = vld [vmem:[#allocation20 + $0x794] sm:$0xf] }
 0x855   :  { %v15560_v61 = vadd.f32 %v6924_v57, %v6896_v16  ;;  %v6723_v60 = vpop.f32.mrf.mxu0  ;;  %v10869_v16 = vld [vmem:[#allocation20 + $0x5b0] sm:$0xf0] }
 0x856   :  { %v6780_v19 = vadd.f32 %v15468_v0, %v6751_v7  ;;  %v6724_v24 = vadd.f32 %v6723_v60, %v15403_v21  ;;  %v6897_v35 = vpop.f32.mrf.mxu1  ;;  %v13079_v0 = vld [vmem:[#allocation20 + $0x5d4] sm:$0xf]  ;;  %v10872_v57 = vor.u32 %v13071_v25, %v10869_v16 }
 0x857   :  { %v6898_v18 = vadd.f32 %v6897_v35, %v15489_v39  ;;  %v10901_v21 = vld [vmem:[#allocation20 + $0x5f0] sm:$0xf0] }
 0x858   :  { %v15565_v4 = vadd.f32 %v15478_v50, %v6780_v19  ;;  %v10904_v50 = vor.u32 %v13079_v0, %v10901_v21  ;;  %v11157_v39 = vld [vmem:[#allocation20 + $0x7f0] sm:$0xf0]  ;;  %v10363_v19 = vld [vmem:[#allocation20 + $0x198] sm:$0xf] }
 0x859   :  { %v11125_v60 = vld [vmem:[#allocation20 + $0x7b0] sm:$0xf0] }
 0x85a   :  { %7161 = vmatpush.bf16.msra.mxu0 %v10904_v50  ;;  %v10837_v21 = vld [vmem:[#allocation20 + $0x570] sm:$0xf0] }
 0x85b   :  { %v6752_v9 = vpop.f32.mrf.mxu3  ;;  %v13055_v16 = vld [vmem:[#allocation20 + $0x514] sm:$0xf] }
 0x85c   :  { %v6753_v31 = vadd.f32 %v6752_v9, %v6724_v24  ;;  %v6926_v55 = vpop.f32.mrf.mxu2  ;;  %v12948_v24 = vld [vmem:[#allocation20 + $0x1b4] sm:$0xf0] }
 0x85d   :  { %v15568_v46 = vadd.f32 %v6926_v55, %v6898_v18  ;;  %v6822_v12 = vpop.f32.mrf.mxu0  ;;  %v11128_v18 = vor.u32 %v13135_v63, %v11125_v60  ;;  %v10364_v9 = vor.u32 %v12948_v24, %v10363_v19  ;;  %v13012_v55 = vld [vmem:[#allocation20 + $0x3b4] sm:$0xf0]  ;;  %v10805_v63 = vld [vmem:[#allocation20 + $0x530] sm:$0xf0] }
 0x85e   :  { %v6782_v47 = vadd.f32 %v15481_v51, %v6753_v31  ;;  %v6823_v22 = vadd.f32 %v6822_v12, %v15505_v26  ;;  %v15572_v56 = vpop.f32.mrf.mxu1  ;;  %v11160_v51 = vor.u32 %v13143_v48, %v11157_v39  ;;  %v10396_v26 = vor.u32 %v12956_v28, %v10395_v59  ;;  %v10619_v31 = vld [vmem:[#allocation20 + $0x398] sm:$0xf]  ;;  %7162 = vmatpush.bf16.msra.mxu0 %v10872_v57  ;;  %v13127_v48 = vld [vmem:[#allocation20 + $0x754] sm:$0xf] }
 0x85f   :  { %v10620_v0 = vor.u32 %v13012_v55, %v10619_v31  ;;  %v11093_v39 = vld [vmem:[#allocation20 + $0x770] sm:$0xf0]  ;;  %v10331_v59 = vld [vmem:[#allocation20 + $0x158] sm:$0xf]  ;;  %v10808_v24 = vor.u32 %v13055_v16, %v10805_v63  ;;  %v16642_v16 = vld [vmem:[#allocation41_spill] sm:$0xff] }
 0x860   :  { %7053 = vmatmul.bf16.vlgmr.msrb.gmra.mxu0 %v14834_v49  ;;  %7082 = vmatmul.bf16.vlgmr.msrb.gmra.mxu3 %v14836_v20  ;;  %v15577_v40 = vadd.f32 %v15483_v54, %v6782_v47  ;;  %v12940_v28 = vld [vmem:[#allocation20 + $0x174] sm:$0xf0]  ;;  %v13119_v57 = vld [vmem:[#allocation20 + $0x714] sm:$0xf]  ;;  %v16643_v63 = vld [vmem:[#allocation42_spill] sm:$0xff] }
 0x861   :  { %7227 = vmatmul.bf16.vlgmr.msra.gmra.mxu1 %v16580_v58  ;;  %7256 = vmatmul.bf16.vlgmr.msrb.gmra.mxu2 %v16581_v37  ;;  %v10555_v55 = vld [vmem:[#allocation20 + $0x318] sm:$0xf] }
 0x862   :  { %7190 = vmatpush.bf16.msra.mxu3 %v11160_v51  ;;  %7335 = vmatpush.bf16.msrb.mxu1 %v10396_v26  ;;  %v11096_v51 = vor.u32 %v13127_v48, %v11093_v39  ;;  %v10332_v26 = vor.u32 %v12940_v28, %v10331_v59  ;;  %v10773_v39 = vld [vmem:[#allocation20 + $0x4f0] sm:$0xf0] }
 0x863   :  { %v6851_v3 = vpop.f32.mrf.mxu3  ;;  %7365 = vmatpush.bf16.msra.mxu2 %v10620_v0  ;;  %v12996_v0 = vld [vmem:[#allocation20 + $0x334] sm:$0xf0]  ;;  %v13111_v59 = vld [vmem:[#allocation20 + $0x6d4] sm:$0xf] }
 0x864   :  { %v15581_v7 = vadd.f32 %v6851_v3, %v6823_v22  ;;  %v15583_v54 = vpop.f32.mrf.mxu2  ;;  %v13063_v22 = vld [vmem:[#allocation20 + $0x554] sm:$0xf]  ;;  %v10588_v3 = vor.u32 %v13004_v13, %v10587_v43  ;;  %v16641_v43 = vld [vmem:[#allocation56_spill] sm:$0xff] }
 0x865   :  { %v6824_v35 = vpop.f32.mrf.mxu0  ;;  %v10840_v50 = vor.u32 %v13063_v22, %v10837_v21 }
 0x866   :  { %v6825_v12 = vadd.f32 %v6824_v35, %v15515_v53  ;;  %v15586_v47 = vpop.f32.mrf.mxu1  ;;  %7191 = vmatpush.bf16.msra.mxu3 %v11128_v18  ;;  %7336 = vmatpush.bf16.msrb.mxu1 %v10364_v9  ;;  %v7802_v53 = vmax.f32 %v15581_v7, 0.0  ;;  %v11061_v35 = vld [vmem:[#allocation20 + $0x730] sm:$0xf0]  ;;  %v10299_v18 = vld [vmem:[#allocation20 + $0x118] sm:$0xf] }
 0x867   :  { %7163 = vmatpush.bf16.msra.mxu0 %v10840_v50  ;;  %7366 = vmatpush.bf16.msra.mxu2 %v10588_v3  ;;  %v12932_v9 = vld [vmem:[#allocation20 + $0x134] sm:$0xf0]  ;;  %v11064_v31 = vor.u32 %v13119_v57, %v11061_v35  ;;  %v10556_v50 = vor.u32 %v12996_v0, %v10555_v55  ;;  %v11029_v3 = vld [vmem:[#allocation20 + $0x6f0] sm:$0xf0] }
 0x868   :  { %v10300_v33 = vor.u32 %v12932_v9, %v10299_v18  ;;  %v7884_v28 = vadd.f32 %v15590_v8, %v7802_v53  ;;  %v11032_v57 = vor.u32 %v13111_v59, %v11029_v3  ;;  %v12988_v35 = vld [vmem:[#allocation20 + $0x2f4] sm:$0xf0] }
 0x869   :  { %v12916_v59 = vld [vmem:[#allocation20 + $0xb4] sm:$0xf0] }
 0x86a   :  { %7192 = vmatpush.bf16.msra.mxu3 %v11096_v51  ;;  %7337 = vmatpush.bf16.msrb.mxu1 %v10332_v26  ;;  %v16640_v26 = vld [vmem:[#allocation55_spill] sm:$0xff] }
 0x86b   :  { %v6853_v25 = vpop.f32.mrf.mxu3  ;;  %7164 = vmatpush.bf16.msra.mxu0 %v10808_v24  ;;  %v10523_v24 = vld [vmem:[#allocation20 + $0x2d8] sm:$0xf]  ;;  %7367 = vmatpush.bf16.msra.mxu2 %v10556_v50 }
 0x86c   :  { %v6854_v60 = vadd.f32 %v6853_v25, %v6825_v12  ;;  %v15592_v19 = vpop.f32.mrf.mxu2  ;;  %v13047_v12 = vld [vmem:[#allocation20 + $0x4d4] sm:$0xf]  ;;  %v12924_v25 = vld [vmem:[#allocation20 + $0xf4] sm:$0xf0]  ;;  %v10524_v53 = vor.u32 %v12988_v35, %v10523_v24 }
 0x86d   :  { %v6827_v7 = vpop.f32.mrf.mxu0  ;;  %v10776_v13 = vor.u32 %v13047_v12, %v10773_v39  ;;  %v10997_v12 = vld [vmem:[#allocation20 + $0x6b0] sm:$0xf0]  ;;  %v10235_v39 = vld [vmem:[#allocation20 + $0x98] sm:$0xf] }
 0x86e   :  { %v7810_v22 = vmax.f32 %v6854_v60, 0.0  ;;  %v6828_v21 = vadd.f32 %v6827_v7, %v15525_v32  ;;  %v15595_v48 = vpop.f32.mrf.mxu1  ;;  %7193 = vmatpush.bf16.msra.mxu3 %v11064_v31  ;;  %7338 = vmatpush.bf16.msrb.mxu1 %v10300_v33  ;;  %v10267_v32 = vld [vmem:[#allocation20 + $0xd8] sm:$0xf]  ;;  %v13039_v7 = vld [vmem:[#allocation20 + $0x494] sm:$0xf] }
 0x86f   :  { %v10268_v60 = vor.u32 %v12924_v25, %v10267_v32  ;;  %7165 = vmatpush.bf16.msra.mxu0 %v10776_v13  ;;  %v10741_v31 = vld [vmem:[#allocation20 + $0x4b0] sm:$0xf0]  ;;  %v12980_v50 = vld [vmem:[#allocation20 + $0x2b4] sm:$0xf0]  ;;  %7368 = vmatpush.bf16.msra.mxu2 %v10524_v53 }
 0x870   :  { %v7892_v51 = vadd.f32 %v15590_v8, %v7810_v22  ;;  %7058 = vmatmul.bf16.gmra.mxu0 %v16640_v26  ;;  %7087 = vmatmul.bf16.gmra.mxu3 %v16641_v43  ;;  %v13103_v33 = vld [vmem:[#allocation20 + $0x694] sm:$0xf]  ;;  %v10744_v22 = vor.u32 %v13039_v7, %v10741_v31  ;;  %v10203_v7 = vld [vmem:[#allocation20 + $0x58] sm:$0xf] }
 0x871   :  { %7232 = vmatmul.bf16.gmra.mxu1 %v16642_v16  ;;  %7261 = vmatmul.bf16.gmra.mxu2 %v16643_v63  ;;  %v11000_v32 = vor.u32 %v13103_v33, %v10997_v12  ;;  %v13095_v24 = vld [vmem:[#allocation20 + $0x654] sm:$0xf]  ;;  %v12908_v31 = vld [vmem:[#allocation20 + $0x74] sm:$0xf0] }
 0x872   :  { %v15603_v18 = vpack.c.bf16 %v7892_v51, %v7884_v28  ;;  %7194 = vmatpush.bf16.msra.mxu3 %v11032_v57  ;;  %7339 = vmatpush.bf16.msrb.mxu1 %v10268_v60  ;;  %v10236_v28 = vor.u32 %v12916_v59, %v10235_v39  ;;  %v10491_v51 = vld [vmem:[#allocation20 + $0x298] sm:$0xf]  ;;  %v10709_v60 = vld [vmem:[#allocation20 + $0x470] sm:$0xf0]  ;;  %v10204_v12 = vor.u32 %v12908_v31, %v10203_v7 }
 0x873   :  { %v6856_v9 = vpop.f32.mrf.mxu3  ;;  %7166 = vmatpush.bf16.msra.mxu0 %v10744_v22  ;;  %v10492_v57 = vor.u32 %v12980_v50, %v10491_v51  ;;  %v10459_v39 = vld [vmem:[#allocation20 + $0x258] sm:$0xf]  ;;  %v13023_v22 = vld [vmem:[#allocation20 + $0x414] sm:$0xf] }
 0x874   :  { %16644 = vst [vmem:[#allocation68_spill] sm:$0xff] %v15603_v18  ;;  %v6857_v55 = vadd.f32 %v6856_v9, %v6828_v21  ;;  %v15605_v0 = vpop.f32.mrf.mxu2  ;;  %v13031_v21 = vld [vmem:[#allocation20 + $0x454] sm:$0xf]  ;;  %v12972_v59 = vld [vmem:[#allocation20 + $0x274] sm:$0xf0] }
 0x875   :  { %v6829_v3 = vpop.f32.mrf.mxu0  ;;  %v10712_v35 = vor.u32 %v13031_v21, %v10709_v60  ;;  %v10965_v9 = vld [vmem:[#allocation20 + $0x670] sm:$0xf0]  ;;  %7369 = vmatpush.bf16.msra.mxu2 %v10492_v57  ;;  %v10171_v60 = vld [vmem:[#allocation20 + $0x18] sm:$0xf] }
 0x876   :  { %v6830_v13 = vadd.f32 %v6829_v3, %v15535_v6  ;;  %v15608_v25 = vpop.f32.mrf.mxu1  ;;  %7195 = vmatpush.bf16.msra.mxu3 %v11000_v32  ;;  %7340 = vmatpush.bf16.msrb.mxu1 %v10236_v28  ;;  %v10968_v33 = vor.u32 %v13095_v24, %v10965_v9  ;;  %v7818_v36 = vmax.f32 %v6857_v55, 0.0  ;;  %v10460_v6 = vor.u32 %v12972_v59, %v10459_v39  ;;  %v10677_v3 = vld [vmem:[#allocation20 + $0x430] sm:$0xf0]  ;;  %v12900_v24 = vld [vmem:[#allocation20 + $0x34] sm:$0xf0] }
 0x877   :  { %7167 = vmatpush.bf16.msra.mxu0 %v10712_v35  ;;  %v13087_v32 = vld [vmem:[#allocation20 + $0x614] sm:$0xf]  ;;  %v10680_v50 = vor.u32 %v13023_v22, %v10677_v3  ;;  %v10172_v31 = vor.u32 %v12900_v24, %v10171_v60  ;;  %v10427_v55 = vld [vmem:[#allocation20 + $0x218] sm:$0xf]  ;;  %v16646_v22 = vld [vmem:[#allocation54_spill] sm:$0xff] }
 0x878   :  { %v10933_v21 = vld [vmem:[#allocation20 + $0x630] sm:$0xf0]  ;;  %v12964_v57 = vld [vmem:[#allocation20 + $0x234] sm:$0xf0] }
 0x879   :  { %v10936_v7 = vor.u32 %v13087_v32, %v10933_v21  ;;  %7370 = vmatpush.bf16.msra.mxu2 %v10460_v6  ;;  %v16647_v3 = vld [vmem:[#allocation43_spill] sm:$0xff]  ;;  %v16648_v32 = vld [vmem:[#allocation44_spill] sm:$0xff] }
 0x87a   :  { %7196 = vmatpush.bf16.msra.mxu3 %v10968_v33  ;;  %7341 = vmatpush.bf16.msrb.mxu1 %v10204_v12  ;;  %v10428_v12 = vor.u32 %v12964_v57, %v10427_v55  ;;  %v11675_v63 = vld [vmem:[#allocation20 + $0xbd8] sm:$0xf] }
 0x87b   :  { %v6858_v53 = vpop.f32.mrf.mxu3  ;;  %7168 = vmatpush.bf16.msra.mxu0 %v10680_v50  ;;  %v13276_v16 = vld [vmem:[#allocation20 + $0xbf4] sm:$0xf0] }
 0x87c   :  { %v6859_v28 = vadd.f32 %v6858_v53, %v6830_v13  ;;  %v15610_v51 = vpop.f32.mrf.mxu2  ;;  %v7900_v13 = vadd.f32 %v15590_v8, %v7818_v36  ;;  %v16645_v53 = vld [vmem:[#allocation53_spill] sm:$0xff] }
 0x87d   :  { %v6832_v9 = vpop.f32.mrf.mxu0  ;;  %7371 = vmatpush.bf16.msra.mxu2 %v10428_v12 }
 0x87e   :  { %v7826_v35 = vmax.f32 %v6859_v28, 0.0  ;;  %v6833_v39 = vadd.f32 %v6832_v9, %v15545_v42  ;;  %v15613_v33 = vpop.f32.mrf.mxu1  ;;  %7197 = vmatpush.bf16.msra.mxu3 %v10936_v7  ;;  %7342 = vmatpush.bf16.msrb.mxu1 %v10172_v31 }
 0x880   :  { %v7908_v59 = vadd.f32 %v15590_v8, %v7826_v35  ;;  %7063 = vmatmul.bf16.gmra.mxu0 %v16645_v53  ;;  %7092 = vmatmul.bf16.gmra.mxu3 %v16646_v22  ;;  %v13212_v22 = vld [vmem:[#allocation20 + $0x9f4] sm:$0xf0] }
 0x881   :  { %7237 = vmatmul.bf16.gmra.mxu1 %v16647_v3  ;;  %7266 = vmatmul.bf16.gmra.mxu2 %v16648_v32  ;;  %v13399_v32 = vld [vmem:[#allocation20 + $0xfd4] sm:$0xf]  ;;  %v16656_v3 = vld [vmem:[#allocation48_spill] sm:$0xff] }
 0x882   :  { %v15621_v42 = vpack.c.bf16 %v7908_v59, %v7900_v13  ;;  %v16650_v59 = vld [vmem:[#allocation51_spill] sm:$0xff] }
 0x883   :  { %v6861_v6 = vpop.f32.mrf.mxu3 }
 0x884   :  { %16649 = vst [vmem:[#allocation69_spill] sm:$0xff] %v15621_v42  ;;  %v6862_v28 = vadd.f32 %v6861_v6, %v6833_v39  ;;  %v15623_v50 = vpop.f32.mrf.mxu2  ;;  %v16652_v6 = vld [vmem:[#allocation45_spill] sm:$0xff] }
 0x885   :  { %v6834_v21 = vpop.f32.mrf.mxu0 }
 0x886   :  { %v6835_v36 = vadd.f32 %v6834_v21, %v15555_v45  ;;  %v15626_v60 = vpop.f32.mrf.mxu1  ;;  %v7834_v9 = vmax.f32 %v6862_v28, 0.0  ;;  %v16651_v45 = vld [vmem:[#allocation52_spill] sm:$0xff]  ;;  %v16653_v28 = vld [vmem:[#allocation46_spill] sm:$0xff] }
 0x888   :  { %v7916_v39 = vadd.f32 %v15590_v8, %v7834_v9 }
 0x88b   :  { %v6863_v24 = vpop.f32.mrf.mxu3 }
 0x88c   :  { %v6864_v7 = vadd.f32 %v6863_v24, %v6835_v36  ;;  %v15628_v31 = vpop.f32.mrf.mxu2 }
 0x88d   :  { %v6837_v55 = vpop.f32.mrf.mxu0 }
 0x88e   :  { %v7842_v57 = vmax.f32 %v6864_v7, 0.0  ;;  %v6838_v35 = vadd.f32 %v6837_v55, %v15565_v4  ;;  %v15631_v12 = vpop.f32.mrf.mxu1 }
 0x890   :  { %v7924_v13 = vadd.f32 %v15590_v8, %v7842_v57  ;;  %7068 = vmatmul.bf16.gmra.mxu0 %v16650_v59  ;;  %7097 = vmatmul.bf16.gmra.mxu3 %v16651_v45 }
 0x891   :  { %7242 = vmatmul.bf16.gmra.mxu1 %v16652_v6  ;;  %7271 = vmatmul.bf16.gmra.mxu2 %v16653_v28 }
 0x892   :  { %v15639_v21 = vpack.c.bf16 %v7924_v13, %v7916_v39  ;;  %v16655_v39 = vld [vmem:[#allocation66_spill] sm:$0xff] }
 0x893   :  { %v6866_v36 = vpop.f32.mrf.mxu3  ;;  %v15650_v13 = vperm.slane %v16655_v39, 5 }
 0x894   :  { %16654 = vst [vmem:[#allocation70_spill] sm:$0xff] %v15639_v21  ;;  %v6867_v24 = vadd.f32 %v6866_v36, %v6838_v35  ;;  %v15641_v7 = vpop.f32.mrf.mxu2  ;;  %v13335_v36 = vld [vmem:[#allocation20 + $0xdd4] sm:$0xf] }
 0x895   :  { %v6839_v4 = vpop.f32.mrf.mxu0  ;;  %v11925_v21 = vld [vmem:[#allocation20 + $0xdf0] sm:$0xf0] }
 0x896   :  { %v6840_v55 = vadd.f32 %v6839_v4, %v15577_v40  ;;  %v15644_v9 = vpop.f32.mrf.mxu1  ;;  %v7850_v42 = vmax.f32 %v6867_v24, 0.0  ;;  %v16657_v24 = vld [vmem:[#allocation49_spill] sm:$0xff] }
 0x898   :  { %v7932_v40 = vadd.f32 %v15590_v8, %v7850_v42  ;;  %v11676_v42 = vor.u32 %v13276_v16, %v11675_v63 }
 0x89a   :  { %7480 = vmatpush.bf16.msrb.mxu2 %v11676_v42  ;;  %v13319_v42 = vld [vmem:[#allocation20 + $0xd54] sm:$0xf] }
 0x89b   :  { %v6868_v57 = vpop.f32.mrf.mxu3 }
 0x89c   :  { %v6869_v18 = vadd.f32 %v6868_v57, %v6840_v55  ;;  %v15646_v59 = vpop.f32.mrf.mxu2  ;;  %v11928_v55 = vor.u32 %v13335_v36, %v11925_v21  ;;  %v12181_v57 = vld [vmem:[#allocation20 + $0xff0] sm:$0xf0] }
 0x89d   :  { %v6938_v45 = vpop.f32.mrf.mxu0  ;;  %v12184_v39 = vor.u32 %v13399_v32, %v12181_v57  ;;  %v13327_v21 = vld [vmem:[#allocation20 + $0xd94] sm:$0xf]  ;;  %v13204_v57 = vld [vmem:[#allocation20 + $0x9b4] sm:$0xf0] }
 0x89e   :  { %v7858_v6 = vmax.f32 %v6869_v18, 0.0  ;;  %v6939_v28 = vadd.f32 %v6938_v45, %v15500_v41  ;;  %v7112_v35 = vpop.f32.mrf.mxu1  ;;  %v11419_v18 = vld [vmem:[#allocation20 + $0x9d8] sm:$0xf]  ;;  %v16659_v45 = vld [vmem:[#allocation57_spill] sm:$0xff]  ;;  %7277 = vmatpush.bf16.msrb.mxu0 %v11928_v55  ;;  %v11893_v36 = vld [vmem:[#allocation20 + $0xdb0] sm:$0xf0] }
 0x89f   :  { %v16658_v41 = vld [vmem:[#allocation47_spill] sm:$0xff]  ;;  %v11420_v53 = vor.u32 %v13212_v22, %v11419_v18  ;;  %7306 = vmatpush.bf16.msrb.mxu3 %v12184_v39 }
 0x8a0   :  { %v7940_v4 = vadd.f32 %v15590_v8, %v7858_v6  ;;  %7169 = vmatmul.bf16.vlgmr.msra.gmra.mxu0 %v16656_v3  ;;  %7198 = vmatmul.bf16.vlgmr.msra.gmra.mxu3 %v16657_v24  ;;  %v7113_v8 = vadd.f32 %v7112_v35, %v15650_v13  ;;  %v13391_v24 = vld [vmem:[#allocation20 + $0xf94] sm:$0xf]  ;;  %v11387_v22 = vld [vmem:[#allocation20 + $0x998] sm:$0xf] }
 0x8a1   :  { %7343 = vmatmul.bf16.vlgmr.msrb.gmra.mxu1 %v16658_v41  ;;  %7372 = vmatmul.bf16.vlgmr.msra.gmra.mxu2 %v16659_v45  ;;  %v11896_v45 = vor.u32 %v13327_v21, %v11893_v36  ;;  %v12149_v32 = vld [vmem:[#allocation20 + $0xfb0] sm:$0xf0]  ;;  %v13268_v35 = vld [vmem:[#allocation20 + $0xbb4] sm:$0xf0] }
 0x8a2   :  { %v15658_v43 = vpack.c.bf16 %v7940_v4, %v7932_v40  ;;  %7451 = vmatpush.bf16.msra.mxu1 %v11420_v53  ;;  %v12152_v63 = vor.u32 %v13391_v24, %v12149_v32  ;;  %v11388_v40 = vor.u32 %v13204_v57, %v11387_v22  ;;  %v11643_v4 = vld [vmem:[#allocation20 + $0xb98] sm:$0xf]  ;;  %v13383_v21 = vld [vmem:[#allocation20 + $0xf54] sm:$0xf] }
 0x8a3   :  { %v6967_v6 = vpop.f32.mrf.mxu3  ;;  %7278 = vmatpush.bf16.msrb.mxu0 %v11896_v45  ;;  %v11355_v36 = vld [vmem:[#allocation20 + $0x958] sm:$0xf] }
 0x8a4   :  { %16660 = vst [vmem:[#allocation66_spill] sm:$0xff] %v15658_v43  ;;  %v6968_v3 = vadd.f32 %v6967_v6, %v6939_v28  ;;  %v7141_v41 = vpop.f32.mrf.mxu2  ;;  %v11644_v28 = vor.u32 %v13268_v35, %v11643_v4  ;;  %7307 = vmatpush.bf16.msrb.mxu3 %v12152_v63  ;;  %v11861_v6 = vld [vmem:[#allocation20 + $0xd70] sm:$0xf0]  ;;  %v13196_v24 = vld [vmem:[#allocation20 + $0x974] sm:$0xf0] }
 0x8a5   :  { %v15661_v18 = vadd.f32 %v7141_v41, %v7113_v8  ;;  %v6940_v16 = vpop.f32.mrf.mxu0  ;;  %v11864_v41 = vor.u32 %v13319_v42, %v11861_v6  ;;  %v12117_v8 = vld [vmem:[#allocation20 + $0xf70] sm:$0xf0]  ;;  %v13188_v6 = vld [vmem:[#allocation20 + $0x934] sm:$0xf0]  ;;  %v10205_v43 = vld [vmem:[#allocation20 + $0x78] sm:$0xf0] }
 0x8a6   :  { %v6997_v55 = vadd.f32 %v15572_v56, %v6968_v3  ;;  %v6941_v53 = vadd.f32 %v6940_v16, %v15508_v14  ;;  %v7114_v39 = vpop.f32.mrf.mxu1  ;;  %7452 = vmatpush.bf16.msra.mxu1 %v11388_v40  ;;  %7481 = vmatpush.bf16.msrb.mxu2 %v11644_v28  ;;  %v12120_v22 = vor.u32 %v13383_v21, %v12117_v8  ;;  %v11611_v3 = vld [vmem:[#allocation20 + $0xb58] sm:$0xf]  ;;  %v13311_v63 = vld [vmem:[#allocation20 + $0xd14] sm:$0xf] }
 0x8a7   :  { %v11356_v56 = vor.u32 %v13196_v24, %v11355_v36  ;;  %v13260_v14 = vld [vmem:[#allocation20 + $0xb74] sm:$0xf0]  ;;  %7279 = vmatpush.bf16.msrb.mxu0 %v11864_v41  ;;  %v7115_v57 = vadd.f32 %v7114_v39, %v15650_v13  ;;  %v11829_v40 = vld [vmem:[#allocation20 + $0xd30] sm:$0xf0] }
 0x8a8   :  { %v15666_v32 = vadd.f32 %v15583_v54, %v6997_v55  ;;  %v11612_v45 = vor.u32 %v13260_v14, %v11611_v3  ;;  %7308 = vmatpush.bf16.msrb.mxu3 %v12120_v22  ;;  %v13375_v4 = vld [vmem:[#allocation20 + $0xf14] sm:$0xf]  ;;  %v11832_v42 = vor.u32 %v13311_v63, %v11829_v40  ;;  %v11323_v55 = vld [vmem:[#allocation20 + $0x918] sm:$0xf] }
 0x8a9   :  { %v12085_v54 = vld [vmem:[#allocation20 + $0xf30] sm:$0xf0]  ;;  %v11324_v36 = vor.u32 %v13188_v6, %v11323_v55  ;;  %v11579_v24 = vld [vmem:[#allocation20 + $0xb18] sm:$0xf] }
 0x8aa   :  { %7453 = vmatpush.bf16.msra.mxu1 %v11356_v56  ;;  %7482 = vmatpush.bf16.msrb.mxu2 %v11612_v45  ;;  %v12088_v41 = vor.u32 %v13375_v4, %v12085_v54  ;;  %v13252_v39 = vld [vmem:[#allocation20 + $0xb34] sm:$0xf0]  ;;  %v13303_v14 = vld [vmem:[#allocation20 + $0xcd4] sm:$0xf] }
 0x8ab   :  { %v6969_v16 = vpop.f32.mrf.mxu3  ;;  %7280 = vmatpush.bf16.msrb.mxu0 %v11832_v42  ;;  %v11797_v45 = vld [vmem:[#allocation20 + $0xcf0] sm:$0xf0]  ;;  %v11291_v40 = vld [vmem:[#allocation20 + $0x8d8] sm:$0xf] }
 0x8ac   :  { %v6970_v35 = vadd.f32 %v6969_v16, %v6941_v53  ;;  %v7143_v28 = vpop.f32.mrf.mxu2  ;;  %v11580_v53 = vor.u32 %v13252_v39, %v11579_v24  ;;  %7309 = vmatpush.bf16.msrb.mxu3 %v12088_v41  ;;  %v13367_v16 = vld [vmem:[#allocation20 + $0xed4] sm:$0xf]  ;;  %v13180_v4 = vld [vmem:[#allocation20 + $0x8f4] sm:$0xf0] }
 0x8ad   :  { %v15669_v21 = vadd.f32 %v7143_v28, %v7115_v57  ;;  %v6943_v8 = vpop.f32.mrf.mxu0  ;;  %v11800_v57 = vor.u32 %v13303_v14, %v11797_v45  ;;  %v12053_v63 = vld [vmem:[#allocation20 + $0xef0] sm:$0xf0]  ;;  %v11547_v28 = vld [vmem:[#allocation20 + $0xad8] sm:$0xf] }
 0x8ae   :  { %v6999_v22 = vadd.f32 %v15586_v47, %v6970_v35  ;;  %v6944_v56 = vadd.f32 %v6943_v8, %v15520_v29  ;;  %v7117_v3 = vpop.f32.mrf.mxu1  ;;  %7454 = vmatpush.bf16.msra.mxu1 %v11324_v36  ;;  %v12056_v29 = vor.u32 %v13367_v16, %v12053_v63  ;;  %v11292_v35 = vor.u32 %v13180_v4, %v11291_v40  ;;  %v13244_v42 = vld [vmem:[#allocation20 + $0xaf4] sm:$0xf0]  ;;  %v13295_v8 = vld [vmem:[#allocation20 + $0xc94] sm:$0xf] }
 0x8af   :  { %7483 = vmatpush.bf16.msrb.mxu2 %v11580_v53  ;;  %7281 = vmatpush.bf16.msrb.mxu0 %v11800_v57  ;;  %v11548_v54 = vor.u32 %v13244_v42, %v11547_v28  ;;  %v7118_v55 = vadd.f32 %v7117_v3, %v15650_v13  ;;  %v11765_v41 = vld [vmem:[#allocation20 + $0xcb0] sm:$0xf0]  ;;  %v11259_v14 = vld [vmem:[#allocation20 + $0x898] sm:$0xf] }
 0x8b0   :  { %7174 = vmatmul.bf16.gmra.mxu0 %v14909_v11  ;;  %7203 = vmatmul.bf16.gmra.mxu3 %v14911_v15  ;;  %v15676_v47 = vadd.f32 %v15592_v19, %v6999_v22  ;;  %v13359_v19 = vld [vmem:[#allocation20 + $0xe94] sm:$0xf]  ;;  %v11768_v39 = vor.u32 %v13295_v8, %v11765_v41  ;;  %v13172_v45 = vld [vmem:[#allocation20 + $0x8b4] sm:$0xf0] }
 0x8b1   :  { %7348 = vmatmul.bf16.gmra.mxu1 %v14854_v38  ;;  %7377 = vmatmul.bf16.gmra.mxu2 %v14856_v23  ;;  %v12021_v22 = vld [vmem:[#allocation20 + $0xeb0] sm:$0xf0]  ;;  %v11260_v57 = vor.u32 %v13172_v45, %v11259_v14  ;;  %v11515_v40 = vld [vmem:[#allocation20 + $0xa98] sm:$0xf] }
 0x8b2   :  { %7310 = vmatpush.bf16.msrb.mxu3 %v12056_v29  ;;  %7455 = vmatpush.bf16.msra.mxu1 %v11292_v35  ;;  %v12024_v53 = vor.u32 %v13359_v19, %v12021_v22  ;;  %v13236_v4 = vld [vmem:[#allocation20 + $0xab4] sm:$0xf0]  ;;  %v13287_v28 = vld [vmem:[#allocation20 + $0xc54] sm:$0xf] }
 0x8b3   :  { %v6972_v6 = vpop.f32.mrf.mxu3  ;;  %7484 = vmatpush.bf16.msrb.mxu2 %v11548_v54  ;;  %7282 = vmatpush.bf16.msrb.mxu0 %v11768_v39  ;;  %v11733_v42 = vld [vmem:[#allocation20 + $0xc70] sm:$0xf0]  ;;  %v11227_v41 = vld [vmem:[#allocation20 + $0x858] sm:$0xf] }
 0x8b4   :  { %v6973_v36 = vadd.f32 %v6972_v6, %v6944_v56  ;;  %v7146_v24 = vpop.f32.mrf.mxu2  ;;  %v11516_v56 = vor.u32 %v13236_v4, %v11515_v40  ;;  %v13351_v6 = vld [vmem:[#allocation20 + $0xe54] sm:$0xf]  ;;  %v13164_v19 = vld [vmem:[#allocation20 + $0x874] sm:$0xf0] }
 0x8b5   :  { %v15681_v16 = vadd.f32 %v7146_v24, %v7118_v55  ;;  %v6945_v63 = vpop.f32.mrf.mxu0  ;;  %v11736_v55 = vor.u32 %v13287_v28, %v11733_v42  ;;  %v11989_v8 = vld [vmem:[#allocation20 + $0xe70] sm:$0xf0]  ;;  %v13156_v28 = vld [vmem:[#allocation20 + $0x834] sm:$0xf0] }
 0x8b6   :  { %v7002_v3 = vadd.f32 %v15595_v48, %v6973_v36  ;;  %v6946_v29 = vadd.f32 %v6945_v63, %v15528_v30  ;;  %v7119_v35 = vpop.f32.mrf.mxu1  ;;  %7311 = vmatpush.bf16.msrb.mxu3 %v12024_v53  ;;  %7456 = vmatpush.bf16.msra.mxu1 %v11260_v57  ;;  %v11992_v22 = vor.u32 %v13351_v6, %v11989_v8  ;;  %v11483_v36 = vld [vmem:[#allocation20 + $0xa58] sm:$0xf]  ;;  %v13279_v45 = vld [vmem:[#allocation20 + $0xc14] sm:$0xf] }
 0x8b7   :  { %v11228_v48 = vor.u32 %v13164_v19, %v11227_v41  ;;  %v13228_v30 = vld [vmem:[#allocation20 + $0xa74] sm:$0xf0]  ;;  %7485 = vmatpush.bf16.msrb.mxu2 %v11516_v56  ;;  %7283 = vmatpush.bf16.msrb.mxu0 %v11736_v55  ;;  %v7120_v39 = vadd.f32 %v7119_v35, %v15650_v13  ;;  %v11701_v63 = vld [vmem:[#allocation20 + $0xc30] sm:$0xf0] }
 0x8b8   :  { %v15686_v24 = vadd.f32 %v15605_v0, %v7002_v3  ;;  %v11484_v54 = vor.u32 %v13228_v30, %v11483_v36  ;;  %v13343_v53 = vld [vmem:[#allocation20 + $0xe14] sm:$0xf]  ;;  %v11704_v4 = vor.u32 %v13279_v45, %v11701_v63  ;;  %v11195_v3 = vld [vmem:[#allocation20 + $0x818] sm:$0xf] }
 0x8b9   :  { %v11957_v0 = vld [vmem:[#allocation20 + $0xe30] sm:$0xf0]  ;;  %v11196_v55 = vor.u32 %v13156_v28, %v11195_v3  ;;  %v11451_v8 = vld [vmem:[#allocation20 + $0xa18] sm:$0xf] }
 0x8ba   :  { %7312 = vmatpush.bf16.msrb.mxu3 %v11992_v22  ;;  %7457 = vmatpush.bf16.msra.mxu1 %v11228_v48  ;;  %v11960_v56 = vor.u32 %v13343_v53, %v11957_v0  ;;  %v13220_v41 = vld [vmem:[#allocation20 + $0xa34] sm:$0xf0] }
 0x8bb   :  { %v6974_v14 = vpop.f32.mrf.mxu3  ;;  %7486 = vmatpush.bf16.msrb.mxu2 %v11484_v54  ;;  %7284 = vmatpush.bf16.msrb.mxu0 %v11704_v4 }
 0x8bc   :  { %v6975_v57 = vadd.f32 %v6974_v14, %v6946_v29  ;;  %v7148_v40 = vpop.f32.mrf.mxu2  ;;  %v11452_v29 = vor.u32 %v13220_v41, %v11451_v8 }
 0x8bd   :  { %v15689_v42 = vadd.f32 %v7148_v40, %v7120_v39  ;;  %v6948_v6 = vpop.f32.mrf.mxu0 }
 0x8be   :  { %v7004_v35 = vadd.f32 %v15608_v25, %v6975_v57  ;;  %v6949_v19 = vadd.f32 %v6948_v6, %v15540_v5  ;;  %v7122_v22 = vpop.f32.mrf.mxu1  ;;  %7313 = vmatpush.bf16.msrb.mxu3 %v11960_v56  ;;  %7458 = vmatpush.bf16.msra.mxu1 %v11196_v55 }
 0x8bf   :  { %7487 = vmatpush.bf16.msrb.mxu2 %v11452_v29  ;;  %v7123_v5 = vadd.f32 %v7122_v22, %v15650_v13 }
 0x8c0   :  { %7179 = vmatmul.bf16.gmra.mxu0 %v14924_v34  ;;  %7208 = vmatmul.bf16.gmra.mxu3 %v14926_v52  ;;  %v15696_v48 = vadd.f32 %v15610_v51, %v7004_v35 }
 0x8c1   :  { %7353 = vmatmul.bf16.gmra.mxu1 %v14864_v27  ;;  %7382 = vmatmul.bf16.gmra.mxu2 %v14866_v44 }
 0x8c3   :  { %v6977_v25 = vpop.f32.mrf.mxu3 }
 0x8c4   :  { %v6978_v36 = vadd.f32 %v6977_v25, %v6949_v19  ;;  %v7151_v30 = vpop.f32.mrf.mxu2 }
 0x8c5   :  { %v15701_v54 = vadd.f32 %v7151_v30, %v7123_v5  ;;  %v6950_v39 = vpop.f32.mrf.mxu0 }
 0x8c6   :  { %v7007_v14 = vadd.f32 %v15613_v33, %v6978_v36  ;;  %v6951_v45 = vadd.f32 %v6950_v39, %v15548_v62  ;;  %v7124_v63 = vpop.f32.mrf.mxu1 }
 0x8c7   :  { %v7125_v53 = vadd.f32 %v7124_v63, %v15650_v13  ;;  %v11163_v63 = vld [vmem:[#allocation20 + $0x7d8] sm:$0xf] }
 0x8c8   :  { %v15706_v51 = vadd.f32 %v15623_v50, %v7007_v14 }
 0x8cb   :  { %v6979_v57 = vpop.f32.mrf.mxu3 }
 0x8cc   :  { %v6980_v40 = vadd.f32 %v6979_v57, %v6951_v45  ;;  %v7153_v4 = vpop.f32.mrf.mxu2  ;;  %v10397_v57 = vld [vmem:[#allocation20 + $0x1f8] sm:$0xf0] }
 0x8cd   :  { %v15709_v0 = vadd.f32 %v7153_v4, %v7125_v53  ;;  %v6953_v3 = vpop.f32.mrf.mxu0  ;;  %v12952_v53 = vld [vmem:[#allocation20 + $0x1dc] sm:$0xf] }
 0x8ce   :  { %v7009_v28 = vadd.f32 %v15626_v60, %v6980_v40  ;;  %v6954_v6 = vadd.f32 %v6953_v3, %v15560_v61  ;;  %v7127_v56 = vpop.f32.mrf.mxu1  ;;  %v13016_v4 = vld [vmem:[#allocation20 + $0x3dc] sm:$0xf] }
 0x8cf   :  { %v7128_v33 = vadd.f32 %v7127_v56, %v15650_v13  ;;  %v10653_v3 = vld [vmem:[#allocation20 + $0x3f8] sm:$0xf0]  ;;  %v10875_v56 = vld [vmem:[#allocation20 + $0x598] sm:$0xf] }
 0x8d0   :  { %7184 = vmatmul.bf16.gmra.mxu0 %v14938_v2  ;;  %7213 = vmatmul.bf16.gmra.mxu3 %v14940_v10  ;;  %v15716_v62 = vadd.f32 %v15628_v31, %v7009_v28  ;;  %v10656_v28 = vor.u32 %v13016_v4, %v10653_v3  ;;  %v13000_v4 = vld [vmem:[#allocation20 + $0x35c] sm:$0xf] }
 0x8d1   :  { %7358 = vmatmul.bf16.gmra.mxu1 %v14874_v1  ;;  %7387 = vmatmul.bf16.gmra.mxu2 %v14876_v17  ;;  %v10589_v3 = vld [vmem:[#allocation20 + $0x378] sm:$0xf0] }
 0x8d2   :  { %7596 = vmatpush.bf16.msra.mxu2 %v10656_v28  ;;  %v15750_v28 = vld [vmem:[#allocation23] sm:$0xff] }
 0x8d3   :  { %v6982_v50 = vpop.f32.mrf.mxu3 }
 0x8d4   :  { %v6983_v55 = vadd.f32 %v6982_v50, %v6954_v6  ;;  %v7156_v8 = vpop.f32.mrf.mxu2  ;;  %v11131_v50 = vld [vmem:[#allocation20 + $0x798] sm:$0xf] }
 0x8d5   :  { %v15721_v60 = vadd.f32 %v7156_v8, %v7128_v33  ;;  %v6955_v61 = vpop.f32.mrf.mxu0  ;;  %v13076_v33 = vld [vmem:[#allocation20 + $0x5b4] sm:$0xf0] }
 0x8d6   :  { %v7012_v41 = vadd.f32 %v15631_v12, %v6983_v55  ;;  %v6956_v35 = vadd.f32 %v6955_v61, %v15568_v46  ;;  %v7129_v19 = vpop.f32.mrf.mxu1  ;;  %v10907_v12 = vld [vmem:[#allocation20 + $0x5d8] sm:$0xf]  ;;  %v10876_v8 = vor.u32 %v13076_v33, %v10875_v56  ;;  %v10592_v56 = vor.u32 %v13000_v4, %v10589_v3 }
 0x8d7   :  { %v7130_v22 = vadd.f32 %v7129_v19, %v15650_v13  ;;  %v13084_v46 = vld [vmem:[#allocation20 + $0x5f4] sm:$0xf0] }
 0x8d8   :  { %v15726_v31 = vadd.f32 %v15641_v7, %v7012_v41  ;;  %v10908_v7 = vor.u32 %v13084_v46, %v10907_v12  ;;  %v13148_v13 = vld [vmem:[#allocation20 + $0x7f4] sm:$0xf0]  ;;  %v12944_v41 = vld [vmem:[#allocation20 + $0x19c] sm:$0xf] }
 0x8d9   :  { %v13140_v61 = vld [vmem:[#allocation20 + $0x7b4] sm:$0xf0] }
 0x8da   :  { %7393 = vmatpush.bf16.msra.mxu0 %v10908_v7  ;;  %v13068_v46 = vld [vmem:[#allocation20 + $0x574] sm:$0xf0] }
 0x8db   :  { %v6984_v29 = vpop.f32.mrf.mxu3  ;;  %v16661_v3 = vld [vmem:[#allocation56_spill] sm:$0xff] }
 0x8dc   :  { %v6985_v5 = vadd.f32 %v6984_v29, %v6956_v35  ;;  %v7158_v25 = vpop.f32.mrf.mxu2  ;;  %v10365_v35 = vld [vmem:[#allocation20 + $0x1b8] sm:$0xf0] }
 0x8dd   :  { %v15729_v36 = vadd.f32 %v7158_v25, %v7130_v22  ;;  %v7054_v30 = vpop.f32.mrf.mxu0  ;;  %v11132_v22 = vor.u32 %v13140_v61, %v11131_v50  ;;  %v10368_v29 = vor.u32 %v12944_v41, %v10365_v35  ;;  %v10621_v25 = vld [vmem:[#allocation20 + $0x3b8] sm:$0xf0]  ;;  %v10811_v50 = vld [vmem:[#allocation20 + $0x518] sm:$0xf] }
 0x8de   :  { %v7014_v39 = vadd.f32 %v15644_v9, %v6985_v5  ;;  %v7055_v14 = vadd.f32 %v7054_v30, %v15666_v32  ;;  %v15733_v45 = vpop.f32.mrf.mxu1  ;;  %v11164_v9 = vor.u32 %v13148_v13, %v11163_v63  ;;  %v10400_v32 = vor.u32 %v12952_v53, %v10397_v57  ;;  %v13008_v5 = vld [vmem:[#allocation20 + $0x39c] sm:$0xf]  ;;  %7394 = vmatpush.bf16.msra.mxu0 %v10876_v8  ;;  %v11099_v63 = vld [vmem:[#allocation20 + $0x758] sm:$0xf] }
 0x8df   :  { %v10624_v12 = vor.u32 %v13008_v5, %v10621_v25  ;;  %v13132_v13 = vld [vmem:[#allocation20 + $0x774] sm:$0xf0]  ;;  %v12936_v53 = vld [vmem:[#allocation20 + $0x15c] sm:$0xf] }
 0x8e0   :  { %7285 = vmatmul.bf16.vlgmr.msrb.gmra.mxu0 %v14834_v49  ;;  %7314 = vmatmul.bf16.vlgmr.msrb.gmra.mxu3 %v14836_v20  ;;  %v15738_v40 = vadd.f32 %v15646_v59, %v7014_v39  ;;  %v10333_v57 = vld [vmem:[#allocation20 + $0x178] sm:$0xf0]  ;;  %v13060_v8 = vld [vmem:[#allocation20 + $0x534] sm:$0xf0] }
 0x8e1   :  { %7459 = vmatmul.bf16.vlgmr.msra.gmra.mxu1 %v16580_v58  ;;  %7488 = vmatmul.bf16.vlgmr.msrb.gmra.mxu2 %v16581_v37  ;;  %v11067_v61 = vld [vmem:[#allocation20 + $0x718] sm:$0xf] }
 0x8e2   :  { %7422 = vmatpush.bf16.msra.mxu3 %v11164_v9  ;;  %7567 = vmatpush.bf16.msrb.mxu1 %v10400_v32  ;;  %v11100_v9 = vor.u32 %v13132_v13, %v11099_v63  ;;  %v10336_v32 = vor.u32 %v12936_v53, %v10333_v57  ;;  %v13052_v57 = vld [vmem:[#allocation20 + $0x4f4] sm:$0xf0] }
 0x8e3   :  { %v7083_v6 = vpop.f32.mrf.mxu3  ;;  %7597 = vmatpush.bf16.msra.mxu2 %v10624_v12 }
 0x8e4   :  { %v15742_v55 = vadd.f32 %v7083_v6, %v7055_v14  ;;  %v15744_v59 = vpop.f32.mrf.mxu2  ;;  %v10843_v14 = vld [vmem:[#allocation20 + $0x558] sm:$0xf]  ;;  %v15753_v6 = vperm.slane %v15750_v28, 4 }
 0x8e5   :  { %v7056_v19 = vpop.f32.mrf.mxu0  ;;  %v10844_v7 = vor.u32 %v13068_v46, %v10843_v14  ;;  %v12992_v14 = vld [vmem:[#allocation20 + $0x31c] sm:$0xf] }
 0x8e6   :  { %v7057_v30 = vadd.f32 %v7056_v19, %v15676_v47  ;;  %v15747_v39 = vpop.f32.mrf.mxu1  ;;  %7423 = vmatpush.bf16.msra.mxu3 %v11132_v22  ;;  %7568 = vmatpush.bf16.msrb.mxu1 %v10368_v29  ;;  %v7803_v47 = vmax.f32 %v15742_v55, 0.0  ;;  %v10812_v19 = vor.u32 %v13060_v8, %v10811_v50  ;;  %v13124_v22 = vld [vmem:[#allocation20 + $0x734] sm:$0xf0]  ;;  %v12928_v55 = vld [vmem:[#allocation20 + $0x11c] sm:$0xf]  ;;  %v16662_v8 = vld [vmem:[#allocation41_spill] sm:$0xff] }
 0x8e7   :  { %7395 = vmatpush.bf16.msra.mxu0 %v10844_v7  ;;  %7598 = vmatpush.bf16.msra.mxu2 %v10592_v56  ;;  %v10301_v29 = vld [vmem:[#allocation20 + $0x138] sm:$0xf0]  ;;  %v11068_v25 = vor.u32 %v13124_v22, %v11067_v61  ;;  %v16663_v61 = vld [vmem:[#allocation42_spill] sm:$0xff] }
 0x8e8   :  { %v10304_v12 = vor.u32 %v12928_v55, %v10301_v29  ;;  %v10557_v46 = vld [vmem:[#allocation20 + $0x338] sm:$0xf0] }
 0x8e9   :  { %v10560_v53 = vor.u32 %v12992_v14, %v10557_v46  ;;  %v10269_v50 = vld [vmem:[#allocation20 + $0xf8] sm:$0xf0]  ;;  %v11003_v14 = vld [vmem:[#allocation20 + $0x698] sm:$0xf] }
 0x8ea   :  { %7424 = vmatpush.bf16.msra.mxu3 %v11100_v9  ;;  %7569 = vmatpush.bf16.msrb.mxu1 %v10336_v32  ;;  %v11035_v9 = vld [vmem:[#allocation20 + $0x6d8] sm:$0xf]  ;;  %v7885_v32 = vadd.f32 %v15753_v6, %v7803_v47  ;;  %v12984_v22 = vld [vmem:[#allocation20 + $0x2dc] sm:$0xf] }
 0x8eb   :  { %v7085_v33 = vpop.f32.mrf.mxu3  ;;  %7396 = vmatpush.bf16.msra.mxu0 %v10812_v19  ;;  %v10525_v55 = vld [vmem:[#allocation20 + $0x2f8] sm:$0xf0]  ;;  %7599 = vmatpush.bf16.msra.mxu2 %v10560_v53 }
 0x8ec   :  { %v7086_v41 = vadd.f32 %v7085_v33, %v7057_v30  ;;  %v15755_v35 = vpop.f32.mrf.mxu2  ;;  %v10779_v30 = vld [vmem:[#allocation20 + $0x4d8] sm:$0xf]  ;;  %v10528_v47 = vor.u32 %v12984_v22, %v10525_v55  ;;  %v10493_v53 = vld [vmem:[#allocation20 + $0x2b8] sm:$0xf0] }
 0x8ed   :  { %v7059_v5 = vpop.f32.mrf.mxu0  ;;  %v10780_v56 = vor.u32 %v13052_v57, %v10779_v30  ;;  %v13116_v33 = vld [vmem:[#allocation20 + $0x6f4] sm:$0xf0] }
 0x8ee   :  { %v7811_v63 = vmax.f32 %v7086_v41, 0.0  ;;  %v7060_v7 = vadd.f32 %v7059_v5, %v15686_v24  ;;  %v15758_v13 = vpop.f32.mrf.mxu1  ;;  %7425 = vmatpush.bf16.msra.mxu3 %v11068_v25  ;;  %7570 = vmatpush.bf16.msrb.mxu1 %v10304_v12  ;;  %v12920_v24 = vld [vmem:[#allocation20 + $0xdc] sm:$0xf]  ;;  %v11036_v41 = vor.u32 %v13116_v33, %v11035_v9  ;;  %v10747_v25 = vld [vmem:[#allocation20 + $0x498] sm:$0xf] }
 0x8ef   :  { %v10272_v19 = vor.u32 %v12920_v24, %v10269_v50  ;;  %7397 = vmatpush.bf16.msra.mxu0 %v10780_v56  ;;  %v13044_v12 = vld [vmem:[#allocation20 + $0x4b4] sm:$0xf0]  ;;  %v12912_v9 = vld [vmem:[#allocation20 + $0x9c] sm:$0xf]  ;;  %7600 = vmatpush.bf16.msra.mxu2 %v10528_v47 }
 0x8f0   :  { %v7893_v4 = vadd.f32 %v15753_v6, %v7811_v63  ;;  %7290 = vmatmul.bf16.gmra.mxu0 %v16640_v26  ;;  %7319 = vmatmul.bf16.gmra.mxu3 %v16661_v3  ;;  %v10748_v30 = vor.u32 %v13044_v12, %v10747_v25  ;;  %v13108_v57 = vld [vmem:[#allocation20 + $0x6b4] sm:$0xf0]  ;;  %v10237_v33 = vld [vmem:[#allocation20 + $0xb8] sm:$0xf0] }
 0x8f1   :  { %7464 = vmatmul.bf16.gmra.mxu1 %v16662_v8  ;;  %7493 = vmatmul.bf16.gmra.mxu2 %v16663_v61  ;;  %v11004_v50 = vor.u32 %v13108_v57, %v11003_v14  ;;  %v10971_v55 = vld [vmem:[#allocation20 + $0x658] sm:$0xf]  ;;  %v12904_v12 = vld [vmem:[#allocation20 + $0x5c] sm:$0xf] }
 0x8f2   :  { %v15766_v29 = vpack.c.bf16 %v7893_v4, %v7885_v32  ;;  %7426 = vmatpush.bf16.msra.mxu3 %v11036_v41  ;;  %7571 = vmatpush.bf16.msrb.mxu1 %v10272_v19  ;;  %v10240_v32 = vor.u32 %v12912_v9, %v10237_v33  ;;  %v12976_v4 = vld [vmem:[#allocation20 + $0x29c] sm:$0xf]  ;;  %v13036_v19 = vld [vmem:[#allocation20 + $0x474] sm:$0xf0]  ;;  %v10208_v57 = vor.u32 %v12904_v12, %v10205_v43 }
 0x8f3   :  { %v7088_v5 = vpop.f32.mrf.mxu3  ;;  %7398 = vmatpush.bf16.msra.mxu0 %v10748_v30  ;;  %v10496_v41 = vor.u32 %v12976_v4, %v10493_v53  ;;  %v13100_v25 = vld [vmem:[#allocation20 + $0x674] sm:$0xf0]  ;;  %v12968_v9 = vld [vmem:[#allocation20 + $0x25c] sm:$0xf] }
 0x8f4   :  { %16664 = vst [vmem:[#allocation71_spill] sm:$0xff] %v15766_v29  ;;  %v7089_v46 = vadd.f32 %v7088_v5, %v7060_v7  ;;  %v15768_v63 = vpop.f32.mrf.mxu2  ;;  %v10715_v7 = vld [vmem:[#allocation20 + $0x458] sm:$0xf]  ;;  %v10972_v14 = vor.u32 %v13100_v25, %v10971_v55  ;;  %v10461_v33 = vld [vmem:[#allocation20 + $0x278] sm:$0xf0] }
 0x8f5   :  { %v7061_v24 = vpop.f32.mrf.mxu0  ;;  %v10716_v5 = vor.u32 %v13036_v19, %v10715_v7  ;;  %7601 = vmatpush.bf16.msra.mxu2 %v10496_v41  ;;  %v10683_v30 = vld [vmem:[#allocation20 + $0x418] sm:$0xf]  ;;  %v12896_v19 = vld [vmem:[#allocation20 + $0x1c] sm:$0xf] }
 0x8f6   :  { %v7062_v56 = vadd.f32 %v7061_v24, %v15696_v48  ;;  %v15771_v22 = vpop.f32.mrf.mxu1  ;;  %7427 = vmatpush.bf16.msra.mxu3 %v11004_v50  ;;  %7572 = vmatpush.bf16.msrb.mxu1 %v10240_v32  ;;  %v7819_v29 = vmax.f32 %v7089_v46, 0.0  ;;  %v10464_v48 = vor.u32 %v12968_v9, %v10461_v33  ;;  %v13028_v24 = vld [vmem:[#allocation20 + $0x434] sm:$0xf0]  ;;  %v10173_v55 = vld [vmem:[#allocation20 + $0x38] sm:$0xf0] }
 0x8f7   :  { %7399 = vmatpush.bf16.msra.mxu0 %v10716_v5  ;;  %v10939_v50 = vld [vmem:[#allocation20 + $0x618] sm:$0xf]  ;;  %v10684_v53 = vor.u32 %v13028_v24, %v10683_v30  ;;  %v10176_v12 = vor.u32 %v12896_v19, %v10173_v55  ;;  %v12960_v46 = vld [vmem:[#allocation20 + $0x21c] sm:$0xf]  ;;  %v16666_v30 = vld [vmem:[#allocation54_spill] sm:$0xff] }
 0x8f8   :  { %v13092_v7 = vld [vmem:[#allocation20 + $0x634] sm:$0xf0]  ;;  %v10429_v41 = vld [vmem:[#allocation20 + $0x238] sm:$0xf0] }
 0x8f9   :  { %v10940_v25 = vor.u32 %v13092_v7, %v10939_v50  ;;  %7602 = vmatpush.bf16.msra.mxu2 %v10464_v48  ;;  %v16667_v24 = vld [vmem:[#allocation43_spill] sm:$0xff]  ;;  %v16668_v50 = vld [vmem:[#allocation44_spill] sm:$0xff] }
 0x8fa   :  { %7428 = vmatpush.bf16.msra.mxu3 %v10972_v14  ;;  %7573 = vmatpush.bf16.msrb.mxu1 %v10208_v57  ;;  %v10432_v57 = vor.u32 %v12960_v46, %v10429_v41  ;;  %v13272_v8 = vld [vmem:[#allocation20 + $0xbdc] sm:$0xf] }
 0x8fb   :  { %v7090_v47 = vpop.f32.mrf.mxu3  ;;  %7400 = vmatpush.bf16.msra.mxu0 %v10684_v53  ;;  %v11677_v3 = vld [vmem:[#allocation20 + $0xbf8] sm:$0xf0] }
 0x8fc   :  { %v7091_v32 = vadd.f32 %v7090_v47, %v7062_v56  ;;  %v15773_v4 = vpop.f32.mrf.mxu2  ;;  %v7901_v56 = vadd.f32 %v15753_v6, %v7819_v29  ;;  %v16665_v47 = vld [vmem:[#allocation53_spill] sm:$0xff] }
 0x8fd   :  { %v7064_v43 = vpop.f32.mrf.mxu0  ;;  %7603 = vmatpush.bf16.msra.mxu2 %v10432_v57 }
 0x8fe   :  { %v7827_v5 = vmax.f32 %v7091_v32, 0.0  ;;  %v7065_v9 = vadd.f32 %v7064_v43, %v15706_v51  ;;  %v15776_v14 = vpop.f32.mrf.mxu1  ;;  %7429 = vmatpush.bf16.msra.mxu3 %v10940_v25  ;;  %7574 = vmatpush.bf16.msrb.mxu1 %v10176_v12 }
 0x900   :  { %v7909_v33 = vadd.f32 %v15753_v6, %v7827_v5  ;;  %7295 = vmatmul.bf16.gmra.mxu0 %v16665_v47  ;;  %7324 = vmatmul.bf16.gmra.mxu3 %v16666_v30  ;;  %v16678_v30 = vld [vmem:[#allocation47_spill] sm:$0xff] }
 0x901   :  { %7469 = vmatmul.bf16.gmra.mxu1 %v16667_v24  ;;  %7498 = vmatmul.bf16.gmra.mxu2 %v16668_v50  ;;  %v13404_v24 = vld [vmem:[#allocation20 + $0xff4] sm:$0xf0] }
 0x902   :  { %v15784_v51 = vpack.c.bf16 %v7909_v33, %v7901_v56  ;;  %v16670_v33 = vld [vmem:[#allocation51_spill] sm:$0xff] }
 0x903   :  { %v7093_v48 = vpop.f32.mrf.mxu3 }
 0x904   :  { %16669 = vst [vmem:[#allocation72_spill] sm:$0xff] %v15784_v51  ;;  %v7094_v32 = vadd.f32 %v7093_v48, %v7065_v9  ;;  %v15786_v53 = vpop.f32.mrf.mxu2  ;;  %v16672_v48 = vld [vmem:[#allocation45_spill] sm:$0xff] }
 0x905   :  { %v7066_v7 = vpop.f32.mrf.mxu0 }
 0x906   :  { %v7067_v29 = vadd.f32 %v7066_v7, %v15716_v62  ;;  %v15789_v19 = vpop.f32.mrf.mxu1  ;;  %v7835_v43 = vmax.f32 %v7094_v32, 0.0  ;;  %v16671_v62 = vld [vmem:[#allocation52_spill] sm:$0xff]  ;;  %v16673_v32 = vld [vmem:[#allocation46_spill] sm:$0xff] }
 0x908   :  { %v7917_v9 = vadd.f32 %v15753_v6, %v7835_v43 }
 0x90b   :  { %v7095_v55 = vpop.f32.mrf.mxu3 }
 0x90c   :  { %v7096_v25 = vadd.f32 %v7095_v55, %v7067_v29  ;;  %v15791_v12 = vpop.f32.mrf.mxu2 }
 0x90d   :  { %v7069_v46 = vpop.f32.mrf.mxu0 }
 0x90e   :  { %v7843_v41 = vmax.f32 %v7096_v25, 0.0  ;;  %v7070_v5 = vadd.f32 %v7069_v46, %v15726_v31  ;;  %v15794_v57 = vpop.f32.mrf.mxu1 }
 0x910   :  { %v7925_v56 = vadd.f32 %v15753_v6, %v7843_v41  ;;  %7300 = vmatmul.bf16.gmra.mxu0 %v16670_v33  ;;  %7329 = vmatmul.bf16.gmra.mxu3 %v16671_v62 }
 0x911   :  { %7474 = vmatmul.bf16.gmra.mxu1 %v16672_v48  ;;  %7503 = vmatmul.bf16.gmra.mxu2 %v16673_v32 }
 0x912   :  { %v15802_v7 = vpack.c.bf16 %v7925_v56, %v7917_v9  ;;  %v15812_v9 = vld [vmem:[#allocation22] sm:$0xff] }
 0x913   :  { %v7098_v29 = vpop.f32.mrf.mxu3  ;;  %16675 = vst [vmem:[#allocation74_spill] sm:$0xff] %v15812_v9 }
 0x914   :  { %16674 = vst [vmem:[#allocation73_spill] sm:$0xff] %v15802_v7  ;;  %v7099_v55 = vadd.f32 %v7098_v29, %v7070_v5  ;;  %v15804_v25 = vpop.f32.mrf.mxu2  ;;  %v15815_v5 = vperm.slane %v15812_v9, 6  ;;  %v11931_v29 = vld [vmem:[#allocation20 + $0xdd8] sm:$0xf]  ;;  %v16679_v9 = vld [vmem:[#allocation57_spill] sm:$0xff] }
 0x915   :  { %v7071_v31 = vpop.f32.mrf.mxu0  ;;  %v13340_v7 = vld [vmem:[#allocation20 + $0xdf4] sm:$0xf0] }
 0x916   :  { %v7072_v46 = vadd.f32 %v7071_v31, %v15738_v40  ;;  %v15807_v43 = vpop.f32.mrf.mxu1  ;;  %v7851_v51 = vmax.f32 %v7099_v55, 0.0  ;;  %v12187_v40 = vld [vmem:[#allocation20 + $0xfd8] sm:$0xf] }
 0x917   :  { %v12188_v47 = vor.u32 %v13404_v24, %v12187_v40  ;;  %v13396_v24 = vld [vmem:[#allocation20 + $0xfb4] sm:$0xf0]  ;;  %v13200_v40 = vld [vmem:[#allocation20 + $0x99c] sm:$0xf] }
 0x918   :  { %v7933_v31 = vadd.f32 %v15753_v6, %v7851_v51  ;;  %v11680_v51 = vor.u32 %v13272_v8, %v11677_v3 }
 0x919   :  { %7538 = vmatpush.bf16.msrb.mxu3 %v12188_v47 }
 0x91a   :  { %7712 = vmatpush.bf16.msrb.mxu2 %v11680_v51  ;;  %v11867_v51 = vld [vmem:[#allocation20 + $0xd58] sm:$0xf] }
 0x91b   :  { %v7100_v41 = vpop.f32.mrf.mxu3 }
 0x91c   :  { %v7101_v33 = vadd.f32 %v7100_v41, %v7072_v46  ;;  %v15809_v50 = vpop.f32.mrf.mxu2  ;;  %v16676_v46 = vld [vmem:[#allocation48_spill] sm:$0xff]  ;;  %v16677_v41 = vld [vmem:[#allocation49_spill] sm:$0xff] }
 0x91d   :  { %v7170_v62 = vpop.f32.mrf.mxu0 }
 0x91e   :  { %v7859_v48 = vmax.f32 %v7101_v33, 0.0  ;;  %v7171_v32 = vadd.f32 %v7170_v62, %v15661_v18  ;;  %v7344_v56 = vpop.f32.mrf.mxu1  ;;  %v11932_v33 = vor.u32 %v13340_v7, %v11931_v29  ;;  %v13208_v18 = vld [vmem:[#allocation20 + $0x9dc] sm:$0xf]  ;;  %v11899_v7 = vld [vmem:[#allocation20 + $0xd98] sm:$0xf] }
 0x91f   :  { %v11421_v62 = vld [vmem:[#allocation20 + $0x9f8] sm:$0xf0]  ;;  %v13332_v29 = vld [vmem:[#allocation20 + $0xdb4] sm:$0xf0] }
 0x920   :  { %v7941_v55 = vadd.f32 %v15753_v6, %v7859_v48  ;;  %7401 = vmatmul.bf16.vlgmr.msra.gmra.mxu0 %v16676_v46  ;;  %7430 = vmatmul.bf16.vlgmr.msra.gmra.mxu3 %v16677_v41  ;;  %v11424_v61 = vor.u32 %v13208_v18, %v11421_v62  ;;  %v7345_v6 = vadd.f32 %v7344_v56, %v15815_v5  ;;  %v12155_v41 = vld [vmem:[#allocation20 + $0xf98] sm:$0xf]  ;;  %v11389_v18 = vld [vmem:[#allocation20 + $0x9b8] sm:$0xf0] }
 0x921   :  { %7575 = vmatmul.bf16.vlgmr.msrb.gmra.mxu1 %v16678_v30  ;;  %7604 = vmatmul.bf16.vlgmr.msra.gmra.mxu2 %v16679_v9  ;;  %v11900_v9 = vor.u32 %v13332_v29, %v11899_v7  ;;  %v12156_v8 = vor.u32 %v13396_v24, %v12155_v41  ;;  %v11645_v56 = vld [vmem:[#allocation20 + $0xbb8] sm:$0xf0]  ;;  %v12123_v7 = vld [vmem:[#allocation20 + $0xf58] sm:$0xf] }
 0x922   :  { %7509 = vmatpush.bf16.msrb.mxu0 %v11932_v33  ;;  %v15823_v26 = vpack.c.bf16 %v7941_v55, %v7933_v31  ;;  %7683 = vmatpush.bf16.msra.mxu1 %v11424_v61  ;;  %v11392_v31 = vor.u32 %v13200_v40, %v11389_v18  ;;  %v13264_v55 = vld [vmem:[#allocation20 + $0xb9c] sm:$0xf]  ;;  %v13388_v29 = vld [vmem:[#allocation20 + $0xf74] sm:$0xf0] }
 0x923   :  { %v7199_v48 = vpop.f32.mrf.mxu3  ;;  %7539 = vmatpush.bf16.msrb.mxu3 %v12156_v8  ;;  %v11357_v41 = vld [vmem:[#allocation20 + $0x978] sm:$0xf0]  ;;  %v12124_v40 = vor.u32 %v13388_v29, %v12123_v7  ;;  %v11835_v8 = vld [vmem:[#allocation20 + $0xd18] sm:$0xf] }
 0x924   :  { %16680 = vst [vmem:[#allocation47_spill] sm:$0xff] %v15823_v26  ;;  %v7200_v46 = vadd.f32 %v7199_v48, %v7171_v32  ;;  %v7373_v30 = vpop.f32.mrf.mxu2  ;;  %v11648_v32 = vor.u32 %v13264_v55, %v11645_v56  ;;  %v13324_v48 = vld [vmem:[#allocation20 + $0xd74] sm:$0xf0] }
 0x925   :  { %v15826_v62 = vadd.f32 %v7373_v30, %v7345_v6  ;;  %v7172_v3 = vpop.f32.mrf.mxu0  ;;  %v11868_v6 = vor.u32 %v13324_v48, %v11867_v51  ;;  %v13192_v30 = vld [vmem:[#allocation20 + $0x95c] sm:$0xf]  ;;  %v12091_v55 = vld [vmem:[#allocation20 + $0xf18] sm:$0xf] }
 0x926   :  { %v7229_v47 = vadd.f32 %v15733_v45, %v7200_v46  ;;  %v7173_v61 = vadd.f32 %v7172_v3, %v15669_v21  ;;  %v7346_v33 = vpop.f32.mrf.mxu1  ;;  %7510 = vmatpush.bf16.msrb.mxu0 %v11900_v9  ;;  %7684 = vmatpush.bf16.msra.mxu1 %v11392_v31  ;;  %v11360_v45 = vor.u32 %v13192_v30, %v11357_v41  ;;  %v13256_v46 = vld [vmem:[#allocation20 + $0xb5c] sm:$0xf]  ;;  %v13316_v31 = vld [vmem:[#allocation20 + $0xd34] sm:$0xf0] }
 0x927   :  { %7713 = vmatpush.bf16.msrb.mxu2 %v11648_v32  ;;  %v11613_v21 = vld [vmem:[#allocation20 + $0xb78] sm:$0xf0]  ;;  %v7347_v18 = vadd.f32 %v7346_v33, %v15815_v5  ;;  %7540 = vmatpush.bf16.msrb.mxu3 %v12124_v40  ;;  %v11836_v51 = vor.u32 %v13316_v31, %v11835_v8  ;;  %v13372_v8 = vld [vmem:[#allocation20 + $0xef4] sm:$0xf0] }
 0x928   :  { %v15831_v24 = vadd.f32 %v15744_v59, %v7229_v47  ;;  %v11616_v9 = vor.u32 %v13256_v46, %v11613_v21  ;;  %v13380_v59 = vld [vmem:[#allocation20 + $0xf34] sm:$0xf0]  ;;  %v13184_v47 = vld [vmem:[#allocation20 + $0x91c] sm:$0xf] }
 0x929   :  { %v11325_v48 = vld [vmem:[#allocation20 + $0x938] sm:$0xf0]  ;;  %v11803_v21 = vld [vmem:[#allocation20 + $0xcd8] sm:$0xf] }
 0x92a   :  { %7511 = vmatpush.bf16.msrb.mxu0 %v11868_v6  ;;  %7685 = vmatpush.bf16.msra.mxu1 %v11360_v45  ;;  %v12092_v6 = vor.u32 %v13380_v59, %v12091_v55  ;;  %v11328_v30 = vor.u32 %v13184_v47, %v11325_v48  ;;  %v13248_v41 = vld [vmem:[#allocation20 + $0xb1c] sm:$0xf] }
 0x92b   :  { %v7201_v3 = vpop.f32.mrf.mxu3  ;;  %7714 = vmatpush.bf16.msrb.mxu2 %v11616_v9  ;;  %v11581_v33 = vld [vmem:[#allocation20 + $0xb38] sm:$0xf0]  ;;  %v13308_v9 = vld [vmem:[#allocation20 + $0xcf4] sm:$0xf0] }
 0x92c   :  { %v7202_v56 = vadd.f32 %v7201_v3, %v7173_v61  ;;  %v7375_v32 = vpop.f32.mrf.mxu2  ;;  %v11584_v61 = vor.u32 %v13248_v41, %v11581_v33  ;;  %7541 = vmatpush.bf16.msrb.mxu3 %v12092_v6  ;;  %v12059_v3 = vld [vmem:[#allocation20 + $0xed8] sm:$0xf]  ;;  %v13176_v31 = vld [vmem:[#allocation20 + $0x8dc] sm:$0xf] }
 0x92d   :  { %v15834_v7 = vadd.f32 %v7375_v32, %v7347_v18  ;;  %v7175_v29 = vpop.f32.mrf.mxu0  ;;  %v11804_v18 = vor.u32 %v13308_v9, %v11803_v21  ;;  %v11293_v55 = vld [vmem:[#allocation20 + $0x8f8] sm:$0xf0]  ;;  %v13300_v6 = vld [vmem:[#allocation20 + $0xcb4] sm:$0xf0] }
 0x92e   :  { %v7231_v40 = vadd.f32 %v15747_v39, %v7202_v56  ;;  %v7176_v45 = vadd.f32 %v7175_v29, %v15681_v16  ;;  %v7349_v46 = vpop.f32.mrf.mxu1  ;;  %7512 = vmatpush.bf16.msrb.mxu0 %v11836_v51  ;;  %7686 = vmatpush.bf16.msra.mxu1 %v11328_v30  ;;  %v12060_v16 = vor.u32 %v13372_v8, %v12059_v3  ;;  %v13240_v32 = vld [vmem:[#allocation20 + $0xadc] sm:$0xf]  ;;  %v11771_v29 = vld [vmem:[#allocation20 + $0xc98] sm:$0xf] }
 0x92f   :  { %v11296_v56 = vor.u32 %v13176_v31, %v11293_v55  ;;  %v11549_v51 = vld [vmem:[#allocation20 + $0xaf8] sm:$0xf0]  ;;  %7715 = vmatpush.bf16.msrb.mxu2 %v11584_v61  ;;  %v7350_v47 = vadd.f32 %v7349_v46, %v15815_v5  ;;  %v13364_v33 = vld [vmem:[#allocation20 + $0xeb4] sm:$0xf0] }
 0x930   :  { %7406 = vmatmul.bf16.gmra.mxu0 %v14909_v11  ;;  %7435 = vmatmul.bf16.gmra.mxu3 %v14911_v15  ;;  %v15841_v39 = vadd.f32 %v15755_v35, %v7231_v40  ;;  %v11552_v59 = vor.u32 %v13240_v32, %v11549_v51  ;;  %v12027_v35 = vld [vmem:[#allocation20 + $0xe98] sm:$0xf]  ;;  %v11261_v40 = vld [vmem:[#allocation20 + $0x8b8] sm:$0xf0] }
 0x931   :  { %7580 = vmatmul.bf16.gmra.mxu1 %v14854_v38  ;;  %7609 = vmatmul.bf16.gmra.mxu2 %v14856_v23  ;;  %v11772_v38 = vor.u32 %v13300_v6, %v11771_v29  ;;  %v13168_v23 = vld [vmem:[#allocation20 + $0x89c] sm:$0xf]  ;;  %v12028_v61 = vor.u32 %v13364_v33, %v12027_v35  ;;  %v11995_v32 = vld [vmem:[#allocation20 + $0xe58] sm:$0xf] }
 0x932   :  { %7513 = vmatpush.bf16.msrb.mxu0 %v11804_v18  ;;  %7542 = vmatpush.bf16.msrb.mxu3 %v12060_v16  ;;  %v11264_v3 = vor.u32 %v13168_v23, %v11261_v40  ;;  %v13232_v18 = vld [vmem:[#allocation20 + $0xa9c] sm:$0xf]  ;;  %v11739_v16 = vld [vmem:[#allocation20 + $0xc58] sm:$0xf] }
 0x933   :  { %v7204_v48 = vpop.f32.mrf.mxu3  ;;  %7687 = vmatpush.bf16.msra.mxu1 %v11296_v56  ;;  %v11517_v8 = vld [vmem:[#allocation20 + $0xab8] sm:$0xf0]  ;;  %7716 = vmatpush.bf16.msrb.mxu2 %v11552_v59  ;;  %v13292_v56 = vld [vmem:[#allocation20 + $0xc74] sm:$0xf0] }
 0x934   :  { %v7205_v30 = vadd.f32 %v7204_v48, %v7176_v45  ;;  %v7378_v41 = vpop.f32.mrf.mxu2  ;;  %v11520_v45 = vor.u32 %v13232_v18, %v11517_v8  ;;  %v11740_v51 = vor.u32 %v13292_v56, %v11739_v16  ;;  %v13160_v48 = vld [vmem:[#allocation20 + $0x85c] sm:$0xf]  ;;  %v11707_v33 = vld [vmem:[#allocation20 + $0xc18] sm:$0xf] }
 0x935   :  { %v15846_v21 = vadd.f32 %v7378_v41, %v7350_v47  ;;  %v7177_v9 = vpop.f32.mrf.mxu0  ;;  %v13356_v47 = vld [vmem:[#allocation20 + $0xe74] sm:$0xf0]  ;;  %v11229_v29 = vld [vmem:[#allocation20 + $0x878] sm:$0xf0] }
 0x936   :  { %v7234_v46 = vadd.f32 %v15758_v13, %v7205_v30  ;;  %v7178_v31 = vadd.f32 %v7177_v9, %v15689_v42  ;;  %v7351_v55 = vpop.f32.mrf.mxu1  ;;  %7514 = vmatpush.bf16.msrb.mxu0 %v11772_v38  ;;  %7543 = vmatpush.bf16.msrb.mxu3 %v12028_v61  ;;  %v11996_v35 = vor.u32 %v13356_v47, %v11995_v32  ;;  %v13224_v30 = vld [vmem:[#allocation20 + $0xa5c] sm:$0xf]  ;;  %v13284_v23 = vld [vmem:[#allocation20 + $0xc34] sm:$0xf0] }
 0x937   :  { %7688 = vmatpush.bf16.msra.mxu1 %v11264_v3  ;;  %v11232_v13 = vor.u32 %v13160_v48, %v11229_v29  ;;  %v11485_v42 = vld [vmem:[#allocation20 + $0xa78] sm:$0xf0]  ;;  %7717 = vmatpush.bf16.msrb.mxu2 %v11520_v45  ;;  %v7352_v41 = vadd.f32 %v7351_v55, %v15815_v5  ;;  %v11963_v40 = vld [vmem:[#allocation20 + $0xe18] sm:$0xf]  ;;  %v11708_v3 = vor.u32 %v13284_v23, %v11707_v33 }
 0x938   :  { %v15851_v6 = vadd.f32 %v15768_v63, %v7234_v46  ;;  %v11488_v59 = vor.u32 %v13224_v30, %v11485_v42  ;;  %v13348_v63 = vld [vmem:[#allocation20 + $0xe34] sm:$0xf0]  ;;  %v13152_v18 = vld [vmem:[#allocation20 + $0x81c] sm:$0xf] }
 0x939   :  { %v11197_v8 = vld [vmem:[#allocation20 + $0x838] sm:$0xf0]  ;;  %v11964_v45 = vor.u32 %v13348_v63, %v11963_v40 }
 0x93a   :  { %7515 = vmatpush.bf16.msrb.mxu0 %v11740_v51  ;;  %7544 = vmatpush.bf16.msrb.mxu3 %v11996_v35  ;;  %v11200_v56 = vor.u32 %v13152_v18, %v11197_v8  ;;  %v13216_v32 = vld [vmem:[#allocation20 + $0xa1c] sm:$0xf] }
 0x93b   :  { %v7206_v38 = vpop.f32.mrf.mxu3  ;;  %7689 = vmatpush.bf16.msra.mxu1 %v11232_v13  ;;  %v11453_v51 = vld [vmem:[#allocation20 + $0xa38] sm:$0xf0]  ;;  %7718 = vmatpush.bf16.msrb.mxu2 %v11488_v59 }
 0x93c   :  { %v7207_v9 = vadd.f32 %v7206_v38, %v7178_v31  ;;  %v7380_v61 = vpop.f32.mrf.mxu2  ;;  %v11456_v31 = vor.u32 %v13216_v32, %v11453_v51 }
 0x93d   :  { %v15854_v46 = vadd.f32 %v7380_v61, %v7352_v41  ;;  %v7180_v16 = vpop.f32.mrf.mxu0 }
 0x93e   :  { %v7236_v55 = vadd.f32 %v15771_v22, %v7207_v9  ;;  %v7181_v47 = vadd.f32 %v7180_v16, %v15701_v54  ;;  %v7354_v48 = vpop.f32.mrf.mxu1  ;;  %7516 = vmatpush.bf16.msrb.mxu0 %v11708_v3  ;;  %7545 = vmatpush.bf16.msrb.mxu3 %v11964_v45 }
 0x93f   :  { %7690 = vmatpush.bf16.msra.mxu1 %v11200_v56  ;;  %7719 = vmatpush.bf16.msrb.mxu2 %v11456_v31  ;;  %v7355_v54 = vadd.f32 %v7354_v48, %v15815_v5 }
 0x940   :  { %7411 = vmatmul.bf16.gmra.mxu0 %v14924_v34  ;;  %7440 = vmatmul.bf16.gmra.mxu3 %v14926_v52  ;;  %v15861_v29 = vadd.f32 %v15773_v4, %v7236_v55 }
 0x941   :  { %7585 = vmatmul.bf16.gmra.mxu1 %v14864_v27  ;;  %7614 = vmatmul.bf16.gmra.mxu2 %v14866_v44 }
 0x943   :  { %v7209_v22 = vpop.f32.mrf.mxu3 }
 0x944   :  { %v7210_v35 = vadd.f32 %v7209_v22, %v7181_v47  ;;  %v7383_v13 = vpop.f32.mrf.mxu2  ;;  %v13144_v22 = vld [vmem:[#allocation20 + $0x7dc] sm:$0xf] }
 0x945   :  { %v15866_v30 = vadd.f32 %v7383_v13, %v7355_v54  ;;  %v7182_v42 = vpop.f32.mrf.mxu0  ;;  %v13420_v13 = vld [vmem:[#allocation25 + $0x74] sm:$0xf0] }
 0x946   :  { %v7239_v59 = vadd.f32 %v15776_v14, %v7210_v35  ;;  %v7183_v41 = vadd.f32 %v7182_v42, %v15709_v0  ;;  %v7356_v38 = vpop.f32.mrf.mxu1  ;;  %v12251_v35 = vld [vmem:[#allocation25 + $0x70] sm:$0xf] }
 0x947   :  { %v7357_v27 = vadd.f32 %v7356_v38, %v15815_v5 }
 0x948   :  { %v15871_v4 = vadd.f32 %v15786_v53, %v7239_v59  ;;  %v12315_v59 = vld [vmem:[#allocation25 + $0xf0] sm:$0xf] }
 0x94b   :  { %v7211_v44 = vpop.f32.mrf.mxu3 }
 0x94c   :  { %v7212_v33 = vadd.f32 %v7211_v44, %v7183_v41  ;;  %v7385_v23 = vpop.f32.mrf.mxu2  ;;  %v13436_v41 = vld [vmem:[#allocation25 + $0xf4] sm:$0xf0]  ;;  %v13072_v44 = vld [vmem:[#allocation20 + $0x59c] sm:$0xf] }
 0x94d   :  { %v15874_v40 = vadd.f32 %v7385_v23, %v7357_v27  ;;  %v7185_v9 = vpop.f32.mrf.mxu0  ;;  %v12316_v38 = vor.u32 %v13436_v41, %v12315_v59  ;;  %v13136_v23 = vld [vmem:[#allocation20 + $0x79c] sm:$0xf] }
 0x94e   :  { %v7241_v61 = vadd.f32 %v15789_v19, %v7212_v33  ;;  %v7186_v3 = vadd.f32 %v7185_v9, %v15721_v60  ;;  %v7359_v63 = vpop.f32.mrf.mxu1  ;;  %v10877_v33 = vld [vmem:[#allocation20 + $0x5b8] sm:$0xf0] }
 0x94f   :  { %v7360_v14 = vadd.f32 %v7359_v63, %v15815_v5  ;;  %8774 = vmatpush.bf16.msra.mxu2 %v12316_v38 }
 0x950   :  { %7416 = vmatmul.bf16.gmra.mxu0 %v14938_v2  ;;  %7445 = vmatmul.bf16.gmra.mxu3 %v14940_v10  ;;  %v15881_v0 = vadd.f32 %v15791_v12, %v7241_v61  ;;  %v11133_v61 = vld [vmem:[#allocation20 + $0x7b8] sm:$0xf0] }
 0x951   :  { %7590 = vmatmul.bf16.gmra.mxu1 %v14874_v1  ;;  %7619 = vmatmul.bf16.gmra.mxu2 %v14876_v17 }
 0x953   :  { %v7214_v53 = vpop.f32.mrf.mxu3 }
 0x954   :  { %v7215_v18 = vadd.f32 %v7214_v53, %v7186_v3  ;;  %v7388_v8 = vpop.f32.mrf.mxu2  ;;  %v13418_v3 = vld [vmem:[#allocation25 + $0x64] sm:$0xf0] }
 0x955   :  { %v15886_v19 = vadd.f32 %v7388_v8, %v7360_v14  ;;  %v7187_v60 = vpop.f32.mrf.mxu0  ;;  %v11136_v14 = vor.u32 %v13136_v23, %v11133_v61  ;;  %v13434_v8 = vld [vmem:[#allocation25 + $0xe4] sm:$0xf0] }
 0x956   :  { %v7244_v16 = vadd.f32 %v15794_v57, %v7215_v18  ;;  %v7188_v45 = vadd.f32 %v7187_v60, %v15729_v36  ;;  %v7361_v56 = vpop.f32.mrf.mxu1  ;;  %v13080_v57 = vld [vmem:[#allocation20 + $0x5dc] sm:$0xf]  ;;  %v12307_v18 = vld [vmem:[#allocation25 + $0xe0] sm:$0xf]  ;;  %v13430_v61 = vld [vmem:[#allocation25 + $0xc4] sm:$0xf0] }
 0x957   :  { %v7362_v1 = vadd.f32 %v7361_v56, %v15815_v5  ;;  %v10909_v36 = vld [vmem:[#allocation20 + $0x5f8] sm:$0xf0] }
 0x958   :  { %v15891_v12 = vadd.f32 %v15804_v25, %v7244_v16  ;;  %v10912_v25 = vor.u32 %v13080_v57, %v10909_v36  ;;  %v11165_v5 = vld [vmem:[#allocation20 + $0x7f8] sm:$0xf0]  ;;  %v12299_v36 = vld [vmem:[#allocation25 + $0xd0] sm:$0xf] }
 0x959   :  { %v13064_v56 = vld [vmem:[#allocation20 + $0x55c] sm:$0xf] }
 0x95a   :  { %7625 = vmatpush.bf16.msra.mxu0 %v10912_v25  ;;  %v15916_v25 = vperm.slane %v15750_v28, 5 }
 0x95b   :  { %v7216_v32 = vpop.f32.mrf.mxu3 }
 0x95c   :  { %v7217_v17 = vadd.f32 %v7216_v32, %v7188_v45  ;;  %v7390_v51 = vpop.f32.mrf.mxu2  ;;  %v12308_v45 = vor.u32 %v13434_v8, %v12307_v18  ;;  %v13128_v32 = vld [vmem:[#allocation20 + $0x75c] sm:$0xf] }
 0x95d   :  { %v15894_v55 = vadd.f32 %v7390_v51, %v7362_v1  ;;  %v7286_v47 = vpop.f32.mrf.mxu0  ;;  %v10845_v1 = vld [vmem:[#allocation20 + $0x578] sm:$0xf0] }
 0x95e   :  { %v7246_v48 = vadd.f32 %v15807_v43, %v7217_v17  ;;  %v7287_v31 = vadd.f32 %v7286_v47, %v15831_v24  ;;  %v15898_v54 = vpop.f32.mrf.mxu1  ;;  %v11168_v43 = vor.u32 %v13144_v22, %v11165_v5  ;;  %v12252_v24 = vor.u32 %v13420_v13, %v12251_v35  ;;  %8775 = vmatpush.bf16.msra.mxu2 %v12308_v45  ;;  %v11101_v51 = vld [vmem:[#allocation20 + $0x778] sm:$0xf0]  ;;  %v12235_v47 = vld [vmem:[#allocation25 + $0x50] sm:$0xf]  ;;  %v13432_v22 = vld [vmem:[#allocation25 + $0xd4] sm:$0xf0] }
 0x95f   :  { %v10848_v17 = vor.u32 %v13064_v56, %v10845_v1  ;;  %v12300_v5 = vor.u32 %v13432_v22, %v12299_v36  ;;  %v13056_v13 = vld [vmem:[#allocation20 + $0x51c] sm:$0xf]  ;;  %v16681_v56 = vld [vmem:[#allocation55_spill] sm:$0xff]  ;;  %v12283_v36 = vld [vmem:[#allocation25 + $0xb0] sm:$0xf] }
 0x960   :  { %7517 = vmatmul.bf16.vlgmr.msrb.gmra.mxu0 %v14834_v49  ;;  %7546 = vmatmul.bf16.vlgmr.msrb.gmra.mxu3 %v14836_v20  ;;  %v15903_v42 = vadd.f32 %v15809_v50, %v7246_v48  ;;  %v13416_v48 = vld [vmem:[#allocation25 + $0x54] sm:$0xf0]  ;;  %v10781_v18 = vld [vmem:[#allocation20 + $0x4f8] sm:$0xf0] }
 0x961   :  { %7691 = vmatmul.bf16.vlgmr.msra.gmra.mxu1 %v16580_v58  ;;  %7720 = vmatmul.bf16.vlgmr.msrb.gmra.mxu2 %v16581_v37  ;;  %v10880_v58 = vor.u32 %v13072_v44, %v10877_v33  ;;  %v12243_v37 = vld [vmem:[#allocation25 + $0x60] sm:$0xf]  ;;  %v12236_v57 = vor.u32 %v13416_v48, %v12235_v47  ;;  %v13414_v33 = vld [vmem:[#allocation25 + $0x44] sm:$0xf0]  ;;  %v13112_v8 = vld [vmem:[#allocation20 + $0x6dc] sm:$0xf] }
 0x962   :  { %7654 = vmatpush.bf16.msra.mxu3 %v11168_v43  ;;  %8745 = vmatpush.bf16.msrb.mxu1 %v12252_v24  ;;  %v12244_v53 = vor.u32 %v13418_v3, %v12243_v37  ;;  %v10813_v43 = vld [vmem:[#allocation20 + $0x538] sm:$0xf0]  ;;  %v12227_v44 = vld [vmem:[#allocation25 + $0x40] sm:$0xf]  ;;  %v16683_v47 = vld [vmem:[#allocation41_spill] sm:$0xff] }
 0x963   :  { %v7315_v27 = vpop.f32.mrf.mxu3  ;;  %7626 = vmatpush.bf16.msra.mxu0 %v10880_v58  ;;  %v13120_v24 = vld [vmem:[#allocation20 + $0x71c] sm:$0xf]  ;;  %8776 = vmatpush.bf16.msra.mxu2 %v12300_v5  ;;  %v10816_v38 = vor.u32 %v13056_v13, %v10813_v43  ;;  %v12228_v28 = vor.u32 %v13414_v33, %v12227_v44  ;;  %v12291_v58 = vld [vmem:[#allocation25 + $0xc0] sm:$0xf]  ;;  %v13428_v22 = vld [vmem:[#allocation25 + $0xb4] sm:$0xf0] }
 0x964   :  { %v15907_v9 = vadd.f32 %v7315_v27, %v7287_v31  ;;  %v15909_v50 = vpop.f32.mrf.mxu2  ;;  %v11104_v31 = vor.u32 %v13128_v32, %v11101_v51  ;;  %v11069_v27 = vld [vmem:[#allocation20 + $0x738] sm:$0xf0]  ;;  %v13412_v51 = vld [vmem:[#allocation25 + $0x34] sm:$0xf0]  ;;  %v12211_v33 = vld [vmem:[#allocation25 + $0x20] sm:$0xf] }
 0x965   :  { %v7288_v63 = vpop.f32.mrf.mxu0  ;;  %v16682_v1 = vld [vmem:[#allocation56_spill] sm:$0xff]  ;;  %v16684_v48 = vld [vmem:[#allocation42_spill] sm:$0xff] }
 0x966   :  { %v7289_v60 = vadd.f32 %v7288_v63, %v15841_v39  ;;  %v15912_v16 = vpop.f32.mrf.mxu1  ;;  %7655 = vmatpush.bf16.msra.mxu3 %v11136_v14  ;;  %8746 = vmatpush.bf16.msrb.mxu1 %v12244_v53  ;;  %v7804_v39 = vmax.f32 %v15907_v9, 0.0  ;;  %v11072_v9 = vor.u32 %v13120_v24, %v11069_v27  ;;  %v12292_v14 = vor.u32 %v13430_v61, %v12291_v58  ;;  %v13048_v53 = vld [vmem:[#allocation20 + $0x4dc] sm:$0xf]  ;;  %v12275_v61 = vld [vmem:[#allocation25 + $0xa0] sm:$0xf] }
 0x967   :  { %7627 = vmatpush.bf16.msra.mxu0 %v10848_v17  ;;  %v10784_v32 = vor.u32 %v13048_v53, %v10781_v18  ;;  %v11037_v17 = vld [vmem:[#allocation20 + $0x6f8] sm:$0xf0] }
 0x968   :  { %8777 = vmatpush.bf16.msra.mxu2 %v12292_v14  ;;  %v13040_v13 = vld [vmem:[#allocation20 + $0x49c] sm:$0xf] }
 0x969   :  { %v10749_v43 = vld [vmem:[#allocation20 + $0x4b8] sm:$0xf0] }
 0x96a   :  { %7656 = vmatpush.bf16.msra.mxu3 %v11104_v31  ;;  %8747 = vmatpush.bf16.msrb.mxu1 %v12236_v57  ;;  %v11040_v31 = vor.u32 %v13112_v8, %v11037_v17  ;;  %v13104_v24 = vld [vmem:[#allocation20 + $0x69c] sm:$0xf]  ;;  %v10752_v27 = vor.u32 %v13040_v13, %v10749_v43  ;;  %v12203_v17 = vld [vmem:[#allocation25 + $0x10] sm:$0xf] }
 0x96b   :  { %v7317_v35 = vpop.f32.mrf.mxu3  ;;  %7628 = vmatpush.bf16.msra.mxu0 %v10816_v38  ;;  %v11005_v44 = vld [vmem:[#allocation20 + $0x6b8] sm:$0xf0] }
 0x96c   :  { %v7318_v59 = vadd.f32 %v7317_v35, %v7289_v60  ;;  %v15918_v41 = vpop.f32.mrf.mxu2  ;;  %v7886_v60 = vadd.f32 %v15916_v25, %v7804_v39  ;;  %v12284_v39 = vor.u32 %v13428_v22, %v12283_v36  ;;  %v10717_v8 = vld [vmem:[#allocation20 + $0x478] sm:$0xf0] }
 0x96d   :  { %v7291_v23 = vpop.f32.mrf.mxu0  ;;  %v13024_v22 = vld [vmem:[#allocation20 + $0x41c] sm:$0xf] }
 0x96e   :  { %v7812_v37 = vmax.f32 %v7318_v59, 0.0  ;;  %v7292_v3 = vadd.f32 %v7291_v23, %v15851_v6  ;;  %v15921_v63 = vpop.f32.mrf.mxu1  ;;  %7657 = vmatpush.bf16.msra.mxu3 %v11072_v9  ;;  %8748 = vmatpush.bf16.msrb.mxu1 %v12228_v28  ;;  %v12219_v6 = vld [vmem:[#allocation25 + $0x30] sm:$0xf]  ;;  %v13410_v23 = vld [vmem:[#allocation25 + $0x24] sm:$0xf0]  ;;  %v11008_v28 = vor.u32 %v13104_v24, %v11005_v44 }
 0x96f   :  { %v12220_v57 = vor.u32 %v13412_v51, %v12219_v6  ;;  %7629 = vmatpush.bf16.msra.mxu0 %v10784_v32  ;;  %v12212_v58 = vor.u32 %v13410_v23, %v12211_v33  ;;  %8778 = vmatpush.bf16.msra.mxu2 %v12284_v39  ;;  %v10973_v32 = vld [vmem:[#allocation20 + $0x678] sm:$0xf0]  ;;  %v13408_v6 = vld [vmem:[#allocation25 + $0x14] sm:$0xf0]  ;;  %v12195_v44 = vld [vmem:[#allocation25] sm:$0xf] }
 0x970   :  { %v7894_v45 = vadd.f32 %v15916_v25, %v7812_v37  ;;  %7522 = vmatmul.bf16.gmra.mxu0 %v16681_v56  ;;  %7551 = vmatmul.bf16.gmra.mxu3 %v16682_v1  ;;  %v13426_v37 = vld [vmem:[#allocation25 + $0xa4] sm:$0xf0]  ;;  %v10685_v39 = vld [vmem:[#allocation20 + $0x438] sm:$0xf0] }
 0x971   :  { %7696 = vmatmul.bf16.gmra.mxu1 %v16683_v47  ;;  %7725 = vmatmul.bf16.gmra.mxu2 %v16684_v48  ;;  %v12276_v18 = vor.u32 %v13426_v37, %v12275_v61  ;;  %v12204_v47 = vor.u32 %v13408_v6, %v12203_v17  ;;  %v12267_v48 = vld [vmem:[#allocation25 + $0x90] sm:$0xf]  ;;  %v10688_v24 = vor.u32 %v13024_v22, %v10685_v39  ;;  %v13406_v33 = vld [vmem:[#allocation25 + $0x4] sm:$0xf0] }
 0x972   :  { %v15929_v5 = vpack.c.bf16 %v7894_v45, %v7886_v60  ;;  %7658 = vmatpush.bf16.msra.mxu3 %v11040_v31  ;;  %8749 = vmatpush.bf16.msrb.mxu1 %v12220_v57  ;;  %v13096_v60 = vld [vmem:[#allocation20 + $0x65c] sm:$0xf]  ;;  %v13424_v31 = vld [vmem:[#allocation25 + $0x94] sm:$0xf0] }
 0x973   :  { %v7320_v35 = vpop.f32.mrf.mxu3  ;;  %7630 = vmatpush.bf16.msra.mxu0 %v10752_v27  ;;  %v10976_v51 = vor.u32 %v13096_v60, %v10973_v32  ;;  %8779 = vmatpush.bf16.msra.mxu2 %v12276_v18  ;;  %v10941_v27 = vld [vmem:[#allocation20 + $0x638] sm:$0xf0]  ;;  %v16685_v60 = vld [vmem:[#allocation53_spill] sm:$0xff]  ;;  %v16687_v32 = vld [vmem:[#allocation43_spill] sm:$0xff] }
 0x974   :  { %v7321_v59 = vadd.f32 %v7320_v35, %v7292_v3  ;;  %v15931_v38 = vpop.f32.mrf.mxu2  ;;  %v13032_v3 = vld [vmem:[#allocation20 + $0x45c] sm:$0xf] }
 0x975   :  { %v7293_v9 = vpop.f32.mrf.mxu0  ;;  %v10720_v45 = vor.u32 %v13032_v3, %v10717_v8  ;;  %v13088_v35 = vld [vmem:[#allocation20 + $0x61c] sm:$0xf] }
 0x976   :  { %v7294_v14 = vadd.f32 %v7293_v9, %v15861_v29  ;;  %v15934_v53 = vpop.f32.mrf.mxu1  ;;  %7659 = vmatpush.bf16.msra.mxu3 %v11008_v28  ;;  %8750 = vmatpush.bf16.msrb.mxu1 %v12212_v58  ;;  %v7820_v57 = vmax.f32 %v7321_v59, 0.0  ;;  %v12268_v29 = vor.u32 %v13424_v31, %v12267_v48  ;;  %v10944_v9 = vor.u32 %v13088_v35, %v10941_v27  ;;  %v12259_v59 = vld [vmem:[#allocation25 + $0x80] sm:$0xf]  ;;  %v13422_v58 = vld [vmem:[#allocation25 + $0x84] sm:$0xf0] }
 0x977   :  { %7631 = vmatpush.bf16.msra.mxu0 %v10720_v45  ;;  %v12196_v28 = vor.u32 %v13406_v33, %v12195_v44  ;;  %v12260_v3 = vor.u32 %v13422_v58, %v12259_v59  ;;  %v16686_v45 = vld [vmem:[#allocation54_spill] sm:$0xff]  ;;  %v16688_v17 = vld [vmem:[#allocation44_spill] sm:$0xff] }
 0x978   :  { %8780 = vmatpush.bf16.msra.mxu2 %v12268_v29 }
 0x97a   :  { %7660 = vmatpush.bf16.msra.mxu3 %v10976_v51  ;;  %8751 = vmatpush.bf16.msrb.mxu1 %v12204_v47 }
 0x97b   :  { %v7322_v36 = vpop.f32.mrf.mxu3  ;;  %7632 = vmatpush.bf16.msra.mxu0 %v10688_v24 }
 0x97c   :  { %v7323_v13 = vadd.f32 %v7322_v36, %v7294_v14  ;;  %v15936_v43 = vpop.f32.mrf.mxu2  ;;  %v7902_v14 = vadd.f32 %v15916_v25, %v7820_v57  ;;  %8781 = vmatpush.bf16.msra.mxu2 %v12260_v3 }
 0x97d   :  { %v7296_v23 = vpop.f32.mrf.mxu0 }
 0x97e   :  { %v7828_v61 = vmax.f32 %v7323_v13, 0.0  ;;  %v7297_v37 = vadd.f32 %v7296_v23, %v15871_v4  ;;  %v15939_v18 = vpop.f32.mrf.mxu1  ;;  %7661 = vmatpush.bf16.msra.mxu3 %v10944_v9  ;;  %8752 = vmatpush.bf16.msrb.mxu1 %v12196_v28  ;;  %v16689_v23 = vld [vmem:[#allocation51_spill] sm:$0xff]  ;;  %v16691_v9 = vld [vmem:[#allocation45_spill] sm:$0xff]  ;;  %v16692_v28 = vld [vmem:[#allocation46_spill] sm:$0xff] }
 0x980   :  { %v7910_v8 = vadd.f32 %v15916_v25, %v7828_v61  ;;  %7527 = vmatmul.bf16.gmra.mxu0 %v16685_v60  ;;  %7556 = vmatmul.bf16.gmra.mxu3 %v16686_v45 }
 0x981   :  { %7701 = vmatmul.bf16.gmra.mxu1 %v16687_v32  ;;  %7730 = vmatmul.bf16.gmra.mxu2 %v16688_v17 }
 0x982   :  { %v15947_v4 = vpack.c.bf16 %v7910_v8, %v7902_v14 }
 0x983   :  { %v7325_v6 = vpop.f32.mrf.mxu3 }
 0x984   :  { %v7326_v51 = vadd.f32 %v7325_v6, %v7297_v37  ;;  %v15949_v47 = vpop.f32.mrf.mxu2 }
 0x985   :  { %v7298_v48 = vpop.f32.mrf.mxu0 }
 0x986   :  { %v7299_v31 = vadd.f32 %v7298_v48, %v15881_v0  ;;  %v15952_v57 = vpop.f32.mrf.mxu1  ;;  %v7836_v36 = vmax.f32 %v7326_v51, 0.0  ;;  %v16690_v0 = vld [vmem:[#allocation52_spill] sm:$0xff] }
 0x988   :  { %v7918_v44 = vadd.f32 %v15916_v25, %v7836_v36 }
 0x98b   :  { %v7327_v29 = vpop.f32.mrf.mxu3 }
 0x98c   :  { %v7328_v22 = vadd.f32 %v7327_v29, %v7299_v31  ;;  %v15954_v39 = vpop.f32.mrf.mxu2  ;;  %v16693_v29 = vld [vmem:[#allocation74_spill] sm:$0xff] }
 0x98d   :  { %v7301_v35 = vpop.f32.mrf.mxu0  ;;  %v15976_v36 = vperm.slane %v16693_v29, 7  ;;  %v13500_v29 = vld [vmem:[#allocation25 + $0x2f4] sm:$0xf0] }
 0x98e   :  { %v7844_v13 = vmax.f32 %v7328_v22, 0.0  ;;  %v7302_v24 = vadd.f32 %v7301_v35, %v15891_v12  ;;  %v15957_v27 = vpop.f32.mrf.mxu1  ;;  %v13336_v35 = vld [vmem:[#allocation20 + $0xddc] sm:$0xf] }
 0x990   :  { %v7926_v33 = vadd.f32 %v15916_v25, %v7844_v13  ;;  %7532 = vmatmul.bf16.gmra.mxu0 %v16689_v23  ;;  %7561 = vmatmul.bf16.gmra.mxu3 %v16690_v0  ;;  %v11933_v13 = vld [vmem:[#allocation20 + $0xdf8] sm:$0xf0] }
 0x991   :  { %7706 = vmatmul.bf16.gmra.mxu1 %v16691_v9  ;;  %7735 = vmatmul.bf16.gmra.mxu2 %v16692_v28  ;;  %v16695_v9 = vld [vmem:[#allocation49_spill] sm:$0xff]  ;;  %v11936_v28 = vor.u32 %v13336_v35, %v11933_v13  ;;  %v13328_v35 = vld [vmem:[#allocation20 + $0xd9c] sm:$0xf] }
 0x992   :  { %v15965_v59 = vpack.c.bf16 %v7926_v33, %v7918_v44  ;;  %v16694_v33 = vld [vmem:[#allocation48_spill] sm:$0xff] }
 0x993   :  { %v7330_v58 = vpop.f32.mrf.mxu3  ;;  %7741 = vmatpush.bf16.msrb.mxu0 %v11936_v28  ;;  %v11901_v13 = vld [vmem:[#allocation20 + $0xdb8] sm:$0xf0] }
 0x994   :  { %v7331_v61 = vadd.f32 %v7330_v58, %v7302_v24  ;;  %v15967_v37 = vpop.f32.mrf.mxu2  ;;  %v13400_v24 = vld [vmem:[#allocation20 + $0xfdc] sm:$0xf] }
 0x995   :  { %v7303_v12 = vpop.f32.mrf.mxu0  ;;  %v12189_v58 = vld [vmem:[#allocation20 + $0xff8] sm:$0xf0] }
 0x996   :  { %v7304_v3 = vadd.f32 %v7303_v12, %v15903_v42  ;;  %v15970_v14 = vpop.f32.mrf.mxu1  ;;  %v7852_v32 = vmax.f32 %v7331_v61, 0.0  ;;  %v12507_v61 = vld [vmem:[#allocation25 + $0x270] sm:$0xf]  ;;  %v13484_v12 = vld [vmem:[#allocation25 + $0x274] sm:$0xf0] }
 0x998   :  { %v7934_v42 = vadd.f32 %v15916_v25, %v7852_v32 }
 0x99b   :  { %v7332_v8 = vpop.f32.mrf.mxu3 }
 0x99c   :  { %v7333_v17 = vadd.f32 %v7332_v8, %v7304_v3  ;;  %v15972_v6 = vpop.f32.mrf.mxu2  ;;  %v16697_v3 = vld [vmem:[#allocation60_spill] sm:$0xff]  ;;  %v12192_v8 = vor.u32 %v13400_v24, %v12189_v58  ;;  %v12499_v58 = vld [vmem:[#allocation25 + $0x260] sm:$0xf] }
 0x99d   :  { %v7402_v51 = vpop.f32.mrf.mxu0  ;;  %v12157_v24 = vld [vmem:[#allocation20 + $0xfb8] sm:$0xf0] }
 0x99e   :  { %v7860_v48 = vmax.f32 %v7333_v17, 0.0  ;;  %v7403_v31 = vadd.f32 %v7402_v51, %v15826_v62  ;;  %v7576_v22 = vpop.f32.mrf.mxu1  ;;  %v16696_v62 = vld [vmem:[#allocation50_spill] sm:$0xff]  ;;  %v12508_v17 = vor.u32 %v13484_v12, %v12507_v61  ;;  %v12571_v51 = vld [vmem:[#allocation25 + $0x2f0] sm:$0xf]  ;;  %7770 = vmatpush.bf16.msrb.mxu3 %v12192_v8  ;;  %v13482_v61 = vld [vmem:[#allocation25 + $0x264] sm:$0xf0] }
 0x99f   :  { %v12572_v32 = vor.u32 %v13500_v29, %v12571_v51  ;;  %v12563_v51 = vld [vmem:[#allocation25 + $0x2e0] sm:$0xf] }
 0x9a0   :  { %v7942_v44 = vadd.f32 %v15916_v25, %v7860_v48  ;;  %7633 = vmatmul.bf16.vlgmr.msra.gmra.mxu0 %v16694_v33  ;;  %7662 = vmatmul.bf16.vlgmr.msra.gmra.mxu3 %v16695_v9  ;;  %v7577_v25 = vadd.f32 %v7576_v22, %v15976_v36  ;;  %v13392_v33 = vld [vmem:[#allocation20 + $0xf9c] sm:$0xf]  ;;  %v13498_v22 = vld [vmem:[#allocation25 + $0x2e4] sm:$0xf0] }
 0x9a1   :  { %8753 = vmatmul.bf16.vlgmr.msrb.gmra.mxu1 %v16696_v62  ;;  %8782 = vmatmul.bf16.vlgmr.msra.gmra.mxu2 %v16697_v3  ;;  %v11904_v3 = vor.u32 %v13328_v35, %v11901_v13  ;;  %v13384_v35 = vld [vmem:[#allocation20 + $0xf5c] sm:$0xf]  ;;  %v12491_v13 = vld [vmem:[#allocation25 + $0x250] sm:$0xf] }
 0x9a2   :  { %v15984_v26 = vpack.c.bf16 %v7942_v44, %v7934_v42  ;;  %8861 = vmatpush.bf16.msra.mxu1 %v12508_v17  ;;  %8890 = vmatpush.bf16.msrb.mxu2 %v12572_v32  ;;  %v12160_v42 = vor.u32 %v13392_v33, %v12157_v24  ;;  %v12500_v44 = vor.u32 %v13482_v61, %v12499_v58  ;;  %v13320_v32 = vld [vmem:[#allocation20 + $0xd5c] sm:$0xf]  ;;  %v13480_v33 = vld [vmem:[#allocation25 + $0x254] sm:$0xf0] }
 0x9a3   :  { %v7431_v48 = vpop.f32.mrf.mxu3  ;;  %7742 = vmatpush.bf16.msrb.mxu0 %v11904_v3 }
 0x9a4   :  { %16698 = vst [vmem:[#allocation57_spill] sm:$0xff] %v15984_v26  ;;  %v7432_v9 = vadd.f32 %v7431_v48, %v7403_v31  ;;  %v7605_v62 = vpop.f32.mrf.mxu2  ;;  %v12564_v31 = vor.u32 %v13498_v22, %v12563_v51  ;;  %7771 = vmatpush.bf16.msrb.mxu3 %v12160_v42  ;;  %v11869_v48 = vld [vmem:[#allocation20 + $0xd78] sm:$0xf0] }
 0x9a5   :  { %v15987_v12 = vadd.f32 %v7605_v62, %v7577_v25  ;;  %v7404_v28 = vpop.f32.mrf.mxu0  ;;  %v11872_v62 = vor.u32 %v13320_v32, %v11869_v48  ;;  %v12125_v25 = vld [vmem:[#allocation20 + $0xf78] sm:$0xf0]  ;;  %v13478_v48 = vld [vmem:[#allocation25 + $0x244] sm:$0xf0] }
 0x9a6   :  { %v7461_v8 = vadd.f32 %v15898_v54, %v7432_v9  ;;  %v7405_v17 = vadd.f32 %v7404_v28, %v15834_v7  ;;  %v7578_v29 = vpop.f32.mrf.mxu1  ;;  %8862 = vmatpush.bf16.msra.mxu1 %v12500_v44  ;;  %8891 = vmatpush.bf16.msrb.mxu2 %v12564_v31  ;;  %v12128_v58 = vor.u32 %v13384_v35, %v12125_v25  ;;  %v12555_v9 = vld [vmem:[#allocation25 + $0x2d0] sm:$0xf]  ;;  %v13496_v7 = vld [vmem:[#allocation25 + $0x2d4] sm:$0xf0]  ;;  %v13312_v42 = vld [vmem:[#allocation20 + $0xd1c] sm:$0xf] }
 0x9a7   :  { %v12492_v54 = vor.u32 %v13480_v33, %v12491_v13  ;;  %7743 = vmatpush.bf16.msrb.mxu0 %v11872_v62  ;;  %v12556_v3 = vor.u32 %v13496_v7, %v12555_v9  ;;  %v7579_v61 = vadd.f32 %v7578_v29, %v15976_v36  ;;  %v11837_v44 = vld [vmem:[#allocation20 + $0xd38] sm:$0xf0]  ;;  %v12547_v33 = vld [vmem:[#allocation25 + $0x2c0] sm:$0xf]  ;;  %v13494_v29 = vld [vmem:[#allocation25 + $0x2c4] sm:$0xf0] }
 0x9a8   :  { %v15992_v24 = vadd.f32 %v15909_v50, %v7461_v8  ;;  %7772 = vmatpush.bf16.msrb.mxu3 %v12128_v58  ;;  %v13376_v51 = vld [vmem:[#allocation20 + $0xf1c] sm:$0xf]  ;;  %v11840_v32 = vor.u32 %v13312_v42, %v11837_v44  ;;  %v12483_v8 = vld [vmem:[#allocation25 + $0x240] sm:$0xf]  ;;  %v12475_v44 = vld [vmem:[#allocation25 + $0x230] sm:$0xf] }
 0x9a9   :  { %v12093_v50 = vld [vmem:[#allocation20 + $0xf38] sm:$0xf0]  ;;  %v12484_v13 = vor.u32 %v13478_v48, %v12483_v8  ;;  %v13492_v8 = vld [vmem:[#allocation25 + $0x2b4] sm:$0xf0] }
 0x9aa   :  { %8863 = vmatpush.bf16.msra.mxu1 %v12492_v54  ;;  %8892 = vmatpush.bf16.msrb.mxu2 %v12556_v3  ;;  %v12096_v62 = vor.u32 %v13376_v51, %v12093_v50  ;;  %v13304_v7 = vld [vmem:[#allocation20 + $0xcdc] sm:$0xf]  ;;  %v13476_v51 = vld [vmem:[#allocation25 + $0x234] sm:$0xf0]  ;;  %v12539_v50 = vld [vmem:[#allocation25 + $0x2b0] sm:$0xf] }
 0x9ab   :  { %v7433_v28 = vpop.f32.mrf.mxu3  ;;  %7744 = vmatpush.bf16.msrb.mxu0 %v11840_v32  ;;  %v11805_v3 = vld [vmem:[#allocation20 + $0xcf8] sm:$0xf0]  ;;  %v12476_v32 = vor.u32 %v13476_v51, %v12475_v44  ;;  %v12531_v44 = vld [vmem:[#allocation25 + $0x2a0] sm:$0xf]  ;;  %v13490_v51 = vld [vmem:[#allocation25 + $0x2a4] sm:$0xf0] }
 0x9ac   :  { %v7434_v22 = vadd.f32 %v7433_v28, %v7405_v17  ;;  %v7607_v31 = vpop.f32.mrf.mxu2  ;;  %v12548_v17 = vor.u32 %v13494_v29, %v12547_v33  ;;  %7773 = vmatpush.bf16.msrb.mxu3 %v12096_v62  ;;  %v13368_v28 = vld [vmem:[#allocation20 + $0xedc] sm:$0xf] }
 0x9ad   :  { %v15995_v35 = vadd.f32 %v7607_v31, %v7579_v61  ;;  %v7407_v25 = vpop.f32.mrf.mxu0  ;;  %v11808_v61 = vor.u32 %v13304_v7, %v11805_v3  ;;  %v12061_v42 = vld [vmem:[#allocation20 + $0xef8] sm:$0xf0]  ;;  %v12467_v7 = vld [vmem:[#allocation25 + $0x220] sm:$0xf]  ;;  %v13474_v3 = vld [vmem:[#allocation25 + $0x224] sm:$0xf0] }
 0x9ae   :  { %v7463_v58 = vadd.f32 %v15912_v16, %v7434_v22  ;;  %v7408_v54 = vadd.f32 %v7407_v25, %v15846_v21  ;;  %v7581_v9 = vpop.f32.mrf.mxu1  ;;  %8864 = vmatpush.bf16.msra.mxu1 %v12484_v13  ;;  %v16699_v21 = vld [vmem:[#allocation39_spill] sm:$0xff]  ;;  %v16700_v22 = vld [vmem:[#allocation61_spill] sm:$0xff]  ;;  %v12064_v31 = vor.u32 %v13368_v28, %v12061_v42  ;;  %8893 = vmatpush.bf16.msrb.mxu2 %v12548_v17  ;;  %v13296_v25 = vld [vmem:[#allocation20 + $0xc9c] sm:$0xf] }
 0x9af   :  { %7745 = vmatpush.bf16.msrb.mxu0 %v11808_v61  ;;  %v11773_v62 = vld [vmem:[#allocation20 + $0xcb8] sm:$0xf0]  ;;  %v12468_v61 = vor.u32 %v13474_v3, %v12467_v7 }
 0x9b0   :  { %7638 = vmatmul.bf16.gmra.mxu0 %v14909_v11  ;;  %7667 = vmatmul.bf16.gmra.mxu3 %v14911_v15  ;;  %v16002_v16 = vadd.f32 %v15918_v41, %v7463_v58  ;;  %v12540_v11 = vor.u32 %v13492_v8, %v12539_v50  ;;  %v7582_v15 = vadd.f32 %v7581_v9, %v15976_v36  ;;  %v13360_v41 = vld [vmem:[#allocation20 + $0xe9c] sm:$0xf] }
 0x9b1   :  { %8758 = vmatmul.bf16.gmra.mxu1 %v16699_v21  ;;  %8787 = vmatmul.bf16.gmra.mxu2 %v16700_v22  ;;  %v11776_v29 = vor.u32 %v13296_v25, %v11773_v62  ;;  %v12029_v58 = vld [vmem:[#allocation20 + $0xeb8] sm:$0xf0]  ;;  %v12459_v62 = vld [vmem:[#allocation25 + $0x210] sm:$0xf] }
 0x9b2   :  { %7774 = vmatpush.bf16.msrb.mxu3 %v12064_v31  ;;  %8865 = vmatpush.bf16.msra.mxu1 %v12476_v32  ;;  %v12032_v17 = vor.u32 %v13360_v41, %v12029_v58  ;;  %v13288_v50 = vld [vmem:[#allocation20 + $0xc5c] sm:$0xf]  ;;  %v13472_v41 = vld [vmem:[#allocation25 + $0x214] sm:$0xf0] }
 0x9b3   :  { %v7436_v48 = vpop.f32.mrf.mxu3  ;;  %8894 = vmatpush.bf16.msrb.mxu2 %v12540_v11  ;;  %7746 = vmatpush.bf16.msrb.mxu0 %v11776_v29  ;;  %v11741_v8 = vld [vmem:[#allocation20 + $0xc78] sm:$0xf0] }
 0x9b4   :  { %v7437_v13 = vadd.f32 %v7436_v48, %v7408_v54  ;;  %v7610_v33 = vpop.f32.mrf.mxu2  ;;  %v12532_v54 = vor.u32 %v13490_v51, %v12531_v44  ;;  %v13352_v48 = vld [vmem:[#allocation20 + $0xe5c] sm:$0xf] }
 0x9b5   :  { %v16007_v28 = vadd.f32 %v7610_v33, %v7582_v15  ;;  %v7409_v42 = vpop.f32.mrf.mxu0  ;;  %v11744_v15 = vor.u32 %v13288_v50, %v11741_v8  ;;  %v11997_v25 = vld [vmem:[#allocation20 + $0xe78] sm:$0xf0]  ;;  %v13470_v50 = vld [vmem:[#allocation25 + $0x204] sm:$0xf0] }
 0x9b6   :  { %v7466_v9 = vadd.f32 %v15921_v63, %v7437_v13  ;;  %v7410_v31 = vadd.f32 %v7409_v42, %v15854_v46  ;;  %v7583_v32 = vpop.f32.mrf.mxu1  ;;  %7775 = vmatpush.bf16.msrb.mxu3 %v12032_v17  ;;  %8866 = vmatpush.bf16.msra.mxu1 %v12468_v61  ;;  %v12000_v58 = vor.u32 %v13352_v48, %v11997_v25  ;;  %v12523_v13 = vld [vmem:[#allocation25 + $0x290] sm:$0xf]  ;;  %v13488_v46 = vld [vmem:[#allocation25 + $0x294] sm:$0xf0]  ;;  %v13280_v3 = vld [vmem:[#allocation20 + $0xc1c] sm:$0xf] }
 0x9b7   :  { %v12460_v63 = vor.u32 %v13472_v41, %v12459_v62  ;;  %8895 = vmatpush.bf16.msrb.mxu2 %v12532_v54  ;;  %7747 = vmatpush.bf16.msrb.mxu0 %v11744_v15  ;;  %v12524_v11 = vor.u32 %v13488_v46, %v12523_v13  ;;  %v7584_v29 = vadd.f32 %v7583_v32, %v15976_v36  ;;  %v11709_v42 = vld [vmem:[#allocation20 + $0xc38] sm:$0xf0]  ;;  %v12515_v25 = vld [vmem:[#allocation25 + $0x280] sm:$0xf]  ;;  %v13486_v62 = vld [vmem:[#allocation25 + $0x284] sm:$0xf0] }
 0x9b8   :  { %v16012_v33 = vadd.f32 %v15931_v38, %v7466_v9  ;;  %v13344_v17 = vld [vmem:[#allocation20 + $0xe1c] sm:$0xf]  ;;  %v11712_v51 = vor.u32 %v13280_v3, %v11709_v42  ;;  %v12451_v9 = vld [vmem:[#allocation25 + $0x200] sm:$0xf] }
 0x9b9   :  { %v11965_v38 = vld [vmem:[#allocation20 + $0xe38] sm:$0xf0]  ;;  %v12452_v15 = vor.u32 %v13470_v50, %v12451_v9  ;;  %v16702_v46 = vld [vmem:[#allocation62_spill] sm:$0xff] }
 0x9ba   :  { %7776 = vmatpush.bf16.msrb.mxu3 %v12000_v58  ;;  %8867 = vmatpush.bf16.msra.mxu1 %v12460_v63  ;;  %v11968_v54 = vor.u32 %v13344_v17, %v11965_v38  ;;  %v16701_v13 = vld [vmem:[#allocation40_spill] sm:$0xff] }
 0x9bb   :  { %v7438_v7 = vpop.f32.mrf.mxu3  ;;  %8896 = vmatpush.bf16.msrb.mxu2 %v12524_v11  ;;  %7748 = vmatpush.bf16.msrb.mxu0 %v11712_v51 }
 0x9bc   :  { %v7439_v61 = vadd.f32 %v7438_v7, %v7410_v31  ;;  %v7612_v44 = vpop.f32.mrf.mxu2  ;;  %v12516_v31 = vor.u32 %v13486_v62, %v12515_v25 }
 0x9bd   :  { %v16015_v8 = vadd.f32 %v7612_v44, %v7584_v29  ;;  %v7412_v48 = vpop.f32.mrf.mxu0 }
 0x9be   :  { %v7468_v32 = vadd.f32 %v15934_v53, %v7439_v61  ;;  %v7413_v41 = vadd.f32 %v7412_v48, %v15866_v30  ;;  %v7586_v58 = vpop.f32.mrf.mxu1  ;;  %7777 = vmatpush.bf16.msrb.mxu3 %v11968_v54  ;;  %8868 = vmatpush.bf16.msra.mxu1 %v12452_v15 }
 0x9bf   :  { %8897 = vmatpush.bf16.msrb.mxu2 %v12516_v31  ;;  %v7587_v30 = vadd.f32 %v7586_v58, %v15976_v36 }
 0x9c0   :  { %7643 = vmatmul.bf16.gmra.mxu0 %v14924_v34  ;;  %7672 = vmatmul.bf16.gmra.mxu3 %v14926_v52  ;;  %v16022_v63 = vadd.f32 %v15936_v43, %v7468_v32 }
 0x9c1   :  { %8763 = vmatmul.bf16.gmra.mxu1 %v16701_v13  ;;  %8792 = vmatmul.bf16.gmra.mxu2 %v16702_v46 }
 0x9c3   :  { %v7441_v53 = vpop.f32.mrf.mxu3 }
 0x9c4   :  { %v7442_v11 = vadd.f32 %v7441_v53, %v7413_v41  ;;  %v7615_v29 = vpop.f32.mrf.mxu2 }
 0x9c5   :  { %v16027_v7 = vadd.f32 %v7615_v29, %v7587_v30  ;;  %v7414_v3 = vpop.f32.mrf.mxu0 }
 0x9c6   :  { %v7471_v34 = vadd.f32 %v15939_v18, %v7442_v11  ;;  %v7415_v52 = vadd.f32 %v7414_v3, %v15874_v40  ;;  %v7588_v42 = vpop.f32.mrf.mxu1  ;;  %v16703_v18 = vld [vmem:[#allocation59_spill] sm:$0xff] }
 0x9c7   :  { %v7589_v17 = vadd.f32 %v7588_v42, %v15976_v36  ;;  %v12443_v42 = vld [vmem:[#allocation25 + $0x1f0] sm:$0xf] }
 0x9c8   :  { %v16032_v43 = vadd.f32 %v15949_v47, %v7471_v34  ;;  %v16704_v47 = vld [vmem:[#allocation58_spill] sm:$0xff] }
 0x9cb   :  { %v7443_v61 = vpop.f32.mrf.mxu3 }
 0x9cc   :  { %v7444_v44 = vadd.f32 %v7443_v61, %v7415_v52  ;;  %v7617_v51 = vpop.f32.mrf.mxu2  ;;  %v12253_v61 = vld [vmem:[#allocation25 + $0x78] sm:$0xf0] }
 0x9cd   :  { %v16035_v38 = vadd.f32 %v7617_v51, %v7589_v17  ;;  %v7417_v9 = vpop.f32.mrf.mxu0  ;;  %v13419_v17 = vld [vmem:[#allocation25 + $0x74] sm:$0xf]  ;;  %v16705_v51 = vld [vmem:[#allocation71_spill] sm:$0xff] }
 0x9ce   :  { %v7473_v50 = vadd.f32 %v15952_v57, %v7444_v44  ;;  %v7418_v48 = vadd.f32 %v7417_v9, %v15886_v19  ;;  %v7591_v54 = vpop.f32.mrf.mxu1  ;;  %v13435_v9 = vld [vmem:[#allocation25 + $0xf4] sm:$0xf] }
 0x9cf   :  { %v7592_v15 = vadd.f32 %v7591_v54, %v15976_v36  ;;  %v13450_v54 = vld [vmem:[#allocation25 + $0x164] sm:$0xf0] }
 0x9d0   :  { %7648 = vmatmul.bf16.gmra.mxu0 %v14938_v2  ;;  %7677 = vmatmul.bf16.gmra.mxu3 %v14940_v10  ;;  %v16042_v40 = vadd.f32 %v15954_v39, %v7473_v50  ;;  %v12317_v50 = vld [vmem:[#allocation25 + $0xf8] sm:$0xf0] }
 0x9d1   :  { %8768 = vmatmul.bf16.gmra.mxu1 %v16703_v18  ;;  %8797 = vmatmul.bf16.gmra.mxu2 %v16704_v47 }
 0x9d3   :  { %v7446_v25 = vpop.f32.mrf.mxu3 }
 0x9d4   :  { %v7447_v62 = vadd.f32 %v7446_v25, %v7418_v48  ;;  %v7620_v32 = vpop.f32.mrf.mxu2  ;;  %v12320_v48 = vor.u32 %v13435_v9, %v12317_v50  ;;  %v12301_v9 = vld [vmem:[#allocation25 + $0xd8] sm:$0xf0] }
 0x9d5   :  { %v16047_v57 = vadd.f32 %v7620_v32, %v7592_v15  ;;  %v7419_v19 = vpop.f32.mrf.mxu0  ;;  %v12435_v15 = vld [vmem:[#allocation25 + $0x1e0] sm:$0xf]  ;;  %v13466_v32 = vld [vmem:[#allocation25 + $0x1e4] sm:$0xf0]  ;;  %v16076_v50 = vld [vmem:[#allocation23] sm:$0xff] }
 0x9d6   :  { %v7476_v41 = vadd.f32 %v15957_v27, %v7447_v62  ;;  %v7420_v2 = vadd.f32 %v7419_v19, %v15894_v55  ;;  %v7593_v10 = vpop.f32.mrf.mxu1  ;;  %v12379_v27 = vld [vmem:[#allocation25 + $0x170] sm:$0xf]  ;;  %v13452_v55 = vld [vmem:[#allocation25 + $0x174] sm:$0xf0]  ;;  %9006 = vmatpush.bf16.msra.mxu2 %v12320_v48  ;;  %v13417_v19 = vld [vmem:[#allocation25 + $0x64] sm:$0xf] }
 0x9d7   :  { %v7594_v58 = vadd.f32 %v7593_v10, %v15976_v36  ;;  %v13468_v36 = vld [vmem:[#allocation25 + $0x1f4] sm:$0xf0]  ;;  %v12436_v10 = vor.u32 %v13466_v32, %v12435_v15  ;;  %v16079_v48 = vperm.slane %v16076_v50, 6  ;;  %v13446_v15 = vld [vmem:[#allocation25 + $0x144] sm:$0xf0] }
 0x9d8   :  { %v16052_v39 = vadd.f32 %v15967_v37, %v7476_v41  ;;  %v12380_v37 = vor.u32 %v13452_v55, %v12379_v27  ;;  %v12245_v41 = vld [vmem:[#allocation25 + $0x68] sm:$0xf0]  ;;  %v13448_v27 = vld [vmem:[#allocation25 + $0x154] sm:$0xf0]  ;;  %v12427_v55 = vld [vmem:[#allocation25 + $0x1d0] sm:$0xf] }
 0x9da   :  { %8803 = vmatpush.bf16.msra.mxu0 %v12380_v37  ;;  %v13464_v37 = vld [vmem:[#allocation25 + $0x1d4] sm:$0xf0] }
 0x9db   :  { %v7448_v31 = vpop.f32.mrf.mxu3 }
 0x9dc   :  { %v7449_v30 = vadd.f32 %v7448_v31, %v7420_v2  ;;  %v7622_v53 = vpop.f32.mrf.mxu2  ;;  %v13433_v31 = vld [vmem:[#allocation25 + $0xe4] sm:$0xf] }
 0x9dd   :  { %v16055_v11 = vadd.f32 %v7622_v53, %v7594_v58  ;;  %v7518_v29 = vpop.f32.mrf.mxu0  ;;  %v12248_v58 = vor.u32 %v13417_v19, %v12245_v41 }
 0x9de   :  { %v7478_v3 = vadd.f32 %v15970_v14, %v7449_v30  ;;  %v7519_v34 = vadd.f32 %v7518_v29, %v15992_v24  ;;  %v16059_v52 = vpop.f32.mrf.mxu1  ;;  %v12444_v14 = vor.u32 %v13468_v36, %v12443_v42  ;;  %v12256_v24 = vor.u32 %v13419_v17, %v12253_v61  ;;  %v12309_v30 = vld [vmem:[#allocation25 + $0xe8] sm:$0xf0]  ;;  %v13415_v36 = vld [vmem:[#allocation25 + $0x54] sm:$0xf]  ;;  %v12237_v17 = vld [vmem:[#allocation25 + $0x58] sm:$0xf0] }
 0x9df   :  { %v12428_v61 = vor.u32 %v13464_v37, %v12427_v55 }
 0x9e0   :  { %7749 = vmatmul.bf16.vlgmr.msrb.gmra.mxu0 %v14834_v49  ;;  %7778 = vmatmul.bf16.vlgmr.msrb.gmra.mxu3 %v14836_v20  ;;  %v16064_v44 = vadd.f32 %v15972_v6, %v7478_v3  ;;  %v12371_v20 = vld [vmem:[#allocation25 + $0x160] sm:$0xf]  ;;  %v12312_v3 = vor.u32 %v13433_v31, %v12309_v30 }
 0x9e1   :  { %8869 = vmatmul.bf16.vlgmr.msra.gmra.mxu1 %v16705_v51  ;;  %8898 = vmatmul.bf16.vlgmr.msrb.gmra.mxu2 %v15929_v5  ;;  %v12372_v62 = vor.u32 %v13450_v54, %v12371_v20  ;;  %v12355_v54 = vld [vmem:[#allocation25 + $0x140] sm:$0xf] }
 0x9e2   :  { %8832 = vmatpush.bf16.msra.mxu3 %v12444_v14  ;;  %8977 = vmatpush.bf16.msrb.mxu1 %v12256_v24  ;;  %v12240_v14 = vor.u32 %v13415_v36, %v12237_v17  ;;  %v13431_v24 = vld [vmem:[#allocation25 + $0xd4] sm:$0xf]  ;;  %v12356_v41 = vor.u32 %v13446_v15, %v12355_v54  ;;  %v13444_v36 = vld [vmem:[#allocation25 + $0x134] sm:$0xf0]  ;;  %v12411_v17 = vld [vmem:[#allocation25 + $0x1b0] sm:$0xf] }
 0x9e3   :  { %v7547_v49 = vpop.f32.mrf.mxu3  ;;  %8804 = vmatpush.bf16.msra.mxu0 %v12372_v62  ;;  %9007 = vmatpush.bf16.msra.mxu2 %v12312_v3  ;;  %v12419_v62 = vld [vmem:[#allocation25 + $0x1c0] sm:$0xf]  ;;  %v13429_v3 = vld [vmem:[#allocation25 + $0xc4] sm:$0xf] }
 0x9e4   :  { %v16068_v25 = vadd.f32 %v7547_v49, %v7519_v34  ;;  %v16070_v6 = vpop.f32.mrf.mxu2  ;;  %v12363_v34 = vld [vmem:[#allocation25 + $0x150] sm:$0xf]  ;;  %v12304_v49 = vor.u32 %v13431_v24, %v12301_v9  ;;  %v13460_v9 = vld [vmem:[#allocation25 + $0x1b4] sm:$0xf0] }
 0x9e5   :  { %v7520_v2 = vpop.f32.mrf.mxu0  ;;  %v12364_v42 = vor.u32 %v13448_v27, %v12363_v34  ;;  %v12293_v34 = vld [vmem:[#allocation25 + $0xc8] sm:$0xf0]  ;;  %v12412_v54 = vor.u32 %v13460_v9, %v12411_v17  ;;  %v13425_v17 = vld [vmem:[#allocation25 + $0xa4] sm:$0xf]  ;;  %v13440_v9 = vld [vmem:[#allocation25 + $0x114] sm:$0xf0] }
 0x9e6   :  { %v7521_v53 = vadd.f32 %v7520_v2, %v16002_v16  ;;  %v16073_v29 = vpop.f32.mrf.mxu1  ;;  %8833 = vmatpush.bf16.msra.mxu3 %v12436_v10  ;;  %8978 = vmatpush.bf16.msrb.mxu1 %v12248_v58  ;;  %v7805_v16 = vmax.f32 %v16068_v25, 0.0  ;;  %v13462_v2 = vld [vmem:[#allocation25 + $0x1c4] sm:$0xf0]  ;;  %v13413_v25 = vld [vmem:[#allocation25 + $0x44] sm:$0xf]  ;;  %v12296_v37 = vor.u32 %v13429_v3, %v12293_v34 }
 0x9e7   :  { %8805 = vmatpush.bf16.msra.mxu0 %v12364_v42  ;;  %9008 = vmatpush.bf16.msra.mxu2 %v12304_v49  ;;  %v12229_v10 = vld [vmem:[#allocation25 + $0x48] sm:$0xf0]  ;;  %v12420_v31 = vor.u32 %v13462_v2, %v12419_v62  ;;  %v12221_v49 = vld [vmem:[#allocation25 + $0x38] sm:$0xf0]  ;;  %v13427_v62 = vld [vmem:[#allocation25 + $0xb4] sm:$0xf] }
 0x9e8   :  { %v12232_v30 = vor.u32 %v13413_v25, %v12229_v10  ;;  %v13442_v2 = vld [vmem:[#allocation25 + $0x124] sm:$0xf0]  ;;  %v12403_v25 = vld [vmem:[#allocation25 + $0x1a0] sm:$0xf]  ;;  %v13409_v3 = vld [vmem:[#allocation25 + $0x24] sm:$0xf] }
 0x9e9   :  { %v12213_v34 = vld [vmem:[#allocation25 + $0x28] sm:$0xf0] }
 0x9ea   :  { %8834 = vmatpush.bf16.msra.mxu3 %v12428_v61  ;;  %8979 = vmatpush.bf16.msrb.mxu1 %v12240_v14  ;;  %v7887_v61 = vadd.f32 %v16079_v48, %v7805_v16 }
 0x9eb   :  { %v7549_v20 = vpop.f32.mrf.mxu3  ;;  %8806 = vmatpush.bf16.msra.mxu0 %v12356_v41  ;;  %9009 = vmatpush.bf16.msra.mxu2 %v12296_v37  ;;  %v12277_v37 = vld [vmem:[#allocation25 + $0xa8] sm:$0xf0] }
 0x9ec   :  { %v7550_v32 = vadd.f32 %v7549_v20, %v7521_v53  ;;  %v16081_v19 = vpop.f32.mrf.mxu2  ;;  %v12347_v53 = vld [vmem:[#allocation25 + $0x130] sm:$0xf] }
 0x9ed   :  { %v7523_v58 = vpop.f32.mrf.mxu0  ;;  %v12348_v24 = vor.u32 %v13444_v36, %v12347_v53  ;;  %v16706_v20 = vld [vmem:[#allocation72_spill] sm:$0xff]  ;;  %v12216_v36 = vor.u32 %v13409_v3, %v12213_v34  ;;  %v12387_v3 = vld [vmem:[#allocation25 + $0x180] sm:$0xf] }
 0x9ee   :  { %v7813_v27 = vmax.f32 %v7550_v32, 0.0  ;;  %v7524_v55 = vadd.f32 %v7523_v58, %v16012_v33  ;;  %v16084_v42 = vpop.f32.mrf.mxu1  ;;  %8835 = vmatpush.bf16.msra.mxu3 %v12420_v31  ;;  %8980 = vmatpush.bf16.msrb.mxu1 %v12232_v30  ;;  %v13411_v33 = vld [vmem:[#allocation25 + $0x34] sm:$0xf]  ;;  %v12285_v32 = vld [vmem:[#allocation25 + $0xb8] sm:$0xf0] }
 0x9ef   :  { %v12224_v15 = vor.u32 %v13411_v33, %v12221_v49  ;;  %8807 = vmatpush.bf16.msra.mxu0 %v12348_v24  ;;  %v12288_v16 = vor.u32 %v13427_v62, %v12285_v32  ;;  %v13458_v30 = vld [vmem:[#allocation25 + $0x1a4] sm:$0xf0]  ;;  %v12280_v24 = vor.u32 %v13425_v17, %v12277_v37  ;;  %v12395_v33 = vld [vmem:[#allocation25 + $0x190] sm:$0xf]  ;;  %v12205_v62 = vld [vmem:[#allocation25 + $0x18] sm:$0xf0] }
 0x9f0   :  { %v7895_v14 = vadd.f32 %v16079_v48, %v7813_v27  ;;  %7754 = vmatmul.bf16.gmra.mxu0 %v16681_v56  ;;  %7783 = vmatmul.bf16.gmra.mxu3 %v16682_v1  ;;  %v12339_v1 = vld [vmem:[#allocation25 + $0x120] sm:$0xf]  ;;  %v12404_v53 = vor.u32 %v13458_v30, %v12403_v25  ;;  %v13438_v30 = vld [vmem:[#allocation25 + $0x104] sm:$0xf0]  ;;  %v13405_v17 = vld [vmem:[#allocation25 + $0x4] sm:$0xf] }
 0x9f1   :  { %8874 = vmatmul.bf16.gmra.mxu1 %v16706_v20  ;;  %8903 = vmatmul.bf16.gmra.mxu2 %v15947_v4  ;;  %v12340_v31 = vor.u32 %v13442_v2, %v12339_v1  ;;  %v13423_v1 = vld [vmem:[#allocation25 + $0x94] sm:$0xf]  ;;  %v12269_v2 = vld [vmem:[#allocation25 + $0x98] sm:$0xf0]  ;;  %v12197_v37 = vld [vmem:[#allocation25 + $0x8] sm:$0xf0] }
 0x9f2   :  { %v16092_v41 = vpack.c.bf16 %v7895_v14, %v7887_v61  ;;  %8836 = vmatpush.bf16.msra.mxu3 %v12412_v54  ;;  %8981 = vmatpush.bf16.msrb.mxu1 %v12224_v15  ;;  %v13456_v54 = vld [vmem:[#allocation25 + $0x194] sm:$0xf0]  ;;  %v13407_v15 = vld [vmem:[#allocation25 + $0x14] sm:$0xf] }
 0x9f3   :  { %v7552_v56 = vpop.f32.mrf.mxu3  ;;  %9010 = vmatpush.bf16.msra.mxu2 %v12288_v16  ;;  %8808 = vmatpush.bf16.msra.mxu0 %v12340_v31  ;;  %v12396_v32 = vor.u32 %v13456_v54, %v12395_v33  ;;  %v12323_v31 = vld [vmem:[#allocation25 + $0x100] sm:$0xf]  ;;  %v12200_v33 = vor.u32 %v13405_v17, %v12197_v37 }
 0x9f4   :  { %v7553_v10 = vadd.f32 %v7552_v56, %v7524_v55  ;;  %v16094_v58 = vpop.f32.mrf.mxu2  ;;  %v12331_v55 = vld [vmem:[#allocation25 + $0x110] sm:$0xf]  ;;  %v12208_v56 = vor.u32 %v13407_v15, %v12205_v62 }
 0x9f5   :  { %v7525_v27 = vpop.f32.mrf.mxu0  ;;  %v12332_v49 = vor.u32 %v13440_v9, %v12331_v55 }
 0x9f6   :  { %v7526_v61 = vadd.f32 %v7525_v27, %v16022_v63  ;;  %v16097_v14 = vpop.f32.mrf.mxu1  ;;  %8837 = vmatpush.bf16.msra.mxu3 %v12404_v53  ;;  %8982 = vmatpush.bf16.msrb.mxu1 %v12216_v36  ;;  %v7821_v25 = vmax.f32 %v7553_v10, 0.0  ;;  %v12272_v63 = vor.u32 %v13423_v1, %v12269_v2  ;;  %v12324_v53 = vor.u32 %v13438_v30, %v12323_v31  ;;  %v13454_v36 = vld [vmem:[#allocation25 + $0x184] sm:$0xf0]  ;;  %v13421_v10 = vld [vmem:[#allocation25 + $0x84] sm:$0xf] }
 0x9f7   :  { %9011 = vmatpush.bf16.msra.mxu2 %v12280_v24  ;;  %8809 = vmatpush.bf16.msra.mxu0 %v12332_v49  ;;  %v12388_v9 = vor.u32 %v13454_v36, %v12387_v3  ;;  %v12261_v24 = vld [vmem:[#allocation25 + $0x88] sm:$0xf0] }
 0x9f8   :  { %v12264_v62 = vor.u32 %v13421_v10, %v12261_v24 }
 0x9fa   :  { %8838 = vmatpush.bf16.msra.mxu3 %v12396_v32  ;;  %8983 = vmatpush.bf16.msrb.mxu1 %v12208_v56  ;;  %v16707_v56 = vld [vmem:[#allocation73_spill] sm:$0xff] }
 0x9fb   :  { %v7554_v16 = vpop.f32.mrf.mxu3  ;;  %9012 = vmatpush.bf16.msra.mxu2 %v12272_v63  ;;  %8810 = vmatpush.bf16.msra.mxu0 %v12324_v53 }
 0x9fc   :  { %v7555_v34 = vadd.f32 %v7554_v16, %v7526_v61  ;;  %v16099_v27 = vpop.f32.mrf.mxu2  ;;  %v7903_v61 = vadd.f32 %v16079_v48, %v7821_v25 }
 0x9fd   :  { %v7528_v55 = vpop.f32.mrf.mxu0 }
 0x9fe   :  { %v7829_v49 = vmax.f32 %v7555_v34, 0.0  ;;  %v7529_v54 = vadd.f32 %v7528_v55, %v16032_v43  ;;  %v16102_v15 = vpop.f32.mrf.mxu1  ;;  %8839 = vmatpush.bf16.msra.mxu3 %v12388_v9  ;;  %8984 = vmatpush.bf16.msrb.mxu1 %v12200_v33 }
 0x9ff   :  { %9013 = vmatpush.bf16.msra.mxu2 %v12264_v62 }
 0xa00   :  { %v7911_v32 = vadd.f32 %v16079_v48, %v7829_v49  ;;  %7759 = vmatmul.bf16.gmra.mxu0 %v16685_v60  ;;  %7788 = vmatmul.bf16.gmra.mxu3 %v16686_v45 }
 0xa01   :  { %8879 = vmatmul.bf16.gmra.mxu1 %v16707_v56  ;;  %8908 = vmatmul.bf16.gmra.mxu2 %v15965_v59 }
 0xa02   :  { %v16110_v43 = vpack.c.bf16 %v7911_v32, %v7903_v61 }
 0xa03   :  { %v7557_v1 = vpop.f32.mrf.mxu3 }
 0xa04   :  { %v7558_v2 = vadd.f32 %v7557_v1, %v7529_v54  ;;  %v16112_v63 = vpop.f32.mrf.mxu2 }
 0xa05   :  { %v7530_v16 = vpop.f32.mrf.mxu0 }
 0xa06   :  { %v7531_v25 = vadd.f32 %v7530_v16, %v16042_v40  ;;  %v16115_v31 = vpop.f32.mrf.mxu1  ;;  %v7837_v60 = vmax.f32 %v7558_v2, 0.0  ;;  %v16708_v40 = vld [vmem:[#allocation47_spill] sm:$0xff] }
 0xa08   :  { %v7919_v37 = vadd.f32 %v16079_v48, %v7837_v60  ;;  %v13483_v60 = vld [vmem:[#allocation25 + $0x274] sm:$0xf] }
 0xa0b   :  { %v7559_v30 = vpop.f32.mrf.mxu3 }
 0xa0c   :  { %v7560_v3 = vadd.f32 %v7559_v30, %v7531_v25  ;;  %v16117_v45 = vpop.f32.mrf.mxu2  ;;  %v12635_v25 = vld [vmem:[#allocation25 + $0x370] sm:$0xf]  ;;  %v13516_v30 = vld [vmem:[#allocation25 + $0x374] sm:$0xf0] }
 0xa0d   :  { %v7533_v34 = vpop.f32.mrf.mxu0 }
 0xa0e   :  { %v7845_v53 = vmax.f32 %v7560_v3, 0.0  ;;  %v7534_v36 = vadd.f32 %v7533_v34, %v16052_v39  ;;  %v16120_v17 = vpop.f32.mrf.mxu1 }
 0xa10   :  { %v7927_v55 = vadd.f32 %v16079_v48, %v7845_v53  ;;  %7764 = vmatmul.bf16.gmra.mxu0 %v16689_v23  ;;  %7793 = vmatmul.bf16.gmra.mxu3 %v16690_v0  ;;  %v16710_v53 = vld [vmem:[#allocation68_spill] sm:$0xff] }
 0xa11   :  { %8884 = vmatmul.bf16.gmra.mxu1 %v16708_v40  ;;  %8913 = vmatmul.bf16.gmra.mxu2 %v15984_v26  ;;  %v12565_v26 = vld [vmem:[#allocation25 + $0x2e8] sm:$0xf0] }
 0xa12   :  { %v16128_v9 = vpack.c.bf16 %v7927_v55, %v7919_v37  ;;  %v12509_v37 = vld [vmem:[#allocation25 + $0x278] sm:$0xf0]  ;;  %v13499_v55 = vld [vmem:[#allocation25 + $0x2f4] sm:$0xf] }
 0xa13   :  { %v7562_v33 = vpop.f32.mrf.mxu3 }
 0xa14   :  { %v7563_v10 = vadd.f32 %v7562_v33, %v7534_v36  ;;  %v16130_v24 = vpop.f32.mrf.mxu2  ;;  %v12636_v36 = vor.u32 %v13516_v30, %v12635_v25  ;;  %v12573_v33 = vld [vmem:[#allocation25 + $0x2f8] sm:$0xf0] }
 0xa15   :  { %v7535_v39 = vpop.f32.mrf.mxu0 }
 0xa16   :  { %v7536_v49 = vadd.f32 %v7535_v39, %v16064_v44  ;;  %v16133_v54 = vpop.f32.mrf.mxu1  ;;  %v7853_v61 = vmax.f32 %v7563_v10, 0.0  ;;  %v16709_v44 = vld [vmem:[#allocation63_spill] sm:$0xff]  ;;  %v16711_v10 = vld [vmem:[#allocation50_spill] sm:$0xff]  ;;  %v16712_v39 = vld [vmem:[#allocation60_spill] sm:$0xff]  ;;  %8919 = vmatpush.bf16.msrb.mxu0 %v12636_v36 }
 0xa17   :  { %v12619_v36 = vld [vmem:[#allocation25 + $0x350] sm:$0xf] }
 0xa18   :  { %v7935_v3 = vadd.f32 %v16079_v48, %v7853_v61 }
 0xa1b   :  { %v7564_v62 = vpop.f32.mrf.mxu3 }
 0xa1c   :  { %v7565_v23 = vadd.f32 %v7564_v62, %v7536_v49  ;;  %v16135_v32 = vpop.f32.mrf.mxu2  ;;  %v12576_v49 = vor.u32 %v13499_v55, %v12573_v33  ;;  %v13512_v55 = vld [vmem:[#allocation25 + $0x354] sm:$0xf0]  ;;  %v13479_v33 = vld [vmem:[#allocation25 + $0x254] sm:$0xf] }
 0xa1d   :  { %v7634_v0 = vpop.f32.mrf.mxu0 }
 0xa1e   :  { %v7861_v1 = vmax.f32 %v7565_v23, 0.0  ;;  %v7635_v2 = vadd.f32 %v7634_v0, %v15987_v12  ;;  %v8754_v16 = vpop.f32.mrf.mxu1  ;;  %v12512_v12 = vor.u32 %v13483_v60, %v12509_v37  ;;  %9122 = vmatpush.bf16.msrb.mxu2 %v12576_v49  ;;  %v13514_v23 = vld [vmem:[#allocation25 + $0x364] sm:$0xf0]  ;;  %v13481_v0 = vld [vmem:[#allocation25 + $0x264] sm:$0xf] }
 0xa1f   :  { %v13495_v49 = vld [vmem:[#allocation25 + $0x2d4] sm:$0xf] }
 0xa20   :  { %v7943_v34 = vadd.f32 %v16079_v48, %v7861_v1  ;;  %8811 = vmatmul.bf16.vlgmr.msra.gmra.mxu0 %v16709_v44  ;;  %8840 = vmatmul.bf16.vlgmr.msra.gmra.mxu3 %v16710_v53  ;;  %v12627_v48 = vld [vmem:[#allocation25 + $0x360] sm:$0xf]  ;;  %v12501_v53 = vld [vmem:[#allocation25 + $0x268] sm:$0xf0]  ;;  %v13497_v44 = vld [vmem:[#allocation25 + $0x2e4] sm:$0xf] }
 0xa21   :  { %8985 = vmatmul.bf16.vlgmr.msrb.gmra.mxu1 %v16711_v10  ;;  %9014 = vmatmul.bf16.vlgmr.msra.gmra.mxu2 %v16712_v39  ;;  %v12628_v30 = vor.u32 %v13514_v23, %v12627_v48  ;;  %v12504_v60 = vor.u32 %v13481_v0, %v12501_v53  ;;  %v12568_v37 = vor.u32 %v13497_v44, %v12565_v26  ;;  %v12611_v44 = vld [vmem:[#allocation25 + $0x340] sm:$0xf]  ;;  %v13510_v53 = vld [vmem:[#allocation25 + $0x344] sm:$0xf0]  ;;  %v13477_v0 = vld [vmem:[#allocation25 + $0x244] sm:$0xf] }
 0xa22   :  { %v16144_v62 = vpack.c.bf16 %v7943_v34, %v7935_v3  ;;  %9093 = vmatpush.bf16.msra.mxu1 %v12512_v12  ;;  %v12493_v12 = vld [vmem:[#allocation25 + $0x258] sm:$0xf0] }
 0xa23   :  { %v7663_v61 = vpop.f32.mrf.mxu3  ;;  %8920 = vmatpush.bf16.msrb.mxu0 %v12628_v30  ;;  %9123 = vmatpush.bf16.msrb.mxu2 %v12568_v37  ;;  %v12496_v48 = vor.u32 %v13479_v33, %v12493_v12  ;;  %v12612_v30 = vor.u32 %v13510_v53, %v12611_v44  ;;  %v13493_v37 = vld [vmem:[#allocation25 + $0x2c4] sm:$0xf]  ;;  %v12603_v12 = vld [vmem:[#allocation25 + $0x330] sm:$0xf]  ;;  %v12541_v44 = vld [vmem:[#allocation25 + $0x2b8] sm:$0xf0] }
 0xa24   :  { %v7664_v1 = vadd.f32 %v7663_v61, %v7635_v2  ;;  %v8783_v25 = vpop.f32.mrf.mxu2  ;;  %v12620_v2 = vor.u32 %v13512_v55, %v12619_v36  ;;  %v12557_v61 = vld [vmem:[#allocation25 + $0x2d8] sm:$0xf0]  ;;  %v12549_v36 = vld [vmem:[#allocation25 + $0x2c8] sm:$0xf0] }
 0xa25   :  { %v16146_v10 = vadd.f32 %v8783_v25, %v8754_v16  ;;  %v7636_v39 = vpop.f32.mrf.mxu0  ;;  %v12560_v23 = vor.u32 %v13495_v49, %v12557_v61  ;;  %v13508_v49 = vld [vmem:[#allocation25 + $0x334] sm:$0xf0]  ;;  %v13475_v61 = vld [vmem:[#allocation25 + $0x234] sm:$0xf] }
 0xa26   :  { %v7693_v3 = vadd.f32 %v16059_v52, %v7664_v1  ;;  %v8756_v34 = vpop.f32.mrf.mxu1  ;;  %9094 = vmatpush.bf16.msra.mxu1 %v12504_v60  ;;  %v7637_v26 = vadd.f32 %v7636_v39, %v15995_v35  ;;  %v12485_v60 = vld [vmem:[#allocation25 + $0x248] sm:$0xf0] }
 0xa27   :  { %8921 = vmatpush.bf16.msrb.mxu0 %v12620_v2  ;;  %9124 = vmatpush.bf16.msrb.mxu2 %v12560_v23  ;;  %v16714_v23 = vld [vmem:[#allocation69_spill] sm:$0xff] }
 0xa28   :  { %v16150_v16 = vadd.f32 %v16070_v6, %v7693_v3  ;;  %v12488_v6 = vor.u32 %v13477_v0, %v12485_v60  ;;  %v12552_v3 = vor.u32 %v13493_v37, %v12549_v36 }
 0xa2a   :  { %9095 = vmatpush.bf16.msra.mxu1 %v12496_v48  ;;  %v16713_v48 = vld [vmem:[#allocation64_spill] sm:$0xff] }
 0xa2b   :  { %v7665_v52 = vpop.f32.mrf.mxu3  ;;  %8922 = vmatpush.bf16.msrb.mxu0 %v12612_v30  ;;  %9125 = vmatpush.bf16.msrb.mxu2 %v12552_v3  ;;  %v12699_v30 = vld [vmem:[#allocation25 + $0x3f0] sm:$0xf] }
 0xa2c   :  { %v7666_v1 = vadd.f32 %v7665_v52, %v7637_v26  ;;  %v8785_v25 = vpop.f32.mrf.mxu2  ;;  %v12477_v26 = vld [vmem:[#allocation25 + $0x238] sm:$0xf0]  ;;  %v13491_v52 = vld [vmem:[#allocation25 + $0x2b4] sm:$0xf] }
 0xa2d   :  { %v16153_v55 = vadd.f32 %v8785_v25, %v8756_v34  ;;  %v7639_v33 = vpop.f32.mrf.mxu0  ;;  %v12604_v34 = vor.u32 %v13508_v49, %v12603_v12  ;;  %v13506_v25 = vld [vmem:[#allocation25 + $0x324] sm:$0xf0]  ;;  %v13489_v12 = vld [vmem:[#allocation25 + $0x2a4] sm:$0xf]  ;;  %v12533_v49 = vld [vmem:[#allocation25 + $0x2a8] sm:$0xf0] }
 0xa2e   :  { %v7695_v35 = vadd.f32 %v16073_v29, %v7666_v1  ;;  %v7640_v39 = vadd.f32 %v7639_v33, %v16007_v28  ;;  %v8759_v2 = vpop.f32.mrf.mxu1  ;;  %9096 = vmatpush.bf16.msra.mxu1 %v12488_v6  ;;  %v12480_v28 = vor.u32 %v13475_v61, %v12477_v26  ;;  %v12544_v29 = vor.u32 %v13491_v52, %v12541_v44  ;;  %v12595_v1 = vld [vmem:[#allocation25 + $0x320] sm:$0xf]  ;;  %v13532_v33 = vld [vmem:[#allocation25 + $0x3f4] sm:$0xf0]  ;;  %v13473_v6 = vld [vmem:[#allocation25 + $0x224] sm:$0xf] }
 0xa2f   :  { %8923 = vmatpush.bf16.msrb.mxu0 %v12604_v34  ;;  %v12596_v36 = vor.u32 %v13506_v25, %v12595_v1  ;;  %v12536_v26 = vor.u32 %v13489_v12, %v12533_v49  ;;  %v12587_v52 = vld [vmem:[#allocation25 + $0x310] sm:$0xf]  ;;  %v13504_v44 = vld [vmem:[#allocation25 + $0x314] sm:$0xf0] }
 0xa30   :  { %8816 = vmatmul.bf16.gmra.mxu0 %v16713_v48  ;;  %8845 = vmatmul.bf16.gmra.mxu3 %v16714_v23  ;;  %v16160_v53 = vadd.f32 %v16081_v19, %v7695_v35  ;;  %v12469_v19 = vld [vmem:[#allocation25 + $0x228] sm:$0xf0]  ;;  %v12700_v35 = vor.u32 %v13532_v33, %v12699_v30  ;;  %v13487_v30 = vld [vmem:[#allocation25 + $0x294] sm:$0xf] }
 0xa31   :  { %8990 = vmatmul.bf16.gmra.mxu1 %v16699_v21  ;;  %9019 = vmatmul.bf16.gmra.mxu2 %v16700_v22  ;;  %v12472_v22 = vor.u32 %v13473_v6, %v12469_v19  ;;  %v12579_v6 = vld [vmem:[#allocation25 + $0x300] sm:$0xf]  ;;  %v13502_v19 = vld [vmem:[#allocation25 + $0x304] sm:$0xf0] }
 0xa32   :  { %9097 = vmatpush.bf16.msra.mxu1 %v12480_v28  ;;  %9126 = vmatpush.bf16.msrb.mxu2 %v12544_v29  ;;  %v12588_v28 = vor.u32 %v13504_v44, %v12587_v52  ;;  %v13530_v29 = vld [vmem:[#allocation25 + $0x3e4] sm:$0xf0]  ;;  %v12580_v49 = vor.u32 %v13502_v19, %v12579_v6  ;;  %v13469_v52 = vld [vmem:[#allocation25 + $0x204] sm:$0xf]  ;;  %v12453_v44 = vld [vmem:[#allocation25 + $0x208] sm:$0xf0] }
 0xa33   :  { %v7668_v0 = vpop.f32.mrf.mxu3  ;;  %8924 = vmatpush.bf16.msrb.mxu0 %v12596_v36  ;;  %8948 = vmatpush.bf16.msrb.mxu3 %v12700_v35  ;;  %v12683_v35 = vld [vmem:[#allocation25 + $0x3d0] sm:$0xf] }
 0xa34   :  { %v7669_v60 = vadd.f32 %v7668_v0, %v7640_v39  ;;  %v8788_v37 = vpop.f32.mrf.mxu2  ;;  %v12691_v39 = vld [vmem:[#allocation25 + $0x3e0] sm:$0xf]  ;;  %v13471_v0 = vld [vmem:[#allocation25 + $0x214] sm:$0xf] }
 0xa35   :  { %v16164_v3 = vadd.f32 %v8788_v37, %v8759_v2  ;;  %v7641_v21 = vpop.f32.mrf.mxu0  ;;  %v12461_v2 = vld [vmem:[#allocation25 + $0x218] sm:$0xf0]  ;;  %v12692_v1 = vor.u32 %v13530_v29, %v12691_v39  ;;  %v12456_v29 = vor.u32 %v13469_v52, %v12453_v44 }
 0xa36   :  { %v7698_v61 = vadd.f32 %v16084_v42, %v7669_v60  ;;  %v8761_v34 = vpop.f32.mrf.mxu1  ;;  %9098 = vmatpush.bf16.msra.mxu1 %v12472_v22  ;;  %9127 = vmatpush.bf16.msrb.mxu2 %v12536_v26  ;;  %v12464_v25 = vor.u32 %v13471_v0, %v12461_v2  ;;  %v12525_v37 = vld [vmem:[#allocation25 + $0x298] sm:$0xf0]  ;;  %v7642_v60 = vadd.f32 %v7641_v21, %v16015_v8  ;;  %v13528_v26 = vld [vmem:[#allocation25 + $0x3d4] sm:$0xf0]  ;;  %v13485_v8 = vld [vmem:[#allocation25 + $0x284] sm:$0xf] }
 0xa37   :  { %v12528_v42 = vor.u32 %v13487_v30, %v12525_v37  ;;  %8925 = vmatpush.bf16.msrb.mxu0 %v12588_v28  ;;  %8949 = vmatpush.bf16.msrb.mxu3 %v12692_v1  ;;  %v12517_v21 = vld [vmem:[#allocation25 + $0x288] sm:$0xf0]  ;;  %v13526_v30 = vld [vmem:[#allocation25 + $0x3c4] sm:$0xf0]  ;;  %v16715_v37 = vld [vmem:[#allocation65_spill] sm:$0xff] }
 0xa38   :  { %v16168_v33 = vadd.f32 %v16094_v58, %v7698_v61  ;;  %v12684_v61 = vor.u32 %v13528_v26, %v12683_v35  ;;  %v12520_v1 = vor.u32 %v13485_v8, %v12517_v21  ;;  %v13522_v26 = vld [vmem:[#allocation25 + $0x3a4] sm:$0xf0] }
 0xa3a   :  { %9099 = vmatpush.bf16.msra.mxu1 %v12464_v25  ;;  %9128 = vmatpush.bf16.msrb.mxu2 %v12528_v42  ;;  %v12675_v25 = vld [vmem:[#allocation25 + $0x3c0] sm:$0xf] }
 0xa3b   :  { %v7670_v36 = vpop.f32.mrf.mxu3  ;;  %8926 = vmatpush.bf16.msrb.mxu0 %v12580_v49  ;;  %8950 = vmatpush.bf16.msrb.mxu3 %v12684_v61  ;;  %v12676_v42 = vor.u32 %v13526_v30, %v12675_v25  ;;  %v12651_v61 = vld [vmem:[#allocation25 + $0x390] sm:$0xf]  ;;  %v12643_v25 = vld [vmem:[#allocation25 + $0x380] sm:$0xf] }
 0xa3c   :  { %v7671_v22 = vadd.f32 %v7670_v36, %v7642_v60  ;;  %v8790_v12 = vpop.f32.mrf.mxu2  ;;  %v13524_v36 = vld [vmem:[#allocation25 + $0x3b4] sm:$0xf0]  ;;  %v16717_v30 = vld [vmem:[#allocation67_spill] sm:$0xff] }
 0xa3d   :  { %v16171_v39 = vadd.f32 %v8790_v12, %v8761_v34  ;;  %v7644_v58 = vpop.f32.mrf.mxu0  ;;  %v16716_v34 = vld [vmem:[#allocation70_spill] sm:$0xff] }
 0xa3e   :  { %v7700_v28 = vadd.f32 %v16097_v14, %v7671_v22  ;;  %v7645_v0 = vadd.f32 %v7644_v58, %v16027_v7  ;;  %v8764_v2 = vpop.f32.mrf.mxu1  ;;  %9100 = vmatpush.bf16.msra.mxu1 %v12456_v29  ;;  %9129 = vmatpush.bf16.msrb.mxu2 %v12520_v1  ;;  %v12667_v14 = vld [vmem:[#allocation25 + $0x3b0] sm:$0xf]  ;;  %v13520_v29 = vld [vmem:[#allocation25 + $0x394] sm:$0xf0] }
 0xa3f   :  { %8951 = vmatpush.bf16.msrb.mxu3 %v12676_v42  ;;  %v12668_v35 = vor.u32 %v13524_v36, %v12667_v14 }
 0xa40   :  { %8821 = vmatmul.bf16.gmra.mxu0 %v16715_v37  ;;  %8850 = vmatmul.bf16.gmra.mxu3 %v16716_v34  ;;  %v16178_v60 = vadd.f32 %v16099_v27, %v7700_v28  ;;  %v12659_v27 = vld [vmem:[#allocation25 + $0x3a0] sm:$0xf]  ;;  %v12652_v28 = vor.u32 %v13520_v29, %v12651_v61  ;;  %v12373_v29 = vld [vmem:[#allocation25 + $0x168] sm:$0xf0] }
 0xa41   :  { %8995 = vmatmul.bf16.gmra.mxu1 %v16701_v13  ;;  %9024 = vmatmul.bf16.gmra.mxu2 %v16702_v46  ;;  %v12660_v13 = vor.u32 %v13522_v26, %v12659_v27 }
 0xa43   :  { %v7673_v7 = vpop.f32.mrf.mxu3  ;;  %8952 = vmatpush.bf16.msrb.mxu3 %v12668_v35 }
 0xa44   :  { %v7674_v6 = vadd.f32 %v7673_v7, %v7645_v0  ;;  %v8793_v19 = vpop.f32.mrf.mxu2 }
 0xa45   :  { %v16182_v22 = vadd.f32 %v8793_v19, %v8764_v2  ;;  %v7646_v12 = vpop.f32.mrf.mxu0 }
 0xa46   :  { %v7703_v49 = vadd.f32 %v16102_v15, %v7674_v6  ;;  %v8766_v52 = vpop.f32.mrf.mxu1  ;;  %v7647_v44 = vadd.f32 %v7646_v12, %v16035_v38  ;;  %v16718_v38 = vld [vmem:[#allocation66_spill] sm:$0xff] }
 0xa47   :  { %8953 = vmatpush.bf16.msrb.mxu3 %v12660_v13 }
 0xa48   :  { %v16186_v46 = vadd.f32 %v16112_v63, %v7703_v49  ;;  %v13518_v63 = vld [vmem:[#allocation25 + $0x384] sm:$0xf0] }
 0xa49   :  { %v12644_v42 = vor.u32 %v13518_v63, %v12643_v25  ;;  %v12357_v63 = vld [vmem:[#allocation25 + $0x148] sm:$0xf0] }
 0xa4b   :  { %v7675_v58 = vpop.f32.mrf.mxu3  ;;  %8954 = vmatpush.bf16.msrb.mxu3 %v12652_v28  ;;  %v13447_v28 = vld [vmem:[#allocation25 + $0x154] sm:$0xf] }
 0xa4c   :  { %v7676_v8 = vadd.f32 %v7675_v58, %v7647_v44  ;;  %v8795_v21 = vpop.f32.mrf.mxu2  ;;  %v13451_v44 = vld [vmem:[#allocation25 + $0x174] sm:$0xf]  ;;  %v12381_v58 = vld [vmem:[#allocation25 + $0x178] sm:$0xf0] }
 0xa4d   :  { %v16189_v0 = vadd.f32 %v8795_v21, %v8766_v52  ;;  %v7649_v15 = vpop.f32.mrf.mxu0  ;;  %v12384_v61 = vor.u32 %v13451_v44, %v12381_v58 }
 0xa4e   :  { %v7705_v2 = vadd.f32 %v16115_v31, %v7676_v8  ;;  %v7650_v1 = vadd.f32 %v7649_v15, %v16047_v57  ;;  %v8769_v14 = vpop.f32.mrf.mxu1  ;;  %v12365_v15 = vld [vmem:[#allocation25 + $0x158] sm:$0xf0] }
 0xa4f   :  { %8955 = vmatpush.bf16.msrb.mxu3 %v12644_v42  ;;  %9035 = vmatpush.bf16.msra.mxu0 %v12384_v61  ;;  %v16219_v42 = vperm.slane %v16076_v50, 7 }
 0xa50   :  { %8826 = vmatmul.bf16.gmra.mxu0 %v16717_v30  ;;  %8855 = vmatmul.bf16.gmra.mxu3 %v16718_v38  ;;  %v16196_v7 = vadd.f32 %v16117_v45, %v7705_v2 }
 0xa51   :  { %9000 = vmatmul.bf16.gmra.mxu1 %v16703_v18  ;;  %9029 = vmatmul.bf16.gmra.mxu2 %v16704_v47 }
 0xa53   :  { %v7678_v36 = vpop.f32.mrf.mxu3 }
 0xa54   :  { %v7679_v31 = vadd.f32 %v7678_v36, %v7650_v1  ;;  %v8798_v57 = vpop.f32.mrf.mxu2  ;;  %v12368_v1 = vor.u32 %v13447_v28, %v12365_v15  ;;  %v13437_v15 = vld [vmem:[#allocation25 + $0x104] sm:$0xf] }
 0xa55   :  { %v16200_v6 = vadd.f32 %v8798_v57, %v8769_v14  ;;  %v7651_v19 = vpop.f32.mrf.mxu0 }
 0xa56   :  { %v7708_v35 = vadd.f32 %v16120_v17, %v7679_v31  ;;  %v7652_v45 = vadd.f32 %v7651_v19, %v16055_v11  ;;  %v8771_v27 = vpop.f32.mrf.mxu1  ;;  %v12349_v19 = vld [vmem:[#allocation25 + $0x138] sm:$0xf0] }
 0xa58   :  { %v16204_v12 = vadd.f32 %v16130_v24, %v7708_v35  ;;  %v13449_v24 = vld [vmem:[#allocation25 + $0x164] sm:$0xf] }
 0xa59   :  { %v12376_v8 = vor.u32 %v13449_v24, %v12373_v29 }
 0xa5b   :  { %v7680_v49 = vpop.f32.mrf.mxu3  ;;  %9036 = vmatpush.bf16.msra.mxu0 %v12376_v8  ;;  %v12437_v8 = vld [vmem:[#allocation25 + $0x1e8] sm:$0xf0] }
 0xa5c   :  { %v7681_v18 = vadd.f32 %v7680_v49, %v7652_v45  ;;  %v8800_v26 = vpop.f32.mrf.mxu2 }
 0xa5d   :  { %v16207_v47 = vadd.f32 %v8800_v26, %v8771_v27  ;;  %v7750_v52 = vpop.f32.mrf.mxu0  ;;  %v13441_v27 = vld [vmem:[#allocation25 + $0x124] sm:$0xf]  ;;  %v13467_v26 = vld [vmem:[#allocation25 + $0x1f4] sm:$0xf] }
 0xa5e   :  { %v7710_v13 = vadd.f32 %v16133_v54, %v7681_v18  ;;  %v7751_v54 = vadd.f32 %v7750_v52, %v16150_v16  ;;  %v13443_v16 = vld [vmem:[#allocation25 + $0x134] sm:$0xf]  ;;  %v12341_v18 = vld [vmem:[#allocation25 + $0x128] sm:$0xf0] }
 0xa5f   :  { %9037 = vmatpush.bf16.msra.mxu0 %v12368_v1  ;;  %v12344_v52 = vor.u32 %v13441_v27, %v12341_v18  ;;  %v13463_v1 = vld [vmem:[#allocation25 + $0x1d4] sm:$0xf] }
 0xa60   :  { %8927 = vmatmul.bf16.vlgmr.msrb.gmra.mxu0 %v16092_v41  ;;  %v16212_v17 = vadd.f32 %v16135_v32, %v7710_v13  ;;  %v12445_v13 = vld [vmem:[#allocation25 + $0x1f8] sm:$0xf0] }
 0xa61   :  { %9101 = vmatmul.bf16.vlgmr.msra.gmra.mxu1 %v16705_v51  ;;  %9130 = vmatmul.bf16.vlgmr.msrb.gmra.mxu2 %v15929_v5  ;;  %v13445_v51 = vld [vmem:[#allocation25 + $0x144] sm:$0xf]  ;;  %v12448_v58 = vor.u32 %v13467_v26, %v12445_v13 }
 0xa62   :  { %v12360_v36 = vor.u32 %v13445_v51, %v12357_v63  ;;  %v12429_v51 = vld [vmem:[#allocation25 + $0x1d8] sm:$0xf0]  ;;  %v13457_v26 = vld [vmem:[#allocation25 + $0x1a4] sm:$0xf] }
 0xa63   :  { %v7779_v11 = vpop.f32.mrf.mxu3  ;;  %9064 = vmatpush.bf16.msra.mxu3 %v12448_v58  ;;  %v13455_v58 = vld [vmem:[#allocation25 + $0x194] sm:$0xf] }
 0xa64   :  { %v7780_v2 = vadd.f32 %v7779_v11, %v7751_v54  ;;  %9038 = vmatpush.bf16.msra.mxu0 %v12360_v36  ;;  %v12333_v11 = vld [vmem:[#allocation25 + $0x118] sm:$0xf0]  ;;  %v13461_v36 = vld [vmem:[#allocation25 + $0x1c4] sm:$0xf] }
 0xa65   :  { %v7752_v21 = vpop.f32.mrf.mxu0 }
 0xa66   :  { %v7753_v32 = vadd.f32 %v7752_v21, %v16160_v53  ;;  %v7806_v5 = vmax.f32 %v7780_v2, 0.0  ;;  %v12352_v53 = vor.u32 %v13443_v16, %v12349_v19  ;;  %v12325_v2 = vld [vmem:[#allocation25 + $0x108] sm:$0xf0] }
 0xa68   :  { %v7888_v35 = vadd.f32 %v16219_v42, %v7806_v5  ;;  %9039 = vmatpush.bf16.msra.mxu0 %v12352_v53  ;;  %v12432_v5 = vor.u32 %v13463_v1, %v12429_v51  ;;  %v12413_v53 = vld [vmem:[#allocation25 + $0x1b8] sm:$0xf0] }
 0xa6b   :  { %v7781_v25 = vpop.f32.mrf.mxu3 }
 0xa6c   :  { %v7782_v14 = vadd.f32 %v7781_v25, %v7753_v32  ;;  %9040 = vmatpush.bf16.msra.mxu0 %v12344_v52  ;;  %v12405_v52 = vld [vmem:[#allocation25 + $0x1a8] sm:$0xf0] }
 0xa6d   :  { %v7755_v31 = vpop.f32.mrf.mxu0  ;;  %v12408_v13 = vor.u32 %v13457_v26, %v12405_v52 }
 0xa6e   :  { %v7814_v57 = vmax.f32 %v7782_v14, 0.0  ;;  %v7756_v61 = vadd.f32 %v7755_v31, %v16168_v33  ;;  %v12328_v33 = vor.u32 %v13437_v15, %v12325_v2  ;;  %v12421_v31 = vld [vmem:[#allocation25 + $0x1c8] sm:$0xf0] }
 0xa6f   :  { %v12424_v16 = vor.u32 %v13461_v36, %v12421_v31  ;;  %v13515_v31 = vld [vmem:[#allocation25 + $0x374] sm:$0xf] }
 0xa70   :  { %v7896_v45 = vadd.f32 %v16219_v42, %v7814_v57  ;;  %8932 = vmatmul.bf16.gmra.mxu0 %v16110_v43 }
 0xa71   :  { %9106 = vmatmul.bf16.gmra.mxu1 %v16706_v20  ;;  %9135 = vmatmul.bf16.gmra.mxu2 %v15947_v4  ;;  %v13439_v20 = vld [vmem:[#allocation25 + $0x114] sm:$0xf]  ;;  %v13465_v4 = vld [vmem:[#allocation25 + $0x1e4] sm:$0xf] }
 0xa72   :  { %v16226_v50 = vpack.c.bf16 %v7896_v45, %v7888_v35  ;;  %v12336_v29 = vor.u32 %v13439_v20, %v12333_v11  ;;  %v12440_v21 = vor.u32 %v13465_v4, %v12437_v8  ;;  %v13459_v45 = vld [vmem:[#allocation25 + $0x1b4] sm:$0xf]  ;;  %v13453_v8 = vld [vmem:[#allocation25 + $0x184] sm:$0xf] }
 0xa73   :  { %v7784_v49 = vpop.f32.mrf.mxu3 }
 0xa74   :  { %8956 = vmatmul.bf16.vlgmr.msrb.gmra.mxu3 %v16226_v50  ;;  %v7785_v24 = vadd.f32 %v7784_v49, %v7756_v61  ;;  %9041 = vmatpush.bf16.msra.mxu0 %v12336_v29  ;;  %v12416_v49 = vor.u32 %v13459_v45, %v12413_v53  ;;  %v12397_v61 = vld [vmem:[#allocation25 + $0x198] sm:$0xf0]  ;;  %v13513_v53 = vld [vmem:[#allocation25 + $0x364] sm:$0xf] }
 0xa75   :  { %v7757_v44 = vpop.f32.mrf.mxu0  ;;  %9065 = vmatpush.bf16.msra.mxu3 %v12440_v21  ;;  %v12400_v4 = vor.u32 %v13455_v58, %v12397_v61  ;;  %v12389_v21 = vld [vmem:[#allocation25 + $0x188] sm:$0xf0] }
 0xa76   :  { %v7758_v54 = vadd.f32 %v7757_v44, %v16178_v60  ;;  %v7822_v32 = vmax.f32 %v7785_v24, 0.0 }
 0xa78   :  { %9042 = vmatpush.bf16.msra.mxu0 %v12328_v33  ;;  %v7904_v57 = vadd.f32 %v16219_v42, %v7822_v32 }
 0xa79   :  { %9066 = vmatpush.bf16.msra.mxu3 %v12432_v5 }
 0xa7b   :  { %v7786_v28 = vpop.f32.mrf.mxu3 }
 0xa7c   :  { %v7787_v25 = vadd.f32 %v7786_v28, %v7758_v54  ;;  %v12392_v28 = vor.u32 %v13453_v8, %v12389_v21  ;;  %v13507_v8 = vld [vmem:[#allocation25 + $0x334] sm:$0xf] }
 0xa7d   :  { %v7760_v63 = vpop.f32.mrf.mxu0  ;;  %9067 = vmatpush.bf16.msra.mxu3 %v12424_v16 }
 0xa7e   :  { %v7830_v14 = vmax.f32 %v7787_v25, 0.0  ;;  %v7761_v18 = vadd.f32 %v7760_v63, %v16186_v46 }
 0xa80   :  { %v7912_v60 = vadd.f32 %v16219_v42, %v7830_v14  ;;  %8937 = vmatmul.bf16.gmra.mxu0 %v16128_v9 }
 0xa81   :  { %9111 = vmatmul.bf16.gmra.mxu1 %v16707_v56  ;;  %9140 = vmatmul.bf16.gmra.mxu2 %v15965_v59 }
 0xa82   :  { %v16236_v19 = vpack.c.bf16 %v7912_v60, %v7904_v57  ;;  %9068 = vmatpush.bf16.msra.mxu3 %v12416_v49  ;;  %v12637_v57 = vld [vmem:[#allocation25 + $0x378] sm:$0xf0]  ;;  %v12629_v49 = vld [vmem:[#allocation25 + $0x368] sm:$0xf0] }
 0xa83   :  { %v7789_v35 = vpop.f32.mrf.mxu3  ;;  %v12640_v45 = vor.u32 %v13515_v31, %v12637_v57  ;;  %v13501_v57 = vld [vmem:[#allocation25 + $0x304] sm:$0xf] }
 0xa84   :  { %8961 = vmatmul.bf16.gmra.mxu3 %v16236_v19  ;;  %v7790_v44 = vadd.f32 %v7789_v35, %v7761_v18  ;;  %v16720_v35 = vld [vmem:[#allocation63_spill] sm:$0xff]  ;;  %v12632_v18 = vor.u32 %v13513_v53, %v12629_v49 }
 0xa85   :  { %v7762_v27 = vpop.f32.mrf.mxu0  ;;  %9151 = vmatpush.bf16.msrb.mxu0 %v12640_v45  ;;  %v12685_v45 = vld [vmem:[#allocation25 + $0x3d8] sm:$0xf0]  ;;  %v13525_v49 = vld [vmem:[#allocation25 + $0x3c4] sm:$0xf] }
 0xa86   :  { %v7763_v56 = vadd.f32 %v7762_v27, %v16196_v7  ;;  %9069 = vmatpush.bf16.msra.mxu3 %v12408_v13  ;;  %v7838_v20 = vmax.f32 %v7790_v44, 0.0  ;;  %v16719_v7 = vld [vmem:[#allocation57_spill] sm:$0xff]  ;;  %v12621_v44 = vld [vmem:[#allocation25 + $0x358] sm:$0xf0] }
 0xa88   :  { %v7920_v46 = vadd.f32 %v16219_v42, %v7838_v20  ;;  %v13509_v20 = vld [vmem:[#allocation25 + $0x344] sm:$0xf] }
 0xa89   :  { %9152 = vmatpush.bf16.msrb.mxu0 %v12632_v18 }
 0xa8a   :  { %9070 = vmatpush.bf16.msra.mxu3 %v12400_v4 }
 0xa8b   :  { %v7791_v59 = vpop.f32.mrf.mxu3 }
 0xa8c   :  { %v7792_v11 = vadd.f32 %v7791_v59, %v7763_v56  ;;  %v8899_v56 = vpop.f32.mrf.mxu2 }
 0xa8d   :  { %v7765_v24 = vpop.f32.mrf.mxu0 }
 0xa8e   :  { %v7846_v29 = vmax.f32 %v7792_v11, 0.0  ;;  %9071 = vmatpush.bf16.msra.mxu3 %v12392_v28  ;;  %v7766_v32 = vadd.f32 %v7765_v24, %v16204_v12  ;;  %v12613_v11 = vld [vmem:[#allocation25 + $0x348] sm:$0xf0] }
 0xa8f   :  { %v12616_v4 = vor.u32 %v13509_v20, %v12613_v11  ;;  %v12597_v28 = vld [vmem:[#allocation25 + $0x328] sm:$0xf0] }
 0xa90   :  { %v7928_v54 = vadd.f32 %v16219_v42, %v7846_v29  ;;  %8942 = vmatmul.bf16.gmra.mxu0 %v16144_v62  ;;  %v12661_v20 = vld [vmem:[#allocation25 + $0x3a8] sm:$0xf0] }
 0xa91   :  { %9116 = vmatmul.bf16.gmra.mxu1 %v16708_v40  ;;  %9145 = vmatmul.bf16.gmra.mxu2 %v16719_v7  ;;  %v13531_v7 = vld [vmem:[#allocation25 + $0x3f4] sm:$0xf] }
 0xa92   :  { %v16246_v15 = vpack.c.bf16 %v7928_v54, %v7920_v46  ;;  %v13505_v54 = vld [vmem:[#allocation25 + $0x324] sm:$0xf] }
 0xa93   :  { %v7794_v2 = vpop.f32.mrf.mxu3 }
 0xa94   :  { %8966 = vmatmul.bf16.gmra.mxu3 %v16246_v15  ;;  %v7795_v25 = vadd.f32 %v7794_v2, %v7766_v32  ;;  %v12600_v32 = vor.u32 %v13505_v54, %v12597_v28 }
 0xa95   :  { %v7767_v1 = vpop.f32.mrf.mxu0 }
 0xa96   :  { %v7768_v33 = vadd.f32 %v7767_v1, %v16212_v17  ;;  %v7854_v63 = vmax.f32 %v7795_v25, 0.0  ;;  %v16721_v1 = vld [vmem:[#allocation68_spill] sm:$0xff]  ;;  %v12701_v25 = vld [vmem:[#allocation25 + $0x3f8] sm:$0xf0] }
 0xa98   :  { %v7936_v60 = vadd.f32 %v16219_v42, %v7854_v63  ;;  %v13503_v63 = vld [vmem:[#allocation25 + $0x314] sm:$0xf] }
 0xa9b   :  { %v7796_v51 = vpop.f32.mrf.mxu3 }
 0xa9c   :  { %v7797_v5 = vadd.f32 %v7796_v51, %v7768_v33  ;;  %v12704_v51 = vor.u32 %v13531_v7, %v12701_v25  ;;  %v8901_v25 = vpop.f32.mrf.mxu2 }
 0xa9d   :  { %v8812_v14 = vpop.f32.mrf.mxu0 }
 0xa9e   :  { %v7862_v36 = vmax.f32 %v7797_v5, 0.0  ;;  %v8813_v40 = vadd.f32 %v8812_v14, %v16146_v10  ;;  %v8870_v10 = vpop.f32.mrf.mxu1  ;;  %v13529_v5 = vld [vmem:[#allocation25 + $0x3e4] sm:$0xf]  ;;  %9180 = vmatpush.bf16.msrb.mxu3 %v12704_v51 }
 0xaa0   :  { %v7944_v16 = vadd.f32 %v16219_v42, %v7862_v36  ;;  %9043 = vmatmul.bf16.vlgmr.msra.gmra.mxu0 %v16720_v35  ;;  %v13511_v42 = vld [vmem:[#allocation25 + $0x354] sm:$0xf]  ;;  %v12693_v36 = vld [vmem:[#allocation25 + $0x3e8] sm:$0xf0] }
 0xaa1   :  { %v12624_v59 = vor.u32 %v13511_v42, %v12621_v44 }
 0xaa2   :  { %v16255_v12 = vpack.c.bf16 %v7944_v16, %v7936_v60  ;;  %v12581_v60 = vld [vmem:[#allocation25 + $0x308] sm:$0xf0]  ;;  %v13527_v16 = vld [vmem:[#allocation25 + $0x3d4] sm:$0xf] }
 0xaa3   :  { %v8841_v17 = vpop.f32.mrf.mxu3  ;;  %9153 = vmatpush.bf16.msrb.mxu0 %v12624_v59  ;;  %v12584_v35 = vor.u32 %v13501_v57, %v12581_v60 }
 0xaa4   :  { %v8842_v27 = vadd.f32 %v8841_v17, %v8813_v40  ;;  %8971 = vmatmul.bf16.gmra.mxu3 %v16255_v12  ;;  %v12696_v40 = vor.u32 %v13529_v5, %v12693_v36 }
 0xaa5   :  { %v8814_v26 = vpop.f32.mrf.mxu0 }
 0xaa6   :  { %v8871_v52 = vadd.f32 %v8870_v10, %v8842_v27  ;;  %v16259_v13 = vadd.f32 %v8814_v26, %v16153_v55  ;;  %v12605_v55 = vld [vmem:[#allocation25 + $0x338] sm:$0xf0]  ;;  %9181 = vmatpush.bf16.msrb.mxu3 %v12696_v40  ;;  %v12677_v27 = vld [vmem:[#allocation25 + $0x3c8] sm:$0xf0]  ;;  %v13523_v26 = vld [vmem:[#allocation25 + $0x3b4] sm:$0xf]  ;;  %v8872_v7 = vpop.f32.mrf.mxu1 }
 0xaa7   :  { %9154 = vmatpush.bf16.msrb.mxu0 %v12616_v4  ;;  %v12608_v21 = vor.u32 %v13507_v8, %v12605_v55  ;;  %v12680_v18 = vor.u32 %v13525_v49, %v12677_v27 }
 0xaa8   :  { %v16261_v58 = vadd.f32 %v8899_v56, %v8871_v52  ;;  %v12669_v52 = vld [vmem:[#allocation25 + $0x3b8] sm:$0xf0] }
 0xaa9   :  { %v12672_v44 = vor.u32 %v13523_v26, %v12669_v52 }
 0xaab   :  { %v16263_v61 = vpop.f32.mrf.mxu3  ;;  %9155 = vmatpush.bf16.msrb.mxu0 %v12608_v21  ;;  %v13517_v21 = vld [vmem:[#allocation25 + $0x384] sm:$0xf] }
 0xaad   :  { %v8817_v24 = vpop.f32.mrf.mxu0 }
 0xaae   :  { %v8818_v29 = vadd.f32 %v8817_v24, %v16164_v3  ;;  %v12653_v24 = vld [vmem:[#allocation25 + $0x398] sm:$0xf0] }
 0xaaf   :  { %9156 = vmatpush.bf16.msrb.mxu0 %v12600_v32 }
 0xab0   :  { %9048 = vmatmul.bf16.gmra.mxu0 %v16713_v48  ;;  %v12589_v48 = vld [vmem:[#allocation25 + $0x318] sm:$0xf0] }
 0xab1   :  { %v12592_v14 = vor.u32 %v13503_v63, %v12589_v48  ;;  %v8904_v48 = vpop.f32.mrf.mxu2 }
 0xab3   :  { %v8846_v46 = vpop.f32.mrf.mxu3  ;;  %9157 = vmatpush.bf16.msrb.mxu0 %v12592_v14 }
 0xab4   :  { %v16267_v2 = vadd.f32 %v8846_v46, %v8818_v29  ;;  %9072 = vmatmul.bf16.vlgmr.msra.gmra.mxu3 %v16721_v1 }
 0xab5   :  { %v8819_v33 = vpop.f32.mrf.mxu0 }
 0xab6   :  { %v16271_v3 = vadd.f32 %v8819_v33, %v16171_v39  ;;  %v12688_v39 = vor.u32 %v13527_v16, %v12685_v45 }
 0xab7   :  { %9158 = vmatpush.bf16.msrb.mxu0 %v12584_v35 }
 0xab8   :  { %9182 = vmatpush.bf16.msrb.mxu3 %v12688_v39 }
 0xabb   :  { %v16273_v31 = vpop.f32.mrf.mxu3 }
 0xabc   :  { %9183 = vmatpush.bf16.msrb.mxu3 %v12680_v18  ;;  %v8849_v60 = vadd.f32 %v16273_v31, %v16271_v3 }
 0xabd   :  { %v8822_v17 = vpop.f32.mrf.mxu0 }
 0xabe   :  { %v8823_v53 = vadd.f32 %v8822_v17, %v16182_v22  ;;  %v13521_v22 = vld [vmem:[#allocation25 + $0x3a4] sm:$0xf] }
 0xabf   :  { %v12664_v11 = vor.u32 %v13521_v22, %v12661_v20 }
 0xac0   :  { %9053 = vmatmul.bf16.gmra.mxu0 %v16715_v37  ;;  %9184 = vmatpush.bf16.msrb.mxu3 %v12672_v44  ;;  %v13519_v37 = vld [vmem:[#allocation25 + $0x394] sm:$0xf] }
 0xac1   :  { %v12656_v29 = vor.u32 %v13519_v37, %v12653_v24 }
 0xac3   :  { %v8851_v10 = vpop.f32.mrf.mxu3 }
 0xac4   :  { %v16277_v42 = vadd.f32 %v8851_v10, %v8823_v53  ;;  %9077 = vmatmul.bf16.gmra.mxu3 %v16714_v23  ;;  %v12645_v23 = vld [vmem:[#allocation25 + $0x388] sm:$0xf0] }
 0xac5   :  { %v8824_v56 = vpop.f32.mrf.mxu0  ;;  %9185 = vmatpush.bf16.msrb.mxu3 %v12664_v11  ;;  %v12648_v46 = vor.u32 %v13517_v21, %v12645_v23 }
 0xac6   :  { %v16281_v59 = vadd.f32 %v8824_v56, %v16189_v0 }
 0xac9   :  { %9186 = vmatpush.bf16.msrb.mxu3 %v12656_v29 }
 0xacb   :  { %v8853_v4 = vpop.f32.mrf.mxu3 }
 0xacc   :  { %v8854_v3 = vadd.f32 %v8853_v4, %v16281_v59 }
 0xacd   :  { %v8827_v8 = vpop.f32.mrf.mxu0  ;;  %9187 = vmatpush.bf16.msrb.mxu3 %v12648_v46 }
 0xace   :  { %v8828_v55 = vadd.f32 %v8827_v8, %v16200_v6  ;;  %v8875_v6 = vpop.f32.mrf.mxu1 }
 0xacf   :  { %v8876_v35 = vadd.f32 %v8875_v6, %v16267_v2 }
 0xad0   :  { %9058 = vmatmul.bf16.gmra.mxu0 %v16717_v30 }
 0xad1   :  { %v8905_v39 = vadd.f32 %v8904_v48, %v8876_v35 }
 0xad3   :  { %v8856_v0 = vpop.f32.mrf.mxu3 }
 0xad4   :  { %v16285_v54 = vadd.f32 %v8856_v0, %v8828_v55  ;;  %9082 = vmatmul.bf16.gmra.mxu3 %v16716_v34  ;;  %v8844_v34 = vadd.f32 %v16263_v61, %v16259_v13 }
 0xad5   :  { %v16288_v28 = vpop.f32.mrf.mxu0 }
 0xad6   :  { %v8877_v51 = vpop.f32.mrf.mxu1  ;;  %v8873_v5 = vadd.f32 %v8872_v7, %v8844_v34 }
 0xad7   :  { %v8878_v45 = vadd.f32 %v8877_v51, %v8849_v60 }
 0xadb   :  { %v8858_v30 = vpop.f32.mrf.mxu3 }
 0xadd   :  { %v8928_v1 = vpop.f32.mrf.mxu0 }
 0xade   :  { %v8929_v32 = vadd.f32 %v8928_v1, %v16261_v58  ;;  %v8880_v14 = vpop.f32.mrf.mxu1 }
 0xadf   :  { %v8881_v22 = vadd.f32 %v8880_v14, %v16277_v42 }
 0xae0   :  { %9159 = vmatmul.bf16.vlgmr.msrb.gmra.mxu0 %v16092_v41 }
 0xae4   :  { %9087 = vmatmul.bf16.gmra.mxu3 %v16718_v38  ;;  %v8902_v38 = vadd.f32 %v8901_v25, %v8873_v5 }
 0xae5   :  { %v8930_v33 = vpop.f32.mrf.mxu0 }
 0xae6   :  { %v8931_v36 = vadd.f32 %v8930_v33, %v8902_v38 }
 0xaed   :  { %v8933_v41 = vpop.f32.mrf.mxu0 }
 0xaee   :  { %v8934_v27 = vadd.f32 %v8933_v41, %v8905_v39 }
 0xaf0   :  { %9164 = vmatmul.bf16.gmra.mxu0 %v16110_v43  ;;  %v8906_v43 = vpop.f32.mrf.mxu2 }
 0xaf1   :  { %v8907_v53 = vadd.f32 %v8906_v43, %v8878_v45 }
 0xaf4   :  { %9188 = vmatmul.bf16.vlgmr.msrb.gmra.mxu3 %v16226_v50  ;;  %v8882_v50 = vpop.f32.mrf.mxu1 }
 0xaf5   :  { %v8935_v61 = vpop.f32.mrf.mxu0  ;;  %v8883_v20 = vadd.f32 %v8882_v50, %v8854_v3 }
 0xaf6   :  { %v8936_v18 = vadd.f32 %v8935_v61, %v8907_v53 }
 0xaf7   :  { %v8957_v63 = vpop.f32.mrf.mxu3 }
 0xaf8   :  { %v16297_v58 = vadd.f32 %v8957_v63, %v8929_v32  ;;  %v8909_v17 = vpop.f32.mrf.mxu2 }
 0xaf9   :  { %v8910_v11 = vadd.f32 %v8909_v17, %v8881_v22  ;;  %v13617_v17 = vld [vmem:[#allocation2 + $0x18] sm:$0xff] }
 0xafd   :  { %v8938_v49 = vpop.f32.mrf.mxu0 }
 0xafe   :  { %v8939_v24 = vadd.f32 %v8938_v49, %v8910_v11 }
 0xaff   :  { %v8959_v40 = vpop.f32.mrf.mxu3 }
 0xb00   :  { %v16299_v57 = vadd.f32 %v8959_v40, %v8931_v36  ;;  %9169 = vmatmul.bf16.gmra.mxu0 %v16128_v9  ;;  %v8885_v9 = vpop.f32.mrf.mxu1 }
 0xb01   :  { %v8886_v0 = vadd.f32 %v8885_v9, %v16285_v54  ;;  %v13614_v54 = vld [vmem:[#allocation2] sm:$0xff] }
 0xb02   :  { %v9209_v13 = vpack.c.bf16 %v16299_v57, %v16297_v58  ;;  %v13615_v58 = vld [vmem:[#allocation2 + $0x8] sm:$0xff]  ;;  %v13616_v57 = vld [vmem:[#allocation2 + $0x10] sm:$0xff] }
 0xb04   :  { %9193 = vmatmul.bf16.gmra.mxu3 %v16236_v19  ;;  %v8911_v19 = vpop.f32.mrf.mxu2 }
 0xb05   :  { %v8940_v2 = vpop.f32.mrf.mxu0  ;;  %v8912_v37 = vadd.f32 %v8911_v19, %v8883_v20 }
 0xb07   :  { %v8962_v16 = vpop.f32.mrf.mxu3  ;;  %v8941_v29 = vadd.f32 %v8940_v2, %v8912_v37 }
 0xb08   :  { %v8963_v26 = vadd.f32 %v8962_v16, %v8934_v27  ;;  %v8887_v56 = vpop.f32.mrf.mxu1 }
 0xb0d   :  { %v8943_v23 = vpop.f32.mrf.mxu0 }
 0xb0f   :  { %v8964_v10 = vpop.f32.mrf.mxu3 }
 0xb10   :  { %v8965_v52 = vadd.f32 %v8964_v10, %v8936_v18  ;;  %9174 = vmatmul.bf16.gmra.mxu0 %v16144_v62  ;;  %v8914_v62 = vpop.f32.mrf.mxu2  ;;  %v16312_v46 = vpop.f32.mrf.mxu1 }
 0xb11   :  { %v8915_v25 = vadd.f32 %v8914_v62, %v8886_v0 }
 0xb12   :  { %v9210_v44 = vpack.c.bf16 %v8965_v52, %v8963_v26 }
 0xb13   :  { %v8944_v51 = vadd.f32 %v8943_v23, %v8915_v25 }
 0xb14   :  { %9198 = vmatmul.bf16.gmra.mxu3 %v16246_v15  ;;  %v8830_v15 = vadd.f32 %v16288_v28, %v16207_v47 }
 0xb15   :  { %v8945_v32 = vpop.f32.mrf.mxu0 }
 0xb16   :  { %v8859_v4 = vadd.f32 %v8858_v30, %v8830_v15 }
 0xb17   :  { %v8967_v31 = vpop.f32.mrf.mxu3 }
 0xb18   :  { %v8968_v55 = vadd.f32 %v8967_v31, %v8939_v24  ;;  %v8888_v7 = vadd.f32 %v8887_v56, %v8859_v4  ;;  %v8916_v1 = vpop.f32.mrf.mxu2  ;;  %v16318_v6 = vpop.f32.mrf.mxu1 }
 0xb1a   :  { %v8917_v33 = vadd.f32 %v8916_v1, %v8888_v7 }
 0xb1c   :  { %v8946_v34 = vadd.f32 %v8945_v32, %v8917_v33 }
 0xb1d   :  { %v9044_v38 = vpop.f32.mrf.mxu0 }
 0xb1f   :  { %v8969_v8 = vpop.f32.mrf.mxu3 }
 0xb20   :  { %v8970_v21 = vadd.f32 %v8969_v8, %v8941_v29  ;;  %v16320_v28 = vpop.f32.mrf.mxu1  ;;  %v9015_v14 = vpop.f32.mrf.mxu2 }
 0xb21   :  { %v9016_v62 = vadd.f32 %v9015_v14, %v16312_v46  ;;  %v16369_v46 = vld [vmem:[#allocation26] ss:$0 sm:$0xff] }
 0xb22   :  { %v9211_v59 = vpack.c.bf16 %v8970_v21, %v8968_v55 }
 0xb23   :  { %v9045_v23 = vadd.f32 %v9044_v38, %v9016_v62 }
 0xb24   :  { %9203 = vmatmul.bf16.gmra.mxu3 %v16255_v12 }
 0xb27   :  { %v8972_v42 = vpop.f32.mrf.mxu3 }
 0xb28   :  { %v8973_v48 = vadd.f32 %v8972_v42, %v8944_v51  ;;  %v16322_v12 = vpop.f32.mrf.mxu1  ;;  %v9017_v43 = vpop.f32.mrf.mxu2 }
 0xb29   :  { %v9018_v42 = vadd.f32 %v9017_v43, %v16318_v6 }
 0xb2f   :  { %v8974_v63 = vpop.f32.mrf.mxu3 }
 0xb30   :  { %v8975_v5 = vadd.f32 %v8974_v63, %v8946_v34  ;;  %v16325_v30 = vpop.f32.mrf.mxu1  ;;  %v9020_v60 = vpop.f32.mrf.mxu2 }
 0xb31   :  { %v9021_v34 = vadd.f32 %v9020_v60, %v16320_v28 }
 0xb32   :  { %v9212_v47 = vpack.c.bf16 %v8975_v5, %v8973_v48 }
 0xb34   :  { %9217 = vmatpush.bf16.msrb.mxu1 %v9212_v47 }
 0xb37   :  { %v9073_v40 = vpop.f32.mrf.mxu3 }
 0xb38   :  { %9218 = vmatpush.bf16.msrb.mxu1 %v9211_v59  ;;  %v16328_v41 = vpop.f32.mrf.mxu1  ;;  %v9022_v39 = vpop.f32.mrf.mxu2  ;;  %v9074_v15 = vadd.f32 %v9073_v40, %v9045_v23 }
 0xb39   :  { %v9023_v28 = vadd.f32 %v9022_v39, %v16322_v12 }
 0xb3c   :  { %9219 = vmatpush.bf16.msrb.mxu1 %v9210_v44 }
 0xb3f   :  { %v9075_v50 = vpop.f32.mrf.mxu3 }
 0xb40   :  { %9220 = vmatpush.bf16.msrb.mxu1 %v9209_v13  ;;  %v16330_v36 = vpop.f32.mrf.mxu1  ;;  %v9046_v13 = vpop.f32.mrf.mxu0 }
 0xb41   :  { %v9025_v27 = vpop.f32.mrf.mxu2  ;;  %v9047_v32 = vadd.f32 %v9046_v13, %v9018_v42 }
 0xb42   :  { %v9026_v23 = vadd.f32 %v9025_v27, %v16325_v30 }
 0xb43   :  { %12705 = vmatmul.msk.bf16.vlgmr.msrb.gmra.mxu1 %vm346_vm0, %v13614_v54  ;;  %v9076_v25 = vadd.f32 %v9075_v50, %v9047_v32 }
 0xb47   :  { %v9078_v45 = vpop.f32.mrf.mxu3 }
 0xb48   :  { %v16333_v61 = vpop.f32.mrf.mxu1  ;;  %v9049_v16 = vpop.f32.mrf.mxu0 }
 0xb49   :  { %v16340_v52 = vpop.f32.mrf.mxu2 }
 0xb4a   :  { %v9028_v30 = vadd.f32 %v16340_v52, %v16328_v41 }
 0xb4f   :  { %v9080_v9 = vpop.f32.mrf.mxu3 }
 0xb50   :  { %v9102_v35 = vpop.f32.mrf.mxu1  ;;  %v9051_v53 = vpop.f32.mrf.mxu0 }
 0xb51   :  { %v16346_v2 = vpop.f32.mrf.mxu2  ;;  %v9103_v0 = vadd.f32 %v9102_v35, %v9074_v15 }
 0xb52   :  { %v9031_v41 = vadd.f32 %v16346_v2, %v16330_v36 }
 0xb53   :  { %12706 = vmatmul.msk.bf16.gmra.mxu1 %vm346_vm0, %v13615_v58  ;;  %v9050_v58 = vadd.f32 %v9049_v16, %v9021_v34 }
 0xb55   :  { %v9079_v38 = vadd.f32 %v9078_v45, %v9050_v58 }
 0xb57   :  { %v16338_v26 = vpop.f32.mrf.mxu3 }
 0xb58   :  { %v9104_v49 = vpop.f32.mrf.mxu1  ;;  %v16336_v18 = vpop.f32.mrf.mxu0 }
 0xb59   :  { %v16354_v20 = vpop.f32.mrf.mxu2  ;;  %v9105_v48 = vadd.f32 %v9104_v49, %v9076_v25 }
 0xb5a   :  { %v9033_v36 = vadd.f32 %v16354_v20, %v16333_v61 }
 0xb5f   :  { %v16344_v19 = vpop.f32.mrf.mxu3 }
 0xb60   :  { %v9107_v10 = vpop.f32.mrf.mxu1  ;;  %v16342_v44 = vpop.f32.mrf.mxu0 }
 0xb61   :  { %v9131_v29 = vpop.f32.mrf.mxu2  ;;  %v9108_v13 = vadd.f32 %v9107_v10, %v9079_v38  ;;  %v9055_v10 = vadd.f32 %v16336_v18, %v9026_v23  ;;  %v9057_v25 = vadd.f32 %v16342_v44, %v9028_v30 }
 0xb62   :  { %v9132_v33 = vadd.f32 %v9131_v29, %v9103_v0 }
 0xb63   :  { %12707 = vmatmul.msk.bf16.gmra.mxu1 %vm346_vm0, %v13616_v57 }
 0xb67   :  { %v16352_v22 = vpop.f32.mrf.mxu3 }
 0xb68   :  { %v9109_v3 = vpop.f32.mrf.mxu1  ;;  %v16348_v31 = vpop.f32.mrf.mxu0 }
 0xb69   :  { %v9133_v59 = vpop.f32.mrf.mxu2 }
 0xb6a   :  { %v9134_v40 = vadd.f32 %v9133_v59, %v9105_v48 }
 0xb6f   :  { %v16360_v24 = vpop.f32.mrf.mxu3 }
 0xb70   :  { %v16350_v56 = vpop.f32.mrf.mxu1  ;;  %v16356_v11 = vpop.f32.mrf.mxu0 }
 0xb71   :  { %v9136_v63 = vpop.f32.mrf.mxu2 }
 0xb73   :  { %12708 = vmatmul.msk.bf16.gmra.mxu1 %vm346_vm0, %v13617_v17  ;;  %v9052_v17 = vadd.f32 %v9051_v53, %v9023_v28 }
 0xb75   :  { %v9081_v16 = vadd.f32 %v9080_v9, %v9052_v17 }
 0xb77   :  { %v9189_v21 = vpop.f32.mrf.mxu3  ;;  %v9110_v15 = vadd.f32 %v9109_v3, %v9081_v16 }
 0xb78   :  { %v16358_v37 = vpop.f32.mrf.mxu1  ;;  %v9160_v8 = vpop.f32.mrf.mxu0 }
 0xb79   :  { %v9161_v51 = vadd.f32 %v9160_v8, %v9132_v33  ;;  %v9138_v35 = vpop.f32.mrf.mxu2  ;;  %v9137_v8 = vadd.f32 %v9136_v63, %v9108_v13 }
 0xb7a   :  { %v9139_v9 = vadd.f32 %v9138_v35, %v9110_v15 }
 0xb7b   :  { %v9190_v5 = vadd.f32 %v9189_v21, %v9161_v51 }
 0xb7f   :  { %v9191_v1 = vpop.f32.mrf.mxu3 }
 0xb80   :  { %v16362_v55 = vpop.f32.mrf.mxu1  ;;  %v9162_v4 = vpop.f32.mrf.mxu0 }
 0xb81   :  { %v9163_v43 = vadd.f32 %v9162_v4, %v9134_v40  ;;  %v9141_v53 = vpop.f32.mrf.mxu2  ;;  %v9084_v4 = vadd.f32 %v16338_v26, %v9055_v10  ;;  %v9086_v26 = vadd.f32 %v16344_v19, %v9057_v25 }
 0xb83   :  { %v9192_v50 = vadd.f32 %v9191_v1, %v9163_v43  ;;  %v9113_v27 = vadd.f32 %v16350_v56, %v9084_v4  ;;  %v9115_v52 = vadd.f32 %v16358_v37, %v9086_v26 }
 0xb85   :  { %v9142_v51 = vadd.f32 %v9141_v53, %v9113_v27 }
 0xb87   :  { %v9194_v6 = vpop.f32.mrf.mxu3 }
 0xb88   :  { %v16366_v7 = vpop.f32.mrf.mxu1  ;;  %v9165_v47 = vpop.f32.mrf.mxu0 }
 0xb89   :  { %v9166_v62 = vadd.f32 %v9165_v47, %v9137_v8  ;;  %v9143_v63 = vpop.f32.mrf.mxu2 }
 0xb8b   :  { %v9195_v12 = vadd.f32 %v9194_v6, %v9166_v62 }
 0xb8f   :  { %v9196_v21 = vpop.f32.mrf.mxu3 }
 0xb90   :  { %v9167_v29 = vpop.f32.mrf.mxu0 }
 0xb91   :  { %v9168_v1 = vadd.f32 %v9167_v29, %v9139_v9  ;;  %v9146_v2 = vpop.f32.mrf.mxu2 }
 0xb93   :  { %v9197_v3 = vadd.f32 %v9196_v21, %v9168_v1 }
 0xb97   :  { %v9199_v32 = vpop.f32.mrf.mxu3 }
 0xb98   :  { %v9170_v0 = vpop.f32.mrf.mxu0 }
 0xb99   :  { %v9171_v48 = vadd.f32 %v9170_v0, %v9142_v51  ;;  %v9148_v29 = vpop.f32.mrf.mxu2 }
 0xb9b   :  { %v9200_v56 = vadd.f32 %v9199_v32, %v9171_v48 }
 0xb9f   :  { %v9201_v47 = vpop.f32.mrf.mxu3 }
 0xbc0   :  { %v9222_v54 = vpop.f32.mrf.mxu1 }
 0xbc1   :  { %v9223_v14 = vadd.f32 %v9222_v54, %v9190_v5  ;;  %v9172_v5 = vpop.f32.mrf.mxu0  ;;  %v9060_v54 = vadd.f32 %v16348_v31, %v9031_v41  ;;  %v9062_v31 = vadd.f32 %v16356_v11, %v9033_v36 }
 0xbc3   :  { %v16372_v57 = vadd.f32 %v16369_v46, %v9223_v14  ;;  %v9089_v58 = vadd.f32 %v16352_v22, %v9060_v54  ;;  %v9144_v14 = vadd.f32 %v9143_v63, %v9115_v52  ;;  %v9204_v22 = vpop.f32.mrf.mxu3 }
 0xbc5   :  { %9254 = vmax.xlane.f32.xlu0 %v16372_v57  ;;  %v9173_v38 = vadd.f32 %v9172_v5, %v9144_v14  ;;  %v9118_v37 = vadd.f32 %v16362_v55, %v9089_v58 }
 0xbc7   :  { %v9202_v40 = vadd.f32 %v9201_v47, %v9173_v38 }
 0xbc8   :  { %v9224_v60 = vpop.f32.mrf.mxu1 }
 0xbc9   :  { %v9225_v49 = vadd.f32 %v9224_v60, %v9192_v50  ;;  %v9175_v43 = vpop.f32.mrf.mxu0  ;;  %v9091_v50 = vadd.f32 %v16360_v24, %v9062_v31  ;;  %v9147_v60 = vadd.f32 %v9146_v2, %v9118_v37 }
 0xbcb   :  { %v16377_v45 = vadd.f32 %v16369_v46, %v9225_v49  ;;  %v9176_v17 = vadd.f32 %v9175_v43, %v9147_v60  ;;  %v9120_v61 = vadd.f32 %v16366_v7, %v9091_v50  ;;  %v9206_v21 = vpop.f32.mrf.mxu3 }
 0xbcd   :  { %9256 = vmax.xlane.f32.xlu0 %v16377_v45  ;;  %v9205_v20 = vadd.f32 %v9204_v22, %v9176_v17  ;;  %v9149_v8 = vadd.f32 %v9148_v29, %v9120_v61 }
 0xbd0   :  { %v9227_v39 = vpop.f32.mrf.mxu1 }
 0xbd1   :  { %v9228_v59 = vadd.f32 %v9227_v39, %v9195_v12  ;;  %v9177_v16 = vpop.f32.mrf.mxu0 }
 0xbd2   :  { %v9178_v24 = vadd.f32 %v9177_v16, %v9149_v8 }
 0xbd3   :  { %v16384_v42 = vadd.f32 %v16369_v46, %v9228_v59 }
 0xbd4   :  { %v9207_v62 = vadd.f32 %v9206_v21, %v9178_v24 }
 0xbd5   :  { %9258 = vmax.xlane.f32.xlu1 %v16384_v42 }
 0xbd8   :  { %v9229_v18 = vpop.f32.mrf.mxu1 }
 0xbd9   :  { %v9230_v33 = vadd.f32 %v9229_v18, %v9197_v3 }
 0xbdb   :  { %v16393_v34 = vadd.f32 %v16369_v46, %v9230_v33 }
 0xbdd   :  { %9260 = vmax.xlane.f32.xlu1 %v16393_v34 }
 0xbe0   :  { %v9232_v44 = vpop.f32.mrf.mxu1 }
 0xbe1   :  { %v9233_v19 = vadd.f32 %v9232_v44, %v9200_v56 }
 0xbe3   :  { %v16402_v6 = vadd.f32 %v16369_v46, %v9233_v19 }
 0xbe5   :  { %9262 = vmax.xlane.f32.xlu2 %v16402_v6 }
 0xbe8   :  { %v9234_v28 = vpop.f32.mrf.mxu1 }
 0xbe9   :  { %v9235_v13 = vadd.f32 %v9234_v28, %v9202_v40 }
 0xbeb   :  { %v16411_v35 = vadd.f32 %v16369_v46, %v9235_v13 }
 0xbed   :  { %9264 = vmax.xlane.f32.xlu2 %v16411_v35 }
 0xbf0   :  { %v9237_v55 = vpop.f32.mrf.mxu1 }
 0xbf1   :  { %v9238_v49 = vadd.f32 %v9237_v55, %v9205_v20 }
 0xbf3   :  { %v16416_v11 = vadd.f32 %v16369_v46, %v9238_v49 }
 0xbf5   :  { %9266 = vmax.xlane.f32.xlu0 %v16416_v11 }
 0xbf8   :  { %v9239_v23 = vpop.f32.mrf.mxu1 }
 0xbf9   :  { %v9240_v15 = vadd.f32 %v9239_v23, %v9207_v62 }
 0xbfb   :  { %v16420_v12 = vadd.f32 %v16369_v46, %v9240_v15 }
 0xbfd   :  { %9268 = vmax.xlane.f32.xlu1 %v16420_v12 }
 0xc38   :  { %v9255_v7 = vpop.xlane.xlu0 %9254 }
 0xc39   :  { %v9270_v39 = vsub.f32 %v16372_v57, %v9255_v7 }
 0xc3b   :  { %v9278_v10 = vmul.f32 1.442695, %v9270_v39 }
 0xc3d   :  { %13569 = vpow2.f32 %v9278_v10 }
 0xc40   :  { %v9257_v59 = vpop.xlane.xlu0 %9256 }
 0xc41   :  { %v9271_v53 = vsub.f32 %v16377_v45, %v9257_v59 }
 0xc43   :  { %v13570_v4 = vpop.eup %13569  ;;  %v9280_v9 = vmul.f32 1.442695, %v9271_v53 }
 0xc44   :  { %9294 = vadd.xlane.f32.xlu2 %v13570_v4 }
 0xc45   :  { %13571 = vpow2.f32 %v9280_v9 }
 0xc48   :  { %v9259_v0 = vpop.xlane.xlu1 %9258 }
 0xc49   :  { %v9272_v1 = vsub.f32 %v16384_v42, %v9259_v0 }
 0xc4b   :  { %v13572_v32 = vpop.eup %13571  ;;  %v9282_v46 = vmul.f32 1.442695, %v9272_v1 }
 0xc4c   :  { %9296 = vadd.xlane.f32.xlu0 %v13572_v32 }
 0xc4d   :  { %13573 = vpow2.f32 %v9282_v46 }
 0xc50   :  { %v9261_v30 = vpop.xlane.xlu1 %9260 }
 0xc51   :  { %v9273_v27 = vsub.f32 %v16393_v34, %v9261_v30 }
 0xc53   :  { %v13574_v3 = vpop.eup %13573  ;;  %v9284_v18 = vmul.f32 1.442695, %v9273_v27 }
 0xc54   :  { %9298 = vadd.xlane.f32.xlu1 %v13574_v3 }
 0xc55   :  { %13575 = vpow2.f32 %v9284_v18 }
 0xc58   :  { %v9263_v25 = vpop.xlane.xlu2 %9262 }
 0xc59   :  { %v9274_v33 = vsub.f32 %v16402_v6, %v9263_v25 }
 0xc5b   :  { %v13576_v26 = vpop.eup %13575  ;;  %v9286_v51 = vmul.f32 1.442695, %v9274_v33 }
 0xc5c   :  { %9300 = vadd.xlane.f32.xlu2 %v13576_v26 }
 0xc5d   :  { %13577 = vpow2.f32 %v9286_v51 }
 0xc60   :  { %v9265_v63 = vpop.xlane.xlu2 %9264 }
 0xc61   :  { %v9275_v48 = vsub.f32 %v16411_v35, %v9265_v63 }
 0xc63   :  { %v13578_v5 = vpop.eup %13577  ;;  %v9288_v41 = vmul.f32 1.442695, %v9275_v48 }
 0xc64   :  { %9302 = vadd.xlane.f32.xlu0 %v13578_v5 }
 0xc65   :  { %13579 = vpow2.f32 %v9288_v41 }
 0xc68   :  { %v9267_v52 = vpop.xlane.xlu0 %9266 }
 0xc69   :  { %v9276_v56 = vsub.f32 %v16416_v11, %v9267_v52 }
 0xc6b   :  { %v13580_v47 = vpop.eup %13579  ;;  %v9290_v44 = vmul.f32 1.442695, %v9276_v56 }
 0xc6c   :  { %9304 = vadd.xlane.f32.xlu1 %v13580_v47 }
 0xc6d   :  { %13581 = vpow2.f32 %v9290_v44 }
 0xc70   :  { %v16430_v54 = vpop.xlane.xlu1 %9268 }
 0xc71   :  { %v9277_v19 = vsub.f32 %v16420_v12, %v16430_v54 }
 0xc73   :  { %v13582_v58 = vpop.eup %13581  ;;  %v9292_v14 = vmul.f32 1.442695, %v9277_v19 }
 0xc74   :  { %9306 = vadd.xlane.f32.xlu2 %v13582_v58 }
 0xc75   :  { %13583 = vpow2.f32 %v9292_v14 }
 0xc7b   :  { %v13584_v38 = vpop.eup %13583 }
 0xc7c   :  { %9308 = vadd.xlane.f32.xlu0 %v13584_v38 }
 0xcb7   :  { %v9295_v36 = vpop.xlane.xlu2 %9294 }
 0xcb8   :  { %13585 = vlog2.f32 %v9295_v36 }
 0xcbe   :  { %v13586_v2 = vpop.eup %13585 }
 0xcbf   :  { %v9311_v37 = vmul.f32 0.6931472, %v13586_v2  ;;  %v9297_v40 = vpop.xlane.xlu0 %9296 }
 0xcc0   :  { %13587 = vlog2.f32 %v9297_v40 }
 0xcc1   :  { %v9326_v43 = vadd.f32 %v9311_v37, %v9255_v7 }
 0xcc3   :  { %v9334_v28 = vsub.f32 %v16372_v57, %v9326_v43 }
 0xcc5   :  { %9342 = vst [vmem:[#allocation28] sm:$0xff] %v9334_v28 }
 0xcc6   :  { %v13588_v31 = vpop.eup %13587 }
 0xcc7   :  { %v9313_v13 = vmul.f32 0.6931472, %v13588_v31  ;;  %v9299_v22 = vpop.xlane.xlu1 %9298 }
 0xcc8   :  { %13589 = vlog2.f32 %v9299_v22 }
 0xcc9   :  { %v9327_v50 = vadd.f32 %v9313_v13, %v9257_v59 }
 0xccb   :  { %v9335_v60 = vsub.f32 %v16377_v45, %v9327_v50 }
 0xccd   :  { %9343 = vst [vmem:[#allocation28 + $0x8] sm:$0xff] %v9335_v60 }
 0xcce   :  { %v13590_v17 = vpop.eup %13589 }
 0xccf   :  { %v9315_v61 = vmul.f32 0.6931472, %v13590_v17  ;;  %v9301_v20 = vpop.xlane.xlu2 %9300 }
 0xcd0   :  { %13591 = vlog2.f32 %v9301_v20 }
 0xcd1   :  { %v9328_v55 = vadd.f32 %v9315_v61, %v9259_v0 }
 0xcd3   :  { %v9336_v49 = vsub.f32 %v16384_v42, %v9328_v55 }
 0xcd5   :  { %9344 = vst [vmem:[#allocation28 + $0x10] sm:$0xff] %v9336_v49 }
 0xcd6   :  { %v13592_v29 = vpop.eup %13591 }
 0xcd7   :  { %v9317_v16 = vmul.f32 0.6931472, %v13592_v29  ;;  %v9303_v57 = vpop.xlane.xlu0 %9302 }
 0xcd8   :  { %13593 = vlog2.f32 %v9303_v57 }
 0xcd9   :  { %v9329_v8 = vadd.f32 %v9317_v16, %v9261_v30 }
 0xcdb   :  { %v9337_v21 = vsub.f32 %v16393_v34, %v9329_v8 }
 0xcdd   :  { %9345 = vst [vmem:[#allocation28 + $0x18] sm:$0xff] %v9337_v21 }
 0xcde   :  { %v13594_v24 = vpop.eup %13593 }
 0xcdf   :  { %v9319_v62 = vmul.f32 0.6931472, %v13594_v24  ;;  %v9305_v45 = vpop.xlane.xlu1 %9304 }
 0xce0   :  { %13595 = vlog2.f32 %v9305_v45 }
 0xce1   :  { %v9330_v23 = vadd.f32 %v9319_v62, %v9263_v25 }
 0xce3   :  { %v9338_v15 = vsub.f32 %v16402_v6, %v9330_v23 }
 0xce5   :  { %9346 = vst [vmem:[#allocation28 + $0x20] sm:$0xff] %v9338_v15 }
 0xce6   :  { %v13596_v7 = vpop.eup %13595 }
 0xce7   :  { %v9321_v39 = vmul.f32 0.6931472, %v13596_v7  ;;  %v9307_v42 = vpop.xlane.xlu2 %9306 }
 0xce8   :  { %13597 = vlog2.f32 %v9307_v42 }
 0xce9   :  { %v9331_v10 = vadd.f32 %v9321_v39, %v9265_v63 }
 0xceb   :  { %v9339_v59 = vsub.f32 %v16411_v35, %v9331_v10 }
 0xced   :  { %9347 = vst [vmem:[#allocation28 + $0x28] sm:$0xff] %v9339_v59 }
 0xcee   :  { %v13598_v53 = vpop.eup %13597 }
 0xcef   :  { %v9323_v4 = vmul.f32 0.6931472, %v13598_v53  ;;  %v9309_v34 = vpop.xlane.xlu0 %9308 }
 0xcf0   :  { %13599 = vlog2.f32 %v9309_v34 }
 0xcf1   :  { %v9332_v9 = vadd.f32 %v9323_v4, %v9267_v52 }
 0xcf3   :  { %v9340_v0 = vsub.f32 %v16416_v11, %v9332_v9 }
 0xcf5   :  { %9348 = vst [vmem:[#allocation28 + $0x30] sm:$0xff] %v9340_v0 }
 0xcf6   :  { %v13600_v1 = vpop.eup %13599 }
 0xcf7   :  { %v9325_v32 = vmul.f32 0.6931472, %v13600_v1 }
 0xcf9   :  { %v9333_v6 = vadd.f32 %v9325_v32, %v16430_v54 }
 0xcfb   :  { %v9341_v35 = vsub.f32 %v16420_v12, %v9333_v6 }
 0xcfd   :  { %9349 = vst [vmem:[#allocation28 + $0x38] sm:$0xff] %v9341_v35 }
 0xcfe   :  { %9362 = dma.vmem_to_hbm [thread:$0]  %s9355_s15, 1024, %s9357_s28, [#allocation4], %s14051_s26, %s14051_s26, %s14052_s27  }
 0xcff   :  { %14044 = dma.done.wait [#allocation4], 1024  }
 0xd00   :  { %14045 = vsyncadd [#allocation4], 4294966272 }
 0xd01   :  { %9367 = vsyncpa [#allocation3], 1 }
 0xd02   :  { %9368 = vsyncpa [#allocation6], 1 }
 0xd03   :  { %9369 = vsyncpa [#allocation9], 1 }
 0xd04   :  { %9370 = vsyncpa [#allocation12], 1 }
 0xd05   :  { %9371 = vsyncpa [#allocation15], 1 }
 0xd06   :  { %9372 = vsyncpa [#allocation18], 1 }
 0xd07   :  { %9373 = vsyncpa [#allocation21], 1 }
 0xd08   :  { %9374 = vsyncpa [#allocation24], 1 }
 0xd09   :  { %9375 = vsyncpa [#allocation27], 1 }
 0xd0a   :  { %9376 = vsyncpa [#allocation4], 1 }

</bundles_post_ra>
